<compile_context>
chip_gen: v5e
topology: v5e:2x2
jax: 0.10.0
libtpu: 0.0.40
codegen_flags: <defaults>
</compile_context>

<pallas_src>
import functools

import jax
import jax.numpy as jnp
from jax import lax
from jax.experimental import pallas as pl
from jax.experimental.pallas import tpu as pltpu

CAPACITY = 64
LATENT_DIMS = 10

LANE = 128      # lane width: pad N of every GEMM output to a multiple of this
M_ALIGN = 16    # sublane alignment for bf16-packed operand rows
TILE_M = 512    # M tile cap (~3 MiB/step working set -> fits v7x VMEM limits)


def _round_up(x, m):
    return (x + m - 1) // m * m


# ---------------------------------------------------------------------------
# Pallas kernel 1: fused (batched) GEMM + bias + activation
# ---------------------------------------------------------------------------
def _gemm_bias_act_kernel(a_ref, b_ref, bias_ref, o_ref, *, activation):
    acc = jnp.dot(a_ref[...], b_ref[...], preferred_element_type=jnp.float32)
    acc = acc + bias_ref[...]                       # (1, N) broadcasts
    if activation == "relu":
        acc = jnp.maximum(acc, 0.0)
    elif activation == "tanh":
        acc = jnp.tanh(acc)
    o_ref[...] = acc.astype(o_ref.dtype)


def gemm_bias_act_pallas(a, b, bias, activation=None, out_dtype=jnp.bfloat16,
                         tile_m=TILE_M):
    """a: (G, M, K), b: (G, K, N), bias: (1, N) -> (G, M, N) in `out_dtype`.

    Operands are cast to bf16 for the MXU; accumulation, bias and activation
    stay in f32; the store is in `out_dtype` (bf16 for intermediates, f32 for
    the final tanh layer).  M is tiled over the grid; N is padded to a
    multiple of 128 for lane-dense stores and sliced afterwards.  K is never
    tiled (full-dim block), so non-multiple-of-128 K is fine.
    """
    G, M, K = a.shape
    G2, K2, N = b.shape
    assert G == G2 and K == K2

    N_pad = _round_up(N, LANE)
    tm = min(tile_m, _round_up(M, M_ALIGN))
    # Megacore / v7x: make sure there are >= 2 grid cells on "parallel" axes.
    if G * (-(-M // tm)) < 2 and M > M_ALIGN:
        tm = _round_up(-(-M // 2), M_ALIGN)
    M_pad = _round_up(M, tm)

    a_p = a.astype(jnp.bfloat16)
    if M_pad != M:
        a_p = jnp.pad(a_p, ((0, 0), (0, M_pad - M), (0, 0)))
    b_p = b.astype(jnp.bfloat16)
    bias_p = bias.astype(jnp.float32).reshape(1, N)
    if N_pad != N:
        b_p = jnp.pad(b_p, ((0, 0), (0, 0), (0, N_pad - N)))
        bias_p = jnp.pad(bias_p, ((0, 0), (0, N_pad - N)))

    grid = (G, M_pad // tm)
    kernel = functools.partial(_gemm_bias_act_kernel, activation=activation)
    out_bytes = jnp.dtype(out_dtype).itemsize
    flops = 2 * G * M_pad * N_pad * K
    transcendentals = G * M_pad * N_pad if activation == "tanh" else 0
    bytes_accessed = (2 * G * M_pad * K + 2 * G * K * N_pad
                      + out_bytes * G * M_pad * N_pad + 4 * N_pad)

    out = pl.pallas_call(
        kernel,
        out_shape=jax.ShapeDtypeStruct((G, M_pad, N_pad), out_dtype),
        grid=grid,
        in_specs=[
            pl.BlockSpec((None, tm, K), lambda g, i: (g, i, 0)),
            pl.BlockSpec((None, K, N_pad), lambda g, i: (g, 0, 0)),
            pl.BlockSpec((1, N_pad), lambda g, i: (0, 0)),
        ],
        out_specs=pl.BlockSpec((None, tm, N_pad), lambda g, i: (g, i, 0)),
        compiler_params=pltpu.CompilerParams(
            dimension_semantics=("parallel", "parallel")),
        cost_estimate=pl.CostEstimate(
            flops=flops, transcendentals=transcendentals,
            bytes_accessed=bytes_accessed),
    )(a_p, b_p, bias_p)
    return out[:, :M, :N]


# ---------------------------------------------------------------------------
# Pallas kernel 2: fused encoder-fc -> latent -> decoder-fc (single grid step)
# (latent (B, 10) lives only in VMEM/registers; encoder matmul runs once)
# ---------------------------------------------------------------------------
def _fc_pair_kernel(h_ref, we_ref, be_ref, wd_ref, bd_ref, o_ref):
    latent = jnp.dot(h_ref[...], we_ref[...],
                     preferred_element_type=jnp.float32) + be_ref[...]
    out = jnp.dot(latent.astype(jnp.bfloat16), wd_ref[...],
                  preferred_element_type=jnp.float32) + bd_ref[...]
    o_ref[...] = out.astype(o_ref.dtype)


def fc_pair_pallas(h, we, be, wd, bd, out_dtype=jnp.bfloat16):
    """h: (B, K1); we: (K1, N1); be: (N1,); wd: (N1, N2); bd: (N2,) -> (B, N2).

    Everything (h, both weights, output) is < ~1 MiB total, so this runs as a
    single grid step: no redundant encoder matmul, no N2 padding (6272 is a
    multiple of 128 already), no per-step overhead.
    """
    B, K1 = h.shape
    K1b, N1 = we.shape
    N1b, N2 = wd.shape
    assert K1 == K1b and N1 == N1b

    Bp = _round_up(B, M_ALIGN)
    N2p = _round_up(N2, LANE)

    h_p = h.astype(jnp.bfloat16)
    if Bp != B:
        h_p = jnp.pad(h_p, ((0, Bp - B), (0, 0)))
    wd_p = wd.astype(jnp.bfloat16)
    bd_p = bd.astype(jnp.float32).reshape(1, N2)
    if N2p != N2:
        wd_p = jnp.pad(wd_p, ((0, 0), (0, N2p - N2)))
        bd_p = jnp.pad(bd_p, ((0, 0), (0, N2p - N2)))

    out = pl.pallas_call(
        _fc_pair_kernel,
        out_shape=jax.ShapeDtypeStruct((Bp, N2p), out_dtype),
        grid=(1,),
        in_specs=[
            pl.BlockSpec((Bp, K1), lambda i: (0, 0)),
            pl.BlockSpec((K1, N1), lambda i: (0, 0)),
            pl.BlockSpec((1, N1), lambda i: (0, 0)),
            pl.BlockSpec((N1, N2p), lambda i: (0, 0)),
            pl.BlockSpec((1, N2p), lambda i: (0, 0)),
        ],
        out_specs=pl.BlockSpec((Bp, N2p), lambda i: (0, 0)),
        compiler_params=pltpu.CompilerParams(
            dimension_semantics=("arbitrary",)),
    )(h_p, we.astype(jnp.bfloat16), be.astype(jnp.float32).reshape(1, N1),
      wd_p, bd_p)
    return out[:B, :N2]


# ---------------------------------------------------------------------------
# Pure-JAX reference backends (same glue, jnp GEMMs)
# ---------------------------------------------------------------------------
def gemm_bias_act_ref(a, b, bias, activation=None, out_dtype=jnp.float32,
                      use_bf16=True):
    if use_bf16:
        acc = jnp.einsum("gmk,gkn->gmn", a.astype(jnp.bfloat16),
                         b.astype(jnp.bfloat16),
                         preferred_element_type=jnp.float32)
    else:
        acc = jnp.einsum("gmk,gkn->gmn", a, b,
                         precision=lax.Precision.HIGHEST)
    acc = acc + bias.reshape(1, 1, -1)
    if activation == "relu":
        acc = jnp.maximum(acc, 0.0)
    elif activation == "tanh":
        acc = jnp.tanh(acc)
    return acc.astype(out_dtype)


def fc_pair_ref(h, we, be, wd, bd, out_dtype=jnp.float32, use_bf16=True):
    if use_bf16:
        lat = jnp.dot(h.astype(jnp.bfloat16), we.astype(jnp.bfloat16),
                      preferred_element_type=jnp.float32) + be
        out = jnp.dot(lat.astype(jnp.bfloat16), wd.astype(jnp.bfloat16),
                      preferred_element_type=jnp.float32) + bd
    else:
        lat = jnp.dot(h, we, precision=lax.Precision.HIGHEST) + be
        out = jnp.dot(lat, wd, precision=lax.Precision.HIGHEST) + bd
    return out.astype(out_dtype)


# ---------------------------------------------------------------------------
# JAX glue: NHWC im2col lowering of conv / conv-transpose to (batched) GEMM
# ---------------------------------------------------------------------------
def _im2col_nhwc(x, kh, kw, stride, pads):
    """x: (B,H,W,C) (already bf16 on the fast path); pads=(top,bot,left,right)
    -> (B*Ho*Wo, kh*kw*C) with column ordering (i, j, c), plus Ho, Wo."""
    B, H, W, C = x.shape
    pt, pb, pleft, pright = pads
    xp = jnp.pad(x, ((0, 0), (pt, pb), (pleft, pright), (0, 0)))
    Ho = (H + pt + pb - kh) // stride + 1
    Wo = (W + pleft + pright - kw) // stride + 1
    patches = []
    for i in range(kh):
        for j in range(kw):
            patches.append(
                xp[:, i:i + stride * Ho:stride, j:j + stride * Wo:stride, :])
    p = jnp.stack(patches, axis=3)                 # (B, Ho, Wo, kh*kw, C)
    return p.reshape(B * Ho * Wo, kh * kw * C), Ho, Wo


def conv2d(x, w, b, stride, padding, activation, backend,
           out_dtype=jnp.bfloat16):
    """x: (B,H,W,Cin) NHWC; w: (Cout,Cin,kh,kw); b: (Cout,)  [PyTorch Conv2d].
    Returns NHWC (B,Ho,Wo,Cout) -- no activation transpose needed."""
    B = x.shape[0]
    Cout, Cin, kh, kw = w.shape
    cols, Ho, Wo = _im2col_nhwc(x, kh, kw, stride, (padding,) * 4)
    wmat = w.transpose(2, 3, 1, 0).reshape(kh * kw * Cin, Cout)   # (K, N), (i,j,c) rows
    out = backend["gemm"](cols[None], wmat[None], b.reshape(1, Cout),
                          activation, out_dtype)[0]
    return out.reshape(B, Ho, Wo, Cout)


# Sub-pixel decomposition of ConvTranspose2d(k=4, s=2, p=1):
# output row y = 2m + a gets contributions (h=m, i=1),(h=m-1, i=3) for a=0 and
# (h=m, i=2),(h=m+1, i=0) for a=1 -> per parity a 2-tap stride-1 conv.
_TCONV_TAPS = ((3, 1), (2, 0))   # kernel indices in window-offset order
_TCONV_PADS = ((1, 0), (0, 1))   # (before, after) input padding per parity


def conv_transpose2d(x, w, b, activation, backend, out_dtype=jnp.bfloat16):
    """x: (B,H,W,Cin) NHWC; w: (Cin,Cout,4,4); b: (Cout,)  [ConvTranspose2d s=2,p=1].
    Decomposed into 4 output-parity 2x2 sub-convs batched into one GEMM call
    (no zero-dilation -> 4x fewer MACs and 4x smaller A operand)."""
    Cin, Cout, kh, kw = w.shape
    assert (kh, kw) == (4, 4)
    B, H, W, C = x.shape
    assert C == Cin

    cols_list, wmat_list = [], []
    for a in range(2):
        for bp in range(2):
            pt, pb = _TCONV_PADS[a]
            pleft, pright = _TCONV_PADS[bp]
            cols, Ho, Wo = _im2col_nhwc(x, 2, 2, 1, (pt, pb, pleft, pright))
            ri = jnp.array(_TCONV_TAPS[a])
            ci = jnp.array(_TCONV_TAPS[bp])
            w_sub = w[:, :, ri, :][:, :, :, ci]                # (Cin,Cout,2,2)
            wmat_list.append(
                w_sub.transpose(2, 3, 0, 1).reshape(Cin * 4, Cout))  # (p,q,c) rows
            cols_list.append(cols)
    a_stack = jnp.stack(cols_list)                             # (4, B*H*W, Cin*4)
    w_stack = jnp.stack(wmat_list)                             # (4, Cin*4, Cout)
    out = backend["gemm"](a_stack, w_stack, b.reshape(1, Cout), activation,
                          out_dtype)
    out = out.reshape(2, 2, B, H, W, Cout)                     # (a, b, B, H, W, C)
    out = out.transpose(2, 3, 0, 4, 1, 5)                      # (B, H, a, W, b, C)
    return out.reshape(B, 2 * H, 2 * W, Cout)


# ---------------------------------------------------------------------------
# Autoencoder forward (NHWC internally; NCHW at the module boundary)
# ---------------------------------------------------------------------------
def autoencoder_forward(params, x, backend, compute_dtype=jnp.bfloat16):
    c = CAPACITY
    B = x.shape[0]
    x = x.transpose(0, 2, 3, 1).astype(compute_dtype)          # NCHW -> NHWC
    # --- Encoder ---
    h = conv2d(x, params["e_conv1_w"], params["e_conv1_b"], stride=2, padding=1,
               activation="relu", backend=backend, out_dtype=compute_dtype)   # (B,14,14,64)
    h = conv2d(h, params["e_conv2_w"], params["e_conv2_b"], stride=2, padding=1,
               activation="relu", backend=backend, out_dtype=compute_dtype)   # (B,7,7,128)
    h = h.reshape(B, -1)                                        # (B,6272), (h,w,c) order
    # Permute fc weights from PyTorch's (c,h,w) flattening to NHWC's (h,w,c)
    # (weight-side, tiny; avoids transposing the activations).
    we = (params["e_fc_w"].reshape(LATENT_DIMS, c * 2, 7, 7)
          .transpose(0, 2, 3, 1).reshape(LATENT_DIMS, -1).T)     # (6272, 10)
    wd = (params["d_fc_w"].T.reshape(LATENT_DIMS, c * 2, 7, 7)
          .transpose(0, 2, 3, 1).reshape(LATENT_DIMS, -1))       # (10, 6272)
    bd = params["d_fc_b"].reshape(c * 2, 7, 7).transpose(1, 2, 0).reshape(-1)
    # --- encoder fc + decoder fc fused (latent never hits HBM) ---
    d = backend["fc_pair"](h, we, params["e_fc_b"], wd, bd, compute_dtype)     # (B,6272)
    # --- Decoder ---
    d = d.reshape(B, 7, 7, c * 2)                               # NHWC
    d = conv_transpose2d(d, params["d_conv2_w"], params["d_conv2_b"],
                         activation="relu", backend=backend,
                         out_dtype=compute_dtype)               # (B,14,14,64)
    d = conv_transpose2d(d, params["d_conv1_w"], params["d_conv1_b"],
                         activation="tanh", backend=backend,
                         out_dtype=jnp.float32)                 # (B,28,28,1) f32
    return d.transpose(0, 3, 1, 2)                              # NHWC -> NCHW


# ---------------------------------------------------------------------------
# Independent f32 reference: XLA convolutions (no im2col / parity glue)
# ---------------------------------------------------------------------------
def lax_reference_forward(params, x):
    c = CAPACITY
    B = x.shape[0]
    dn = ("NCHW", "OIHW", "NCHW")
    hp = lax.Precision.HIGHEST

    def conv(x, w, b, stride, padding):
        y = lax.conv_general_dilated(
            x, w, (stride, stride), ((padding, padding), (padding, padding)),
            dimension_numbers=dn, precision=hp)
        return y + b.reshape(1, -1, 1, 1)

    def tconv(x, w, b, stride, padding):
        k = w.shape[2]
        w_t = jnp.flip(w, (2, 3)).transpose(1, 0, 2, 3)     # (Cout,Cin,kh,kw)
        pad = k - 1 - padding
        y = lax.conv_general_dilated(
            x, w_t, (1, 1), ((pad, pad), (pad, pad)),
            lhs_dilation=(stride, stride), dimension_numbers=dn, precision=hp)
        return y + b.reshape(1, -1, 1, 1)

    h = jnp.maximum(conv(x, params["e_conv1_w"], params["e_conv1_b"], 2, 1), 0.0)
    h = jnp.maximum(conv(h, params["e_conv2_w"], params["e_conv2_b"], 2, 1), 0.0)
    h = h.reshape(B, -1)
    latent = jnp.dot(h, params["e_fc_w"].T, precision=hp) + params["e_fc_b"]
    d = jnp.dot(latent, params["d_fc_w"].T, precision=hp) + params["d_fc_b"]
    d = d.reshape(B, c * 2, 7, 7)
    d = jnp.maximum(tconv(d, params["d_conv2_w"], params["d_conv2_b"], 2, 1), 0.0)
    d = jnp.tanh(tconv(d, params["d_conv1_w"], params["d_conv1_b"], 2, 1))
    return d


# ---------------------------------------------------------------------------
# Deterministic parameter init (PyTorch-style uniform(-1/sqrt(fan_in), ...))
# ---------------------------------------------------------------------------
def init_params(key):
    c = CAPACITY

    def uni(key, shape, fan_in):
        bound = 1.0 / jnp.sqrt(float(fan_in))
        return jax.random.uniform(key, shape, jnp.float32, -bound, bound)

    keys = jax.random.split(key, 12)
    return {
        # Encoder
        "e_conv1_w": uni(keys[0], (c, 1, 4, 4), 1 * 4 * 4),
        "e_conv1_b": uni(keys[1], (c,), 1 * 4 * 4),
        "e_conv2_w": uni(keys[2], (c * 2, c, 4, 4), c * 4 * 4),
        "e_conv2_b": uni(keys[3], (c * 2,), c * 4 * 4),
        "e_fc_w":    uni(keys[4], (LATENT_DIMS, c * 2 * 7 * 7), c * 2 * 7 * 7),
        "e_fc_b":    uni(keys[5], (LATENT_DIMS,), c * 2 * 7 * 7),
        # Decoder
        "d_fc_w":    uni(keys[6], (c * 2 * 7 * 7, LATENT_DIMS), LATENT_DIMS),
        "d_fc_b":    uni(keys[7], (c * 2 * 7 * 7,), LATENT_DIMS),
        "d_conv2_w": uni(keys[8], (c * 2, c, 4, 4), c * 2 * 4 * 4),
        "d_conv2_b": uni(keys[9], (c,), c * 2 * 4 * 4),
        "d_conv1_w": uni(keys[10], (c, 1, 4, 4), c * 4 * 4),
        "d_conv1_b": uni(keys[11], (1,), c * 4 * 4),
    }


if __name__ == "__main__":
    key = jax.random.PRNGKey(0)
    pkey, xkey = jax.random.split(key)
    params = init_params(pkey)

    # MNIST-like input: (batch=2, channels=1, 28, 28) — 28 is forced by the
    # hard-coded 7*7 bottleneck in the module.
    x = jax.random.normal(xkey, (2, 1, 28, 28), dtype=jnp.float32)

    pallas_backend = {"gemm": gemm_bias_act_pallas,
                      "fc_pair": fc_pair_pallas}
    ref_bf16_backend = {"gemm": functools.partial(gemm_bias_act_ref, use_bf16=True),
                        "fc_pair": functools.partial(fc_pair_ref, use_bf16=True)}
    ref_f32_backend = {"gemm": functools.partial(gemm_bias_act_ref, use_bf16=False),
                       "fc_pair": functools.partial(fc_pair_ref, use_bf16=False)}

    fwd_pallas = jax.jit(functools.partial(
        autoencoder_forward, backend=pallas_backend, compute_dtype=jnp.bfloat16))
    fwd_ref_bf16 = jax.jit(functools.partial(
        autoencoder_forward, backend=ref_bf16_backend, compute_dtype=jnp.bfloat16))
    fwd_ref_f32 = jax.jit(functools.partial(
        autoencoder_forward, backend=ref_f32_backend, compute_dtype=jnp.float32))
    fwd_lax = jax.jit(lax_reference_forward)

    out = jax.block_until_ready(fwd_pallas(params, x))
    ref_bf16 = jax.block_until_ready(fwd_ref_bf16(params, x))
    ref_f32 = jax.block_until_ready(fwd_ref_f32(params, x))
    lax_ref = jax.block_until_ready(fwd_lax(params, x))

    assert out.shape == (2, 1, 28, 28), out.shape
    assert out.dtype == jnp.float32, out.dtype
    # (A) NHWC im2col / parity-decomposition / fc-weight-permutation glue
    #     matches an independent XLA-conv reference in full f32.
    err_a = float(jnp.max(jnp.abs(ref_f32 - lax_ref)))
    assert err_a < 1e-4, f"glue mismatch vs lax conv reference: {err_a}"
    # (B) Pallas kernels match the same-math (bf16-GEMM, bf16-intermediate)
    #     pure-JAX reference.
    err_b = float(jnp.max(jnp.abs(out - ref_bf16)))
    assert err_b < 5e-3, f"pallas vs bf16 reference mismatch: {err_b}"
    # (C) bf16 MXU path stays close to the f32 model output (tanh-bounded).
    err_c = float(jnp.max(jnp.abs(out - ref_f32)))
    assert err_c < 5e-2, f"bf16 drift vs f32 model: {err_c}"
    print("KERNEL_OK")
</pallas_src>

<mosaic_0001>
module attributes {stable_mosaic.version = 11 : i64} {
  func.func @_gemm_bias_act_kernel(%arg0: i32, %arg1: i32, %arg2: memref<1x208x16xbf16, #tpu.memory_space<vmem>>, %arg3: memref<1x16x128xbf16, #tpu.memory_space<vmem>>, %arg4: memref<1x128xf32, #tpu.memory_space<vmem>>, %arg5: memref<1x208x128xbf16, #tpu.memory_space<vmem>>) attributes {dimension_semantics = [#tpu.dimension_semantics<parallel>, #tpu.dimension_semantics<parallel>], iteration_bounds = array<i64: 1, 2>, scalar_prefetch = 0 : i64, scratch_operands = 0 : i64, tpu.core_type = #tpu.core_type<tc>, window_params = [{transform_indices = @transform_0, window_bounds = array<i64: 1, 208, 16>}, {transform_indices = @transform_1, window_bounds = array<i64: 1, 16, 128>}, {pipeline_mode = #tpu.pipeline_mode<synchronous>, transform_indices = @transform_2, window_bounds = array<i64: 1, 128>}, {transform_indices = @transform_3, window_bounds = array<i64: 1, 208, 128>}]} {
    %c0 = arith.constant 0 : index
    %c0_0 = arith.constant 0 : index
    %c0_1 = arith.constant 0 : index
    %0 = vector.load %arg2[%c0, %c0_0, %c0_1] : memref<1x208x16xbf16, #tpu.memory_space<vmem>>, vector<1x208x16xbf16>
    %1 = vector.shape_cast %0 : vector<1x208x16xbf16> to vector<208x16xbf16>
    %c0_2 = arith.constant 0 : index
    %c0_3 = arith.constant 0 : index
    %c0_4 = arith.constant 0 : index
    %2 = vector.load %arg3[%c0_2, %c0_3, %c0_4] : memref<1x16x128xbf16, #tpu.memory_space<vmem>>, vector<1x16x128xbf16>
    %3 = vector.shape_cast %2 : vector<1x16x128xbf16> to vector<16x128xbf16>
    %cst = arith.constant dense<0.000000e+00> : vector<208x128xf32>
    %4 = tpu.matmul %1, %3, %cst {dimension_numbers = #tpu.dot_dimension_numbers<[1], [0], [0], [1], [0, 0, 1, 1], [], []>} : vector<208x16xbf16>, vector<16x128xbf16>, vector<208x128xf32> -> vector<208x128xf32>
    %c0_5 = arith.constant 0 : index
    %c0_6 = arith.constant 0 : index
    %5 = vector.load %arg4[%c0_5, %c0_6] : memref<1x128xf32, #tpu.memory_space<vmem>>, vector<1x128xf32>
    %6 = vector.broadcast %5 : vector<1x128xf32> to vector<208x128xf32>
    %7 = arith.addf %4, %6 : vector<208x128xf32>
    %cst_7 = arith.constant 0.000000e+00 : f32
    %8 = vector.broadcast %cst_7 : f32 to vector<208x128xf32>
    %9 = arith.maximumf %7, %8 : vector<208x128xf32>
    %10 = arith.truncf %9 : vector<208x128xf32> to vector<208x128xbf16>
    %c0_8 = arith.constant 0 : index
    %c0_9 = arith.constant 0 : index
    %c0_10 = arith.constant 0 : index
    %11 = vector.load %arg5[%c0_8, %c0_9, %c0_10] : memref<1x208x128xbf16, #tpu.memory_space<vmem>>, vector<1x208x128xbf16>
    %12 = vector.shape_cast %11 : vector<1x208x128xbf16> to vector<208x128xbf16>
    %13 = vector.shape_cast %10 : vector<208x128xbf16> to vector<1x208x128xbf16>
    tpu.vector_store %arg5[%c0_8, %c0_9, %c0_10], %13 {strides = array<i32>} : memref<1x208x128xbf16, #tpu.memory_space<vmem>>, vector<1x208x128xbf16>,
    return
  }
  func.func @transform_0(%arg0: i32, %arg1: i32) -> (i32, i32, i32) {
    %c0_i32 = arith.constant 0 : i32
    %c0_i32_0 = arith.constant 0 : i32
    return %arg0, %arg1, %c0_i32 : i32, i32, i32
  }
  func.func @transform_1(%arg0: i32, %arg1: i32) -> (i32, i32, i32) {
    %c0_i32 = arith.constant 0 : i32
    %c0_i32_0 = arith.constant 0 : i32
    %c0_i32_1 = arith.constant 0 : i32
    return %arg0, %c0_i32, %c0_i32_0 : i32, i32, i32
  }
  func.func @transform_2(%arg0: i32, %arg1: i32) -> (i32, i32) {
    %c0_i32 = arith.constant 0 : i32
    %c0_i32_0 = arith.constant 0 : i32
    %c0_i32_1 = arith.constant 0 : i32
    return %c0_i32, %c0_i32_0 : i32, i32
  }
  func.func @transform_3(%arg0: i32, %arg1: i32) -> (i32, i32, i32) {
    %c0_i32 = arith.constant 0 : i32
    %c0_i32_0 = arith.constant 0 : i32
    return %arg0, %arg1, %c0_i32 : i32, i32, i32
  }
}

module attributes {stable_mosaic.version = 11 : i64} {
  func.func @_gemm_bias_act_kernel(%arg0: i32, %arg1: i32, %arg2: memref<1x64x1024xbf16, #tpu.memory_space<vmem>>, %arg3: memref<1x1024x128xbf16, #tpu.memory_space<vmem>>, %arg4: memref<1x128xf32, #tpu.memory_space<vmem>>, %arg5: memref<1x64x128xbf16, #tpu.memory_space<vmem>>) attributes {dimension_semantics = [#tpu.dimension_semantics<parallel>, #tpu.dimension_semantics<parallel>], iteration_bounds = array<i64: 1, 2>, scalar_prefetch = 0 : i64, scratch_operands = 0 : i64, tpu.core_type = #tpu.core_type<tc>, window_params = [{transform_indices = @transform_0, window_bounds = array<i64: 1, 64, 1024>}, {transform_indices = @transform_1, window_bounds = array<i64: 1, 1024, 128>}, {pipeline_mode = #tpu.pipeline_mode<synchronous>, transform_indices = @transform_2, window_bounds = array<i64: 1, 128>}, {transform_indices = @transform_3, window_bounds = array<i64: 1, 64, 128>}]} {
    %c0 = arith.constant 0 : index
    %c0_0 = arith.constant 0 : index
    %c0_1 = arith.constant 0 : index
    %0 = vector.load %arg2[%c0, %c0_0, %c0_1] : memref<1x64x1024xbf16, #tpu.memory_space<vmem>>, vector<1x64x1024xbf16>
    %1 = vector.shape_cast %0 : vector<1x64x1024xbf16> to vector<64x1024xbf16>
    %c0_2 = arith.constant 0 : index
    %c0_3 = arith.constant 0 : index
    %c0_4 = arith.constant 0 : index
    %2 = vector.load %arg3[%c0_2, %c0_3, %c0_4] : memref<1x1024x128xbf16, #tpu.memory_space<vmem>>, vector<1x1024x128xbf16>
    %3 = vector.shape_cast %2 : vector<1x1024x128xbf16> to vector<1024x128xbf16>
    %cst = arith.constant dense<0.000000e+00> : vector<64x128xf32>
    %4 = tpu.matmul %1, %3, %cst {dimension_numbers = #tpu.dot_dimension_numbers<[1], [0], [0], [1], [0, 0, 1, 1], [], []>} : vector<64x1024xbf16>, vector<1024x128xbf16>, vector<64x128xf32> -> vector<64x128xf32>
    %c0_5 = arith.constant 0 : index
    %c0_6 = arith.constant 0 : index
    %5 = vector.load %arg4[%c0_5, %c0_6] : memref<1x128xf32, #tpu.memory_space<vmem>>, vector<1x128xf32>
    %6 = vector.broadcast %5 : vector<1x128xf32> to vector<64x128xf32>
    %7 = arith.addf %4, %6 : vector<64x128xf32>
    %cst_7 = arith.constant 0.000000e+00 : f32
    %8 = vector.broadcast %cst_7 : f32 to vector<64x128xf32>
    %9 = arith.maximumf %7, %8 : vector<64x128xf32>
    %10 = arith.truncf %9 : vector<64x128xf32> to vector<64x128xbf16>
    %c0_8 = arith.constant 0 : index
    %c0_9 = arith.constant 0 : index
    %c0_10 = arith.constant 0 : index
    %11 = vector.load %arg5[%c0_8, %c0_9, %c0_10] : memref<1x64x128xbf16, #tpu.memory_space<vmem>>, vector<1x64x128xbf16>
    %12 = vector.shape_cast %11 : vector<1x64x128xbf16> to vector<64x128xbf16>
    %13 = vector.shape_cast %10 : vector<64x128xbf16> to vector<1x64x128xbf16>
    tpu.vector_store %arg5[%c0_8, %c0_9, %c0_10], %13 {strides = array<i32>} : memref<1x64x128xbf16, #tpu.memory_space<vmem>>, vector<1x64x128xbf16>,
    return
  }
  func.func @transform_0(%arg0: i32, %arg1: i32) -> (i32, i32, i32) {
    %c0_i32 = arith.constant 0 : i32
    %c0_i32_0 = arith.constant 0 : i32
    return %arg0, %arg1, %c0_i32 : i32, i32, i32
  }
  func.func @transform_1(%arg0: i32, %arg1: i32) -> (i32, i32, i32) {
    %c0_i32 = arith.constant 0 : i32
    %c0_i32_0 = arith.constant 0 : i32
    %c0_i32_1 = arith.constant 0 : i32
    return %arg0, %c0_i32, %c0_i32_0 : i32, i32, i32
  }
  func.func @transform_2(%arg0: i32, %arg1: i32) -> (i32, i32) {
    %c0_i32 = arith.constant 0 : i32
    %c0_i32_0 = arith.constant 0 : i32
    %c0_i32_1 = arith.constant 0 : i32
    return %c0_i32, %c0_i32_0 : i32, i32
  }
  func.func @transform_3(%arg0: i32, %arg1: i32) -> (i32, i32, i32) {
    %c0_i32 = arith.constant 0 : i32
    %c0_i32_0 = arith.constant 0 : i32
    return %arg0, %arg1, %c0_i32 : i32, i32, i32
  }
}

module attributes {stable_mosaic.version = 11 : i64} {
  func.func @_fc_pair_kernel(%arg0: i32, %arg1: memref<16x6272xbf16, #tpu.memory_space<vmem>>, %arg2: memref<6272x10xbf16, #tpu.memory_space<vmem>>, %arg3: memref<1x10xf32, #tpu.memory_space<vmem>>, %arg4: memref<10x6272xbf16, #tpu.memory_space<vmem>>, %arg5: memref<1x6272xf32, #tpu.memory_space<vmem>>, %arg6: memref<16x6272xbf16, #tpu.memory_space<vmem>>) attributes {dimension_semantics = [#tpu.dimension_semantics<arbitrary>], iteration_bounds = array<i64: 1>, scalar_prefetch = 0 : i64, scratch_operands = 0 : i64, tpu.core_type = #tpu.core_type<tc>, window_params = [{pipeline_mode = #tpu.pipeline_mode<synchronous>, transform_indices = @transform_0, window_bounds = array<i64: 16, 6272>}, {pipeline_mode = #tpu.pipeline_mode<synchronous>, transform_indices = @transform_1, window_bounds = array<i64: 6272, 10>}, {pipeline_mode = #tpu.pipeline_mode<synchronous>, transform_indices = @transform_2, window_bounds = array<i64: 1, 10>}, {pipeline_mode = #tpu.pipeline_mode<synchronous>, transform_indices = @transform_3, window_bounds = array<i64: 10, 6272>}, {pipeline_mode = #tpu.pipeline_mode<synchronous>, transform_indices = @transform_4, window_bounds = array<i64: 1, 6272>}, {pipeline_mode = #tpu.pipeline_mode<synchronous>, transform_indices = @transform_5, window_bounds = array<i64: 16, 6272>}]} {
    %c0 = arith.constant 0 : index
    %c0_0 = arith.constant 0 : index
    %0 = vector.load %arg1[%c0, %c0_0] : memref<16x6272xbf16, #tpu.memory_space<vmem>>, vector<16x6272xbf16>
    %c0_1 = arith.constant 0 : index
    %c0_2 = arith.constant 0 : index
    %1 = vector.load %arg2[%c0_1, %c0_2] : memref<6272x10xbf16, #tpu.memory_space<vmem>>, vector<6272x10xbf16>
    %cst = arith.constant dense<0.000000e+00> : vector<16x10xf32>
    %2 = tpu.matmul %0, %1, %cst {dimension_numbers = #tpu.dot_dimension_numbers<[1], [0], [0], [1], [0, 0, 1, 1], [], []>} : vector<16x6272xbf16>, vector<6272x10xbf16>, vector<16x10xf32> -> vector<16x10xf32>
    %c0_3 = arith.constant 0 : index
    %c0_4 = arith.constant 0 : index
    %3 = vector.load %arg3[%c0_3, %c0_4] : memref<1x10xf32, #tpu.memory_space<vmem>>, vector<1x10xf32>
    %4 = vector.broadcast %3 : vector<1x10xf32> to vector<16x10xf32>
    %5 = arith.addf %2, %4 : vector<16x10xf32>
    %6 = arith.truncf %5 : vector<16x10xf32> to vector<16x10xbf16>
    %c0_5 = arith.constant 0 : index
    %c0_6 = arith.constant 0 : index
    %7 = vector.load %arg4[%c0_5, %c0_6] : memref<10x6272xbf16, #tpu.memory_space<vmem>>, vector<10x6272xbf16>
    %cst_7 = arith.constant dense<0.000000e+00> : vector<16x6272xf32>
    %8 = tpu.matmul %6, %7, %cst_7 {dimension_numbers = #tpu.dot_dimension_numbers<[1], [0], [0], [1], [0, 0, 1, 1], [], []>} : vector<16x10xbf16>, vector<10x6272xbf16>, vector<16x6272xf32> -> vector<16x6272xf32>
    %c0_8 = arith.constant 0 : index
    %c0_9 = arith.constant 0 : index
    %9 = vector.load %arg5[%c0_8, %c0_9] : memref<1x6272xf32, #tpu.memory_space<vmem>>, vector<1x6272xf32>
    %10 = vector.broadcast %9 : vector<1x6272xf32> to vector<16x6272xf32>
    %11 = arith.addf %8, %10 : vector<16x6272xf32>
    %12 = arith.truncf %11 : vector<16x6272xf32> to vector<16x6272xbf16>
    %c0_10 = arith.constant 0 : index
    %c0_11 = arith.constant 0 : index
    %13 = vector.load %arg6[%c0_10, %c0_11] : memref<16x6272xbf16, #tpu.memory_space<vmem>>, vector<16x6272xbf16>
    tpu.vector_store %arg6[%c0_10, %c0_11], %12 {strides = array<i32>} : memref<16x6272xbf16, #tpu.memory_space<vmem>>, vector<16x6272xbf16>,
    return
  }
  func.func @transform_0(%arg0: i32) -> (i32, i32) {
    %c0_i32 = arith.constant 0 : i32
    %c0_i32_0 = arith.constant 0 : i32
    %c0_i32_1 = arith.constant 0 : i32
    return %c0_i32, %c0_i32_0 : i32, i32
  }
  func.func @transform_1(%arg0: i32) -> (i32, i32) {
    %c0_i32 = arith.constant 0 : i32
    %c0_i32_0 = arith.constant 0 : i32
    %c0_i32_1 = arith.constant 0 : i32
    return %c0_i32, %c0_i32_0 : i32, i32
  }
  func.func @transform_2(%arg0: i32) -> (i32, i32) {
    %c0_i32 = arith.constant 0 : i32
    %c0_i32_0 = arith.constant 0 : i32
    %c0_i32_1 = arith.constant 0 : i32
    return %c0_i32, %c0_i32_0 : i32, i32
  }
  func.func @transform_3(%arg0: i32) -> (i32, i32) {
    %c0_i32 = arith.constant 0 : i32
    %c0_i32_0 = arith.constant 0 : i32
    %c0_i32_1 = arith.constant 0 : i32
    return %c0_i32, %c0_i32_0 : i32, i32
  }
  func.func @transform_4(%arg0: i32) -> (i32, i32) {
    %c0_i32 = arith.constant 0 : i32
    %c0_i32_0 = arith.constant 0 : i32
    %c0_i32_1 = arith.constant 0 : i32
    return %c0_i32, %c0_i32_0 : i32, i32
  }
  func.func @transform_5(%arg0: i32) -> (i32, i32) {
    %c0_i32 = arith.constant 0 : i32
    %c0_i32_0 = arith.constant 0 : i32
    %c0_i32_1 = arith.constant 0 : i32
    return %c0_i32, %c0_i32_0 : i32, i32
  }
}

module attributes {stable_mosaic.version = 11 : i64} {
  func.func @_gemm_bias_act_kernel(%arg0: i32, %arg1: i32, %arg2: memref<1x112x512xbf16, #tpu.memory_space<vmem>>, %arg3: memref<1x512x128xbf16, #tpu.memory_space<vmem>>, %arg4: memref<1x128xf32, #tpu.memory_space<vmem>>, %arg5: memref<1x112x128xbf16, #tpu.memory_space<vmem>>) attributes {dimension_semantics = [#tpu.dimension_semantics<parallel>, #tpu.dimension_semantics<parallel>], iteration_bounds = array<i64: 4, 1>, scalar_prefetch = 0 : i64, scratch_operands = 0 : i64, tpu.core_type = #tpu.core_type<tc>, window_params = [{transform_indices = @transform_0, window_bounds = array<i64: 1, 112, 512>}, {transform_indices = @transform_1, window_bounds = array<i64: 1, 512, 128>}, {pipeline_mode = #tpu.pipeline_mode<synchronous>, transform_indices = @transform_2, window_bounds = array<i64: 1, 128>}, {transform_indices = @transform_3, window_bounds = array<i64: 1, 112, 128>}]} {
    %c0 = arith.constant 0 : index
    %c0_0 = arith.constant 0 : index
    %c0_1 = arith.constant 0 : index
    %0 = vector.load %arg2[%c0, %c0_0, %c0_1] : memref<1x112x512xbf16, #tpu.memory_space<vmem>>, vector<1x112x512xbf16>
    %1 = vector.shape_cast %0 : vector<1x112x512xbf16> to vector<112x512xbf16>
    %c0_2 = arith.constant 0 : index
    %c0_3 = arith.constant 0 : index
    %c0_4 = arith.constant 0 : index
    %2 = vector.load %arg3[%c0_2, %c0_3, %c0_4] : memref<1x512x128xbf16, #tpu.memory_space<vmem>>, vector<1x512x128xbf16>
    %3 = vector.shape_cast %2 : vector<1x512x128xbf16> to vector<512x128xbf16>
    %cst = arith.constant dense<0.000000e+00> : vector<112x128xf32>
    %4 = tpu.matmul %1, %3, %cst {dimension_numbers = #tpu.dot_dimension_numbers<[1], [0], [0], [1], [0, 0, 1, 1], [], []>} : vector<112x512xbf16>, vector<512x128xbf16>, vector<112x128xf32> -> vector<112x128xf32>
    %c0_5 = arith.constant 0 : index
    %c0_6 = arith.constant 0 : index
    %5 = vector.load %arg4[%c0_5, %c0_6] : memref<1x128xf32, #tpu.memory_space<vmem>>, vector<1x128xf32>
    %6 = vector.broadcast %5 : vector<1x128xf32> to vector<112x128xf32>
    %7 = arith.addf %4, %6 : vector<112x128xf32>
    %cst_7 = arith.constant 0.000000e+00 : f32
    %8 = vector.broadcast %cst_7 : f32 to vector<112x128xf32>
    %9 = arith.maximumf %7, %8 : vector<112x128xf32>
    %10 = arith.truncf %9 : vector<112x128xf32> to vector<112x128xbf16>
    %c0_8 = arith.constant 0 : index
    %c0_9 = arith.constant 0 : index
    %c0_10 = arith.constant 0 : index
    %11 = vector.load %arg5[%c0_8, %c0_9, %c0_10] : memref<1x112x128xbf16, #tpu.memory_space<vmem>>, vector<1x112x128xbf16>
    %12 = vector.shape_cast %11 : vector<1x112x128xbf16> to vector<112x128xbf16>
    %13 = vector.shape_cast %10 : vector<112x128xbf16> to vector<1x112x128xbf16>
    tpu.vector_store %arg5[%c0_8, %c0_9, %c0_10], %13 {strides = array<i32>} : memref<1x112x128xbf16, #tpu.memory_space<vmem>>, vector<1x112x128xbf16>,
    return
  }
  func.func @transform_0(%arg0: i32, %arg1: i32) -> (i32, i32, i32) {
    %c0_i32 = arith.constant 0 : i32
    %c0_i32_0 = arith.constant 0 : i32
    return %arg0, %arg1, %c0_i32 : i32, i32, i32
  }
  func.func @transform_1(%arg0: i32, %arg1: i32) -> (i32, i32, i32) {
    %c0_i32 = arith.constant 0 : i32
    %c0_i32_0 = arith.constant 0 : i32
    %c0_i32_1 = arith.constant 0 : i32
    return %arg0, %c0_i32, %c0_i32_0 : i32, i32, i32
  }
  func.func @transform_2(%arg0: i32, %arg1: i32) -> (i32, i32) {
    %c0_i32 = arith.constant 0 : i32
    %c0_i32_0 = arith.constant 0 : i32
    %c0_i32_1 = arith.constant 0 : i32
    return %c0_i32, %c0_i32_0 : i32, i32
  }
  func.func @transform_3(%arg0: i32, %arg1: i32) -> (i32, i32, i32) {
    %c0_i32 = arith.constant 0 : i32
    %c0_i32_0 = arith.constant 0 : i32
    return %arg0, %arg1, %c0_i32 : i32, i32, i32
  }
}

module attributes {stable_mosaic.version = 11 : i64} {
  func.func @_gemm_bias_act_kernel(%arg0: i32, %arg1: i32, %arg2: memref<1x400x256xbf16, #tpu.memory_space<vmem>>, %arg3: memref<1x256x128xbf16, #tpu.memory_space<vmem>>, %arg4: memref<1x128xf32, #tpu.memory_space<vmem>>, %arg5: memref<1x400x128xf32, #tpu.memory_space<vmem>>) attributes {dimension_semantics = [#tpu.dimension_semantics<parallel>, #tpu.dimension_semantics<parallel>], iteration_bounds = array<i64: 4, 1>, scalar_prefetch = 0 : i64, scratch_operands = 0 : i64, tpu.core_type = #tpu.core_type<tc>, window_params = [{transform_indices = @transform_0, window_bounds = array<i64: 1, 400, 256>}, {transform_indices = @transform_1, window_bounds = array<i64: 1, 256, 128>}, {pipeline_mode = #tpu.pipeline_mode<synchronous>, transform_indices = @transform_2, window_bounds = array<i64: 1, 128>}, {transform_indices = @transform_3, window_bounds = array<i64: 1, 400, 128>}]} {
    %c0 = arith.constant 0 : index
    %c0_0 = arith.constant 0 : index
    %c0_1 = arith.constant 0 : index
    %0 = vector.load %arg2[%c0, %c0_0, %c0_1] : memref<1x400x256xbf16, #tpu.memory_space<vmem>>, vector<1x400x256xbf16>
    %1 = vector.shape_cast %0 : vector<1x400x256xbf16> to vector<400x256xbf16>
    %c0_2 = arith.constant 0 : index
    %c0_3 = arith.constant 0 : index
    %c0_4 = arith.constant 0 : index
    %2 = vector.load %arg3[%c0_2, %c0_3, %c0_4] : memref<1x256x128xbf16, #tpu.memory_space<vmem>>, vector<1x256x128xbf16>
    %3 = vector.shape_cast %2 : vector<1x256x128xbf16> to vector<256x128xbf16>
    %cst = arith.constant dense<0.000000e+00> : vector<400x128xf32>
    %4 = tpu.matmul %1, %3, %cst {dimension_numbers = #tpu.dot_dimension_numbers<[1], [0], [0], [1], [0, 0, 1, 1], [], []>} : vector<400x256xbf16>, vector<256x128xbf16>, vector<400x128xf32> -> vector<400x128xf32>
    %c0_5 = arith.constant 0 : index
    %c0_6 = arith.constant 0 : index
    %5 = vector.load %arg4[%c0_5, %c0_6] : memref<1x128xf32, #tpu.memory_space<vmem>>, vector<1x128xf32>
    %6 = vector.broadcast %5 : vector<1x128xf32> to vector<400x128xf32>
    %7 = arith.addf %4, %6 : vector<400x128xf32>
    %8 = math.tanh %7 : vector<400x128xf32>
    %c0_7 = arith.constant 0 : index
    %c0_8 = arith.constant 0 : index
    %c0_9 = arith.constant 0 : index
    %9 = vector.load %arg5[%c0_7, %c0_8, %c0_9] : memref<1x400x128xf32, #tpu.memory_space<vmem>>, vector<1x400x128xf32>
    %10 = vector.shape_cast %9 : vector<1x400x128xf32> to vector<400x128xf32>
    %11 = vector.shape_cast %8 : vector<400x128xf32> to vector<1x400x128xf32>
    tpu.vector_store %arg5[%c0_7, %c0_8, %c0_9], %11 {strides = array<i32>} : memref<1x400x128xf32, #tpu.memory_space<vmem>>, vector<1x400x128xf32>,
    return
  }
  func.func @transform_0(%arg0: i32, %arg1: i32) -> (i32, i32, i32) {
    %c0_i32 = arith.constant 0 : i32
    %c0_i32_0 = arith.constant 0 : i32
    return %arg0, %arg1, %c0_i32 : i32, i32, i32
  }
  func.func @transform_1(%arg0: i32, %arg1: i32) -> (i32, i32, i32) {
    %c0_i32 = arith.constant 0 : i32
    %c0_i32_0 = arith.constant 0 : i32
    %c0_i32_1 = arith.constant 0 : i32
    return %arg0, %c0_i32, %c0_i32_0 : i32, i32, i32
  }
  func.func @transform_2(%arg0: i32, %arg1: i32) -> (i32, i32) {
    %c0_i32 = arith.constant 0 : i32
    %c0_i32_0 = arith.constant 0 : i32
    %c0_i32_1 = arith.constant 0 : i32
    return %c0_i32, %c0_i32_0 : i32, i32
  }
  func.func @transform_3(%arg0: i32, %arg1: i32) -> (i32, i32, i32) {
    %c0_i32 = arith.constant 0 : i32
    %c0_i32_0 = arith.constant 0 : i32
    return %arg0, %arg1, %c0_i32 : i32, i32, i32
  }
}

</mosaic_0001>

<bundles_post_ra>
// kernel: squeeze.2
= control target key start
LH: loop header
LB: loop body
LE: loop exit
PB: predicated region body
PF: predicated region fallthrough
CT: control target
= control target key end

     0   :  { %vm738_vm0 = vcmask 523264   ;;  %s2086_s0 = inlined_call_operand.vmem [shape: bf16[1,392,64], index: 0, kind: input, shape index: {}]   ;;  %s2087_s1 = inlined_call_operand.vmem [shape: bf16[2,14,14,64], index: 1, kind: output, shape index: {}]  }
   0x1   :  { %v1816_v0 = vld [vmem:[%s2086_s0 + $0xb0] sm:$0xff]   ;;  %v1822_v2 = vld [vmem:[%s2086_s0 + $0xa0] sm:$0xff]   ;;  %v1775_v22 = vld [vmem:[%s2086_s0 + $0x8] sm:$0xff]  }
   0x2   :  { %v1523_v1 = vunpack.c.l.bf16 %v1816_v0  ;;  %v1531_v3 = vunpack.c.l.bf16 %v1822_v2  ;;  %v1828_v4 = vld [vmem:[%s2086_s0 + $0x90] sm:$0xff]   ;;  %v1833_v5 = vld [vmem:[%s2086_s0 + $0x80] sm:$0xff]   ;;  %v1607_v25 = vunpack.c.l.bf16 %v1775_v22  ;;  %v1608_v27 = vunpack.c.h.bf16 %v1775_v22  ;;  %v1773_v28 = vld [vmem:[%s2086_s0 + $0x18] sm:$0xff]  }
   0x3   :  { %v1539_v6 = vunpack.c.l.bf16 %v1828_v4  ;;  %v1839_v7 = vld [vmem:[%s2086_s0 + $0x70] sm:$0xff]   ;;  %v1547_v8 = vunpack.c.l.bf16 %v1833_v5  ;;  %v1846_v9 = vld [vmem:[%s2086_s0 + $0x60] sm:$0xff]   ;;  %v1599_v30 = vunpack.c.l.bf16 %v1773_v28  ;;  %v1771_v31 = vld [vmem:[%s2086_s0 + $0x28] sm:$0xff]   ;;  %v1600_v32 = vunpack.c.h.bf16 %v1773_v28 }
   0x4   :  { %997 = vst.msk [vmem:[#allocation0 + $0x192] sm:$0xff] %vm738_vm0, %v1523_v1   ;;  %v1851_v10 = vld [vmem:[%s2086_s0 + $0x50] sm:$0xff]   ;;  %v1555_v11 = vunpack.c.l.bf16 %v1839_v7  ;;  %v1860_v12 = vld [vmem:[%s2086_s0 + $0x40] sm:$0xff]   ;;  %v1563_v13 = vunpack.c.l.bf16 %v1846_v9  ;;  %v1591_v34 = vunpack.c.l.bf16 %v1771_v31  ;;  %v1769_v35 = vld [vmem:[%s2086_s0 + $0x38] sm:$0xff]   ;;  %v1592_v36 = vunpack.c.h.bf16 %v1771_v31 }
   0x5   :  { %973 = vst.msk [vmem:[#allocation0 + $0x16c] sm:$0x3] %vm738_vm0, %v1531_v3   ;;  %v1770_v14 = vld [vmem:[%s2086_s0 + $0x30] sm:$0xff]   ;;  %v1571_v15 = vunpack.c.l.bf16 %v1851_v10  ;;  %v1772_v16 = vld [vmem:[%s2086_s0 + $0x20] sm:$0xff]   ;;  %v1579_v17 = vunpack.c.l.bf16 %v1860_v12  ;;  %v1583_v38 = vunpack.c.l.bf16 %v1769_v35  ;;  %v1584_v39 = vunpack.c.h.bf16 %v1769_v35  ;;  %v1767_v40 = vld [vmem:[%s2086_s0 + $0x48] sm:$0xff]  }
   0x6   :  { %949 = vst.msk [vmem:[#allocation0 + $0x148] sm:$0x3f] %vm738_vm0, %v1539_v6   ;;  %v1774_v18 = vld [vmem:[%s2086_s0 + $0x10] sm:$0xff]   ;;  %v1587_v19 = vunpack.c.l.bf16 %v1770_v14  ;;  %v1610_v20 = vld [vmem:[%s2086_s0] sm:$0xff]   ;;  %v1595_v21 = vunpack.c.l.bf16 %v1772_v16  ;;  %v1596_v33 = vunpack.c.h.bf16 %v1772_v16  ;;  %v1588_v37 = vunpack.c.h.bf16 %v1770_v14  ;;  %v1765_v43 = vld [vmem:[%s2086_s0 + $0x58] sm:$0xff]  }
   0x7   :  { %927 = vst.msk [vmem:[#allocation0 + $0x124] sm:$0xff] %vm738_vm0, %v1547_v8   ;;  %v1603_v23 = vunpack.c.l.bf16 %v1774_v18  ;;  %v1611_v24 = vunpack.c.l.bf16 %v1610_v20  ;;  %v1612_v26 = vunpack.c.h.bf16 %v1610_v20  ;;  %v1604_v29 = vunpack.c.h.bf16 %v1774_v18  ;;  %v1763_v47 = vld [vmem:[%s2086_s0 + $0x68] sm:$0xff]   ;;  %v1761_v51 = vld [vmem:[%s2086_s0 + $0x78] sm:$0xff]  }
   0x8   :  { %903 = vst.msk [vmem:[#allocation0 + $0x100] sm:$0xff] %vm738_vm0, %v1555_v11   ;;  %v1580_v41 = vunpack.c.h.bf16 %v1860_v12  ;;  %v1575_v42 = vunpack.c.l.bf16 %v1767_v40  ;;  %v1576_v44 = vunpack.c.h.bf16 %v1767_v40  ;;  %v1572_v45 = vunpack.c.h.bf16 %v1851_v10  ;;  %v1759_v56 = vld [vmem:[%s2086_s0 + $0x88] sm:$0xff]   ;;  %v1757_v59 = vld [vmem:[%s2086_s0 + $0x98] sm:$0xff]  }
   0x9   :  { %879 = vst.msk [vmem:[#allocation0 + $0xda] sm:$0xf] %vm738_vm0, %v1563_v13   ;;  %v1567_v46 = vunpack.c.l.bf16 %v1765_v43  ;;  %v1568_v48 = vunpack.c.h.bf16 %v1765_v43  ;;  %v1564_v49 = vunpack.c.h.bf16 %v1846_v9  ;;  %v1559_v50 = vunpack.c.l.bf16 %v1763_v47  ;;  %v1755_v63 = vld [vmem:[%s2086_s0 + $0xa8] sm:$0xff]  }
   0xa   :  { %857 = vst.msk [vmem:[#allocation0 + $0xb6] sm:$0xff] %vm738_vm0, %v1571_v15   ;;  %v1560_v52 = vunpack.c.h.bf16 %v1763_v47  ;;  %v1556_v53 = vunpack.c.h.bf16 %v1839_v7  ;;  %v1551_v54 = vunpack.c.l.bf16 %v1761_v51  ;;  %v1552_v55 = vunpack.c.h.bf16 %v1761_v51  ;;  %v1753_v7 = vld [vmem:[%s2086_s0 + $0xb8] sm:$0xff]  }
   0xb   :  { %833 = vst.msk [vmem:[#allocation0 + $0x92] sm:$0xff] %vm738_vm0, %v1579_v17   ;;  %v1548_v57 = vunpack.c.h.bf16 %v1833_v5  ;;  %v1543_v58 = vunpack.c.l.bf16 %v1759_v56  ;;  %v1544_v60 = vunpack.c.h.bf16 %v1759_v56  ;;  %v1540_v61 = vunpack.c.h.bf16 %v1828_v4 }
   0xc   :  { %809 = vst.msk [vmem:[#allocation0 + $0x6c] sm:$0x3] %vm738_vm0, %v1587_v19   ;;  %v1535_v62 = vunpack.c.l.bf16 %v1757_v59  ;;  %v1536_v1 = vunpack.c.h.bf16 %v1757_v59  ;;  %v1532_v4 = vunpack.c.h.bf16 %v1822_v2  ;;  %v1527_v5 = vunpack.c.l.bf16 %v1755_v63  ;;  %v1414_v2 = vld [vmem:[%s2086_s0 + $0xc0] sm:$0xf] }
   0xd   :  { %785 = vst.msk [vmem:[#allocation0 + $0x48] sm:$0x3f] %vm738_vm0, %v1595_v21   ;;  %v1524_v0 = vunpack.c.h.bf16 %v1816_v0  ;;  %v1520_v8 = vunpack.c.h.bf16 %v1753_v7 }
   0xe   :  { %763 = vst.msk [vmem:[#allocation0 + $0x24] sm:$0xff] %vm738_vm0, %v1603_v23  }
   0xf   :  { %739 = vst.msk [vmem:[#allocation0] sm:$0xff] %vm738_vm0, %v1611_v24   ;;  %v1247_v56 = vld [vmem:[#allocation0 + $0x100] sm:$0xff] }
  0x10   :  { %744 = vst.msk [vmem:[#allocation0 + $0x8] sm:$0x3f] %vm738_vm0, %v1612_v26  }
  0x11   :  { %746 = vst.msk [vmem:[#allocation0 + $0xa] sm:$0xc0] %vm738_vm0, %v1612_v26  }
  0x12   :  { %751 = vst.msk [vmem:[#allocation0 + $0x12] sm:$0xff] %vm738_vm0, %v1607_v25  }
  0x13   :  { %756 = vst.msk [vmem:[#allocation0 + $0x1a] sm:$0xf] %vm738_vm0, %v1608_v27  }
  0x14   :  { %758 = vst.msk [vmem:[#allocation0 + $0x1c] sm:$0xf0] %vm738_vm0, %v1608_v27  }
  0x15   :  { %768 = vst.msk [vmem:[#allocation0 + $0x2c] sm:$0x3] %vm738_vm0, %v1604_v29  }
  0x16   :  { %770 = vst.msk [vmem:[#allocation0 + $0x2e] sm:$0xfc] %vm738_vm0, %v1604_v29   ;;  %v1024_v9 = vld [vmem:[#allocation0] sm:$0xff] }
  0x17   :  { %775 = vst.msk [vmem:[#allocation0 + $0x36] sm:$0xff] %vm738_vm0, %v1599_v30   ;;  %v1030_v10 = vld [vmem:[#allocation0 + $0x8] sm:$0xff] }
  0x18   :  { %780 = vst.msk [vmem:[#allocation0 + $0x40] sm:$0xff] %vm738_vm0, %v1600_v32   ;;  %v1616_v16 = vpack.c.bf16 %v1030_v10, %v1024_v9 }
  0x19   :  { %787 = vst.msk [vmem:[#allocation0 + $0x4a] sm:$0xc0] %vm738_vm0, %v1595_v21   ;;  %v1037_v11 = vld [vmem:[#allocation0 + $0x10] sm:$0xff]  ;;  %v1086_v21 = vld [vmem:[#allocation0 + $0x48] sm:$0xff] }
  0x1a   :  { %792 = vst.msk [vmem:[#allocation0 + $0x52] sm:$0xff] %vm738_vm0, %v1596_v33   ;;  %v1044_v12 = vld [vmem:[#allocation0 + $0x18] sm:$0xff] }
  0x1b   :  { %797 = vst.msk [vmem:[#allocation0 + $0x5a] sm:$0xf] %vm738_vm0, %v1591_v34   ;;  %v1051_v14 = vld [vmem:[#allocation0 + $0x20] sm:$0xff] }
  0x1c   :  { %799 = vst.msk [vmem:[#allocation0 + $0x5c] sm:$0xf0] %vm738_vm0, %v1591_v34   ;;  %v1058_v15 = vld [vmem:[#allocation0 + $0x28] sm:$0xff] }
  0x1d   :  { %804 = vst.msk [vmem:[#allocation0 + $0x64] sm:$0xff] %vm738_vm0, %v1592_v36   ;;  %v1626_v22 = vpack.c.bf16 %v1058_v15, %v1051_v14 }
  0x1e   :  { %811 = vst.msk [vmem:[#allocation0 + $0x6e] sm:$0xfc] %vm738_vm0, %v1587_v19   ;;  %v1065_v17 = vld [vmem:[#allocation0 + $0x30] sm:$0xff]  ;;  %v1072_v18 = vld [vmem:[#allocation0 + $0x38] sm:$0xff]  ;;  %v1621_v19 = vpack.c.bf16 %v1044_v12, %v1037_v11 }
  0x1f   :  { %816 = vst.msk [vmem:[#allocation0 + $0x76] sm:$0xff] %vm738_vm0, %v1588_v37   ;;  %v1079_v20 = vld [vmem:[#allocation0 + $0x40] sm:$0xff]  ;;  %v1631_v25 = vpack.c.bf16 %v1072_v18, %v1065_v17 }
  0x20   :  { %821 = vst.msk [vmem:[#allocation0 + $0x80] sm:$0xff] %vm738_vm0, %v1583_v38   ;;  %v1636_v28 = vpack.c.bf16 %v1086_v21, %v1079_v20 }
  0x21   :  { %826 = vst.msk [vmem:[#allocation0 + $0x88] sm:$0x3f] %vm738_vm0, %v1584_v39   ;;  %v1093_v23 = vld [vmem:[#allocation0 + $0x50] sm:$0xff] }
  0x22   :  { %828 = vst.msk [vmem:[#allocation0 + $0x8a] sm:$0xc0] %vm738_vm0, %v1584_v39   ;;  %v1100_v24 = vld [vmem:[#allocation0 + $0x58] sm:$0xff] }
  0x23   :  { %838 = vst.msk [vmem:[#allocation0 + $0x9a] sm:$0xf] %vm738_vm0, %v1580_v41   ;;  %v1641_v31 = vpack.c.bf16 %v1100_v24, %v1093_v23 }
  0x24   :  { %840 = vst.msk [vmem:[#allocation0 + $0x9c] sm:$0xf0] %vm738_vm0, %v1580_v41   ;;  %v1107_v26 = vld [vmem:[#allocation0 + $0x60] sm:$0xff]  ;;  %v1114_v27 = vld [vmem:[#allocation0 + $0x68] sm:$0xff] }
  0x25   :  { %845 = vst.msk [vmem:[#allocation0 + $0xa4] sm:$0xff] %vm738_vm0, %v1575_v42   ;;  %v1646_v34 = vpack.c.bf16 %v1114_v27, %v1107_v26  ;;  %v1184_v42 = vld [vmem:[#allocation0 + $0xb8] sm:$0xff] }
  0x26   :  { %850 = vst.msk [vmem:[#allocation0 + $0xac] sm:$0x3] %vm738_vm0, %v1576_v44   ;;  %v1121_v29 = vld [vmem:[#allocation0 + $0x70] sm:$0xff]  ;;  %v1128_v30 = vld [vmem:[#allocation0 + $0x78] sm:$0xff] }
  0x27   :  { %852 = vst.msk [vmem:[#allocation0 + $0xae] sm:$0xfc] %vm738_vm0, %v1576_v44   ;;  %v1135_v32 = vld [vmem:[#allocation0 + $0x80] sm:$0xff]  ;;  %v1651_v37 = vpack.c.bf16 %v1128_v30, %v1121_v29 }
  0x28   :  { %862 = vst.msk [vmem:[#allocation0 + $0xc0] sm:$0xff] %vm738_vm0, %v1572_v45   ;;  %v1142_v33 = vld [vmem:[#allocation0 + $0x88] sm:$0xff] }
  0x29   :  { %867 = vst.msk [vmem:[#allocation0 + $0xc8] sm:$0x3f] %vm738_vm0, %v1567_v46   ;;  %v1149_v35 = vld [vmem:[#allocation0 + $0x90] sm:$0xff]  ;;  %v1656_v40 = vpack.c.bf16 %v1142_v33, %v1135_v32 }
  0x2a   :  { %869 = vst.msk [vmem:[#allocation0 + $0xca] sm:$0xc0] %vm738_vm0, %v1567_v46   ;;  %v1156_v36 = vld [vmem:[#allocation0 + $0x98] sm:$0xff] }
  0x2b   :  { %874 = vst.msk [vmem:[#allocation0 + $0xd2] sm:$0xff] %vm738_vm0, %v1568_v48   ;;  %v1661_v43 = vpack.c.bf16 %v1156_v36, %v1149_v35 }
  0x2c   :  { %881 = vst.msk [vmem:[#allocation0 + $0xdc] sm:$0xf0] %vm738_vm0, %v1563_v13   ;;  %v15_v13 = vunpack.c.l.bf16 %v1414_v2  ;;  %v1163_v38 = vld [vmem:[#allocation0 + $0xa0] sm:$0xff] }
  0x2d   :  { %886 = vst.msk [vmem:[#allocation0 + $0xe4] sm:$0xff] %vm738_vm0, %v1564_v49   ;;  %v1170_v39 = vld [vmem:[#allocation0 + $0xa8] sm:$0xff] }
  0x2e   :  { %891 = vst.msk [vmem:[#allocation0 + $0xec] sm:$0x3] %vm738_vm0, %v1559_v50   ;;  %v1177_v41 = vld [vmem:[#allocation0 + $0xb0] sm:$0xff]  ;;  %v1666_v46 = vpack.c.bf16 %v1170_v39, %v1163_v38 }
  0x2f   :  { %893 = vst.msk [vmem:[#allocation0 + $0xee] sm:$0xfc] %vm738_vm0, %v1559_v50   ;;  %v1191_v44 = vld [vmem:[#allocation0 + $0xc0] sm:$0xff]  ;;  %v1671_v49 = vpack.c.bf16 %v1184_v42, %v1177_v41 }
  0x30   :  { %898 = vst.msk [vmem:[#allocation0 + $0xf6] sm:$0xff] %vm738_vm0, %v1560_v52   ;;  %v1198_v45 = vld [vmem:[#allocation0 + $0xc8] sm:$0xff] }
  0x31   :  { %908 = vst.msk [vmem:[#allocation0 + $0x108] sm:$0x3f] %vm738_vm0, %v1556_v53   ;;  %v1676_v52 = vpack.c.bf16 %v1198_v45, %v1191_v44 }
  0x32   :  { %910 = vst.msk [vmem:[#allocation0 + $0x10a] sm:$0xc0] %vm738_vm0, %v1556_v53   ;;  %v1205_v47 = vld [vmem:[#allocation0 + $0xd0] sm:$0xff]  ;;  %v1212_v48 = vld [vmem:[#allocation0 + $0xd8] sm:$0xff] }
  0x33   :  { %915 = vst.msk [vmem:[#allocation0 + $0x112] sm:$0xff] %vm738_vm0, %v1551_v54  }
  0x34   :  { %920 = vst.msk [vmem:[#allocation0 + $0x11a] sm:$0xf] %vm738_vm0, %v1552_v55   ;;  %v1219_v50 = vld [vmem:[#allocation0 + $0xe0] sm:$0xff] }
  0x35   :  { %922 = vst.msk [vmem:[#allocation0 + $0x11c] sm:$0xf0] %vm738_vm0, %v1552_v55   ;;  %v1226_v51 = vld [vmem:[#allocation0 + $0xe8] sm:$0xff]  ;;  %v1681_v55 = vpack.c.bf16 %v1212_v48, %v1205_v47 }
  0x36   :  { %932 = vst.msk [vmem:[#allocation0 + $0x12c] sm:$0x3] %vm738_vm0, %v1548_v57  }
  0x37   :  { %934 = vst.msk [vmem:[#allocation0 + $0x12e] sm:$0xfc] %vm738_vm0, %v1548_v57   ;;  %v1233_v53 = vld [vmem:[#allocation0 + $0xf0] sm:$0xff]  ;;  %v1240_v54 = vld [vmem:[#allocation0 + $0xf8] sm:$0xff] }
  0x38   :  { %939 = vst.msk [vmem:[#allocation0 + $0x136] sm:$0xff] %vm738_vm0, %v1543_v58   ;;  %v1254_v57 = vld [vmem:[#allocation0 + $0x108] sm:$0xff]  ;;  %v1686_v58 = vpack.c.bf16 %v1226_v51, %v1219_v50 }
  0x39   :  { %944 = vst.msk [vmem:[#allocation0 + $0x140] sm:$0xff] %vm738_vm0, %v1544_v60  }
  0x3a   :  { %951 = vst.msk [vmem:[#allocation0 + $0x14a] sm:$0xc0] %vm738_vm0, %v1539_v6   ;;  %v1528_v6 = vunpack.c.h.bf16 %v1755_v63  ;;  %v1261_v59 = vld [vmem:[#allocation0 + $0x110] sm:$0xff] }
  0x3b   :  { %956 = vst.msk [vmem:[#allocation0 + $0x152] sm:$0xff] %vm738_vm0, %v1540_v61   ;;  %v1268_v60 = vld [vmem:[#allocation0 + $0x118] sm:$0xff]  ;;  %v1691_v61 = vpack.c.bf16 %v1240_v54, %v1233_v53 }
  0x3c   :  { %961 = vst.msk [vmem:[#allocation0 + $0x15a] sm:$0xf] %vm738_vm0, %v1535_v62  }
  0x3d   :  { %963 = vst.msk [vmem:[#allocation0 + $0x15c] sm:$0xf0] %vm738_vm0, %v1535_v62   ;;  %v1275_v62 = vld [vmem:[#allocation0 + $0x120] sm:$0xff]  ;;  %v1282_v63 = vld [vmem:[#allocation0 + $0x128] sm:$0xff] }
  0x3e   :  { %968 = vst.msk [vmem:[#allocation0 + $0x164] sm:$0xff] %vm738_vm0, %v1536_v1   ;;  %v1696_v1 = vpack.c.bf16 %v1254_v57, %v1247_v56  ;;  %v1706_v2 = vpack.c.bf16 %v1282_v63, %v1275_v62 }
  0x3f   :  { %975 = vst.msk [vmem:[#allocation0 + $0x16e] sm:$0xfc] %vm738_vm0, %v1531_v3   ;;  %v1519_v3 = vunpack.c.l.bf16 %v1753_v7 }
  0x40   :  { %980 = vst.msk [vmem:[#allocation0 + $0x176] sm:$0xff] %vm738_vm0, %v1532_v4   ;;  %v1289_v4 = vld [vmem:[#allocation0 + $0x130] sm:$0xff]  ;;  %v1303_v7 = vld [vmem:[#allocation0 + $0x140] sm:$0xff] }
  0x41   :  { %985 = vst.msk [vmem:[#allocation0 + $0x180] sm:$0xff] %vm738_vm0, %v1527_v5   ;;  %v1296_v5 = vld [vmem:[#allocation0 + $0x138] sm:$0xff] }
  0x42   :  { %990 = vst.msk [vmem:[#allocation0 + $0x188] sm:$0x3f] %vm738_vm0, %v1528_v6   ;;  %v1711_v9 = vpack.c.bf16 %v1296_v5, %v1289_v4 }
  0x43   :  { %992 = vst.msk [vmem:[#allocation0 + $0x18a] sm:$0xc0] %vm738_vm0, %v1528_v6   ;;  %v1701_v6 = vpack.c.bf16 %v1268_v60, %v1261_v59 }
  0x44   :  { %1002 = vst.msk [vmem:[#allocation0 + $0x19a] sm:$0xf] %vm738_vm0, %v1524_v0  }
  0x45   :  { %1004 = vst.msk [vmem:[#allocation0 + $0x19c] sm:$0xf0] %vm738_vm0, %v1524_v0   ;;  %v1310_v0 = vld [vmem:[#allocation0 + $0x148] sm:$0xff]  ;;  %v1331_v10 = vld [vmem:[#allocation0 + $0x160] sm:$0xff] }
  0x46   :  { %1009 = vst.msk [vmem:[#allocation0 + $0x1a4] sm:$0xff] %vm738_vm0, %v1519_v3   ;;  %v1317_v3 = vld [vmem:[#allocation0 + $0x150] sm:$0xff]  ;;  %v1338_v11 = vld [vmem:[#allocation0 + $0x168] sm:$0xff]  ;;  %v1716_v12 = vpack.c.bf16 %v1310_v0, %v1303_v7 }
  0x47   :  { %1014 = vst.msk [vmem:[#allocation0 + $0x1ac] sm:$0x3] %vm738_vm0, %v1520_v8   ;;  %v1352_v14 = vld [vmem:[#allocation0 + $0x178] sm:$0xff]  ;;  %v1726_v18 = vpack.c.bf16 %v1338_v11, %v1331_v10 }
  0x48   :  { %1016 = vst.msk [vmem:[#allocation0 + $0x1ae] sm:$0xfc] %vm738_vm0, %v1520_v8   ;;  %v1324_v8 = vld [vmem:[#allocation0 + $0x158] sm:$0xff] }
  0x49   :  { %1021 = vst.msk [vmem:[#allocation0 + $0x1b6] sm:$0xff] %vm738_vm0, %v15_v13   ;;  %v1345_v13 = vld [vmem:[#allocation0 + $0x170] sm:$0xff]  ;;  %v1721_v15 = vpack.c.bf16 %v1324_v8, %v1317_v3  ;;  %v1366_v17 = vld [vmem:[#allocation0 + $0x188] sm:$0xff] }
  0x4a   :  { %1617 = vst [vmem:[%s2087_s1] sm:$0xff] %v1616_v16   ;;  %v1359_v16 = vld [vmem:[#allocation0 + $0x180] sm:$0xff]  ;;  %v1731_v21 = vpack.c.bf16 %v1352_v14, %v1345_v13 }
  0x4b   :  { %1776 = vst [vmem:[%s2087_s1 + $0x8] sm:$0xff] %v1621_v19   ;;  %v1373_v19 = vld [vmem:[#allocation0 + $0x190] sm:$0xff]  ;;  %v1380_v20 = vld [vmem:[#allocation0 + $0x198] sm:$0xff]  ;;  %v1736_v24 = vpack.c.bf16 %v1366_v17, %v1359_v16 }
  0x4c   :  { %1777 = vst [vmem:[%s2087_s1 + $0x10] sm:$0xff] %v1626_v22   ;;  %v1741_v27 = vpack.c.bf16 %v1380_v20, %v1373_v19 }
  0x4d   :  { %1778 = vst [vmem:[%s2087_s1 + $0x18] sm:$0xff] %v1631_v25   ;;  %v1387_v22 = vld [vmem:[#allocation0 + $0x1a0] sm:$0xff] }
  0x4e   :  { %1779 = vst [vmem:[%s2087_s1 + $0x20] sm:$0xff] %v1636_v28   ;;  %v1394_v23 = vld [vmem:[#allocation0 + $0x1a8] sm:$0xff] }
  0x4f   :  { %1780 = vst [vmem:[%s2087_s1 + $0x28] sm:$0xff] %v1641_v31   ;;  %v1746_v28 = vpack.c.bf16 %v1394_v23, %v1387_v22 }
  0x50   :  { %1781 = vst [vmem:[%s2087_s1 + $0x30] sm:$0xff] %v1646_v34   ;;  %v1401_v25 = vld [vmem:[#allocation0 + $0x1b0] sm:$0xff]  ;;  %v1408_v26 = vld [vmem:[#allocation0 + $0x1b8] sm:$0xff] }
  0x51   :  { %1782 = vst [vmem:[%s2087_s1 + $0x38] sm:$0xff] %v1651_v37   ;;  %v1751_v29 = vpack.c.bf16 %v1408_v26, %v1401_v25 }
  0x52   :  { %1783 = vst [vmem:[%s2087_s1 + $0x40] sm:$0xff] %v1656_v40  }
  0x53   :  { %1784 = vst [vmem:[%s2087_s1 + $0x48] sm:$0xff] %v1661_v43  }
  0x54   :  { %1785 = vst [vmem:[%s2087_s1 + $0x50] sm:$0xff] %v1666_v46  }
  0x55   :  { %1786 = vst [vmem:[%s2087_s1 + $0x58] sm:$0xff] %v1671_v49  }
  0x56   :  { %1787 = vst [vmem:[%s2087_s1 + $0x60] sm:$0xff] %v1676_v52  }
  0x57   :  { %1788 = vst [vmem:[%s2087_s1 + $0x68] sm:$0xff] %v1681_v55  }
  0x58   :  { %1789 = vst [vmem:[%s2087_s1 + $0x70] sm:$0xff] %v1686_v58  }
  0x59   :  { %1790 = vst [vmem:[%s2087_s1 + $0x78] sm:$0xff] %v1691_v61  }
  0x5a   :  { %1791 = vst [vmem:[%s2087_s1 + $0x80] sm:$0xff] %v1696_v1  }
  0x5b   :  { %1792 = vst [vmem:[%s2087_s1 + $0x88] sm:$0xff] %v1701_v6  }
  0x5c   :  { %1793 = vst [vmem:[%s2087_s1 + $0x90] sm:$0xff] %v1706_v2  }
  0x5d   :  { %1794 = vst [vmem:[%s2087_s1 + $0x98] sm:$0xff] %v1711_v9  }
  0x5e   :  { %1795 = vst [vmem:[%s2087_s1 + $0xa0] sm:$0xff] %v1716_v12  }
  0x5f   :  { %1796 = vst [vmem:[%s2087_s1 + $0xa8] sm:$0xff] %v1721_v15  }
  0x60   :  { %1797 = vst [vmem:[%s2087_s1 + $0xb0] sm:$0xff] %v1726_v18  }
  0x61   :  { %1798 = vst [vmem:[%s2087_s1 + $0xb8] sm:$0xff] %v1731_v21  }
  0x62   :  { %1799 = vst [vmem:[%s2087_s1 + $0xc0] sm:$0xff] %v1736_v24  }
  0x63   :  { %1800 = vst [vmem:[%s2087_s1 + $0xc8] sm:$0xff] %v1741_v27  }
  0x64   :  { %1801 = vst [vmem:[%s2087_s1 + $0xd0] sm:$0xff] %v1746_v28  }
  0x65   :  { %1802 = vst [vmem:[%s2087_s1 + $0xd8] sm:$0xff] %v1751_v29  }

// kernel: autoencoder_forward.5
= control target key start
LH: loop header
LB: loop body
LE: loop exit
PB: predicated region body
PF: predicated region fallthrough
CT: control target
= control target key end

     0   :  { %s870_s12 = smov 0   ;;  %s872_s13 = smov 0   ;;  %s972_s0 = inlined_call_operand.vmem [shape: bf16[1,416,16], index: 0, kind: input, shape index: {}]   ;;  %s973_s1 = inlined_call_operand.vmem [shape: bf16[1,16,128], index: 1, kind: input, shape index: {}]   ;;  %s974_s2 = inlined_call_operand.vmem [shape: f32[1,128], index: 2, kind: input, shape index: {}]   ;;  %s975_s3 = inlined_call_operand.vmem [shape: bf16[1,416,128], index: 3, kind: output, shape index: {}]  }
   0x1   :  { %s874_s14 = smov 0  }
   0x2 LB: > { %s22_s15 = sadd.s32 1, %s844_s13  ;;  %p633_p0 = scmp.ge.s32.totalorder %s848_s14, 1  ;;  %s848_s14 = sphi %s874_s14, %s13_s14   ;;  %s844_s13 = sphi %s872_s13, %s977_s13   ;;  %s840_s12 = sphi %s870_s12, %s976_s12  }
   0x3   : > { %p23_p1 = scmp.ge.s32.totalorder %s22_s15, 2  ;;  %p168_p2 = scmp.lt.s32.totalorder %s848_s14, 3 }
   0x5   : > { %s979_s15 = smov (%p23_p1, %s22_s15), 0  ;;  %p169_p3 = pnand %p633_p0, %p168_p2 }
   0x6   : > { %s205_s18 = smul.u32 (!%p169_p3), 26, %s840_s12 }
   0x7   : > { %172 = sbr.rel (%p169_p3) target bundleno = 212 (0xd4), region = 32 }
   0x8   : > { %p208_p4 = scmp.lt.s32.totalorder (!%p169_p3), %s205_s18, 51 }
   0xc   : > { %v720_v0 = vld [vmem:[%s973_s1] sm:$0xff]  ;;  %s981_s18 = smov (!%p208_p4, %s205_s18), 51  ;;  %vm334_vm0 = vcmask 130048  }
   0xd   : > { %381 = vmatpush.bf16.msra.mxu0 %v720_v0  ;;  %798 = vmatpush.bf16.msra.mxu1 %v720_v0  ;;  %s634_s19 = sshll.u32 %s981_s18, 2  ;;  %v915_v16 = vld [vmem:[%s974_s2] ss:$0 sm:$0xff] }
   0xe   : > { %800 = vmatpush.bf16.msra.mxu3 %v720_v0  ;;  %799 = vmatpush.bf16.msra.mxu2 %v720_v0  ;;  %s213_s22 = scalar_lea.vmem %s972_s0, %s634_s19  ;;  %s926_s27 = scalar_lea.vmem %s975_s3, %s634_s19 }
   0xf   : > { %v707_v1 = vld [vmem:[%s213_s22] sm:$0xff]  ;;  %v716_v3 = vld [vmem:[%s213_s22 + $0x48] sm:$0xff]  ;;  %v717_v7 = vld [vmem:[%s213_s22 + $0x50] sm:$0xff] }
  0x10   : > { %v711_v2 = vld [vmem:[%s213_s22 + $0x20] sm:$0xff]  ;;  %692 = vmatmul.msk.bf16.vlgmr.msra.gmra.mxu0 %vm334_vm0, %v707_v1  ;;  %v708_v5 = vld [vmem:[%s213_s22 + $0x8] sm:$0xff]  ;;  %v709_v8 = vld [vmem:[%s213_s22 + $0x10] sm:$0xff] }
  0x11   : > { %696 = vmatmul.msk.bf16.vlgmr.msra.gmra.mxu1 %vm334_vm0, %v711_v2  ;;  %701 = vmatmul.msk.bf16.vlgmr.msra.gmra.mxu3 %vm334_vm0, %v716_v3  ;;  %v715_v4 = vld [vmem:[%s213_s22 + $0x40] sm:$0xff]  ;;  %v712_v6 = vld [vmem:[%s213_s22 + $0x28] sm:$0xff]  ;;  %v713_v9 = vld [vmem:[%s213_s22 + $0x30] sm:$0xff] }
  0x12   : > { %700 = vmatmul.msk.bf16.vlgmr.msra.gmra.mxu2 %vm334_vm0, %v715_v4  ;;  %v718_v10 = vld [vmem:[%s213_s22 + $0x58] sm:$0xff]  ;;  %v719_v13 = vld [vmem:[%s213_s22 + $0x60] sm:$0xff] }
  0x13   : > { %v710_v11 = vld [vmem:[%s213_s22 + $0x18] sm:$0xff] }
  0x14   : > { %v714_v12 = vld [vmem:[%s213_s22 + $0x38] sm:$0xff] }
  0x20   : > { %693 = vmatmul.msk.bf16.gmra.mxu0 %vm334_vm0, %v708_v5 }
  0x21   : > { %697 = vmatmul.msk.bf16.gmra.mxu1 %vm334_vm0, %v712_v6  ;;  %702 = vmatmul.msk.bf16.gmra.mxu3 %vm334_vm0, %v717_v7 }
  0x30   : > { %694 = vmatmul.msk.bf16.gmra.mxu0 %vm334_vm0, %v709_v8 }
  0x31   : > { %698 = vmatmul.msk.bf16.gmra.mxu1 %vm334_vm0, %v713_v9  ;;  %703 = vmatmul.msk.bf16.gmra.mxu3 %vm334_vm0, %v718_v10 }
  0x40   : > { %695 = vmatmul.msk.bf16.gmra.mxu0 %vm334_vm0, %v710_v11 }
  0x41   : > { %699 = vmatmul.msk.bf16.gmra.mxu1 %vm334_vm0, %v714_v12  ;;  %704 = vmatmul.msk.bf16.gmra.mxu3 %vm334_vm0, %v719_v13 }
  0x8d   : > { %v383_v14 = vpop.f32.mrf.mxu0 }
  0x8e   : > { %v403_v15 = vpop.f32.mrf.mxu1  ;;  %v384_v17 = vadd.f32 %v915_v16, %v383_v14 }
  0x8f   : > { %v404_v18 = vadd.f32 %v915_v16, %v403_v15 }
  0x90   : > { %v448_v24 = vmax.f32 %v384_v17, 0.0 }
  0x91   : > { %v456_v25 = vmax.f32 %v404_v18, 0.0 }
  0x94   : > { %v428_v19 = vpop.f32.mrf.mxu3 }
  0x95   : > { %v385_v20 = vpop.f32.mrf.mxu0  ;;  %v429_v30 = vadd.f32 %v915_v16, %v428_v19  ;;  %v423_v32 = vpop.f32.mrf.mxu2 }
  0x96   : > { %v405_v21 = vpop.f32.mrf.mxu1  ;;  %v386_v22 = vadd.f32 %v915_v16, %v385_v20  ;;  %v424_v39 = vadd.f32 %v915_v16, %v423_v32 }
  0x97   : > { %v406_v23 = vadd.f32 %v915_v16, %v405_v21  ;;  %v466_v36 = vmax.f32 %v429_v30, 0.0 }
  0x98   : > { %v449_v26 = vmax.f32 %v386_v22, 0.0  ;;  %v464_v46 = vmax.f32 %v424_v39, 0.0 }
  0x99   : > { %v457_v27 = vmax.f32 %v406_v23, 0.0 }
  0x9a   : > { %v724_v28 = vpack.c.bf16 %v449_v26, %v448_v24 }
  0x9b   : > { %v744_v29 = vpack.c.bf16 %v457_v27, %v456_v25 }
  0x9c   : > { %725 = vst [vmem:[%s926_s27] sm:$0xff] %v724_v28   ;;  %v430_v31 = vpop.f32.mrf.mxu3 }
  0x9d   : > { %789 = vst [vmem:[%s926_s27 + $0x20] sm:$0xff] %v744_v29   ;;  %v431_v33 = vadd.f32 %v915_v16, %v430_v31  ;;  %v388_v34 = vpop.f32.mrf.mxu0  ;;  %v425_v43 = vpop.f32.mrf.mxu2 }
  0x9e   : > { %v408_v35 = vpop.f32.mrf.mxu1  ;;  %v389_v40 = vadd.f32 %v915_v16, %v388_v34  ;;  %v426_v47 = vadd.f32 %v915_v16, %v425_v43 }
  0x9f   : > { %v467_v37 = vmax.f32 %v431_v33, 0.0  ;;  %v409_v41 = vadd.f32 %v915_v16, %v408_v35 }
  0xa0   : > { %v465_v50 = vmax.f32 %v426_v47, 0.0  ;;  %v450_v51 = vmax.f32 %v389_v40, 0.0 }
  0xa1   : > { %v769_v38 = vpack.c.bf16 %v467_v37, %v466_v36  ;;  %v458_v52 = vmax.f32 %v409_v41, 0.0 }
  0xa2   : > { %v764_v55 = vpack.c.bf16 %v465_v50, %v464_v46 }
  0xa3   : > { %794 = vst [vmem:[%s926_s27 + $0x48] sm:$0xff] %v769_v38  }
  0xa4   : > { %v433_v42 = vpop.f32.mrf.mxu3  ;;  %793 = vst [vmem:[%s926_s27 + $0x40] sm:$0xff] %v764_v55  }
  0xa5   : > { %v390_v44 = vpop.f32.mrf.mxu0  ;;  %v434_v58 = vadd.f32 %v915_v16, %v433_v42 }
  0xa6   : > { %v410_v45 = vpop.f32.mrf.mxu1  ;;  %v391_v48 = vadd.f32 %v915_v16, %v390_v44 }
  0xa7   : > { %v411_v49 = vadd.f32 %v915_v16, %v410_v45  ;;  %v468_v63 = vmax.f32 %v434_v58, 0.0 }
  0xa8   : > { %v451_v53 = vmax.f32 %v391_v48, 0.0 }
  0xa9   : > { %v459_v54 = vmax.f32 %v411_v49, 0.0 }
  0xaa   : > { %v729_v56 = vpack.c.bf16 %v451_v53, %v450_v51 }
  0xab   : > { %v749_v57 = vpack.c.bf16 %v459_v54, %v458_v52 }
  0xac   : > { %786 = vst [vmem:[%s926_s27 + $0x8] sm:$0xff] %v729_v56   ;;  %v435_v59 = vpop.f32.mrf.mxu3 }
  0xad   : > { %790 = vst [vmem:[%s926_s27 + $0x28] sm:$0xff] %v749_v57   ;;  %v436_v60 = vadd.f32 %v915_v16, %v435_v59  ;;  %v393_v61 = vpop.f32.mrf.mxu0 }
  0xae   : > { %v413_v62 = vpop.f32.mrf.mxu1  ;;  %v394_v2 = vadd.f32 %v915_v16, %v393_v61 }
  0xaf   : > { %v469_v0 = vmax.f32 %v436_v60, 0.0  ;;  %v414_v3 = vadd.f32 %v915_v16, %v413_v62 }
  0xb0   : > { %v452_v9 = vmax.f32 %v394_v2, 0.0 }
  0xb1   : > { %v774_v1 = vpack.c.bf16 %v469_v0, %v468_v63  ;;  %v460_v10 = vmax.f32 %v414_v3, 0.0 }
  0xb3   : > { %795 = vst [vmem:[%s926_s27 + $0x50] sm:$0xff] %v774_v1  }
  0xb4   : > { %v438_v4 = vpop.f32.mrf.mxu3 }
  0xb5   : > { %v395_v5 = vpop.f32.mrf.mxu0  ;;  %v439_v15 = vadd.f32 %v915_v16, %v438_v4 }
  0xb6   : > { %v415_v6 = vpop.f32.mrf.mxu1  ;;  %v396_v7 = vadd.f32 %v915_v16, %v395_v5 }
  0xb7   : > { %v416_v8 = vadd.f32 %v915_v16, %v415_v6  ;;  %v470_v21 = vmax.f32 %v439_v15, 0.0 }
  0xb8   : > { %v453_v11 = vmax.f32 %v396_v7, 0.0 }
  0xb9   : > { %v461_v12 = vmax.f32 %v416_v8, 0.0 }
  0xba   : > { %v734_v13 = vpack.c.bf16 %v453_v11, %v452_v9 }
  0xbb   : > { %v754_v14 = vpack.c.bf16 %v461_v12, %v460_v10 }
  0xbc   : > { %787 = vst [vmem:[%s926_s27 + $0x10] sm:$0xff] %v734_v13   ;;  %v440_v17 = vpop.f32.mrf.mxu3 }
  0xbd   : > { %791 = vst [vmem:[%s926_s27 + $0x30] sm:$0xff] %v754_v14   ;;  %v441_v18 = vadd.f32 %v915_v16, %v440_v17  ;;  %v398_v19 = vpop.f32.mrf.mxu0 }
  0xbe   : > { %v418_v20 = vpop.f32.mrf.mxu1  ;;  %v399_v24 = vadd.f32 %v915_v16, %v398_v19 }
  0xbf   : > { %v471_v22 = vmax.f32 %v441_v18, 0.0  ;;  %v419_v25 = vadd.f32 %v915_v16, %v418_v20 }
  0xc0   : > { %v454_v31 = vmax.f32 %v399_v24, 0.0 }
  0xc1   : > { %v779_v23 = vpack.c.bf16 %v471_v22, %v470_v21  ;;  %v462_v32 = vmax.f32 %v419_v25, 0.0 }
  0xc3   : > { %796 = vst [vmem:[%s926_s27 + $0x58] sm:$0xff] %v779_v23  }
  0xc4   : > { %v443_v26 = vpop.f32.mrf.mxu3 }
  0xc5   : > { %v400_v27 = vpop.f32.mrf.mxu0  ;;  %v444_v37 = vadd.f32 %v915_v16, %v443_v26 }
  0xc6   : > { %v420_v28 = vpop.f32.mrf.mxu1  ;;  %v401_v29 = vadd.f32 %v915_v16, %v400_v27 }
  0xc7   : > { %v421_v30 = vadd.f32 %v915_v16, %v420_v28  ;;  %v472_v40 = vmax.f32 %v444_v37, 0.0 }
  0xc8   : > { %v455_v33 = vmax.f32 %v401_v29, 0.0 }
  0xc9   : > { %v463_v34 = vmax.f32 %v421_v30, 0.0 }
  0xca   : > { %v739_v35 = vpack.c.bf16 %v455_v33, %v454_v31 }
  0xcb   : > { %v759_v36 = vpack.c.bf16 %v463_v34, %v462_v32 }
  0xcc   : > { %788 = vst [vmem:[%s926_s27 + $0x18] sm:$0xff] %v739_v35   ;;  %v445_v38 = vpop.f32.mrf.mxu3 }
  0xcd   : > { %792 = vst [vmem:[%s926_s27 + $0x38] sm:$0xff] %v759_v36   ;;  %v446_v39 = vadd.f32 %v915_v16, %v445_v38 }
  0xcf   : > { %v473_v41 = vmax.f32 %v446_v39, 0.0 }
  0xd1   : > { %v784_v42 = vpack.c.bf16 %v473_v41, %v472_v40 }
  0xd3   : > { %797 = vst [vmem:[%s926_s27 + $0x60] sm:$0xff] %v784_v42  }
  0xd4 PF: > { %s13_s14 = sadd.s32 1, %s848_s14   ;;  %s976_s12 = smov %s844_s13 }
  0xd5   : > { %p10_p5 = scmp.ge.s32.totalorder %s13_s14, 4   ;;  %s977_s13 = smov %s979_s15 }
  0xd7   :  { %12 = sbr.rel (!%p10_p5) target bundleno = 2 (0x2), region = 65 }

// kernel: squeeze.3
= control target key start
LH: loop header
LB: loop body
LE: loop exit
PB: predicated region body
PF: predicated region fallthrough
CT: control target
= control target key end

     0   :  { %s882_s0 = inlined_call_operand.vmem [shape: bf16[1,98,128], index: 0, kind: input, shape index: {}]   ;;  %s883_s1 = inlined_call_operand.vmem [shape: bf16[2,6272], index: 1, kind: output, shape index: {}]  }
   0x1   :  { %v615_v0 = vld [vmem:[%s882_s0 + $0x30] sm:$0xf]  ;;  %v699_v1 = vld [vmem:[%s882_s0 + $0x28] sm:$0xff]   ;;  %v700_v3 = vld [vmem:[%s882_s0 + $0x20] sm:$0xff]  }
   0x2   :  { %v15_v2 = vunpack.c.l.bf16 %v615_v0  ;;  %v678_v4 = vunpack.c.h.bf16 %v699_v1  ;;  %v677_v5 = vunpack.c.l.bf16 %v699_v1  ;;  %v701_v6 = vld [vmem:[%s882_s0 + $0x18] sm:$0xff]   ;;  %v682_v7 = vunpack.c.h.bf16 %v700_v3  ;;  %v702_v9 = vld [vmem:[%s882_s0 + $0x10] sm:$0xff]   ;;  %v703_v12 = vld [vmem:[%s882_s0 + $0x8] sm:$0xff]  }
   0x3   :  { %v681_v8 = vunpack.c.l.bf16 %v700_v3  ;;  %v686_v10 = vunpack.c.h.bf16 %v701_v6  ;;  %v685_v11 = vunpack.c.l.bf16 %v701_v6  ;;  %v690_v13 = vunpack.c.h.bf16 %v702_v9  ;;  %v696_v15 = vld [vmem:[%s882_s0] sm:$0xff]  }
   0x4   :  { %18 = vst [vmem:[#allocation1 + $0x30] sm:$0xff] %v15_v2  ;;  %v689_v14 = vunpack.c.l.bf16 %v702_v9  ;;  %v694_v16 = vunpack.c.h.bf16 %v703_v12  ;;  %v693_v17 = vunpack.c.l.bf16 %v703_v12  ;;  %v697_v18 = vunpack.c.l.bf16 %v696_v15 }
   0x5   :  { %v698_v19 = vunpack.c.h.bf16 %v696_v15  ;;  %227 = vst [vmem:[#allocation0 + $0x140] ss:$8 sm:$0xf] %v690_v13  }
   0x6   :  { %198 = vst [vmem:[#allocation0] ss:$8 sm:$0xf] %v697_v18  }
   0x7   :  { %199 = vst [vmem:[#allocation0] ss:$8 sm:$0xf0] %v697_v18  }
   0x8   :  { %203 = vst [vmem:[#allocation0 + $0x40] ss:$8 sm:$0xf] %v698_v19  }
   0x9   :  { %205 = vst [vmem:[#allocation0 + $0x40] ss:$8 sm:$0xf0] %v698_v19  }
   0xa   :  { %209 = vst [vmem:[#allocation0 + $0x80] ss:$8 sm:$0xf] %v693_v17  }
   0xb   :  { %211 = vst [vmem:[#allocation0 + $0x80] ss:$8 sm:$0xf0] %v693_v17   ;;  %v269_v21 = vld [vmem:[#allocation1 + $0x30] sm:$0x3]  }
   0xc   :  { %215 = vst [vmem:[#allocation0 + $0xc0] ss:$8 sm:$0xf] %v694_v16  }
   0xd   :  { %217 = vst [vmem:[#allocation0 + $0xc0] ss:$8 sm:$0xf0] %v694_v16  }
   0xe   :  { %221 = vst [vmem:[#allocation0 + $0x100] ss:$8 sm:$0xf] %v689_v14  }
   0xf   :  { %223 = vst [vmem:[#allocation0 + $0x100] ss:$8 sm:$0xf0] %v689_v14  }
  0x10   :  { %229 = vst [vmem:[#allocation0 + $0x140] ss:$8 sm:$0xf0] %v690_v13  }
  0x11   :  { %233 = vst [vmem:[#allocation0 + $0x180] ss:$-383 sm:$0x3] %v685_v11  }
  0x12   :  { %235 = vst [vmem:[#allocation0 - $0x7] ss:$8 sm:$0x3c] %v685_v11  }
  0x13   :  { %237 = vst [vmem:[#allocation0 - $0x7] ss:$8 sm:$0xc0] %v685_v11  }
  0x14   :  { %241 = vst [vmem:[#allocation0 + $0x39] ss:$8 sm:$0xf] %v686_v10  }
  0x15   :  { %243 = vst [vmem:[#allocation0 + $0x39] ss:$8 sm:$0xf0] %v686_v10  }
  0x16   :  { %247 = vst [vmem:[#allocation0 + $0x79] ss:$8 sm:$0xf] %v681_v8  }
  0x17   :  { %249 = vst [vmem:[#allocation0 + $0x79] ss:$8 sm:$0xf0] %v681_v8  }
  0x18   :  { %253 = vst [vmem:[#allocation0 + $0xb9] ss:$8 sm:$0xf] %v682_v7   ;;  %v274_v20 = vld [vmem:[#allocation0] sm:$0x3] }
  0x19   :  { %255 = vst [vmem:[#allocation0 + $0xb9] ss:$8 sm:$0xf0] %v682_v7   ;;  %v280_v22 = vld [vmem:[#allocation0 + $0x8] sm:$0x3]  ;;  %v275_v24 = vpack.c.bf16 0.0, %v274_v20 }
  0x1a   :  { %259 = vst [vmem:[#allocation0 + $0xf9] ss:$8 sm:$0xf] %v677_v5   ;;  %v287_v23 = vld [vmem:[#allocation0 + $0x10] sm:$0x3]  ;;  %v281_v26 = vpack.c.bf16 0.0, %v280_v22 }
  0x1b   :  { %261 = vst [vmem:[#allocation0 + $0xf9] ss:$8 sm:$0xf0] %v677_v5   ;;  %v294_v25 = vld [vmem:[#allocation0 + $0x18] sm:$0x3]  ;;  %v288_v28 = vpack.c.bf16 0.0, %v287_v23 }
  0x1c   :  { %265 = vst [vmem:[#allocation0 + $0x139] ss:$8 sm:$0xf] %v678_v4   ;;  %v301_v27 = vld [vmem:[#allocation0 + $0x20] sm:$0x3]  ;;  %v295_v30 = vpack.c.bf16 0.0, %v294_v25 }
  0x1d   :  { %267 = vst [vmem:[#allocation0 + $0x139] ss:$8 sm:$0xf0] %v678_v4   ;;  %v308_v29 = vld [vmem:[#allocation0 + $0x28] sm:$0x3]  ;;  %v302_v32 = vpack.c.bf16 0.0, %v301_v27 }
  0x1e   :  { %271 = vst [vmem:[#allocation0 + $0x179] ss:$8 sm:$0x3] %v269_v21   ;;  %v315_v31 = vld [vmem:[#allocation0 + $0x30] sm:$0x3]  ;;  %v309_v34 = vpack.c.bf16 0.0, %v308_v29 }
  0x1f   :  { %278 = vst [vmem:[%s883_s1] sm:$0x1] %v275_v24  ;;  %v322_v33 = vld [vmem:[#allocation0 + $0x38] sm:$0x3]  ;;  %v329_v35 = vld [vmem:[#allocation0 + $0x40] sm:$0x3]  ;;  %v316_v36 = vpack.c.bf16 0.0, %v315_v31 }
  0x20   :  { %627 = vst [vmem:[%s883_s1 + $0x1] sm:$0x1] %v281_v26  ;;  %v336_v37 = vld [vmem:[#allocation0 + $0x48] sm:$0x3]  ;;  %v323_v38 = vpack.c.bf16 0.0, %v322_v33  ;;  %v330_v40 = vpack.c.bf16 0.0, %v329_v35 }
  0x21   :  { %628 = vst [vmem:[%s883_s1 + $0x2] sm:$0x1] %v288_v28  ;;  %v343_v39 = vld [vmem:[#allocation0 + $0x50] sm:$0x3]  ;;  %v350_v41 = vld [vmem:[#allocation0 + $0x58] sm:$0x3] }
  0x22   :  { %629 = vst [vmem:[%s883_s1 + $0x3] sm:$0x1] %v295_v30  ;;  %v337_v42 = vpack.c.bf16 0.0, %v336_v37  ;;  %v357_v43 = vld [vmem:[#allocation0 + $0x60] sm:$0x3]  ;;  %v344_v44 = vpack.c.bf16 0.0, %v343_v39 }
  0x23   :  { %630 = vst [vmem:[%s883_s1 + $0x4] sm:$0x1] %v302_v32  ;;  %v364_v45 = vld [vmem:[#allocation0 + $0x68] sm:$0x3]  ;;  %v351_v46 = vpack.c.bf16 0.0, %v350_v41  ;;  %v358_v48 = vpack.c.bf16 0.0, %v357_v43 }
  0x24   :  { %631 = vst [vmem:[%s883_s1 + $0x5] sm:$0x1] %v309_v34  ;;  %v371_v47 = vld [vmem:[#allocation0 + $0x70] sm:$0x3]  ;;  %v378_v49 = vld [vmem:[#allocation0 + $0x78] sm:$0x3] }
  0x25   :  { %632 = vst [vmem:[%s883_s1 + $0x6] sm:$0x1] %v316_v36  ;;  %v365_v50 = vpack.c.bf16 0.0, %v364_v45  ;;  %v385_v51 = vld [vmem:[#allocation0 + $0x80] sm:$0x3]  ;;  %v372_v52 = vpack.c.bf16 0.0, %v371_v47 }
  0x26   :  { %633 = vst [vmem:[%s883_s1 + $0x7] sm:$0x1] %v323_v38  ;;  %v392_v53 = vld [vmem:[#allocation0 + $0x88] sm:$0x3]  ;;  %v379_v54 = vpack.c.bf16 0.0, %v378_v49  ;;  %v386_v56 = vpack.c.bf16 0.0, %v385_v51 }
  0x27   :  { %634 = vst [vmem:[%s883_s1 + $0x8] sm:$0x1] %v330_v40  ;;  %v399_v55 = vld [vmem:[#allocation0 + $0x90] sm:$0x3]  ;;  %v406_v57 = vld [vmem:[#allocation0 + $0x98] sm:$0x3] }
  0x28   :  { %635 = vst [vmem:[%s883_s1 + $0x9] sm:$0x1] %v337_v42  ;;  %v393_v58 = vpack.c.bf16 0.0, %v392_v53  ;;  %v413_v59 = vld [vmem:[#allocation0 + $0xa0] sm:$0x3]  ;;  %v400_v60 = vpack.c.bf16 0.0, %v399_v55 }
  0x29   :  { %636 = vst [vmem:[%s883_s1 + $0xa] sm:$0x1] %v344_v44  ;;  %v420_v61 = vld [vmem:[#allocation0 + $0xa8] sm:$0x3]  ;;  %v407_v62 = vpack.c.bf16 0.0, %v406_v57  ;;  %v414_v0 = vpack.c.bf16 0.0, %v413_v59 }
  0x2a   :  { %637 = vst [vmem:[%s883_s1 + $0xb] sm:$0x1] %v351_v46  ;;  %v427_v63 = vld [vmem:[#allocation0 + $0xb0] sm:$0x3]  ;;  %v434_v1 = vld [vmem:[#allocation0 + $0xb8] sm:$0x3] }
  0x2b   :  { %638 = vst [vmem:[%s883_s1 + $0xc] sm:$0x1] %v358_v48  ;;  %v421_v2 = vpack.c.bf16 0.0, %v420_v61  ;;  %v441_v3 = vld [vmem:[#allocation0 + $0xc0] sm:$0x3]  ;;  %v428_v4 = vpack.c.bf16 0.0, %v427_v63 }
  0x2c   :  { %639 = vst [vmem:[%s883_s1 + $0xd] sm:$0x1] %v365_v50  ;;  %v448_v5 = vld [vmem:[#allocation0 + $0xc8] sm:$0x3]  ;;  %v435_v6 = vpack.c.bf16 0.0, %v434_v1  ;;  %v442_v8 = vpack.c.bf16 0.0, %v441_v3 }
  0x2d   :  { %640 = vst [vmem:[%s883_s1 + $0xe] sm:$0x1] %v372_v52  ;;  %v455_v7 = vld [vmem:[#allocation0 + $0xd0] sm:$0x3]  ;;  %v462_v9 = vld [vmem:[#allocation0 + $0xd8] sm:$0x3] }
  0x2e   :  { %641 = vst [vmem:[%s883_s1 + $0xf] sm:$0x1] %v379_v54  ;;  %v449_v10 = vpack.c.bf16 0.0, %v448_v5  ;;  %v469_v11 = vld [vmem:[#allocation0 + $0xe0] sm:$0x3]  ;;  %v456_v12 = vpack.c.bf16 0.0, %v455_v7 }
  0x2f   :  { %642 = vst [vmem:[%s883_s1 + $0x10] sm:$0x1] %v386_v56  ;;  %v476_v13 = vld [vmem:[#allocation0 + $0xe8] sm:$0x3]  ;;  %v463_v14 = vpack.c.bf16 0.0, %v462_v9  ;;  %v470_v16 = vpack.c.bf16 0.0, %v469_v11 }
  0x30   :  { %643 = vst [vmem:[%s883_s1 + $0x11] sm:$0x1] %v393_v58  ;;  %v483_v15 = vld [vmem:[#allocation0 + $0xf0] sm:$0x3]  ;;  %v490_v17 = vld [vmem:[#allocation0 + $0xf8] sm:$0x3] }
  0x31   :  { %644 = vst [vmem:[%s883_s1 + $0x12] sm:$0x1] %v400_v60  ;;  %v477_v18 = vpack.c.bf16 0.0, %v476_v13  ;;  %v497_v19 = vld [vmem:[#allocation0 + $0x100] sm:$0x3]  ;;  %v484_v20 = vpack.c.bf16 0.0, %v483_v15 }
  0x32   :  { %645 = vst [vmem:[%s883_s1 + $0x13] sm:$0x1] %v407_v62  ;;  %v504_v21 = vld [vmem:[#allocation0 + $0x108] sm:$0x3]  ;;  %v491_v22 = vpack.c.bf16 0.0, %v490_v17  ;;  %v498_v24 = vpack.c.bf16 0.0, %v497_v19 }
  0x33   :  { %646 = vst [vmem:[%s883_s1 + $0x14] sm:$0x1] %v414_v0  ;;  %v511_v23 = vld [vmem:[#allocation0 + $0x110] sm:$0x3]  ;;  %v518_v25 = vld [vmem:[#allocation0 + $0x118] sm:$0x3] }
  0x34   :  { %647 = vst [vmem:[%s883_s1 + $0x15] sm:$0x1] %v421_v2  ;;  %v505_v26 = vpack.c.bf16 0.0, %v504_v21  ;;  %v525_v27 = vld [vmem:[#allocation0 + $0x120] sm:$0x3]  ;;  %v512_v28 = vpack.c.bf16 0.0, %v511_v23 }
  0x35   :  { %648 = vst [vmem:[%s883_s1 + $0x16] sm:$0x1] %v428_v4  ;;  %v532_v29 = vld [vmem:[#allocation0 + $0x128] sm:$0x3]  ;;  %v519_v30 = vpack.c.bf16 0.0, %v518_v25  ;;  %v526_v32 = vpack.c.bf16 0.0, %v525_v27 }
  0x36   :  { %649 = vst [vmem:[%s883_s1 + $0x17] sm:$0x1] %v435_v6  ;;  %v539_v31 = vld [vmem:[#allocation0 + $0x130] sm:$0x3]  ;;  %v546_v33 = vld [vmem:[#allocation0 + $0x138] sm:$0x3] }
  0x37   :  { %650 = vst [vmem:[%s883_s1 + $0x18] sm:$0x1] %v442_v8  ;;  %v533_v34 = vpack.c.bf16 0.0, %v532_v29  ;;  %v553_v35 = vld [vmem:[#allocation0 + $0x140] sm:$0x3]  ;;  %v540_v36 = vpack.c.bf16 0.0, %v539_v31 }
  0x38   :  { %651 = vst [vmem:[%s883_s1 + $0x19] sm:$0x1] %v449_v10  ;;  %v560_v37 = vld [vmem:[#allocation0 + $0x148] sm:$0x3]  ;;  %v547_v38 = vpack.c.bf16 0.0, %v546_v33  ;;  %v554_v40 = vpack.c.bf16 0.0, %v553_v35 }
  0x39   :  { %652 = vst [vmem:[%s883_s1 + $0x1a] sm:$0x1] %v456_v12  ;;  %v567_v39 = vld [vmem:[#allocation0 + $0x150] sm:$0x3]  ;;  %v574_v41 = vld [vmem:[#allocation0 + $0x158] sm:$0x3] }
  0x3a   :  { %653 = vst [vmem:[%s883_s1 + $0x1b] sm:$0x1] %v463_v14  ;;  %v561_v42 = vpack.c.bf16 0.0, %v560_v37  ;;  %v581_v43 = vld [vmem:[#allocation0 + $0x160] sm:$0x3]  ;;  %v568_v44 = vpack.c.bf16 0.0, %v567_v39 }
  0x3b   :  { %654 = vst [vmem:[%s883_s1 + $0x1c] sm:$0x1] %v470_v16  ;;  %v588_v45 = vld [vmem:[#allocation0 + $0x168] sm:$0x3]  ;;  %v575_v46 = vpack.c.bf16 0.0, %v574_v41  ;;  %v582_v48 = vpack.c.bf16 0.0, %v581_v43 }
  0x3c   :  { %655 = vst [vmem:[%s883_s1 + $0x1d] sm:$0x1] %v477_v18  ;;  %v595_v47 = vld [vmem:[#allocation0 + $0x170] sm:$0x3]  ;;  %v602_v49 = vld [vmem:[#allocation0 + $0x178] sm:$0x3] }
  0x3d   :  { %656 = vst [vmem:[%s883_s1 + $0x1e] sm:$0x1] %v484_v20  ;;  %v589_v50 = vpack.c.bf16 0.0, %v588_v45  ;;  %v609_v51 = vld [vmem:[#allocation0 + $0x180] sm:$0x3]  ;;  %v596_v52 = vpack.c.bf16 0.0, %v595_v47 }
  0x3e   :  { %657 = vst [vmem:[%s883_s1 + $0x1f] sm:$0x1] %v491_v22  ;;  %v603_v53 = vpack.c.bf16 0.0, %v602_v49  ;;  %v610_v54 = vpack.c.bf16 0.0, %v609_v51 }
  0x3f   :  { %658 = vst [vmem:[%s883_s1 + $0x20] sm:$0x1] %v498_v24 }
  0x40   :  { %659 = vst [vmem:[%s883_s1 + $0x21] sm:$0x1] %v505_v26 }
  0x41   :  { %660 = vst [vmem:[%s883_s1 + $0x22] sm:$0x1] %v512_v28 }
  0x42   :  { %661 = vst [vmem:[%s883_s1 + $0x23] sm:$0x1] %v519_v30 }
  0x43   :  { %662 = vst [vmem:[%s883_s1 + $0x24] sm:$0x1] %v526_v32 }
  0x44   :  { %663 = vst [vmem:[%s883_s1 + $0x25] sm:$0x1] %v533_v34 }
  0x45   :  { %664 = vst [vmem:[%s883_s1 + $0x26] sm:$0x1] %v540_v36 }
  0x46   :  { %665 = vst [vmem:[%s883_s1 + $0x27] sm:$0x1] %v547_v38 }
  0x47   :  { %666 = vst [vmem:[%s883_s1 + $0x28] sm:$0x1] %v554_v40 }
  0x48   :  { %667 = vst [vmem:[%s883_s1 + $0x29] sm:$0x1] %v561_v42 }
  0x49   :  { %668 = vst [vmem:[%s883_s1 + $0x2a] sm:$0x1] %v568_v44 }
  0x4a   :  { %669 = vst [vmem:[%s883_s1 + $0x2b] sm:$0x1] %v575_v46 }
  0x4b   :  { %670 = vst [vmem:[%s883_s1 + $0x2c] sm:$0x1] %v582_v48 }
  0x4c   :  { %671 = vst [vmem:[%s883_s1 + $0x2d] sm:$0x1] %v589_v50 }
  0x4d   :  { %672 = vst [vmem:[%s883_s1 + $0x2e] sm:$0x1] %v596_v52 }
  0x4e   :  { %673 = vst [vmem:[%s883_s1 + $0x2f] sm:$0x1] %v603_v53 }
  0x4f   :  { %674 = vst [vmem:[%s883_s1 + $0x30] sm:$0x1] %v610_v54 }

// kernel: autoencoder_forward.6
= control target key start
LH: loop header
LB: loop body
LE: loop exit
PB: predicated region body
PF: predicated region fallthrough
CT: control target
= control target key end

     0   :  { %s1888_s12 = smov 0   ;;  %s1890_s13 = smov 0   ;;  %s2232_s0 = inlined_call_operand.vmem [shape: bf16[1,128,1024], index: 0, kind: input, shape index: {}]   ;;  %s2233_s1 = inlined_call_operand.vmem [shape: bf16[1,1024,128], index: 1, kind: input, shape index: {}]   ;;  %s2234_s2 = inlined_call_operand.vmem [shape: f32[1,128], index: 2, kind: input, shape index: {}]   ;;  %s2235_s3 = inlined_call_operand.vmem [shape: bf16[1,128,128], index: 3, kind: output, shape index: {}]  }
   0x1   :  { %s1892_s14 = smov 0  }
   0x2 LB: > { %s22_s15 = sadd.s32 1, %s1862_s13  ;;  %p1307_p0 = scmp.ge.s32.totalorder %s1866_s14, 1  ;;  %s1866_s14 = sphi %s1892_s14, %s13_s14   ;;  %s1862_s13 = sphi %s1890_s13, %s2237_s13   ;;  %s1858_s12 = sphi %s1888_s12, %s2236_s12  }
   0x3   : > { %p23_p1 = scmp.ge.s32.totalorder %s22_s15, 2  ;;  %p169_p2 = scmp.lt.s32.totalorder %s1866_s14, 3 }
   0x5   : > { %s2239_s15 = smov (%p23_p1, %s22_s15), 0  ;;  %p170_p3 = pnand %p1307_p0, %p169_p2 }
   0x6   : > { %s1308_s17 = sshll.u32 (!%p170_p3), %s1858_s12, 3 }
   0x7   : > { %173 = sbr.rel (%p170_p3) target bundleno = 307 (0x133), region = 32  ;;  %p210_p4 = scmp.lt.s32.totalorder (!%p170_p3), %s1308_s17, 15 }
   0xc   : > { %v1739_v0 = vld [vmem:[%s2233_s1 + $0x38] sm:$0xff]  ;;  %v1738_v4 = vld [vmem:[%s2233_s1 + $0x30] sm:$0xff]  ;;  %v1737_v8 = vld [vmem:[%s2233_s1 + $0x28] sm:$0xff]  ;;  %s2241_s17 = smov (!%p210_p4, %s1308_s17), 15 }
   0xd   : > { %v1747_v1 = vld [vmem:[%s2233_s1 + $0x78] sm:$0xff]  ;;  %941 = vmatpush.bf16.msra.mxu0 %v1739_v0  ;;  %v1746_v5 = vld [vmem:[%s2233_s1 + $0x70] sm:$0xff]  ;;  %v1745_v9 = vld [vmem:[%s2233_s1 + $0x68] sm:$0xff]  ;;  %s1699_s19 = sshll.u32 %s2241_s17, 5 }
   0xe   : > { %v1755_v2 = vld [vmem:[%s2233_s1 + $0xb8] sm:$0xff]  ;;  %970 = vmatpush.bf16.msra.mxu1 %v1747_v1  ;;  %v1754_v6 = vld [vmem:[%s2233_s1 + $0xb0] sm:$0xff]  ;;  %v1753_v10 = vld [vmem:[%s2233_s1 + $0xa8] sm:$0xff]  ;;  %s1993_s12 = scalar_lea.vmem %s2232_s0, %s1699_s19 }
   0xf   : > { %v1763_v3 = vld [vmem:[%s2233_s1 + $0xf8] sm:$0xff]  ;;  %999 = vmatpush.bf16.msra.mxu2 %v1755_v2  ;;  %v1762_v7 = vld [vmem:[%s2233_s1 + $0xf0] sm:$0xff]  ;;  %v1761_v11 = vld [vmem:[%s2233_s1 + $0xe8] sm:$0xff] }
  0x10   : > { %1028 = vmatpush.bf16.msra.mxu3 %v1763_v3  ;;  %v1736_v12 = vld [vmem:[%s2233_s1 + $0x20] sm:$0xff]  ;;  %v1735_v16 = vld [vmem:[%s2233_s1 + $0x18] sm:$0xff]  ;;  %v1734_v20 = vld [vmem:[%s2233_s1 + $0x10] sm:$0xff] }
  0x11   : > { %942 = vmatpush.bf16.msra.mxu0 %v1738_v4  ;;  %v1744_v13 = vld [vmem:[%s2233_s1 + $0x60] sm:$0xff]  ;;  %v1743_v17 = vld [vmem:[%s2233_s1 + $0x58] sm:$0xff]  ;;  %v1742_v21 = vld [vmem:[%s2233_s1 + $0x50] sm:$0xff] }
  0x12   : > { %971 = vmatpush.bf16.msra.mxu1 %v1746_v5  ;;  %v1752_v14 = vld [vmem:[%s2233_s1 + $0xa0] sm:$0xff]  ;;  %v1751_v18 = vld [vmem:[%s2233_s1 + $0x98] sm:$0xff]  ;;  %v1750_v22 = vld [vmem:[%s2233_s1 + $0x90] sm:$0xff] }
  0x13   : > { %1000 = vmatpush.bf16.msra.mxu2 %v1754_v6  ;;  %v1760_v15 = vld [vmem:[%s2233_s1 + $0xe0] sm:$0xff]  ;;  %v1759_v19 = vld [vmem:[%s2233_s1 + $0xd8] sm:$0xff]  ;;  %v1758_v23 = vld [vmem:[%s2233_s1 + $0xd0] sm:$0xff] }
  0x14   : > { %1029 = vmatpush.bf16.msra.mxu3 %v1762_v7  ;;  %v1733_v24 = vld [vmem:[%s2233_s1 + $0x8] sm:$0xff]  ;;  %v1732_v28 = vld [vmem:[%s2233_s1] sm:$0xff]  ;;  %v1787_v40 = vld [vmem:[%s2233_s1 + $0x1b8] sm:$0xff] }
  0x15   : > { %943 = vmatpush.bf16.msra.mxu0 %v1737_v8  ;;  %v1741_v25 = vld [vmem:[%s2233_s1 + $0x48] sm:$0xff]  ;;  %v1740_v29 = vld [vmem:[%s2233_s1 + $0x40] sm:$0xff]  ;;  %v1771_v41 = vld [vmem:[%s2233_s1 + $0x138] sm:$0xff] }
  0x16   : > { %972 = vmatpush.bf16.msra.mxu1 %v1745_v9  ;;  %v1749_v26 = vld [vmem:[%s2233_s1 + $0x88] sm:$0xff]  ;;  %v1748_v30 = vld [vmem:[%s2233_s1 + $0x80] sm:$0xff]  ;;  %v1795_v46 = vld [vmem:[%s2233_s1 + $0x1f8] sm:$0xff] }
  0x17   : > { %1001 = vmatpush.bf16.msra.mxu2 %v1753_v10  ;;  %v1757_v27 = vld [vmem:[%s2233_s1 + $0xc8] sm:$0xff]  ;;  %v1756_v31 = vld [vmem:[%s2233_s1 + $0xc0] sm:$0xff]  ;;  %v1779_v47 = vld [vmem:[%s2233_s1 + $0x178] sm:$0xff] }
  0x18   : > { %1030 = vmatpush.bf16.msra.mxu3 %v1761_v11  ;;  %v1315_v32 = vld [vmem:[%s1993_s12] sm:$0xf]  ;;  %v1700_v34 = vld [vmem:[%s1993_s12 + $0x4] sm:$0xf]  ;;  %v1323_v36 = vld [vmem:[%s1993_s12 + $0x8] sm:$0xf] }
  0x19   : > { %944 = vmatpush.bf16.msra.mxu0 %v1736_v12  ;;  %v1704_v33 = vld [vmem:[%s1993_s12 + $0x1c] sm:$0xf0]  ;;  %v1317_v35 = vld [vmem:[%s1993_s12 + $0x20] sm:$0xf0]  ;;  %v1705_v37 = vld [vmem:[%s1993_s12 + $0x24] sm:$0xf0] }
  0x1a   : > { %973 = vmatpush.bf16.msra.mxu1 %v1744_v13  ;;  %v1701_v38 = vld [vmem:[%s1993_s12 + $0xc] sm:$0xf]  ;;  %v1316_v42 = vor.u32 %v1704_v33, %v1315_v32  ;;  %v1320_v43 = vor.u32 %v1700_v34, %v1317_v35  ;;  %v1324_v44 = vor.u32 %v1705_v37, %v1323_v36  ;;  %v1786_v48 = vld [vmem:[%s2233_s1 + $0x1b0] sm:$0xff]  ;;  %v1347_v56 = vld [vmem:[%s1993_s12 + $0x40] sm:$0xf] }
  0x1b   : > { %1002 = vmatpush.bf16.msra.mxu2 %v1752_v14  ;;  %v1325_v39 = vld [vmem:[%s1993_s12 + $0x28] sm:$0xf0]  ;;  %v1770_v49 = vld [vmem:[%s2233_s1 + $0x130] sm:$0xff]  ;;  %v1784_v57 = vld [vmem:[%s2233_s1 + $0x1a0] sm:$0xff] }
  0x1c   : > { %1031 = vmatpush.bf16.msra.mxu3 %v1760_v15  ;;  %v1328_v45 = vor.u32 %v1701_v38, %v1325_v39  ;;  %v1794_v50 = vld [vmem:[%s2233_s1 + $0x1f0] sm:$0xff]  ;;  %v1785_v52 = vld [vmem:[%s2233_s1 + $0x1a8] sm:$0xff]  ;;  %v1768_v58 = vld [vmem:[%s2233_s1 + $0x120] sm:$0xff] }
  0x1d   : > { %945 = vmatpush.bf16.msra.mxu0 %v1735_v16  ;;  %v1778_v51 = vld [vmem:[%s2233_s1 + $0x170] sm:$0xff]  ;;  %v1769_v53 = vld [vmem:[%s2233_s1 + $0x128] sm:$0xff]  ;;  %v1712_v59 = vld [vmem:[%s1993_s12 + $0x5c] sm:$0xf0] }
  0x1e   : > { %974 = vmatpush.bf16.msra.mxu1 %v1743_v17  ;;  %v1793_v54 = vld [vmem:[%s2233_s1 + $0x1e8] sm:$0xff]  ;;  %v1708_v60 = vld [vmem:[%s1993_s12 + $0x44] sm:$0xf]  ;;  %v1783_v4 = vld [vmem:[%s2233_s1 + $0x198] sm:$0xff]  ;;  %v1348_v6 = vor.u32 %v1712_v59, %v1347_v56 }
  0x1f   : > { %1003 = vmatpush.bf16.msra.mxu2 %v1751_v18  ;;  %v1777_v55 = vld [vmem:[%s2233_s1 + $0x168] sm:$0xff]  ;;  %v1349_v61 = vld [vmem:[%s1993_s12 + $0x60] sm:$0xf0]  ;;  %v1767_v5 = vld [vmem:[%s2233_s1 + $0x118] sm:$0xff] }
  0x20   : > { %1032 = vmatpush.bf16.msra.mxu3 %v1759_v19  ;;  %v1355_v62 = vld [vmem:[%s1993_s12 + $0x48] sm:$0xf]  ;;  %v1709_v0 = vld [vmem:[%s1993_s12 + $0x4c] sm:$0xf]  ;;  %v1792_v2 = vld [vmem:[%s2233_s1 + $0x1e0] sm:$0xff]  ;;  %v1352_v7 = vor.u32 %v1708_v60, %v1349_v61 }
  0x21   : > { %946 = vmatpush.bf16.msra.mxu0 %v1734_v20  ;;  %v1713_v63 = vld [vmem:[%s1993_s12 + $0x64] sm:$0xf0]  ;;  %v1357_v1 = vld [vmem:[%s1993_s12 + $0x68] sm:$0xf0]  ;;  %v1776_v3 = vld [vmem:[%s2233_s1 + $0x160] sm:$0xff] }
  0x22   : > { %975 = vmatpush.bf16.msra.mxu1 %v1742_v21  ;;  %v1356_v8 = vor.u32 %v1713_v63, %v1355_v62  ;;  %v1360_v9 = vor.u32 %v1709_v0, %v1357_v1  ;;  %v1791_v10 = vld [vmem:[%s2233_s1 + $0x1d8] sm:$0xff]  ;;  %v1782_v12 = vld [vmem:[%s2233_s1 + $0x190] sm:$0xff]  ;;  %v1781_v16 = vld [vmem:[%s2233_s1 + $0x188] sm:$0xff] }
  0x23   : > { %1004 = vmatpush.bf16.msra.mxu2 %v1750_v22  ;;  %v1775_v11 = vld [vmem:[%s2233_s1 + $0x158] sm:$0xff]  ;;  %v1766_v13 = vld [vmem:[%s2233_s1 + $0x110] sm:$0xff]  ;;  %v1765_v17 = vld [vmem:[%s2233_s1 + $0x108] sm:$0xff] }
  0x24   : > { %1033 = vmatpush.bf16.msra.mxu3 %v1758_v23  ;;  %v1790_v14 = vld [vmem:[%s2233_s1 + $0x1d0] sm:$0xff]  ;;  %v1789_v18 = vld [vmem:[%s2233_s1 + $0x1c8] sm:$0xff]  ;;  %v1379_v20 = vld [vmem:[%s1993_s12 + $0x80] sm:$0xf] }
  0x25   : > { %947 = vmatpush.bf16.msra.mxu0 %v1733_v24  ;;  %v1774_v15 = vld [vmem:[%s2233_s1 + $0x150] sm:$0xff]  ;;  %v1773_v19 = vld [vmem:[%s2233_s1 + $0x148] sm:$0xff]  ;;  %v1780_v21 = vld [vmem:[%s2233_s1 + $0x180] sm:$0xff] }
  0x26   : > { %976 = vmatpush.bf16.msra.mxu1 %v1741_v25  ;;  %v1764_v22 = vld [vmem:[%s2233_s1 + $0x100] sm:$0xff]  ;;  %v1363_v60 = vld [vmem:[%s1993_s12 + $0x50] sm:$0xf]  ;;  %v1710_v62 = vld [vmem:[%s1993_s12 + $0x54] sm:$0xf] }
  0x27   : > { %1005 = vmatpush.bf16.msra.mxu2 %v1749_v26  ;;  %v1720_v23 = vld [vmem:[%s1993_s12 + $0x9c] sm:$0xf0]  ;;  %v1716_v24 = vld [vmem:[%s1993_s12 + $0x84] sm:$0xf]  ;;  %v1387_v26 = vld [vmem:[%s1993_s12 + $0x88] sm:$0xf] }
  0x28   : > { %1034 = vmatpush.bf16.msra.mxu3 %v1757_v27  ;;  %v1381_v25 = vld [vmem:[%s1993_s12 + $0xa0] sm:$0xf0]  ;;  %v1721_v27 = vld [vmem:[%s1993_s12 + $0xa4] sm:$0xf0]  ;;  %v1380_v32 = vor.u32 %v1720_v23, %v1379_v20  ;;  %v1411_v36 = vld [vmem:[%s1993_s12 + $0xc0] sm:$0xf] }
  0x29   : > { %948 = vmatpush.bf16.msra.mxu0 %v1732_v28  ;;  %v1717_v28 = vld [vmem:[%s1993_s12 + $0x8c] sm:$0xf]  ;;  %v1384_v33 = vor.u32 %v1716_v24, %v1381_v25  ;;  %v1388_v34 = vor.u32 %v1721_v27, %v1387_v26  ;;  %v1728_v37 = vld [vmem:[%s1993_s12 + $0xdc] sm:$0xf0]  ;;  %v1724_v38 = vld [vmem:[%s1993_s12 + $0xc4] sm:$0xf] }
  0x2a   : > { %977 = vmatpush.bf16.msra.mxu1 %v1740_v29  ;;  %v1389_v29 = vld [vmem:[%s1993_s12 + $0xa8] sm:$0xf0]  ;;  %v1413_v39 = vld [vmem:[%s1993_s12 + $0xe0] sm:$0xf0]  ;;  %v1714_v61 = vld [vmem:[%s1993_s12 + $0x6c] sm:$0xf0] }
  0x2b   : > { %1006 = vmatpush.bf16.msra.mxu2 %v1748_v30  ;;  %v1788_v30 = vld [vmem:[%s2233_s1 + $0x1c0] sm:$0xff]  ;;  %v1392_v35 = vor.u32 %v1717_v28, %v1389_v29  ;;  %v1365_v63 = vld [vmem:[%s1993_s12 + $0x70] sm:$0xf0]  ;;  %v1371_v0 = vld [vmem:[%s1993_s12 + $0x58] sm:$0xf] }
  0x2c   : > { %1035 = vmatpush.bf16.msra.mxu3 %v1756_v31  ;;  %949 = vmatmul.bf16.vlgmr.msra.gmra.mxu0 %v1316_v42  ;;  %v1772_v31 = vld [vmem:[%s2233_s1 + $0x140] sm:$0xff]  ;;  %v1725_v42 = vld [vmem:[%s1993_s12 + $0xcc] sm:$0xf]  ;;  %v1715_v1 = vld [vmem:[%s1993_s12 + $0x74] sm:$0xf0] }
  0x2d   : > { %1057 = vmatpush.bf16.msrb.mxu0 %v1771_v41  ;;  %978 = vmatmul.bf16.vlgmr.msra.gmra.mxu1 %v1320_v43  ;;  %v1729_v41 = vld [vmem:[%s1993_s12 + $0xe4] sm:$0xf0]  ;;  %v1421_v43 = vld [vmem:[%s1993_s12 + $0xe8] sm:$0xf0]  ;;  %v1427_v20 = vld [vmem:[%s1993_s12 + $0xd0] sm:$0xf] }
  0x2e   : > { %1007 = vmatmul.bf16.vlgmr.msra.gmra.mxu2 %v1324_v44  ;;  %1086 = vmatpush.bf16.msrb.mxu1 %v1779_v47  ;;  %v1412_v44 = vor.u32 %v1728_v37, %v1411_v36  ;;  %v1424_v47 = vor.u32 %v1725_v42, %v1421_v43  ;;  %v1429_v23 = vld [vmem:[%s1993_s12 + $0xf0] sm:$0xf0]  ;;  %v1435_v24 = vld [vmem:[%s1993_s12 + $0xd8] sm:$0xf]  ;;  %v1727_v26 = vld [vmem:[%s1993_s12 + $0xdc] sm:$0xf] }
  0x2f   : > { %1115 = vmatpush.bf16.msrb.mxu2 %v1787_v40  ;;  %1036 = vmatmul.bf16.vlgmr.msra.gmra.mxu3 %v1328_v45  ;;  %v1419_v40 = vld [vmem:[%s1993_s12 + $0xc8] sm:$0xf]  ;;  %v1416_v45 = vor.u32 %v1724_v38, %v1413_v39  ;;  %v1731_v25 = vld [vmem:[%s1993_s12 + $0xf4] sm:$0xf0]  ;;  %v1437_v27 = vld [vmem:[%s1993_s12 + $0xf8] sm:$0xf0] }
  0x30   : > { %1144 = vmatpush.bf16.msrb.mxu3 %v1795_v46  ;;  %v1420_v46 = vor.u32 %v1729_v41, %v1419_v40 }
  0x31   : > { %1058 = vmatpush.bf16.msrb.mxu0 %v1770_v49  ;;  %v1706_v49 = vld [vmem:[%s1993_s12 + $0x2c] sm:$0xf0] }
  0x32   : > { %1087 = vmatpush.bf16.msrb.mxu1 %v1778_v51  ;;  %v1333_v51 = vld [vmem:[%s1993_s12 + $0x30] sm:$0xf0] }
  0x33   : > { %1116 = vmatpush.bf16.msrb.mxu2 %v1786_v48  ;;  %v1331_v48 = vld [vmem:[%s1993_s12 + $0x10] sm:$0xf] }
  0x34   : > { %1145 = vmatpush.bf16.msrb.mxu3 %v1794_v50  ;;  %v1702_v50 = vld [vmem:[%s1993_s12 + $0x14] sm:$0xf]  ;;  %v1332_v56 = vor.u32 %v1706_v49, %v1331_v48 }
  0x35   : > { %1059 = vmatpush.bf16.msrb.mxu0 %v1769_v53  ;;  %v1707_v53 = vld [vmem:[%s1993_s12 + $0x34] sm:$0xf0] }
  0x36   : > { %1088 = vmatpush.bf16.msrb.mxu1 %v1777_v55  ;;  %v1341_v55 = vld [vmem:[%s1993_s12 + $0x38] sm:$0xf0] }
  0x37   : > { %1117 = vmatpush.bf16.msrb.mxu2 %v1785_v52  ;;  %v1339_v52 = vld [vmem:[%s1993_s12 + $0x18] sm:$0xf] }
  0x38   : > { %1146 = vmatpush.bf16.msrb.mxu3 %v1793_v54  ;;  %v1703_v54 = vld [vmem:[%s1993_s12 + $0x1c] sm:$0xf] }
  0x39   : > { %1060 = vmatpush.bf16.msrb.mxu0 %v1768_v58  ;;  %v1340_v58 = vor.u32 %v1707_v53, %v1339_v52  ;;  %v1344_v59 = vor.u32 %v1703_v54, %v1341_v55 }
  0x3a   : > { %1089 = vmatpush.bf16.msrb.mxu1 %v1776_v3  ;;  %v1373_v3 = vld [vmem:[%s1993_s12 + $0x78] sm:$0xf0] }
  0x3b   : > { %1118 = vmatpush.bf16.msrb.mxu2 %v1784_v57  ;;  %v1336_v57 = vor.u32 %v1702_v50, %v1333_v51 }
  0x3c   : > { %1147 = vmatpush.bf16.msrb.mxu3 %v1792_v2  ;;  %954 = vmatmul.bf16.gmra.mxu0 %v1348_v6  ;;  %v1711_v2 = vld [vmem:[%s1993_s12 + $0x5c] sm:$0xf]  ;;  %v1372_v6 = vor.u32 %v1715_v1, %v1371_v0 }
  0x3d   : > { %1061 = vmatpush.bf16.msrb.mxu0 %v1767_v5  ;;  %983 = vmatmul.bf16.gmra.mxu1 %v1352_v7  ;;  %v1368_v5 = vor.u32 %v1710_v62, %v1365_v63  ;;  %v1376_v7 = vor.u32 %v1711_v2, %v1373_v3 }
  0x3e   : > { %1012 = vmatmul.bf16.gmra.mxu2 %v1356_v8  ;;  %1090 = vmatpush.bf16.msrb.mxu1 %v1775_v11  ;;  %v1395_v8 = vld [vmem:[%s1993_s12 + $0x90] sm:$0xf]  ;;  %v1397_v11 = vld [vmem:[%s1993_s12 + $0xb0] sm:$0xf0] }
  0x3f   : > { %1119 = vmatpush.bf16.msrb.mxu2 %v1783_v4  ;;  %1041 = vmatmul.bf16.gmra.mxu3 %v1360_v9  ;;  %v1364_v4 = vor.u32 %v1714_v61, %v1363_v60  ;;  %v1722_v9 = vld [vmem:[%s1993_s12 + $0xac] sm:$0xf0] }
  0x40   : > { %1148 = vmatpush.bf16.msrb.mxu3 %v1791_v10  ;;  %v1718_v10 = vld [vmem:[%s1993_s12 + $0x94] sm:$0xf] }
  0x41   : > { %1062 = vmatpush.bf16.msrb.mxu0 %v1766_v13  ;;  %v1723_v13 = vld [vmem:[%s1993_s12 + $0xb4] sm:$0xf0] }
  0x42   : > { %1091 = vmatpush.bf16.msrb.mxu1 %v1774_v15  ;;  %v1405_v15 = vld [vmem:[%s1993_s12 + $0xb8] sm:$0xf0] }
  0x43   : > { %1120 = vmatpush.bf16.msrb.mxu2 %v1782_v12  ;;  %v1403_v12 = vld [vmem:[%s1993_s12 + $0x98] sm:$0xf] }
  0x44   : > { %1149 = vmatpush.bf16.msrb.mxu3 %v1790_v14  ;;  %v1719_v14 = vld [vmem:[%s1993_s12 + $0x9c] sm:$0xf] }
  0x45   : > { %1063 = vmatpush.bf16.msrb.mxu0 %v1765_v17  ;;  %v1400_v17 = vor.u32 %v1718_v10, %v1397_v11 }
  0x46   : > { %1092 = vmatpush.bf16.msrb.mxu1 %v1773_v19  ;;  %v1408_v19 = vor.u32 %v1719_v14, %v1405_v15 }
  0x47   : > { %1121 = vmatpush.bf16.msrb.mxu2 %v1781_v16  ;;  %v1396_v16 = vor.u32 %v1722_v9, %v1395_v8 }
  0x48   : > { %1150 = vmatpush.bf16.msrb.mxu3 %v1789_v18  ;;  %v1404_v18 = vor.u32 %v1723_v13, %v1403_v12 }
  0x49   : > { %1064 = vmatpush.bf16.msrb.mxu0 %v1764_v22  ;;  %v1726_v22 = vld [vmem:[%s1993_s12 + $0xd4] sm:$0xf] }
  0x4a   : > { %1093 = vmatpush.bf16.msrb.mxu1 %v1772_v31  ;;  %v1432_v29 = vor.u32 %v1726_v22, %v1429_v23  ;;  %v1440_v31 = vor.u32 %v1727_v26, %v1437_v27 }
  0x4b   : > { %1122 = vmatpush.bf16.msrb.mxu2 %v1780_v21  ;;  %v1730_v21 = vld [vmem:[%s1993_s12 + $0xec] sm:$0xf0]  ;;  %s1312_s12 = sshll.u32 %s2241_s17, 2 }
  0x4c   : > { %1151 = vmatpush.bf16.msrb.mxu3 %v1788_v30  ;;  %959 = vmatmul.bf16.gmra.mxu0 %v1380_v32  ;;  %v1428_v28 = vor.u32 %v1730_v21, %v1427_v20  ;;  %v1436_v30 = vor.u32 %v1731_v25, %v1435_v24  ;;  %v2176_v32 = vld [vmem:[%s2234_s2] ss:$0 sm:$0xff]  ;;  %s2206_s18 = scalar_lea.vmem %s2235_s3, %s1312_s12 }
  0x4d   : > { %988 = vmatmul.bf16.gmra.mxu1 %v1384_v33 }
  0x4e   : > { %1017 = vmatmul.bf16.gmra.mxu2 %v1388_v34 }
  0x4f   : > { %1046 = vmatmul.bf16.gmra.mxu3 %v1392_v35 }
  0x5c   : > { %964 = vmatmul.bf16.gmra.mxu0 %v1412_v44 }
  0x5d   : > { %993 = vmatmul.bf16.gmra.mxu1 %v1416_v45 }
  0x5e   : > { %1022 = vmatmul.bf16.gmra.mxu2 %v1420_v46 }
  0x5f   : > { %1051 = vmatmul.bf16.gmra.mxu3 %v1424_v47 }
  0x6c   : > { %1065 = vmatmul.bf16.vlgmr.msrb.gmra.mxu0 %v1332_v56 }
  0x6d   : > { %1094 = vmatmul.bf16.vlgmr.msrb.gmra.mxu1 %v1336_v57 }
  0x6e   : > { %1123 = vmatmul.bf16.vlgmr.msrb.gmra.mxu2 %v1340_v58 }
  0x6f   : > { %1152 = vmatmul.bf16.vlgmr.msrb.gmra.mxu3 %v1344_v59 }
  0x7c   : > { %1070 = vmatmul.bf16.gmra.mxu0 %v1364_v4 }
  0x7d   : > { %1099 = vmatmul.bf16.gmra.mxu1 %v1368_v5 }
  0x7e   : > { %1128 = vmatmul.bf16.gmra.mxu2 %v1372_v6 }
  0x7f   : > { %1157 = vmatmul.bf16.gmra.mxu3 %v1376_v7 }
  0x8c   : > { %1075 = vmatmul.bf16.gmra.mxu0 %v1396_v16 }
  0x8d   : > { %1104 = vmatmul.bf16.gmra.mxu1 %v1400_v17 }
  0x8e   : > { %1133 = vmatmul.bf16.gmra.mxu2 %v1404_v18 }
  0x8f   : > { %1162 = vmatmul.bf16.gmra.mxu3 %v1408_v19 }
  0x9c   : > { %1080 = vmatmul.bf16.gmra.mxu0 %v1428_v28 }
  0x9d   : > { %1109 = vmatmul.bf16.gmra.mxu1 %v1432_v29 }
  0x9e   : > { %1138 = vmatmul.bf16.gmra.mxu2 %v1436_v30 }
  0x9f   : > { %1167 = vmatmul.bf16.gmra.mxu3 %v1440_v31 }
  0xa9   : > { %v950_v33 = vpop.f32.mrf.mxu0 }
  0xaa   : > { %v979_v34 = vpop.f32.mrf.mxu1  ;;  %v951_v35 = vadd.f32 %v2176_v32, %v950_v33 }
  0xac   : > { %v980_v36 = vadd.f32 %v979_v34, %v951_v35 }
  0xb1   : > { %v1008_v37 = vpop.f32.mrf.mxu2  ;;  %v952_v40 = vpop.f32.mrf.mxu0 }
  0xb2   : > { %v1037_v38 = vpop.f32.mrf.mxu3  ;;  %v1009_v39 = vadd.f32 %v1008_v37, %v980_v36  ;;  %v981_v41 = vpop.f32.mrf.mxu1  ;;  %v953_v15 = vadd.f32 %v2176_v32, %v952_v40 }
  0xb4   : > { %v1038_v42 = vadd.f32 %v1037_v38, %v1009_v39  ;;  %v982_v20 = vadd.f32 %v981_v41, %v953_v15 }
  0xb9   : > { %v1010_v43 = vpop.f32.mrf.mxu2  ;;  %v955_v45 = vpop.f32.mrf.mxu0 }
  0xba   : > { %v1039_v44 = vpop.f32.mrf.mxu3  ;;  %v984_v46 = vpop.f32.mrf.mxu1  ;;  %v956_v47 = vadd.f32 %v2176_v32, %v955_v45  ;;  %v1011_v21 = vadd.f32 %v1010_v43, %v982_v20 }
  0xbc   : > { %v985_v48 = vadd.f32 %v984_v46, %v956_v47  ;;  %v1040_v25 = vadd.f32 %v1039_v44, %v1011_v21 }
  0xc1   : > { %v1013_v49 = vpop.f32.mrf.mxu2  ;;  %v957_v52 = vpop.f32.mrf.mxu0 }
  0xc2   : > { %v1042_v50 = vpop.f32.mrf.mxu3  ;;  %v1014_v51 = vadd.f32 %v1013_v49, %v985_v48  ;;  %v986_v53 = vpop.f32.mrf.mxu1  ;;  %v958_v31 = vadd.f32 %v2176_v32, %v957_v52 }
  0xc4   : > { %v1043_v54 = vadd.f32 %v1042_v50, %v1014_v51  ;;  %v987_v40 = vadd.f32 %v986_v53, %v958_v31 }
  0xc9   : > { %v1015_v55 = vpop.f32.mrf.mxu2  ;;  %v960_v57 = vpop.f32.mrf.mxu0 }
  0xca   : > { %v1044_v56 = vpop.f32.mrf.mxu3  ;;  %v989_v58 = vpop.f32.mrf.mxu1  ;;  %v961_v59 = vadd.f32 %v2176_v32, %v960_v57 }
  0xcc   : > { %v990_v60 = vadd.f32 %v989_v58, %v961_v59 }
  0xd1   : > { %v1018_v61 = vpop.f32.mrf.mxu2  ;;  %v962_v0 = vpop.f32.mrf.mxu0 }
  0xd2   : > { %v1047_v62 = vpop.f32.mrf.mxu3  ;;  %v1019_v63 = vadd.f32 %v1018_v61, %v990_v60  ;;  %v2181_v1 = vpop.f32.mrf.mxu1 }
  0xd4   : > { %v2183_v2 = vadd.f32 %v1047_v62, %v1019_v63 }
  0xd9   : > { %v2185_v3 = vpop.f32.mrf.mxu2  ;;  %v965_v5 = vpop.f32.mrf.mxu0 }
  0xda   : > { %v2187_v4 = vpop.f32.mrf.mxu3  ;;  %v994_v6 = vpop.f32.mrf.mxu1  ;;  %v966_v7 = vadd.f32 %v2176_v32, %v965_v5 }
  0xdc   : > { %v995_v8 = vadd.f32 %v994_v6, %v966_v7 }
  0xe1   : > { %v1023_v9 = vpop.f32.mrf.mxu2  ;;  %v2190_v12 = vpop.f32.mrf.mxu0 }
  0xe2   : > { %v1052_v10 = vpop.f32.mrf.mxu3  ;;  %v1024_v11 = vadd.f32 %v1023_v9, %v995_v8  ;;  %v2192_v13 = vpop.f32.mrf.mxu1 }
  0xe4   : > { %v2194_v14 = vadd.f32 %v1052_v10, %v1024_v11 }
  0xe9   : > { %v2197_v16 = vpop.f32.mrf.mxu2  ;;  %v1066_v18 = vpop.f32.mrf.mxu0 }
  0xea   : > { %v2199_v17 = vpop.f32.mrf.mxu3  ;;  %v1095_v19 = vpop.f32.mrf.mxu1  ;;  %v1067_v22 = vadd.f32 %v1066_v18, %v1038_v42  ;;  %v1016_v42 = vadd.f32 %v1015_v55, %v987_v40  ;;  %v963_v55 = vadd.f32 %v2176_v32, %v962_v0 }
  0xec   : > { %v1096_v28 = vadd.f32 %v1095_v19, %v1067_v22  ;;  %v1045_v49 = vadd.f32 %v1044_v56, %v1016_v42 }
  0xf1   : > { %v1124_v23 = vpop.f32.mrf.mxu2  ;;  %v1068_v26 = vpop.f32.mrf.mxu0 }
  0xf2   : > { %v1153_v24 = vpop.f32.mrf.mxu3  ;;  %v1097_v27 = vpop.f32.mrf.mxu1  ;;  %v1069_v29 = vadd.f32 %v1068_v26, %v1040_v25  ;;  %v1125_v30 = vadd.f32 %v1124_v23, %v1096_v28 }
  0xf4   : > { %v1098_v33 = vadd.f32 %v1097_v27, %v1069_v29  ;;  %v1154_v36 = vadd.f32 %v1153_v24, %v1125_v30 }
  0xf6   : > { %v1173_v43 = vmax.f32 %v1154_v36, 0.0 }
  0xf9   : > { %v1126_v34 = vpop.f32.mrf.mxu2  ;;  %v1071_v38 = vpop.f32.mrf.mxu0 }
  0xfa   : > { %v1155_v35 = vpop.f32.mrf.mxu3  ;;  %v1127_v37 = vadd.f32 %v1126_v34, %v1098_v33  ;;  %v1100_v39 = vpop.f32.mrf.mxu1  ;;  %v1072_v46 = vadd.f32 %v1071_v38, %v1043_v54  ;;  %v992_v54 = vadd.f32 %v2181_v1, %v963_v55  ;;  %v968_v1 = vadd.f32 %v2176_v32, %v2190_v12 }
  0xfc   : > { %v1156_v41 = vadd.f32 %v1155_v35, %v1127_v37  ;;  %v1101_v52 = vadd.f32 %v1100_v39, %v1072_v46  ;;  %v1021_v56 = vadd.f32 %v2185_v3, %v992_v54  ;;  %v997_v27 = vadd.f32 %v2192_v13, %v968_v1 }
  0xfe   : > { %v1174_v44 = vmax.f32 %v1156_v41, 0.0  ;;  %v1050_v15 = vadd.f32 %v2187_v4, %v1021_v56  ;;  %v1026_v29 = vadd.f32 %v2197_v16, %v997_v27 }
 0x100   : > { %v1799_v45 = vpack.c.bf16 %v1174_v44, %v1173_v43  ;;  %v1055_v12 = vadd.f32 %v2199_v17, %v1026_v29 }
 0x101   : > { %v1129_v47 = vpop.f32.mrf.mxu2  ;;  %v1073_v50 = vpop.f32.mrf.mxu0 }
 0x102   : > { %v1158_v48 = vpop.f32.mrf.mxu3  ;;  %1800 = vst [vmem:[%s2206_s18] sm:$0xff] %v1799_v45   ;;  %v1102_v51 = vpop.f32.mrf.mxu1  ;;  %v1074_v53 = vadd.f32 %v1073_v50, %v1045_v49  ;;  %v1130_v57 = vadd.f32 %v1129_v47, %v1101_v52 }
 0x104   : > { %v1103_v58 = vadd.f32 %v1102_v51, %v1074_v53  ;;  %v1159_v61 = vadd.f32 %v1158_v48, %v1130_v57 }
 0x106   : > { %v1175_v7 = vmax.f32 %v1159_v61, 0.0 }
 0x109   : > { %v1131_v59 = vpop.f32.mrf.mxu2  ;;  %v1076_v63 = vpop.f32.mrf.mxu0 }
 0x10a   : > { %v1160_v60 = vpop.f32.mrf.mxu3  ;;  %v1132_v62 = vadd.f32 %v1131_v59, %v1103_v58  ;;  %v1105_v5 = vpop.f32.mrf.mxu1  ;;  %v1077_v10 = vadd.f32 %v1076_v63, %v2183_v2 }
 0x10c   : > { %v1161_v6 = vadd.f32 %v1160_v60, %v1132_v62  ;;  %v1106_v20 = vadd.f32 %v1105_v5, %v1077_v10 }
 0x10e   : > { %v1176_v8 = vmax.f32 %v1161_v6, 0.0 }
 0x110   : > { %v1804_v9 = vpack.c.bf16 %v1176_v8, %v1175_v7 }
 0x111   : > { %v1134_v11 = vpop.f32.mrf.mxu2  ;;  %v1078_v18 = vpop.f32.mrf.mxu0 }
 0x112   : > { %v1163_v0 = vpop.f32.mrf.mxu3  ;;  %1816 = vst [vmem:[%s2206_s18 + $0x8] sm:$0xff] %v1804_v9   ;;  %v1107_v19 = vpop.f32.mrf.mxu1  ;;  %v1079_v21 = vadd.f32 %v1078_v18, %v1050_v15  ;;  %v1135_v22 = vadd.f32 %v1134_v11, %v1106_v20 }
 0x114   : > { %v1108_v23 = vadd.f32 %v1107_v19, %v1079_v21  ;;  %v1164_v25 = vadd.f32 %v1163_v0, %v1135_v22 }
 0x116   : > { %v1177_v30 = vmax.f32 %v1164_v25, 0.0 }
 0x119   : > { %v1136_v3 = vpop.f32.mrf.mxu2  ;;  %v1081_v2 = vpop.f32.mrf.mxu0 }
 0x11a   : > { %v1165_v24 = vpop.f32.mrf.mxu3  ;;  %v1137_v26 = vadd.f32 %v1136_v3, %v1108_v23  ;;  %v1110_v4 = vpop.f32.mrf.mxu1  ;;  %v1082_v34 = vadd.f32 %v1081_v2, %v2194_v14 }
 0x11c   : > { %v1166_v28 = vadd.f32 %v1165_v24, %v1137_v26  ;;  %v1111_v37 = vadd.f32 %v1110_v4, %v1082_v34 }
 0x11e   : > { %v1178_v31 = vmax.f32 %v1166_v28, 0.0 }
 0x120   : > { %v1809_v33 = vpack.c.bf16 %v1178_v31, %v1177_v30 }
 0x121   : > { %v1139_v35 = vpop.f32.mrf.mxu2  ;;  %v1083_v36 = vpop.f32.mrf.mxu0 }
 0x122   : > { %v1168_v32 = vpop.f32.mrf.mxu3  ;;  %1817 = vst [vmem:[%s2206_s18 + $0x10] sm:$0xff] %v1809_v33   ;;  %v1084_v38 = vadd.f32 %v1083_v36, %v1055_v12  ;;  %v1140_v39 = vadd.f32 %v1139_v35, %v1111_v37  ;;  %v1112_v13 = vpop.f32.mrf.mxu1 }
 0x124   : > { %v1113_v40 = vadd.f32 %v1112_v13, %v1084_v38  ;;  %v1169_v42 = vadd.f32 %v1168_v32, %v1140_v39 }
 0x126   : > { %v1179_v45 = vmax.f32 %v1169_v42, 0.0 }
 0x129   : > { %v1141_v41 = vpop.f32.mrf.mxu2 }
 0x12a   : > { %v1142_v16 = vadd.f32 %v1141_v41, %v1113_v40  ;;  %v1170_v43 = vpop.f32.mrf.mxu3 }
 0x12c   : > { %v1171_v44 = vadd.f32 %v1170_v43, %v1142_v16 }
 0x12e   : > { %v1180_v46 = vmax.f32 %v1171_v44, 0.0 }
 0x130   : > { %v1814_v14 = vpack.c.bf16 %v1180_v46, %v1179_v45 }
 0x132   : > { %1818 = vst [vmem:[%s2206_s18 + $0x18] sm:$0xff] %v1814_v14  }
 0x133 PF: > { %s13_s14 = sadd.s32 1, %s1866_s14   ;;  %s2236_s12 = smov %s1862_s13 }
 0x134   : > { %p10_p5 = scmp.ge.s32.totalorder %s13_s14, 4   ;;  %s2237_s13 = smov %s2239_s15 }
 0x136   :  { %12 = sbr.rel (!%p10_p5) target bundleno = 2 (0x2), region = 65 }

// kernel: autoencoder_forward.7
= control target key start
LH: loop header
LB: loop body
LE: loop exit
PB: predicated region body
PF: predicated region fallthrough
CT: control target
= control target key end

     0   :  { %vm4507_vm0 = vcmask 1044480   ;;  %vm4503_vm1 = vcmask 80896   ;;  %s10211_s1 = inlined_call_operand.vmem [shape: bf16[6272,10], index: 1, kind: input, shape index: {}]   ;;  %s10212_s0 = inlined_call_operand.vmem [shape: bf16[16,6272], index: 0, kind: input, shape index: {}]   ;;  %s10213_s2 = inlined_call_operand.vmem [shape: f32[1,10], index: 2, kind: input, shape index: {}]   ;;  %s10214_s3 = inlined_call_operand.vmem [shape: bf16[10,6272], index: 3, kind: input, shape index: {}]   ;;  %s10215_s4 = inlined_call_operand.vmem [shape: f32[1,6272], index: 4, kind: input, shape index: {}]   ;;  %s10216_s5 = inlined_call_operand.vmem [shape: bf16[16,6272], index: 5, kind: output, shape index: {}]  }
   0x1   :  { %v7510_v0 = vld [vmem:[%s10211_s1 + $0x38] sm:$0xff]  ;;  %v7509_v4 = vld [vmem:[%s10211_s1 + $0x30] sm:$0xff]  ;;  %v7508_v8 = vld [vmem:[%s10211_s1 + $0x28] sm:$0xff] }
   0x2   :  { %v7526_v1 = vld [vmem:[%s10211_s1 + $0xb8] sm:$0xff]  ;;  %3457 = vmatpush.bf16.msra.mxu0 %v7510_v0  ;;  %v7525_v5 = vld [vmem:[%s10211_s1 + $0xb0] sm:$0xff]  ;;  %v7524_v9 = vld [vmem:[%s10211_s1 + $0xa8] sm:$0xff] }
   0x3   :  { %v7518_v2 = vld [vmem:[%s10211_s1 + $0x78] sm:$0xff]  ;;  %3485 = vmatpush.bf16.msra.mxu2 %v7526_v1  ;;  %v7517_v6 = vld [vmem:[%s10211_s1 + $0x70] sm:$0xff]  ;;  %v7516_v10 = vld [vmem:[%s10211_s1 + $0x68] sm:$0xff] }
   0x4   :  { %v7534_v3 = vld [vmem:[%s10211_s1 + $0xf8] sm:$0xff]  ;;  %3471 = vmatpush.bf16.msra.mxu1 %v7518_v2  ;;  %v7533_v7 = vld [vmem:[%s10211_s1 + $0xf0] sm:$0xff]  ;;  %v7532_v11 = vld [vmem:[%s10211_s1 + $0xe8] sm:$0xff] }
   0x5   :  { %3499 = vmatpush.bf16.msra.mxu3 %v7534_v3  ;;  %v7507_v12 = vld [vmem:[%s10211_s1 + $0x20] sm:$0xff]  ;;  %v7506_v16 = vld [vmem:[%s10211_s1 + $0x18] sm:$0xff]  ;;  %v7505_v20 = vld [vmem:[%s10211_s1 + $0x10] sm:$0xff] }
   0x6   :  { %3458 = vmatpush.bf16.msra.mxu0 %v7509_v4  ;;  %v7523_v13 = vld [vmem:[%s10211_s1 + $0xa0] sm:$0xff]  ;;  %v7522_v17 = vld [vmem:[%s10211_s1 + $0x98] sm:$0xff]  ;;  %v7521_v21 = vld [vmem:[%s10211_s1 + $0x90] sm:$0xff] }
   0x7   :  { %3486 = vmatpush.bf16.msra.mxu2 %v7525_v5  ;;  %v7515_v14 = vld [vmem:[%s10211_s1 + $0x60] sm:$0xff]  ;;  %v7514_v18 = vld [vmem:[%s10211_s1 + $0x58] sm:$0xff]  ;;  %v7513_v22 = vld [vmem:[%s10211_s1 + $0x50] sm:$0xff] }
   0x8   :  { %3472 = vmatpush.bf16.msra.mxu1 %v7517_v6  ;;  %v7531_v15 = vld [vmem:[%s10211_s1 + $0xe0] sm:$0xff]  ;;  %v7530_v19 = vld [vmem:[%s10211_s1 + $0xd8] sm:$0xff]  ;;  %v7529_v23 = vld [vmem:[%s10211_s1 + $0xd0] sm:$0xff] }
   0x9   :  { %3500 = vmatpush.bf16.msra.mxu3 %v7533_v7  ;;  %v7504_v24 = vld [vmem:[%s10211_s1 + $0x8] sm:$0xff]  ;;  %v7503_v28 = vld [vmem:[%s10211_s1] sm:$0xff]  ;;  %v7542_v30 = vld [vmem:[%s10211_s1 + $0x138] sm:$0xff] }
   0xa   :  { %3459 = vmatpush.bf16.msra.mxu0 %v7508_v8  ;;  %v7520_v25 = vld [vmem:[%s10211_s1 + $0x88] sm:$0xff]  ;;  %v7519_v29 = vld [vmem:[%s10211_s1 + $0x80] sm:$0xff]  ;;  %v7558_v31 = vld [vmem:[%s10211_s1 + $0x1b8] sm:$0xff] }
   0xb   :  { %3487 = vmatpush.bf16.msra.mxu2 %v7524_v9  ;;  %v7512_v26 = vld [vmem:[%s10211_s1 + $0x48] sm:$0xff]  ;;  %v7511_v32 = vld [vmem:[%s10211_s1 + $0x40] sm:$0xff]  ;;  %v7550_v38 = vld [vmem:[%s10211_s1 + $0x178] sm:$0xff] }
   0xc   :  { %3473 = vmatpush.bf16.msra.mxu1 %v7516_v10  ;;  %v7528_v27 = vld [vmem:[%s10211_s1 + $0xc8] sm:$0xff]  ;;  %v7527_v33 = vld [vmem:[%s10211_s1 + $0xc0] sm:$0xff]  ;;  %v7566_v39 = vld [vmem:[%s10211_s1 + $0x1f8] sm:$0xff] }
   0xd   :  { %3501 = vmatpush.bf16.msra.mxu3 %v7532_v11  ;;  %v5447_v34 = vld [vmem:[%s10212_s0] sm:$0xf]  ;;  %v7478_v35 = vld [vmem:[%s10212_s0 + $0xc0] sm:$0xf0]  ;;  %v5455_v36 = vld [vmem:[%s10212_s0 + $0x8] sm:$0xf] }
   0xe   :  { %3460 = vmatpush.bf16.msra.mxu0 %v7507_v12  ;;  %v7479_v37 = vld [vmem:[%s10212_s0 + $0xc8] sm:$0xf0]  ;;  %v7454_v40 = vld [vmem:[%s10212_s0 + $0x4] sm:$0xf]  ;;  %v5449_v41 = vld [vmem:[%s10212_s0 + $0xc4] sm:$0xf0]  ;;  %v5448_v44 = vor.u32 %v7478_v35, %v5447_v34 }
   0xf   :  { %3488 = vmatpush.bf16.msra.mxu2 %v7523_v13  ;;  %v7455_v42 = vld [vmem:[%s10212_s0 + $0xc] sm:$0xf]  ;;  %v5457_v43 = vld [vmem:[%s10212_s0 + $0xcc] sm:$0xf0]  ;;  %v5456_v45 = vor.u32 %v7479_v37, %v5455_v36  ;;  %v5452_v48 = vor.u32 %v7454_v40, %v5449_v41  ;;  %v7539_v56 = vld [vmem:[%s10211_s1 + $0x120] sm:$0xff] }
  0x10   :  { %3474 = vmatpush.bf16.msra.mxu1 %v7515_v14  ;;  %v7541_v46 = vld [vmem:[%s10211_s1 + $0x130] sm:$0xff]  ;;  %v5460_v49 = vor.u32 %v7455_v42, %v5457_v43  ;;  %v7540_v52 = vld [vmem:[%s10211_s1 + $0x128] sm:$0xff]  ;;  %v7555_v57 = vld [vmem:[%s10211_s1 + $0x1a0] sm:$0xff] }
  0x11   :  { %3502 = vmatpush.bf16.msra.mxu3 %v7531_v15  ;;  %v7557_v47 = vld [vmem:[%s10211_s1 + $0x1b0] sm:$0xff]  ;;  %v7556_v53 = vld [vmem:[%s10211_s1 + $0x1a8] sm:$0xff]  ;;  %v7547_v58 = vld [vmem:[%s10211_s1 + $0x160] sm:$0xff] }
  0x12   :  { %3461 = vmatpush.bf16.msra.mxu0 %v7506_v16  ;;  %v7549_v50 = vld [vmem:[%s10211_s1 + $0x170] sm:$0xff]  ;;  %v7548_v54 = vld [vmem:[%s10211_s1 + $0x168] sm:$0xff]  ;;  %v7563_v59 = vld [vmem:[%s10211_s1 + $0x1e0] sm:$0xff] }
  0x13   :  { %3489 = vmatpush.bf16.msra.mxu2 %v7522_v17  ;;  %v7565_v51 = vld [vmem:[%s10211_s1 + $0x1f0] sm:$0xff]  ;;  %v7564_v55 = vld [vmem:[%s10211_s1 + $0x1e8] sm:$0xff]  ;;  %v7538_v60 = vld [vmem:[%s10211_s1 + $0x118] sm:$0xff] }
  0x14   :  { %3475 = vmatpush.bf16.msra.mxu1 %v7514_v18  ;;  %v7554_v61 = vld [vmem:[%s10211_s1 + $0x198] sm:$0xff]  ;;  %v7537_v0 = vld [vmem:[%s10211_s1 + $0x110] sm:$0xff]  ;;  %v7536_v4 = vld [vmem:[%s10211_s1 + $0x108] sm:$0xff] }
  0x15   :  { %3503 = vmatpush.bf16.msra.mxu3 %v7530_v19  ;;  %v7546_v62 = vld [vmem:[%s10211_s1 + $0x158] sm:$0xff]  ;;  %v7553_v1 = vld [vmem:[%s10211_s1 + $0x190] sm:$0xff]  ;;  %v7552_v5 = vld [vmem:[%s10211_s1 + $0x188] sm:$0xff] }
  0x16   :  { %3462 = vmatpush.bf16.msra.mxu0 %v7505_v20  ;;  %v7562_v63 = vld [vmem:[%s10211_s1 + $0x1d8] sm:$0xff]  ;;  %v7545_v2 = vld [vmem:[%s10211_s1 + $0x150] sm:$0xff]  ;;  %v7544_v6 = vld [vmem:[%s10211_s1 + $0x148] sm:$0xff] }
  0x17   :  { %3490 = vmatpush.bf16.msra.mxu2 %v7521_v21  ;;  %v7561_v3 = vld [vmem:[%s10211_s1 + $0x1d0] sm:$0xff]  ;;  %v7560_v7 = vld [vmem:[%s10211_s1 + $0x1c8] sm:$0xff]  ;;  %v7535_v8 = vld [vmem:[%s10211_s1 + $0x100] sm:$0xff] }
  0x18   :  { %3476 = vmatpush.bf16.msra.mxu1 %v7513_v22  ;;  %v7551_v9 = vld [vmem:[%s10211_s1 + $0x180] sm:$0xff]  ;;  %v7574_v10 = vld [vmem:[%s10211_s1 + $0x238] sm:$0xff]  ;;  %v5463_v12 = vld [vmem:[%s10212_s0 + $0x10] sm:$0xf] }
  0x19   :  { %3504 = vmatpush.bf16.msra.mxu3 %v7529_v23  ;;  %v7590_v11 = vld [vmem:[%s10211_s1 + $0x2b8] sm:$0xff]  ;;  %v7480_v13 = vld [vmem:[%s10212_s0 + $0xd0] sm:$0xf0]  ;;  %v7543_v16 = vld [vmem:[%s10211_s1 + $0x140] sm:$0xff] }
  0x1a   :  { %3463 = vmatpush.bf16.msra.mxu0 %v7504_v24  ;;  %v5471_v14 = vld [vmem:[%s10212_s0 + $0x18] sm:$0xf]  ;;  %v7481_v15 = vld [vmem:[%s10212_s0 + $0xd8] sm:$0xf0]  ;;  %v7559_v17 = vld [vmem:[%s10211_s1 + $0x1c0] sm:$0xff]  ;;  %v5464_v22 = vor.u32 %v7480_v13, %v5463_v12 }
  0x1b   :  { %3491 = vmatpush.bf16.msra.mxu2 %v7520_v25  ;;  %v7456_v18 = vld [vmem:[%s10212_s0 + $0x14] sm:$0xf]  ;;  %v5465_v19 = vld [vmem:[%s10212_s0 + $0xd4] sm:$0xf0]  ;;  %v7457_v20 = vld [vmem:[%s10212_s0 + $0x1c] sm:$0xf]  ;;  %v5472_v23 = vor.u32 %v7481_v15, %v5471_v14 }
  0x1c   :  { %3477 = vmatpush.bf16.msra.mxu1 %v7512_v26  ;;  %v5473_v21 = vld [vmem:[%s10212_s0 + $0xdc] sm:$0xf0]  ;;  %v7582_v24 = vld [vmem:[%s10211_s1 + $0x278] sm:$0xff]  ;;  %v5468_v26 = vor.u32 %v7456_v18, %v5465_v19  ;;  %v7580_v34 = vld [vmem:[%s10211_s1 + $0x268] sm:$0xff] }
  0x1d   :  { %3505 = vmatpush.bf16.msra.mxu3 %v7528_v27  ;;  %v7598_v25 = vld [vmem:[%s10211_s1 + $0x2f8] sm:$0xff]  ;;  %v5476_v27 = vor.u32 %v7457_v20, %v5473_v21  ;;  %v7596_v35 = vld [vmem:[%s10211_s1 + $0x2e8] sm:$0xff]  ;;  %v7571_v36 = vld [vmem:[%s10211_s1 + $0x220] sm:$0xff] }
  0x1e   :  { %3464 = vmatpush.bf16.msra.mxu0 %v7503_v28  ;;  %v7573_v28 = vld [vmem:[%s10211_s1 + $0x230] sm:$0xff]  ;;  %v7587_v37 = vld [vmem:[%s10211_s1 + $0x2a0] sm:$0xff]  ;;  %v7570_v40 = vld [vmem:[%s10211_s1 + $0x218] sm:$0xff] }
  0x1f   :  { %3492 = vmatpush.bf16.msra.mxu2 %v7519_v29  ;;  %v7589_v29 = vld [vmem:[%s10211_s1 + $0x2b0] sm:$0xff]  ;;  %v7586_v41 = vld [vmem:[%s10211_s1 + $0x298] sm:$0xff]  ;;  %v7604_v12 = vld [vmem:[%s10211_s1 + $0x328] sm:$0xff] }
  0x20   :  { %3478 = vmatpush.bf16.msra.mxu1 %v7511_v32  ;;  %v7572_v32 = vld [vmem:[%s10211_s1 + $0x228] sm:$0xff]  ;;  %v7578_v42 = vld [vmem:[%s10211_s1 + $0x258] sm:$0xff]  ;;  %v7611_v18 = vld [vmem:[%s10211_s1 + $0x360] sm:$0xff] }
  0x21   :  { %3506 = vmatpush.bf16.msra.mxu3 %v7527_v33  ;;  %3465 = vmatmul.bf16.vlgmr.msra.gmra.mxu0 %v5448_v44  ;;  %v7588_v33 = vld [vmem:[%s10211_s1 + $0x2a8] sm:$0xff]  ;;  %v7594_v43 = vld [vmem:[%s10211_s1 + $0x2d8] sm:$0xff]  ;;  %v7569_v44 = vld [vmem:[%s10211_s1 + $0x210] sm:$0xff] }
  0x22   :  { %3513 = vmatpush.bf16.msrb.mxu0 %v7542_v30  ;;  %3493 = vmatmul.bf16.vlgmr.msra.gmra.mxu2 %v5456_v45  ;;  %v7581_v30 = vld [vmem:[%s10211_s1 + $0x270] sm:$0xff]  ;;  %v7620_v13 = vld [vmem:[%s10211_s1 + $0x3a8] sm:$0xff]  ;;  %v7627_v19 = vld [vmem:[%s10211_s1 + $0x3e0] sm:$0xff] }
  0x23   :  { %3541 = vmatpush.bf16.msrb.mxu2 %v7558_v31  ;;  %3479 = vmatmul.bf16.vlgmr.msra.gmra.mxu1 %v5452_v48  ;;  %v7597_v31 = vld [vmem:[%s10211_s1 + $0x2f0] sm:$0xff]  ;;  %v7568_v48 = vld [vmem:[%s10211_s1 + $0x208] sm:$0xff]  ;;  %v7602_v20 = vld [vmem:[%s10211_s1 + $0x318] sm:$0xff] }
  0x24   :  { %3527 = vmatpush.bf16.msrb.mxu1 %v7550_v38  ;;  %3507 = vmatmul.bf16.vlgmr.msra.gmra.mxu3 %v5460_v49  ;;  %v7579_v38 = vld [vmem:[%s10211_s1 + $0x260] sm:$0xff]  ;;  %v7585_v45 = vld [vmem:[%s10211_s1 + $0x290] sm:$0xff]  ;;  %v7584_v49 = vld [vmem:[%s10211_s1 + $0x288] sm:$0xff] }
  0x25   :  { %3555 = vmatpush.bf16.msrb.mxu3 %v7566_v39  ;;  %v7595_v39 = vld [vmem:[%s10211_s1 + $0x2e0] sm:$0xff]  ;;  %v7612_v14 = vld [vmem:[%s10211_s1 + $0x368] sm:$0xff]  ;;  %v7618_v21 = vld [vmem:[%s10211_s1 + $0x398] sm:$0xff] }
  0x26   :  { %3514 = vmatpush.bf16.msrb.mxu0 %v7541_v46  ;;  %v7577_v46 = vld [vmem:[%s10211_s1 + $0x250] sm:$0xff]  ;;  %v7628_v15 = vld [vmem:[%s10211_s1 + $0x3e8] sm:$0xff] }
  0x27   :  { %3542 = vmatpush.bf16.msrb.mxu2 %v7557_v47  ;;  %v7593_v47 = vld [vmem:[%s10211_s1 + $0x2d0] sm:$0xff] }
  0x28   :  { %3528 = vmatpush.bf16.msrb.mxu1 %v7549_v50  ;;  %v7576_v50 = vld [vmem:[%s10211_s1 + $0x248] sm:$0xff] }
  0x29   :  { %3556 = vmatpush.bf16.msrb.mxu3 %v7565_v51  ;;  %v7592_v51 = vld [vmem:[%s10211_s1 + $0x2c8] sm:$0xff] }
  0x2a   :  { %3515 = vmatpush.bf16.msrb.mxu0 %v7540_v52  ;;  %v7567_v52 = vld [vmem:[%s10211_s1 + $0x200] sm:$0xff] }
  0x2b   :  { %3543 = vmatpush.bf16.msrb.mxu2 %v7556_v53  ;;  %v7583_v53 = vld [vmem:[%s10211_s1 + $0x280] sm:$0xff] }
  0x2c   :  { %3529 = vmatpush.bf16.msrb.mxu1 %v7548_v54  ;;  %v7606_v54 = vld [vmem:[%s10211_s1 + $0x338] sm:$0xff] }
  0x2d   :  { %3557 = vmatpush.bf16.msrb.mxu3 %v7564_v55  ;;  %v7622_v55 = vld [vmem:[%s10211_s1 + $0x3b8] sm:$0xff] }
  0x2e   :  { %3516 = vmatpush.bf16.msrb.mxu0 %v7539_v56  ;;  %v5479_v56 = vld [vmem:[%s10212_s0 + $0x20] sm:$0xf] }
  0x2f   :  { %3544 = vmatpush.bf16.msrb.mxu2 %v7555_v57  ;;  %v7482_v57 = vld [vmem:[%s10212_s0 + $0xe0] sm:$0xf0] }
  0x30   :  { %3530 = vmatpush.bf16.msrb.mxu1 %v7547_v58  ;;  %v5487_v58 = vld [vmem:[%s10212_s0 + $0x28] sm:$0xf] }
  0x31   :  { %3558 = vmatpush.bf16.msrb.mxu3 %v7563_v59  ;;  %v7483_v59 = vld [vmem:[%s10212_s0 + $0xe8] sm:$0xf0] }
  0x32   :  { %3517 = vmatpush.bf16.msrb.mxu0 %v7538_v60  ;;  %v7575_v60 = vld [vmem:[%s10211_s1 + $0x240] sm:$0xff] }
  0x33   :  { %3545 = vmatpush.bf16.msrb.mxu2 %v7554_v61  ;;  %v7591_v61 = vld [vmem:[%s10211_s1 + $0x2c0] sm:$0xff] }
  0x34   :  { %3531 = vmatpush.bf16.msrb.mxu1 %v7546_v62  ;;  %v7458_v62 = vld [vmem:[%s10212_s0 + $0x24] sm:$0xf] }
  0x35   :  { %3559 = vmatpush.bf16.msrb.mxu3 %v7562_v63  ;;  %v5481_v63 = vld [vmem:[%s10212_s0 + $0xe4] sm:$0xf0] }
  0x36   :  { %3518 = vmatpush.bf16.msrb.mxu0 %v7537_v0  ;;  %v7459_v0 = vld [vmem:[%s10212_s0 + $0x2c] sm:$0xf] }
  0x37   :  { %3546 = vmatpush.bf16.msrb.mxu2 %v7553_v1  ;;  %v5489_v1 = vld [vmem:[%s10212_s0 + $0xec] sm:$0xf0] }
  0x38   :  { %3532 = vmatpush.bf16.msrb.mxu1 %v7545_v2  ;;  %v5480_v2 = vor.u32 %v7482_v57, %v5479_v56  ;;  %v7636_v56 = vld [vmem:[%s10211_s1 + $0x428] sm:$0xff] }
  0x39   :  { %3560 = vmatpush.bf16.msrb.mxu3 %v7561_v3  ;;  %v5488_v3 = vor.u32 %v7483_v59, %v5487_v58  ;;  %v7652_v57 = vld [vmem:[%s10211_s1 + $0x4a8] sm:$0xff] }
  0x3a   :  { %3519 = vmatpush.bf16.msrb.mxu0 %v7536_v4  ;;  %v7614_v4 = vld [vmem:[%s10211_s1 + $0x378] sm:$0xff]  ;;  %v7644_v58 = vld [vmem:[%s10211_s1 + $0x468] sm:$0xff] }
  0x3b   :  { %3547 = vmatpush.bf16.msrb.mxu2 %v7552_v5  ;;  %v7630_v5 = vld [vmem:[%s10211_s1 + $0x3f8] sm:$0xff]  ;;  %v7660_v59 = vld [vmem:[%s10211_s1 + $0x4e8] sm:$0xff] }
  0x3c   :  { %3533 = vmatpush.bf16.msrb.mxu1 %v7544_v6  ;;  %v5484_v6 = vor.u32 %v7458_v62, %v5481_v63  ;;  %v7643_v62 = vld [vmem:[%s10211_s1 + $0x460] sm:$0xff] }
  0x3d   :  { %3561 = vmatpush.bf16.msrb.mxu3 %v7560_v7  ;;  %v5492_v7 = vor.u32 %v7459_v0, %v5489_v1  ;;  %v7659_v63 = vld [vmem:[%s10211_s1 + $0x4e0] sm:$0xff]  ;;  %v7634_v0 = vld [vmem:[%s10211_s1 + $0x418] sm:$0xff] }
  0x3e   :  { %3520 = vmatpush.bf16.msrb.mxu0 %v7535_v8  ;;  %v7605_v8 = vld [vmem:[%s10211_s1 + $0x330] sm:$0xff]  ;;  %v7650_v1 = vld [vmem:[%s10211_s1 + $0x498] sm:$0xff] }
  0x3f   :  { %3548 = vmatpush.bf16.msrb.mxu2 %v7551_v9  ;;  %v7621_v9 = vld [vmem:[%s10211_s1 + $0x3b0] sm:$0xff] }
  0x40   :  { %3534 = vmatpush.bf16.msrb.mxu1 %v7543_v16  ;;  %v7603_v16 = vld [vmem:[%s10211_s1 + $0x320] sm:$0xff] }
  0x41   :  { %3562 = vmatpush.bf16.msrb.mxu3 %v7559_v17  ;;  %3521 = vmatmul.bf16.vlgmr.msrb.gmra.mxu0 %v5464_v22  ;;  %v7619_v17 = vld [vmem:[%s10211_s1 + $0x3a0] sm:$0xff]  ;;  %v7610_v22 = vld [vmem:[%s10211_s1 + $0x358] sm:$0xff] }
  0x42   :  { %3569 = vmatpush.bf16.msra.mxu0 %v7574_v10  ;;  %3549 = vmatmul.bf16.vlgmr.msrb.gmra.mxu2 %v5472_v23  ;;  %v7613_v10 = vld [vmem:[%s10211_s1 + $0x370] sm:$0xff]  ;;  %v7626_v23 = vld [vmem:[%s10211_s1 + $0x3d8] sm:$0xff] }
  0x43   :  { %3597 = vmatpush.bf16.msra.mxu2 %v7590_v11  ;;  %3535 = vmatmul.bf16.vlgmr.msrb.gmra.mxu1 %v5468_v26  ;;  %v7629_v11 = vld [vmem:[%s10211_s1 + $0x3f0] sm:$0xff] }
  0x44   :  { %3583 = vmatpush.bf16.msra.mxu1 %v7582_v24  ;;  %3563 = vmatmul.bf16.vlgmr.msrb.gmra.mxu3 %v5476_v27  ;;  %v7601_v24 = vld [vmem:[%s10211_s1 + $0x310] sm:$0xff] }
  0x45   :  { %3611 = vmatpush.bf16.msra.mxu3 %v7598_v25  ;;  %v7617_v25 = vld [vmem:[%s10211_s1 + $0x390] sm:$0xff] }
  0x46   :  { %3570 = vmatpush.bf16.msra.mxu0 %v7573_v28  ;;  %v7609_v26 = vld [vmem:[%s10211_s1 + $0x350] sm:$0xff]  ;;  %v7600_v28 = vld [vmem:[%s10211_s1 + $0x308] sm:$0xff] }
  0x47   :  { %3598 = vmatpush.bf16.msra.mxu2 %v7589_v29  ;;  %v7625_v27 = vld [vmem:[%s10211_s1 + $0x3d0] sm:$0xff]  ;;  %v7616_v29 = vld [vmem:[%s10211_s1 + $0x388] sm:$0xff] }
  0x48   :  { %3584 = vmatpush.bf16.msra.mxu1 %v7581_v30  ;;  %v7608_v30 = vld [vmem:[%s10211_s1 + $0x348] sm:$0xff] }
  0x49   :  { %3612 = vmatpush.bf16.msra.mxu3 %v7597_v31  ;;  %v7624_v31 = vld [vmem:[%s10211_s1 + $0x3c8] sm:$0xff] }
  0x4a   :  { %3571 = vmatpush.bf16.msra.mxu0 %v7572_v32  ;;  %v7599_v32 = vld [vmem:[%s10211_s1 + $0x300] sm:$0xff] }
  0x4b   :  { %3599 = vmatpush.bf16.msra.mxu2 %v7588_v33  ;;  %v7615_v33 = vld [vmem:[%s10211_s1 + $0x380] sm:$0xff] }
  0x4c   :  { %3585 = vmatpush.bf16.msra.mxu1 %v7580_v34  ;;  %v7638_v34 = vld [vmem:[%s10211_s1 + $0x438] sm:$0xff] }
  0x4d   :  { %3613 = vmatpush.bf16.msra.mxu3 %v7596_v35  ;;  %v7654_v35 = vld [vmem:[%s10211_s1 + $0x4b8] sm:$0xff] }
  0x4e   :  { %3572 = vmatpush.bf16.msra.mxu0 %v7571_v36  ;;  %v5495_v36 = vld [vmem:[%s10212_s0 + $0x30] sm:$0xf] }
  0x4f   :  { %3600 = vmatpush.bf16.msra.mxu2 %v7587_v37  ;;  %v7484_v37 = vld [vmem:[%s10212_s0 + $0xf0] sm:$0xf0] }
  0x50   :  { %3586 = vmatpush.bf16.msra.mxu1 %v7579_v38  ;;  %v5503_v38 = vld [vmem:[%s10212_s0 + $0x38] sm:$0xf] }
  0x51   :  { %3614 = vmatpush.bf16.msra.mxu3 %v7595_v39  ;;  %v7485_v39 = vld [vmem:[%s10212_s0 + $0xf8] sm:$0xf0] }
  0x52   :  { %3573 = vmatpush.bf16.msra.mxu0 %v7570_v40  ;;  %v7607_v40 = vld [vmem:[%s10211_s1 + $0x340] sm:$0xff] }
  0x53   :  { %3601 = vmatpush.bf16.msra.mxu2 %v7586_v41  ;;  %v7623_v41 = vld [vmem:[%s10211_s1 + $0x3c0] sm:$0xff] }
  0x54   :  { %3587 = vmatpush.bf16.msra.mxu1 %v7578_v42  ;;  %v7460_v42 = vld [vmem:[%s10212_s0 + $0x34] sm:$0xf] }
  0x55   :  { %3615 = vmatpush.bf16.msra.mxu3 %v7594_v43  ;;  %v5497_v43 = vld [vmem:[%s10212_s0 + $0xf4] sm:$0xf0] }
  0x56   :  { %3574 = vmatpush.bf16.msra.mxu0 %v7569_v44  ;;  %v7461_v44 = vld [vmem:[%s10212_s0 + $0x3c] sm:$0xf] }
  0x57   :  { %3602 = vmatpush.bf16.msra.mxu2 %v7585_v45  ;;  %v5505_v45 = vld [vmem:[%s10212_s0 + $0xfc] sm:$0xf0] }
  0x58   :  { %3588 = vmatpush.bf16.msra.mxu1 %v7577_v46  ;;  %v5496_v46 = vor.u32 %v7484_v37, %v5495_v36  ;;  %v7668_v36 = vld [vmem:[%s10211_s1 + $0x528] sm:$0xff] }
  0x59   :  { %3616 = vmatpush.bf16.msra.mxu3 %v7593_v47  ;;  %v5504_v47 = vor.u32 %v7485_v39, %v5503_v38  ;;  %v7684_v37 = vld [vmem:[%s10211_s1 + $0x5a8] sm:$0xff]  ;;  %v7944_v38 = vld [vmem:[%s10213_s2] ss:$0 sm:$0xff] }
  0x5a   :  { %3575 = vmatpush.bf16.msra.mxu0 %v7568_v48  ;;  %v7646_v48 = vld [vmem:[%s10211_s1 + $0x478] sm:$0xff]  ;;  %v7676_v39 = vld [vmem:[%s10211_s1 + $0x568] sm:$0xff] }
  0x5b   :  { %3603 = vmatpush.bf16.msra.mxu2 %v7584_v49  ;;  %v7662_v49 = vld [vmem:[%s10211_s1 + $0x4f8] sm:$0xff] }
  0x5c   :  { %3589 = vmatpush.bf16.msra.mxu1 %v7576_v50  ;;  %v5500_v50 = vor.u32 %v7460_v42, %v5497_v43  ;;  %v7683_v42 = vld [vmem:[%s10211_s1 + $0x5a0] sm:$0xff] }
  0x5d   :  { %3617 = vmatpush.bf16.msra.mxu3 %v7592_v51  ;;  %v5508_v51 = vor.u32 %v7461_v44, %v5505_v45  ;;  %v7675_v45 = vld [vmem:[%s10211_s1 + $0x560] sm:$0xff] }
  0x5e   :  { %3576 = vmatpush.bf16.msra.mxu0 %v7567_v52  ;;  %v7637_v52 = vld [vmem:[%s10211_s1 + $0x430] sm:$0xff] }
  0x5f   :  { %3604 = vmatpush.bf16.msra.mxu2 %v7583_v53  ;;  %v7653_v53 = vld [vmem:[%s10211_s1 + $0x4b0] sm:$0xff] }
  0x60   :  { %3590 = vmatpush.bf16.msra.mxu1 %v7575_v60  ;;  %v7635_v60 = vld [vmem:[%s10211_s1 + $0x420] sm:$0xff] }
  0x61   :  { %3618 = vmatpush.bf16.msra.mxu3 %v7591_v61  ;;  %3577 = vmatmul.bf16.vlgmr.msra.gmra.mxu0 %v5480_v2  ;;  %v7651_v61 = vld [vmem:[%s10211_s1 + $0x4a0] sm:$0xff]  ;;  %v7642_v2 = vld [vmem:[%s10211_s1 + $0x458] sm:$0xff] }
  0x62   :  { %3625 = vmatpush.bf16.msrb.mxu0 %v7606_v54  ;;  %3605 = vmatmul.bf16.vlgmr.msra.gmra.mxu2 %v5488_v3  ;;  %v7645_v54 = vld [vmem:[%s10211_s1 + $0x470] sm:$0xff]  ;;  %v7658_v3 = vld [vmem:[%s10211_s1 + $0x4d8] sm:$0xff] }
  0x63   :  { %3653 = vmatpush.bf16.msrb.mxu2 %v7622_v55  ;;  %3591 = vmatmul.bf16.vlgmr.msra.gmra.mxu1 %v5484_v6  ;;  %v7661_v55 = vld [vmem:[%s10211_s1 + $0x4f0] sm:$0xff] }
  0x64   :  { %3639 = vmatpush.bf16.msrb.mxu1 %v7614_v4  ;;  %3619 = vmatmul.bf16.vlgmr.msra.gmra.mxu3 %v5492_v7  ;;  %v7633_v4 = vld [vmem:[%s10211_s1 + $0x410] sm:$0xff] }
  0x65   :  { %3667 = vmatpush.bf16.msrb.mxu3 %v7630_v5  ;;  %v7649_v5 = vld [vmem:[%s10211_s1 + $0x490] sm:$0xff] }
  0x66   :  { %3626 = vmatpush.bf16.msrb.mxu0 %v7605_v8  ;;  %v7641_v6 = vld [vmem:[%s10211_s1 + $0x450] sm:$0xff]  ;;  %v7632_v8 = vld [vmem:[%s10211_s1 + $0x408] sm:$0xff] }
  0x67   :  { %3654 = vmatpush.bf16.msrb.mxu2 %v7621_v9  ;;  %v7657_v7 = vld [vmem:[%s10211_s1 + $0x4d0] sm:$0xff]  ;;  %v7648_v9 = vld [vmem:[%s10211_s1 + $0x488] sm:$0xff] }
  0x68   :  { %3640 = vmatpush.bf16.msrb.mxu1 %v7613_v10  ;;  %v7640_v10 = vld [vmem:[%s10211_s1 + $0x448] sm:$0xff] }
  0x69   :  { %3668 = vmatpush.bf16.msrb.mxu3 %v7629_v11  ;;  %v7656_v11 = vld [vmem:[%s10211_s1 + $0x4c8] sm:$0xff] }
  0x6a   :  { %3627 = vmatpush.bf16.msrb.mxu0 %v7604_v12  ;;  %v7631_v12 = vld [vmem:[%s10211_s1 + $0x400] sm:$0xff] }
  0x6b   :  { %3655 = vmatpush.bf16.msrb.mxu2 %v7620_v13  ;;  %v7647_v13 = vld [vmem:[%s10211_s1 + $0x480] sm:$0xff] }
  0x6c   :  { %3641 = vmatpush.bf16.msrb.mxu1 %v7612_v14  ;;  %v7670_v14 = vld [vmem:[%s10211_s1 + $0x538] sm:$0xff] }
  0x6d   :  { %3669 = vmatpush.bf16.msrb.mxu3 %v7628_v15  ;;  %v7686_v15 = vld [vmem:[%s10211_s1 + $0x5b8] sm:$0xff] }
  0x6e   :  { %3628 = vmatpush.bf16.msrb.mxu0 %v7603_v16  ;;  %v5511_v16 = vld [vmem:[%s10212_s0 + $0x40] sm:$0xf] }
  0x6f   :  { %3656 = vmatpush.bf16.msrb.mxu2 %v7619_v17  ;;  %v7486_v17 = vld [vmem:[%s10212_s0 + $0x100] sm:$0xf0] }
  0x70   :  { %3642 = vmatpush.bf16.msrb.mxu1 %v7611_v18  ;;  %v5519_v18 = vld [vmem:[%s10212_s0 + $0x48] sm:$0xf] }
  0x71   :  { %3670 = vmatpush.bf16.msrb.mxu3 %v7627_v19  ;;  %v7487_v19 = vld [vmem:[%s10212_s0 + $0x108] sm:$0xf0] }
  0x72   :  { %3629 = vmatpush.bf16.msrb.mxu0 %v7602_v20  ;;  %v7639_v20 = vld [vmem:[%s10211_s1 + $0x440] sm:$0xff] }
  0x73   :  { %3657 = vmatpush.bf16.msrb.mxu2 %v7618_v21  ;;  %v7655_v21 = vld [vmem:[%s10211_s1 + $0x4c0] sm:$0xff] }
  0x74   :  { %3643 = vmatpush.bf16.msrb.mxu1 %v7610_v22  ;;  %v7462_v22 = vld [vmem:[%s10212_s0 + $0x44] sm:$0xf] }
  0x75   :  { %3671 = vmatpush.bf16.msrb.mxu3 %v7626_v23  ;;  %v5513_v23 = vld [vmem:[%s10212_s0 + $0x104] sm:$0xf0] }
  0x76   :  { %3630 = vmatpush.bf16.msrb.mxu0 %v7601_v24  ;;  %v7463_v24 = vld [vmem:[%s10212_s0 + $0x4c] sm:$0xf] }
  0x77   :  { %3658 = vmatpush.bf16.msrb.mxu2 %v7617_v25  ;;  %v5521_v25 = vld [vmem:[%s10212_s0 + $0x10c] sm:$0xf0] }
  0x78   :  { %3644 = vmatpush.bf16.msrb.mxu1 %v7609_v26  ;;  %v5512_v26 = vor.u32 %v7486_v17, %v5511_v16 }
  0x79   :  { %3672 = vmatpush.bf16.msrb.mxu3 %v7625_v27  ;;  %v5520_v27 = vor.u32 %v7487_v19, %v5519_v18  ;;  %v7710_v18 = vld [vmem:[%s10211_s1 + $0x678] sm:$0xff] }
  0x7a   :  { %3631 = vmatpush.bf16.msrb.mxu0 %v7600_v28  ;;  %v7678_v28 = vld [vmem:[%s10211_s1 + $0x578] sm:$0xff] }
  0x7b   :  { %3659 = vmatpush.bf16.msrb.mxu2 %v7616_v29  ;;  %v7694_v29 = vld [vmem:[%s10211_s1 + $0x5f8] sm:$0xff] }
  0x7c   :  { %3645 = vmatpush.bf16.msrb.mxu1 %v7608_v30  ;;  %v5516_v30 = vor.u32 %v7462_v22, %v5513_v23  ;;  %v7726_v19 = vld [vmem:[%s10211_s1 + $0x6f8] sm:$0xff]  ;;  %v7701_v23 = vld [vmem:[%s10211_s1 + $0x630] sm:$0xff] }
  0x7d   :  { %3673 = vmatpush.bf16.msrb.mxu3 %v7624_v31  ;;  %v5524_v31 = vor.u32 %v7463_v24, %v5521_v25  ;;  %v7717_v24 = vld [vmem:[%s10211_s1 + $0x6b0] sm:$0xff] }
  0x7e   :  { %3632 = vmatpush.bf16.msrb.mxu0 %v7599_v32  ;;  %v7669_v32 = vld [vmem:[%s10211_s1 + $0x530] sm:$0xff] }
  0x7f   :  { %3660 = vmatpush.bf16.msrb.mxu2 %v7615_v33  ;;  %v7685_v33 = vld [vmem:[%s10211_s1 + $0x5b0] sm:$0xff] }
  0x80   :  { %3646 = vmatpush.bf16.msrb.mxu1 %v7607_v40  ;;  %v7692_v40 = vld [vmem:[%s10211_s1 + $0x5e8] sm:$0xff]  ;;  %v7709_v25 = vld [vmem:[%s10211_s1 + $0x670] sm:$0xff] }
  0x81   :  { %3674 = vmatpush.bf16.msrb.mxu3 %v7623_v41  ;;  %3633 = vmatmul.bf16.vlgmr.msrb.gmra.mxu0 %v5496_v46  ;;  %v7667_v41 = vld [vmem:[%s10211_s1 + $0x520] sm:$0xff] }
  0x82   :  { %3681 = vmatpush.bf16.msra.mxu0 %v7638_v34  ;;  %3661 = vmatmul.bf16.vlgmr.msrb.gmra.mxu2 %v5504_v47  ;;  %v7677_v34 = vld [vmem:[%s10211_s1 + $0x570] sm:$0xff]  ;;  %v7691_v46 = vld [vmem:[%s10211_s1 + $0x5e0] sm:$0xff] }
  0x83   :  { %3709 = vmatpush.bf16.msra.mxu2 %v7654_v35  ;;  %3647 = vmatmul.bf16.vlgmr.msrb.gmra.mxu1 %v5500_v50  ;;  %v7693_v35 = vld [vmem:[%s10211_s1 + $0x5f0] sm:$0xff]  ;;  %v7682_v50 = vld [vmem:[%s10211_s1 + $0x598] sm:$0xff] }
  0x84   :  { %3695 = vmatpush.bf16.msra.mxu1 %v7646_v48  ;;  %3675 = vmatmul.bf16.vlgmr.msrb.gmra.mxu3 %v5508_v51  ;;  %v7674_v51 = vld [vmem:[%s10211_s1 + $0x558] sm:$0xff] }
  0x85   :  { %3723 = vmatpush.bf16.msra.mxu3 %v7662_v49  ;;  %v7666_v49 = vld [vmem:[%s10211_s1 + $0x518] sm:$0xff] }
  0x86   :  { %3682 = vmatpush.bf16.msra.mxu0 %v7637_v52  ;;  %v7690_v52 = vld [vmem:[%s10211_s1 + $0x5d8] sm:$0xff] }
  0x87   :  { %3710 = vmatpush.bf16.msra.mxu2 %v7653_v53 }
  0x88   :  { %3696 = vmatpush.bf16.msra.mxu1 %v7645_v54 }
  0x89   :  { %3724 = vmatpush.bf16.msra.mxu3 %v7661_v55  ;;  %v7665_v55 = vld [vmem:[%s10211_s1 + $0x510] sm:$0xff] }
  0x8a   :  { %3683 = vmatpush.bf16.msra.mxu0 %v7636_v56  ;;  %v7681_v56 = vld [vmem:[%s10211_s1 + $0x590] sm:$0xff] }
  0x8b   :  { %3711 = vmatpush.bf16.msra.mxu2 %v7652_v57 }
  0x8c   :  { %3697 = vmatpush.bf16.msra.mxu1 %v7644_v58 }
  0x8d   :  { %3725 = vmatpush.bf16.msra.mxu3 %v7660_v59  ;;  %v7673_v59 = vld [vmem:[%s10211_s1 + $0x550] sm:$0xff] }
  0x8e   :  { %3684 = vmatpush.bf16.msra.mxu0 %v7635_v60  ;;  %v7689_v60 = vld [vmem:[%s10211_s1 + $0x5d0] sm:$0xff] }
  0x8f   :  { %3712 = vmatpush.bf16.msra.mxu2 %v7651_v61  ;;  %v7664_v61 = vld [vmem:[%s10211_s1 + $0x508] sm:$0xff] }
  0x90   :  { %3698 = vmatpush.bf16.msra.mxu1 %v7643_v62  ;;  %v7680_v62 = vld [vmem:[%s10211_s1 + $0x588] sm:$0xff] }
  0x91   :  { %3726 = vmatpush.bf16.msra.mxu3 %v7659_v63  ;;  %v7672_v63 = vld [vmem:[%s10211_s1 + $0x548] sm:$0xff] }
  0x92   :  { %3685 = vmatpush.bf16.msra.mxu0 %v7634_v0  ;;  %v7688_v0 = vld [vmem:[%s10211_s1 + $0x5c8] sm:$0xff] }
  0x93   :  { %3713 = vmatpush.bf16.msra.mxu2 %v7650_v1  ;;  %v7663_v1 = vld [vmem:[%s10211_s1 + $0x500] sm:$0xff] }
  0x94   :  { %3699 = vmatpush.bf16.msra.mxu1 %v7642_v2  ;;  %v7679_v2 = vld [vmem:[%s10211_s1 + $0x580] sm:$0xff] }
  0x95   :  { %3727 = vmatpush.bf16.msra.mxu3 %v7658_v3  ;;  %v7702_v3 = vld [vmem:[%s10211_s1 + $0x638] sm:$0xff] }
  0x96   :  { %3686 = vmatpush.bf16.msra.mxu0 %v7633_v4  ;;  %v7718_v4 = vld [vmem:[%s10211_s1 + $0x6b8] sm:$0xff] }
  0x97   :  { %3714 = vmatpush.bf16.msra.mxu2 %v7649_v5  ;;  %v5527_v5 = vld [vmem:[%s10212_s0 + $0x50] sm:$0xf] }
  0x98   :  { %3700 = vmatpush.bf16.msra.mxu1 %v7641_v6  ;;  %v7488_v6 = vld [vmem:[%s10212_s0 + $0x110] sm:$0xf0] }
  0x99   :  { %3728 = vmatpush.bf16.msra.mxu3 %v7657_v7  ;;  %v5535_v7 = vld [vmem:[%s10212_s0 + $0x58] sm:$0xf]  ;;  %v5528_v16 = vor.u32 %v7488_v6, %v5527_v5  ;;  %v7467_v5 = vld [vmem:[%s10212_s0 + $0x6c] sm:$0xf]  ;;  %v5553_v6 = vld [vmem:[%s10212_s0 + $0x12c] sm:$0xf0] }
  0x9a   :  { %3687 = vmatpush.bf16.msra.mxu0 %v7632_v8  ;;  %v7489_v8 = vld [vmem:[%s10212_s0 + $0x118] sm:$0xf0] }
  0x9b   :  { %3715 = vmatpush.bf16.msra.mxu2 %v7648_v9  ;;  %v7671_v9 = vld [vmem:[%s10211_s1 + $0x540] sm:$0xff]  ;;  %v5536_v17 = vor.u32 %v7489_v8, %v5535_v7 }
  0x9c   :  { %3701 = vmatpush.bf16.msra.mxu1 %v7640_v10  ;;  %v7687_v10 = vld [vmem:[%s10211_s1 + $0x5c0] sm:$0xff] }
  0x9d   :  { %3729 = vmatpush.bf16.msra.mxu3 %v7656_v11  ;;  %v7464_v11 = vld [vmem:[%s10212_s0 + $0x54] sm:$0xf] }
  0x9e   :  { %3688 = vmatpush.bf16.msra.mxu0 %v7631_v12  ;;  %v3466_v43 = vpop.f32.mrf.mxu0 }
  0x9f   :  { %3716 = vmatpush.bf16.msra.mxu2 %v7647_v13  ;;  %v3467_v44 = vadd.f32 %v7944_v38, %v3466_v43  ;;  %v5529_v13 = vld [vmem:[%s10212_s0 + $0x114] sm:$0xf0] }
  0xa0   :  { %3702 = vmatpush.bf16.msra.mxu1 %v7639_v20  ;;  %v3480_v47 = vpop.f32.mrf.mxu1 }
  0xa1   :  { %3730 = vmatpush.bf16.msra.mxu3 %v7655_v21  ;;  %3689 = vmatmul.bf16.vlgmr.msra.gmra.mxu0 %v5512_v26  ;;  %v3481_v48 = vadd.f32 %v3480_v47, %v3467_v44  ;;  %v5532_v21 = vor.u32 %v7464_v11, %v5529_v13  ;;  %v7725_v26 = vld [vmem:[%s10211_s1 + $0x6f0] sm:$0xff]  ;;  %v7758_v11 = vld [vmem:[%s10211_s1 + $0x7f8] sm:$0xff] }
  0xa2   :  { %3737 = vmatpush.bf16.msrb.mxu0 %v7670_v14  ;;  %3717 = vmatmul.bf16.vlgmr.msra.gmra.mxu2 %v5520_v27  ;;  %v7465_v14 = vld [vmem:[%s10212_s0 + $0x5c] sm:$0xf] }
  0xa3   :  { %3765 = vmatpush.bf16.msrb.mxu2 %v7686_v15  ;;  %3703 = vmatmul.bf16.vlgmr.msra.gmra.mxu1 %v5516_v30  ;;  %v5537_v15 = vld [vmem:[%s10212_s0 + $0x11c] sm:$0xf0] }
  0xa4   :  { %3751 = vmatpush.bf16.msrb.mxu1 %v7678_v28  ;;  %3731 = vmatmul.bf16.vlgmr.msra.gmra.mxu3 %v5524_v31  ;;  %v5540_v22 = vor.u32 %v7465_v14, %v5537_v15  ;;  %v7700_v28 = vld [vmem:[%s10211_s1 + $0x628] sm:$0xff]  ;;  %v5556_v14 = vor.u32 %v7467_v5, %v5553_v6  ;;  %v7774_v6 = vld [vmem:[%s10211_s1 + $0x878] sm:$0xff] }
  0xa5   :  { %3779 = vmatpush.bf16.msrb.mxu3 %v7694_v29  ;;  %v3494_v53 = vpop.f32.mrf.mxu2  ;;  %v7716_v29 = vld [vmem:[%s10211_s1 + $0x6a8] sm:$0xff] }
  0xa6   :  { %3738 = vmatpush.bf16.msrb.mxu0 %v7669_v32  ;;  %v3495_v54 = vadd.f32 %v3494_v53, %v3481_v48  ;;  %v8699_v12 = vpop.f32.mrf.mxu0  ;;  %v7708_v31 = vld [vmem:[%s10211_s1 + $0x668] sm:$0xff] }
  0xa7   :  { %3766 = vmatpush.bf16.msrb.mxu2 %v7685_v33  ;;  %v3508_v57 = vpop.f32.mrf.mxu3  ;;  %v7724_v32 = vld [vmem:[%s10211_s1 + $0x6e8] sm:$0xff] }
  0xa8   :  { %3752 = vmatpush.bf16.msrb.mxu1 %v7677_v34  ;;  %v8646_v58 = vadd.f32 %v3508_v57, %v3495_v54  ;;  %v8716_v20 = vpop.f32.mrf.mxu1  ;;  %v7696_v53 = vld [vmem:[%s10211_s1 + $0x608] sm:$0xff]  ;;  %v7695_v57 = vld [vmem:[%s10211_s1 + $0x600] sm:$0xff] }
  0xa9   :  { %3780 = vmatpush.bf16.msrb.mxu3 %v7693_v35  ;;  %v7699_v35 = vld [vmem:[%s10211_s1 + $0x620] sm:$0xff]  ;;  %v7712_v54 = vld [vmem:[%s10211_s1 + $0x688] sm:$0xff] }
  0xaa   :  { %3739 = vmatpush.bf16.msrb.mxu0 %v7668_v36  ;;  %v7715_v36 = vld [vmem:[%s10211_s1 + $0x6a0] sm:$0xff] }
  0xab   :  { %3767 = vmatpush.bf16.msrb.mxu2 %v7684_v37 }
  0xac   :  { %3753 = vmatpush.bf16.msrb.mxu1 %v7676_v39  ;;  %v7707_v39 = vld [vmem:[%s10211_s1 + $0x660] sm:$0xff] }
  0xad   :  { %3781 = vmatpush.bf16.msrb.mxu3 %v7692_v40  ;;  %v8730_v27 = vpop.f32.mrf.mxu2  ;;  %v7723_v40 = vld [vmem:[%s10211_s1 + $0x6e0] sm:$0xff] }
  0xae   :  { %3740 = vmatpush.bf16.msrb.mxu0 %v7667_v41  ;;  %v7698_v41 = vld [vmem:[%s10211_s1 + $0x618] sm:$0xff] }
  0xaf   :  { %3768 = vmatpush.bf16.msrb.mxu2 %v7683_v42  ;;  %v8738_v30 = vpop.f32.mrf.mxu3  ;;  %v7714_v42 = vld [vmem:[%s10211_s1 + $0x698] sm:$0xff] }
  0xb0   :  { %3754 = vmatpush.bf16.msrb.mxu1 %v7675_v45  ;;  %v7706_v45 = vld [vmem:[%s10211_s1 + $0x658] sm:$0xff] }
  0xb1   :  { %3782 = vmatpush.bf16.msrb.mxu3 %v7691_v46  ;;  %v7722_v46 = vld [vmem:[%s10211_s1 + $0x6d8] sm:$0xff] }
  0xb2   :  { %3741 = vmatpush.bf16.msrb.mxu0 %v7666_v49  ;;  %v7697_v49 = vld [vmem:[%s10211_s1 + $0x610] sm:$0xff] }
  0xb3   :  { %3769 = vmatpush.bf16.msrb.mxu2 %v7682_v50  ;;  %v7713_v50 = vld [vmem:[%s10211_s1 + $0x690] sm:$0xff] }
  0xb4   :  { %3755 = vmatpush.bf16.msrb.mxu1 %v7674_v51  ;;  %v7705_v51 = vld [vmem:[%s10211_s1 + $0x650] sm:$0xff] }
  0xb5   :  { %3783 = vmatpush.bf16.msrb.mxu3 %v7690_v52  ;;  %v7721_v52 = vld [vmem:[%s10211_s1 + $0x6d0] sm:$0xff] }
  0xb6   :  { %3742 = vmatpush.bf16.msrb.mxu0 %v7665_v55  ;;  %v7704_v55 = vld [vmem:[%s10211_s1 + $0x648] sm:$0xff] }
  0xb7   :  { %3770 = vmatpush.bf16.msrb.mxu2 %v7681_v56  ;;  %v7720_v56 = vld [vmem:[%s10211_s1 + $0x6c8] sm:$0xff] }
  0xb8   :  { %3756 = vmatpush.bf16.msrb.mxu1 %v7673_v59  ;;  %v7734_v59 = vld [vmem:[%s10211_s1 + $0x738] sm:$0xff] }
  0xb9   :  { %3784 = vmatpush.bf16.msrb.mxu3 %v7689_v60  ;;  %v7750_v60 = vld [vmem:[%s10211_s1 + $0x7b8] sm:$0xff] }
  0xba   :  { %3743 = vmatpush.bf16.msrb.mxu0 %v7664_v61  ;;  %v5543_v61 = vld [vmem:[%s10212_s0 + $0x60] sm:$0xf] }
  0xbb   :  { %3771 = vmatpush.bf16.msrb.mxu2 %v7680_v62  ;;  %v7490_v62 = vld [vmem:[%s10212_s0 + $0x120] sm:$0xf0] }
  0xbc   :  { %3757 = vmatpush.bf16.msrb.mxu1 %v7672_v63  ;;  %v5551_v63 = vld [vmem:[%s10212_s0 + $0x68] sm:$0xf]  ;;  %v5544_v7 = vor.u32 %v7490_v62, %v5543_v61  ;;  %v7735_v61 = vld [vmem:[%s10211_s1 + $0x740] sm:$0xff] }
  0xbd   :  { %3785 = vmatpush.bf16.msrb.mxu3 %v7688_v0  ;;  %v7491_v0 = vld [vmem:[%s10212_s0 + $0x128] sm:$0xf0]  ;;  %v7751_v62 = vld [vmem:[%s10211_s1 + $0x7c0] sm:$0xff] }
  0xbe   :  { %3744 = vmatpush.bf16.msrb.mxu0 %v7663_v1  ;;  %v3522_v33 = vpop.f32.mrf.mxu0  ;;  %v7703_v1 = vld [vmem:[%s10211_s1 + $0x640] sm:$0xff]  ;;  %v5552_v8 = vor.u32 %v7491_v0, %v5551_v63  ;;  %v7468_v63 = vld [vmem:[%s10212_s0 + $0x74] sm:$0xf]  ;;  %v5561_v0 = vld [vmem:[%s10212_s0 + $0x134] sm:$0xf0] }
  0xbf   :  { %3772 = vmatpush.bf16.msrb.mxu2 %v7679_v2  ;;  %v3523_v34 = vadd.f32 %v3522_v33, %v8646_v58  ;;  %v7711_v58 = vld [vmem:[%s10211_s1 + $0x680] sm:$0xff] }
  0xc0   :  { %3758 = vmatpush.bf16.msrb.mxu1 %v7671_v9  ;;  %v3536_v37 = vpop.f32.mrf.mxu1  ;;  %v7719_v2 = vld [vmem:[%s10211_s1 + $0x6c0] sm:$0xff] }
  0xc1   :  { %3786 = vmatpush.bf16.msrb.mxu3 %v7687_v10  ;;  %3745 = vmatmul.bf16.vlgmr.msrb.gmra.mxu0 %v5528_v16  ;;  %v3537_v38 = vadd.f32 %v3536_v37, %v3523_v34  ;;  %v7742_v10 = vld [vmem:[%s10211_s1 + $0x778] sm:$0xff]  ;;  %v7733_v16 = vld [vmem:[%s10211_s1 + $0x730] sm:$0xff] }
  0xc2   :  { %3793 = vmatpush.bf16.msra.mxu0 %v7702_v3  ;;  %3773 = vmatmul.bf16.vlgmr.msrb.gmra.mxu2 %v5536_v17  ;;  %v7466_v3 = vld [vmem:[%s10212_s0 + $0x64] sm:$0xf]  ;;  %v7749_v17 = vld [vmem:[%s10211_s1 + $0x7b0] sm:$0xff]  ;;  %v7730_v37 = vld [vmem:[%s10211_s1 + $0x718] sm:$0xff] }
  0xc3   :  { %3821 = vmatpush.bf16.msra.mxu2 %v7718_v4  ;;  %3759 = vmatmul.bf16.vlgmr.msrb.gmra.mxu1 %v5532_v21  ;;  %v5545_v4 = vld [vmem:[%s10212_s0 + $0x124] sm:$0xf0] }
  0xc4   :  { %3807 = vmatpush.bf16.msra.mxu1 %v7710_v18  ;;  %3787 = vmatmul.bf16.vlgmr.msrb.gmra.mxu3 %v5540_v22  ;;  %v5548_v13 = vor.u32 %v7466_v3, %v5545_v4  ;;  %v7741_v18 = vld [vmem:[%s10211_s1 + $0x770] sm:$0xff]  ;;  %v7732_v22 = vld [vmem:[%s10211_s1 + $0x728] sm:$0xff] }
  0xc5   :  { %3835 = vmatpush.bf16.msra.mxu3 %v7726_v19  ;;  %v3550_v43 = vpop.f32.mrf.mxu2  ;;  %v7757_v19 = vld [vmem:[%s10211_s1 + $0x7f0] sm:$0xff] }
  0xc6   :  { %3794 = vmatpush.bf16.msra.mxu0 %v7701_v23  ;;  %v3551_v44 = vadd.f32 %v3550_v43, %v3537_v38  ;;  %v8839_v9 = vpop.f32.mrf.mxu0  ;;  %v7748_v23 = vld [vmem:[%s10211_s1 + $0x7a8] sm:$0xff]  ;;  %v7746_v38 = vld [vmem:[%s10211_s1 + $0x798] sm:$0xff] }
  0xc7   :  { %3822 = vmatpush.bf16.msra.mxu2 %v7717_v24  ;;  %v3564_v47 = vpop.f32.mrf.mxu3 }
  0xc8   :  { %3808 = vmatpush.bf16.msra.mxu1 %v7709_v25  ;;  %v8771_v48 = vadd.f32 %v3564_v47, %v3551_v44  ;;  %v8847_v15 = vpop.f32.mrf.mxu1  ;;  %v7740_v25 = vld [vmem:[%s10211_s1 + $0x768] sm:$0xff]  ;;  %v7737_v47 = vld [vmem:[%s10211_s1 + $0x750] sm:$0xff] }
  0xc9   :  { %3836 = vmatpush.bf16.msra.mxu3 %v7725_v26  ;;  %v7756_v26 = vld [vmem:[%s10211_s1 + $0x7e8] sm:$0xff] }
  0xca   :  { %3795 = vmatpush.bf16.msra.mxu0 %v7700_v28 }
  0xcb   :  { %3823 = vmatpush.bf16.msra.mxu2 %v7716_v29 }
  0xcc   :  { %3809 = vmatpush.bf16.msra.mxu1 %v7708_v31  ;;  %v7731_v31 = vld [vmem:[%s10211_s1 + $0x720] sm:$0xff] }
  0xcd   :  { %3837 = vmatpush.bf16.msra.mxu3 %v7724_v32  ;;  %v8861_v21 = vpop.f32.mrf.mxu2  ;;  %v7747_v32 = vld [vmem:[%s10211_s1 + $0x7a0] sm:$0xff] }
  0xce   :  { %3796 = vmatpush.bf16.msra.mxu0 %v7699_v35  ;;  %v7739_v35 = vld [vmem:[%s10211_s1 + $0x760] sm:$0xff] }
  0xcf   :  { %3824 = vmatpush.bf16.msra.mxu2 %v7715_v36  ;;  %v8869_v24 = vpop.f32.mrf.mxu3  ;;  %v7755_v36 = vld [vmem:[%s10211_s1 + $0x7e0] sm:$0xff] }
  0xd0   :  { %3810 = vmatpush.bf16.msra.mxu1 %v7707_v39 }
  0xd1   :  { %3838 = vmatpush.bf16.msra.mxu3 %v7723_v40 }
  0xd2   :  { %3797 = vmatpush.bf16.msra.mxu0 %v7698_v41  ;;  %v7738_v41 = vld [vmem:[%s10211_s1 + $0x758] sm:$0xff] }
  0xd3   :  { %3825 = vmatpush.bf16.msra.mxu2 %v7714_v42  ;;  %v7754_v42 = vld [vmem:[%s10211_s1 + $0x7d8] sm:$0xff] }
  0xd4   :  { %3811 = vmatpush.bf16.msra.mxu1 %v7706_v45  ;;  %v7729_v45 = vld [vmem:[%s10211_s1 + $0x710] sm:$0xff] }
  0xd5   :  { %3839 = vmatpush.bf16.msra.mxu3 %v7722_v46  ;;  %v7745_v46 = vld [vmem:[%s10211_s1 + $0x790] sm:$0xff] }
  0xd6   :  { %3798 = vmatpush.bf16.msra.mxu0 %v7697_v49  ;;  %v7728_v49 = vld [vmem:[%s10211_s1 + $0x708] sm:$0xff] }
  0xd7   :  { %3826 = vmatpush.bf16.msra.mxu2 %v7713_v50  ;;  %v7744_v50 = vld [vmem:[%s10211_s1 + $0x788] sm:$0xff] }
  0xd8   :  { %3812 = vmatpush.bf16.msra.mxu1 %v7705_v51  ;;  %v7736_v51 = vld [vmem:[%s10211_s1 + $0x748] sm:$0xff] }
  0xd9   :  { %3840 = vmatpush.bf16.msra.mxu3 %v7721_v52  ;;  %v7752_v52 = vld [vmem:[%s10211_s1 + $0x7c8] sm:$0xff] }
  0xda   :  { %3799 = vmatpush.bf16.msra.mxu0 %v7696_v53  ;;  %v7727_v53 = vld [vmem:[%s10211_s1 + $0x700] sm:$0xff] }
  0xdb   :  { %3827 = vmatpush.bf16.msra.mxu2 %v7712_v54  ;;  %v7743_v54 = vld [vmem:[%s10211_s1 + $0x780] sm:$0xff] }
  0xdc   :  { %3813 = vmatpush.bf16.msra.mxu1 %v7704_v55  ;;  %v7766_v55 = vld [vmem:[%s10211_s1 + $0x838] sm:$0xff] }
  0xdd   :  { %3841 = vmatpush.bf16.msra.mxu3 %v7720_v56  ;;  %v7782_v56 = vld [vmem:[%s10211_s1 + $0x8b8] sm:$0xff] }
  0xde   :  { %3800 = vmatpush.bf16.msra.mxu0 %v7695_v57  ;;  %v3578_v28 = vpop.f32.mrf.mxu0  ;;  %v5559_v57 = vld [vmem:[%s10212_s0 + $0x70] sm:$0xf] }
  0xdf   :  { %3828 = vmatpush.bf16.msra.mxu2 %v7711_v58  ;;  %v3579_v29 = vadd.f32 %v3578_v28, %v8771_v48  ;;  %v7753_v48 = vld [vmem:[%s10211_s1 + $0x7d0] sm:$0xff] }
  0xe0   :  { %3814 = vmatpush.bf16.msra.mxu1 %v7703_v1  ;;  %v3592_v33 = vpop.f32.mrf.mxu1  ;;  %v7492_v58 = vld [vmem:[%s10212_s0 + $0x130] sm:$0xf0]  ;;  %v7469_v1 = vld [vmem:[%s10212_s0 + $0x7c] sm:$0xf] }
  0xe1   :  { %3842 = vmatpush.bf16.msra.mxu3 %v7719_v2  ;;  %3801 = vmatmul.bf16.vlgmr.msra.gmra.mxu0 %v5544_v7  ;;  %v3593_v34 = vadd.f32 %v3592_v33, %v3579_v29  ;;  %v5569_v2 = vld [vmem:[%s10212_s0 + $0x13c] sm:$0xf0]  ;;  %v5560_v3 = vor.u32 %v7492_v58, %v5559_v57  ;;  %v7790_v7 = vld [vmem:[%s10211_s1 + $0x8f8] sm:$0xff]  ;;  %v7494_v58 = vld [vmem:[%s10212_s0 + $0x140] sm:$0xf0] }
  0xe2   :  { %3849 = vmatpush.bf16.msrb.mxu0 %v7734_v59  ;;  %3829 = vmatmul.bf16.vlgmr.msra.gmra.mxu2 %v5552_v8  ;;  %v5567_v59 = vld [vmem:[%s10212_s0 + $0x78] sm:$0xf]  ;;  %v5564_v8 = vor.u32 %v7468_v63, %v5561_v0  ;;  %v5575_v57 = vld [vmem:[%s10212_s0 + $0x80] sm:$0xf]  ;;  %v7470_v63 = vld [vmem:[%s10212_s0 + $0x84] sm:$0xf] }
  0xe3   :  { %3877 = vmatpush.bf16.msrb.mxu2 %v7750_v60  ;;  %3815 = vmatmul.bf16.vlgmr.msra.gmra.mxu1 %v5548_v13  ;;  %v7493_v60 = vld [vmem:[%s10212_s0 + $0x138] sm:$0xf0]  ;;  %v7765_v13 = vld [vmem:[%s10211_s1 + $0x830] sm:$0xff]  ;;  %v5577_v0 = vld [vmem:[%s10212_s0 + $0x144] sm:$0xf0] }
  0xe4   :  { %3863 = vmatpush.bf16.msrb.mxu1 %v7742_v10  ;;  %3843 = vmatmul.bf16.vlgmr.msra.gmra.mxu3 %v5556_v14  ;;  %v5568_v4 = vor.u32 %v7493_v60, %v5567_v59  ;;  %v5572_v10 = vor.u32 %v7469_v1, %v5569_v2  ;;  %v7781_v14 = vld [vmem:[%s10211_s1 + $0x8b0] sm:$0xff]  ;;  %v5583_v59 = vld [vmem:[%s10212_s0 + $0x88] sm:$0xf]  ;;  %v7495_v60 = vld [vmem:[%s10212_s0 + $0x148] sm:$0xf0] }
  0xe5   :  { %3891 = vmatpush.bf16.msrb.mxu3 %v7758_v11  ;;  %v3606_v39 = vpop.f32.mrf.mxu2  ;;  %v7471_v1 = vld [vmem:[%s10212_s0 + $0x8c] sm:$0xf]  ;;  %v5585_v2 = vld [vmem:[%s10212_s0 + $0x14c] sm:$0xf0] }
  0xe6   :  { %3850 = vmatpush.bf16.msrb.mxu0 %v7733_v16  ;;  %v3607_v40 = vadd.f32 %v3606_v39, %v3593_v34  ;;  %v8970_v5 = vpop.f32.mrf.mxu0  ;;  %v7773_v16 = vld [vmem:[%s10211_s1 + $0x870] sm:$0xff] }
  0xe7   :  { %3878 = vmatpush.bf16.msrb.mxu2 %v7749_v17  ;;  %v3620_v43 = vpop.f32.mrf.mxu3  ;;  %v7789_v17 = vld [vmem:[%s10211_s1 + $0x8f0] sm:$0xff] }
  0xe8   :  { %3864 = vmatpush.bf16.msrb.mxu1 %v7741_v18  ;;  %v8902_v44 = vadd.f32 %v3620_v43, %v3607_v40  ;;  %v8978_v11 = vpop.f32.mrf.mxu1 }
  0xe9   :  { %3892 = vmatpush.bf16.msrb.mxu3 %v7757_v19  ;;  %v7764_v19 = vld [vmem:[%s10211_s1 + $0x828] sm:$0xff] }
  0xea   :  { %3851 = vmatpush.bf16.msrb.mxu0 %v7732_v22  ;;  %v7780_v22 = vld [vmem:[%s10211_s1 + $0x8a8] sm:$0xff] }
  0xeb   :  { %3879 = vmatpush.bf16.msrb.mxu2 %v7748_v23 }
  0xec   :  { %3865 = vmatpush.bf16.msrb.mxu1 %v7740_v25  ;;  %v7772_v25 = vld [vmem:[%s10211_s1 + $0x868] sm:$0xff] }
  0xed   :  { %3893 = vmatpush.bf16.msrb.mxu3 %v7756_v26  ;;  %v8992_v18 = vpop.f32.mrf.mxu2  ;;  %v7788_v26 = vld [vmem:[%s10211_s1 + $0x8e8] sm:$0xff] }
  0xee   :  { %3852 = vmatpush.bf16.msrb.mxu0 %v7731_v31  ;;  %v7763_v31 = vld [vmem:[%s10211_s1 + $0x820] sm:$0xff] }
  0xef   :  { %3880 = vmatpush.bf16.msrb.mxu2 %v7747_v32  ;;  %v9000_v23 = vpop.f32.mrf.mxu3  ;;  %v7779_v32 = vld [vmem:[%s10211_s1 + $0x8a0] sm:$0xff] }
  0xf0   :  { %3866 = vmatpush.bf16.msrb.mxu1 %v7739_v35  ;;  %v7771_v35 = vld [vmem:[%s10211_s1 + $0x860] sm:$0xff] }
  0xf1   :  { %3894 = vmatpush.bf16.msrb.mxu3 %v7755_v36  ;;  %v7787_v36 = vld [vmem:[%s10211_s1 + $0x8e0] sm:$0xff] }
  0xf2   :  { %3853 = vmatpush.bf16.msrb.mxu0 %v7730_v37  ;;  %v7762_v37 = vld [vmem:[%s10211_s1 + $0x818] sm:$0xff] }
  0xf3   :  { %3881 = vmatpush.bf16.msrb.mxu2 %v7746_v38  ;;  %v7778_v38 = vld [vmem:[%s10211_s1 + $0x898] sm:$0xff] }
  0xf4   :  { %3867 = vmatpush.bf16.msrb.mxu1 %v7738_v41  ;;  %v7770_v41 = vld [vmem:[%s10211_s1 + $0x858] sm:$0xff] }
  0xf5   :  { %3895 = vmatpush.bf16.msrb.mxu3 %v7754_v42  ;;  %v7786_v42 = vld [vmem:[%s10211_s1 + $0x8d8] sm:$0xff] }
  0xf6   :  { %3854 = vmatpush.bf16.msrb.mxu0 %v7729_v45  ;;  %v7761_v45 = vld [vmem:[%s10211_s1 + $0x810] sm:$0xff] }
  0xf7   :  { %3882 = vmatpush.bf16.msrb.mxu2 %v7745_v46  ;;  %v7777_v46 = vld [vmem:[%s10211_s1 + $0x890] sm:$0xff] }
  0xf8   :  { %3868 = vmatpush.bf16.msrb.mxu1 %v7737_v47  ;;  %v7769_v47 = vld [vmem:[%s10211_s1 + $0x850] sm:$0xff] }
  0xf9   :  { %3896 = vmatpush.bf16.msrb.mxu3 %v7753_v48  ;;  %v7785_v48 = vld [vmem:[%s10211_s1 + $0x8d0] sm:$0xff] }
  0xfa   :  { %3855 = vmatpush.bf16.msrb.mxu0 %v7728_v49  ;;  %v7760_v49 = vld [vmem:[%s10211_s1 + $0x808] sm:$0xff] }
  0xfb   :  { %3883 = vmatpush.bf16.msrb.mxu2 %v7744_v50  ;;  %v7776_v50 = vld [vmem:[%s10211_s1 + $0x888] sm:$0xff] }
  0xfc   :  { %3869 = vmatpush.bf16.msrb.mxu1 %v7736_v51  ;;  %v7768_v51 = vld [vmem:[%s10211_s1 + $0x848] sm:$0xff] }
  0xfd   :  { %3897 = vmatpush.bf16.msrb.mxu3 %v7752_v52  ;;  %v7784_v52 = vld [vmem:[%s10211_s1 + $0x8c8] sm:$0xff] }
  0xfe   :  { %3856 = vmatpush.bf16.msrb.mxu0 %v7727_v53  ;;  %v3634_v28 = vpop.f32.mrf.mxu0  ;;  %v7759_v53 = vld [vmem:[%s10211_s1 + $0x800] sm:$0xff] }
  0xff   :  { %3884 = vmatpush.bf16.msrb.mxu2 %v7743_v54  ;;  %v3635_v29 = vadd.f32 %v3634_v28, %v8902_v44  ;;  %v7775_v54 = vld [vmem:[%s10211_s1 + $0x880] sm:$0xff]  ;;  %v7812_v28 = vld [vmem:[%s10211_s1 + $0x9a8] sm:$0xff] }
 0x100   :  { %3870 = vmatpush.bf16.msrb.mxu1 %v7735_v61  ;;  %v3648_v33 = vpop.f32.mrf.mxu1  ;;  %v7767_v61 = vld [vmem:[%s10211_s1 + $0x840] sm:$0xff] }
 0x101   :  { %3898 = vmatpush.bf16.msrb.mxu3 %v7751_v62  ;;  %3857 = vmatmul.bf16.vlgmr.msrb.gmra.mxu0 %v5560_v3  ;;  %v3649_v34 = vadd.f32 %v3648_v33, %v3635_v29  ;;  %v7783_v62 = vld [vmem:[%s10211_s1 + $0x8c0] sm:$0xff]  ;;  %v5576_v3 = vor.u32 %v7494_v58, %v5575_v57 }
 0x102   :  { %3905 = vmatpush.bf16.msra.mxu0 %v7766_v55  ;;  %3885 = vmatmul.bf16.vlgmr.msrb.gmra.mxu2 %v5568_v4  ;;  %v7798_v55 = vld [vmem:[%s10211_s1 + $0x938] sm:$0xff]  ;;  %v5584_v4 = vor.u32 %v7495_v60, %v5583_v59  ;;  %v7791_v57 = vld [vmem:[%s10211_s1 + $0x900] sm:$0xff] }
 0x103   :  { %3933 = vmatpush.bf16.msra.mxu2 %v7782_v56  ;;  %3871 = vmatmul.bf16.vlgmr.msrb.gmra.mxu1 %v5564_v8  ;;  %v7814_v56 = vld [vmem:[%s10211_s1 + $0x9b8] sm:$0xff]  ;;  %v7807_v58 = vld [vmem:[%s10211_s1 + $0x980] sm:$0xff] }
 0x104   :  { %3919 = vmatpush.bf16.msra.mxu1 %v7774_v6  ;;  %3899 = vmatmul.bf16.vlgmr.msrb.gmra.mxu3 %v5572_v10  ;;  %v7822_v8 = vld [vmem:[%s10211_s1 + $0x9f8] sm:$0xff]  ;;  %v5580_v10 = vor.u32 %v7470_v63, %v5577_v0 }
 0x105   :  { %3947 = vmatpush.bf16.msra.mxu3 %v7790_v7  ;;  %v3662_v39 = vpop.f32.mrf.mxu2  ;;  %v7806_v7 = vld [vmem:[%s10211_s1 + $0x978] sm:$0xff] }
 0x106   :  { %3906 = vmatpush.bf16.msra.mxu0 %v7765_v13  ;;  %v3663_v40 = vadd.f32 %v3662_v39, %v3649_v34  ;;  %v9101_v6 = vpop.f32.mrf.mxu0  ;;  %v5588_v13 = vor.u32 %v7471_v1, %v5585_v2  ;;  %v7803_v39 = vld [vmem:[%s10211_s1 + $0x960] sm:$0xff]  ;;  %v7830_v59 = vld [vmem:[%s10211_s1 + $0xa38] sm:$0xff] }
 0x107   :  { %3934 = vmatpush.bf16.msra.mxu2 %v7781_v14  ;;  %v3676_v43 = vpop.f32.mrf.mxu3  ;;  %v7846_v60 = vld [vmem:[%s10211_s1 + $0xab8] sm:$0xff]  ;;  %v7799_v1 = vld [vmem:[%s10211_s1 + $0x940] sm:$0xff] }
 0x108   :  { %3920 = vmatpush.bf16.msra.mxu1 %v7773_v16  ;;  %v9033_v44 = vadd.f32 %v3676_v43, %v3663_v40  ;;  %v9109_v14 = vpop.f32.mrf.mxu1  ;;  %v7797_v16 = vld [vmem:[%s10211_s1 + $0x930] sm:$0xff]  ;;  %v7819_v40 = vld [vmem:[%s10211_s1 + $0x9e0] sm:$0xff]  ;;  %v5599_v63 = vld [vmem:[%s10212_s0 + $0x98] sm:$0xf] }
 0x109   :  { %3948 = vmatpush.bf16.msra.mxu3 %v7789_v17  ;;  %v7813_v17 = vld [vmem:[%s10211_s1 + $0x9b0] sm:$0xff]  ;;  %v7497_v0 = vld [vmem:[%s10212_s0 + $0x158] sm:$0xf0]  ;;  %v7815_v2 = vld [vmem:[%s10211_s1 + $0x9c0] sm:$0xff] }
 0x10a   :  { %3907 = vmatpush.bf16.msra.mxu0 %v7764_v19  ;;  %v7805_v19 = vld [vmem:[%s10211_s1 + $0x970] sm:$0xff] }
 0x10b   :  { %3935 = vmatpush.bf16.msra.mxu2 %v7780_v22  ;;  %v7821_v22 = vld [vmem:[%s10211_s1 + $0x9f0] sm:$0xff] }
 0x10c   :  { %3921 = vmatpush.bf16.msra.mxu1 %v7772_v25 }
 0x10d   :  { %3949 = vmatpush.bf16.msra.mxu3 %v7788_v26  ;;  %v9123_v25 = vpop.f32.mrf.mxu2  ;;  %v7796_v26 = vld [vmem:[%s10211_s1 + $0x928] sm:$0xff] }
 0x10e   :  { %3908 = vmatpush.bf16.msra.mxu0 %v7763_v31  ;;  %v7804_v31 = vld [vmem:[%s10211_s1 + $0x968] sm:$0xff] }
 0x10f   :  { %3936 = vmatpush.bf16.msra.mxu2 %v7779_v32  ;;  %v9131_v29 = vpop.f32.mrf.mxu3  ;;  %v7820_v32 = vld [vmem:[%s10211_s1 + $0x9e8] sm:$0xff] }
 0x110   :  { %3922 = vmatpush.bf16.msra.mxu1 %v7771_v35  ;;  %v7795_v35 = vld [vmem:[%s10211_s1 + $0x920] sm:$0xff] }
 0x111   :  { %3950 = vmatpush.bf16.msra.mxu3 %v7787_v36  ;;  %v7811_v36 = vld [vmem:[%s10211_s1 + $0x9a0] sm:$0xff] }
 0x112   :  { %3909 = vmatpush.bf16.msra.mxu0 %v7762_v37 }
 0x113   :  { %3937 = vmatpush.bf16.msra.mxu2 %v7778_v38 }
 0x114   :  { %3923 = vmatpush.bf16.msra.mxu1 %v7770_v41  ;;  %v7794_v41 = vld [vmem:[%s10211_s1 + $0x918] sm:$0xff] }
 0x115   :  { %3951 = vmatpush.bf16.msra.mxu3 %v7786_v42  ;;  %v7810_v42 = vld [vmem:[%s10211_s1 + $0x998] sm:$0xff] }
 0x116   :  { %3910 = vmatpush.bf16.msra.mxu0 %v7761_v45  ;;  %v7802_v45 = vld [vmem:[%s10211_s1 + $0x958] sm:$0xff] }
 0x117   :  { %3938 = vmatpush.bf16.msra.mxu2 %v7777_v46  ;;  %v7818_v46 = vld [vmem:[%s10211_s1 + $0x9d8] sm:$0xff] }
 0x118   :  { %3924 = vmatpush.bf16.msra.mxu1 %v7769_v47 }
 0x119   :  { %3952 = vmatpush.bf16.msra.mxu3 %v7785_v48 }
 0x11a   :  { %3911 = vmatpush.bf16.msra.mxu0 %v7760_v49  ;;  %v7793_v49 = vld [vmem:[%s10211_s1 + $0x910] sm:$0xff] }
 0x11b   :  { %3939 = vmatpush.bf16.msra.mxu2 %v7776_v50  ;;  %v7809_v50 = vld [vmem:[%s10211_s1 + $0x990] sm:$0xff] }
 0x11c   :  { %3925 = vmatpush.bf16.msra.mxu1 %v7768_v51  ;;  %v7801_v51 = vld [vmem:[%s10211_s1 + $0x950] sm:$0xff] }
 0x11d   :  { %3953 = vmatpush.bf16.msra.mxu3 %v7784_v52  ;;  %v7817_v52 = vld [vmem:[%s10211_s1 + $0x9d0] sm:$0xff] }
 0x11e   :  { %3912 = vmatpush.bf16.msra.mxu0 %v7759_v53  ;;  %v3690_v33 = vpop.f32.mrf.mxu0  ;;  %v7792_v53 = vld [vmem:[%s10211_s1 + $0x908] sm:$0xff] }
 0x11f   :  { %3940 = vmatpush.bf16.msra.mxu2 %v7775_v54  ;;  %v3691_v34 = vadd.f32 %v3690_v33, %v9033_v44  ;;  %v7808_v54 = vld [vmem:[%s10211_s1 + $0x988] sm:$0xff]  ;;  %v7853_v33 = vld [vmem:[%s10211_s1 + $0xaf0] sm:$0xff] }
 0x120   :  { %3926 = vmatpush.bf16.msra.mxu1 %v7767_v61  ;;  %v3704_v37 = vpop.f32.mrf.mxu1  ;;  %v5591_v61 = vld [vmem:[%s10212_s0 + $0x90] sm:$0xf] }
 0x121   :  { %3954 = vmatpush.bf16.msra.mxu3 %v7783_v62  ;;  %3913 = vmatmul.bf16.vlgmr.msra.gmra.mxu0 %v5576_v3  ;;  %v3705_v38 = vadd.f32 %v3704_v37, %v3691_v34  ;;  %v7496_v62 = vld [vmem:[%s10212_s0 + $0x150] sm:$0xf0]  ;;  %v7828_v34 = vld [vmem:[%s10211_s1 + $0xa28] sm:$0xff] }
 0x122   :  { %3961 = vmatpush.bf16.msrb.mxu0 %v7798_v55  ;;  %3941 = vmatmul.bf16.vlgmr.msra.gmra.mxu2 %v5584_v4  ;;  %v7800_v55 = vld [vmem:[%s10211_s1 + $0x948] sm:$0xff]  ;;  %v7472_v3 = vld [vmem:[%s10212_s0 + $0x94] sm:$0xf]  ;;  %v5593_v4 = vld [vmem:[%s10212_s0 + $0x154] sm:$0xf0] }
 0x123   :  { %3989 = vmatpush.bf16.msrb.mxu2 %v7814_v56  ;;  %3927 = vmatmul.bf16.vlgmr.msra.gmra.mxu1 %v5580_v10  ;;  %v7816_v56 = vld [vmem:[%s10211_s1 + $0x9c8] sm:$0xff]  ;;  %v5592_v10 = vor.u32 %v7496_v62, %v5591_v61  ;;  %v7498_v61 = vld [vmem:[%s10212_s0 + $0x160] sm:$0xf0] }
 0x124   :  { %3975 = vmatpush.bf16.msrb.mxu1 %v7806_v7  ;;  %3955 = vmatmul.bf16.vlgmr.msra.gmra.mxu3 %v5588_v13  ;;  %v7473_v7 = vld [vmem:[%s10212_s0 + $0x9c] sm:$0xf]  ;;  %v5600_v13 = vor.u32 %v7497_v0, %v5599_v63  ;;  %v7852_v37 = vld [vmem:[%s10211_s1 + $0xae8] sm:$0xff]  ;;  %v7831_v0 = vld [vmem:[%s10211_s1 + $0xa40] sm:$0xff] }
 0x125   :  { %4003 = vmatpush.bf16.msrb.mxu3 %v7822_v8  ;;  %v3718_v43 = vpop.f32.mrf.mxu2  ;;  %v5601_v8 = vld [vmem:[%s10212_s0 + $0x15c] sm:$0xf0]  ;;  %v5615_v62 = vld [vmem:[%s10212_s0 + $0xa8] sm:$0xf]  ;;  %v7499_v63 = vld [vmem:[%s10212_s0 + $0x168] sm:$0xf0] }
 0x126   :  { %3962 = vmatpush.bf16.msrb.mxu0 %v7797_v16  ;;  %v3719_v44 = vadd.f32 %v3718_v43, %v3705_v38  ;;  %v9232_v16 = vpop.f32.mrf.mxu0  ;;  %v7851_v43 = vld [vmem:[%s10211_s1 + $0xae0] sm:$0xff] }
 0x127   :  { %3990 = vmatpush.bf16.msrb.mxu2 %v7813_v17  ;;  %v3732_v47 = vpop.f32.mrf.mxu3  ;;  %v7838_v17 = vld [vmem:[%s10211_s1 + $0xa78] sm:$0xff] }
 0x128   :  { %3976 = vmatpush.bf16.msrb.mxu1 %v7805_v19  ;;  %v9164_v48 = vadd.f32 %v3732_v47, %v3719_v44  ;;  %v7854_v19 = vld [vmem:[%s10211_s1 + $0xaf8] sm:$0xff] }
 0x129   :  { %4004 = vmatpush.bf16.msrb.mxu3 %v7821_v22  ;;  %v5596_v22 = vor.u32 %v7472_v3, %v5593_v4  ;;  %v7826_v44 = vld [vmem:[%s10211_s1 + $0xa18] sm:$0xff]  ;;  %v5609_v3 = vld [vmem:[%s10212_s0 + $0x164] sm:$0xf0]  ;;  %v7475_v4 = vld [vmem:[%s10212_s0 + $0xac] sm:$0xf] }
 0x12a   :  { %3963 = vmatpush.bf16.msrb.mxu0 %v7796_v26  ;;  %v5604_v26 = vor.u32 %v7473_v7, %v5601_v8  ;;  %v7850_v47 = vld [vmem:[%s10211_s1 + $0xad8] sm:$0xff]  ;;  %v5617_v7 = vld [vmem:[%s10212_s0 + $0x16c] sm:$0xf0] }
 0x12b   :  { %3991 = vmatpush.bf16.msrb.mxu2 %v7812_v28  ;;  %v7829_v28 = vld [vmem:[%s10211_s1 + $0xa30] sm:$0xff] }
 0x12c   :  { %3977 = vmatpush.bf16.msrb.mxu1 %v7804_v31  ;;  %v7845_v31 = vld [vmem:[%s10211_s1 + $0xab0] sm:$0xff] }
 0x12d   :  { %4005 = vmatpush.bf16.msrb.mxu3 %v7820_v32  ;;  %v7837_v32 = vld [vmem:[%s10211_s1 + $0xa70] sm:$0xff] }
 0x12e   :  { %3964 = vmatpush.bf16.msrb.mxu0 %v7795_v35  ;;  %v7844_v35 = vld [vmem:[%s10211_s1 + $0xaa8] sm:$0xff] }
 0x12f   :  { %3992 = vmatpush.bf16.msrb.mxu2 %v7811_v36  ;;  %v7836_v36 = vld [vmem:[%s10211_s1 + $0xa68] sm:$0xff] }
 0x130   :  { %3978 = vmatpush.bf16.msrb.mxu1 %v7803_v39 }
 0x131   :  { %4006 = vmatpush.bf16.msrb.mxu3 %v7819_v40  ;;  %v7827_v40 = vld [vmem:[%s10211_s1 + $0xa20] sm:$0xff] }
 0x132   :  { %3965 = vmatpush.bf16.msrb.mxu0 %v7794_v41  ;;  %v7843_v41 = vld [vmem:[%s10211_s1 + $0xaa0] sm:$0xff] }
 0x133   :  { %3993 = vmatpush.bf16.msrb.mxu2 %v7810_v42  ;;  %v7835_v42 = vld [vmem:[%s10211_s1 + $0xa60] sm:$0xff] }
 0x134   :  { %3979 = vmatpush.bf16.msrb.mxu1 %v7802_v45  ;;  %v7842_v45 = vld [vmem:[%s10211_s1 + $0xa98] sm:$0xff] }
 0x135   :  { %4007 = vmatpush.bf16.msrb.mxu3 %v7818_v46  ;;  %v7834_v46 = vld [vmem:[%s10211_s1 + $0xa58] sm:$0xff] }
 0x136   :  { %3966 = vmatpush.bf16.msrb.mxu0 %v7793_v49  ;;  %v7841_v49 = vld [vmem:[%s10211_s1 + $0xa90] sm:$0xff] }
 0x137   :  { %3994 = vmatpush.bf16.msrb.mxu2 %v7809_v50  ;;  %v7833_v50 = vld [vmem:[%s10211_s1 + $0xa50] sm:$0xff] }
 0x138   :  { %3980 = vmatpush.bf16.msrb.mxu1 %v7801_v51  ;;  %v7849_v51 = vld [vmem:[%s10211_s1 + $0xad0] sm:$0xff] }
 0x139   :  { %4008 = vmatpush.bf16.msrb.mxu3 %v7817_v52  ;;  %v7824_v52 = vld [vmem:[%s10211_s1 + $0xa08] sm:$0xff] }
 0x13a   :  { %3967 = vmatpush.bf16.msrb.mxu0 %v7792_v53  ;;  %v7840_v53 = vld [vmem:[%s10211_s1 + $0xa88] sm:$0xff] }
 0x13b   :  { %3995 = vmatpush.bf16.msrb.mxu2 %v7808_v54  ;;  %v7832_v54 = vld [vmem:[%s10211_s1 + $0xa48] sm:$0xff] }
 0x13c   :  { %3981 = vmatpush.bf16.msrb.mxu1 %v7800_v55  ;;  %v7848_v55 = vld [vmem:[%s10211_s1 + $0xac8] sm:$0xff] }
 0x13d   :  { %4009 = vmatpush.bf16.msrb.mxu3 %v7816_v56  ;;  %v7823_v56 = vld [vmem:[%s10211_s1 + $0xa00] sm:$0xff] }
 0x13e   :  { %3968 = vmatpush.bf16.msrb.mxu0 %v7791_v57  ;;  %v3746_v38 = vpop.f32.mrf.mxu0  ;;  %v7839_v57 = vld [vmem:[%s10211_s1 + $0xa80] sm:$0xff] }
 0x13f   :  { %3996 = vmatpush.bf16.msrb.mxu2 %v7807_v58  ;;  %v9265_v39 = vadd.f32 %v3746_v38, %v9164_v48  ;;  %v7825_v48 = vld [vmem:[%s10211_s1 + $0xa10] sm:$0xff]  ;;  %v7862_v58 = vld [vmem:[%s10211_s1 + $0xb38] sm:$0xff]  ;;  %v7875_v38 = vld [vmem:[%s10211_s1 + $0xba0] sm:$0xff] }
 0x140   :  { %3982 = vmatpush.bf16.msrb.mxu1 %v7799_v1  ;;  %v7847_v1 = vld [vmem:[%s10211_s1 + $0xac0] sm:$0xff] }
 0x141   :  { %4010 = vmatpush.bf16.msrb.mxu3 %v7815_v2  ;;  %3969 = vmatmul.bf16.vlgmr.msrb.gmra.mxu0 %v5592_v10  ;;  %v7474_v2 = vld [vmem:[%s10212_s0 + $0xa4] sm:$0xf]  ;;  %v5616_v10 = vor.u32 %v7499_v63, %v5615_v62  ;;  %v7476_v63 = vld [vmem:[%s10212_s0 + $0xb4] sm:$0xf] }
 0x142   :  { %4017 = vmatpush.bf16.msra.mxu0 %v7830_v59  ;;  %3997 = vmatmul.bf16.vlgmr.msrb.gmra.mxu2 %v5600_v13  ;;  %v7878_v59 = vld [vmem:[%s10211_s1 + $0xbb8] sm:$0xff]  ;;  %v7879_v62 = vld [vmem:[%s10211_s1 + $0xbc0] sm:$0xff] }
 0x143   :  { %4045 = vmatpush.bf16.msra.mxu2 %v7846_v60  ;;  %3983 = vmatmul.bf16.vlgmr.msrb.gmra.mxu1 %v5596_v22  ;;  %v5607_v60 = vld [vmem:[%s10212_s0 + $0xa0] sm:$0xf]  ;;  %v7870_v13 = vld [vmem:[%s10211_s1 + $0xb78] sm:$0xff]  ;;  %v5620_v22 = vor.u32 %v7475_v4, %v5617_v7 }
 0x144   :  { %4031 = vmatpush.bf16.msra.mxu1 %v7838_v17  ;;  %4011 = vmatmul.bf16.vlgmr.msrb.gmra.mxu3 %v5604_v26  ;;  %v5608_v8 = vor.u32 %v7498_v61, %v5607_v60  ;;  %v7886_v17 = vld [vmem:[%s10211_s1 + $0xbf8] sm:$0xff]  ;;  %v7861_v26 = vld [vmem:[%s10211_s1 + $0xb30] sm:$0xff]  ;;  %v7863_v61 = vld [vmem:[%s10211_s1 + $0xb40] sm:$0xff] }
 0x145   :  { %4059 = vmatpush.bf16.msra.mxu3 %v7854_v19  ;;  %v5612_v19 = vor.u32 %v7474_v2, %v5609_v3  ;;  %v7501_v60 = vld [vmem:[%s10212_s0 + $0x178] sm:$0xf0]  ;;  %v5633_v2 = vld [vmem:[%s10212_s0 + $0x17c] sm:$0xf0] }
 0x146   :  { %4018 = vmatpush.bf16.msra.mxu0 %v7829_v28  ;;  %v7877_v28 = vld [vmem:[%s10211_s1 + $0xbb0] sm:$0xff] }
 0x147   :  { %4046 = vmatpush.bf16.msra.mxu2 %v7845_v31  ;;  %v7869_v31 = vld [vmem:[%s10211_s1 + $0xb70] sm:$0xff] }
 0x148   :  { %4032 = vmatpush.bf16.msra.mxu1 %v7837_v32  ;;  %v7885_v32 = vld [vmem:[%s10211_s1 + $0xbf0] sm:$0xff] }
 0x149   :  { %4060 = vmatpush.bf16.msra.mxu3 %v7853_v33  ;;  %v7860_v33 = vld [vmem:[%s10211_s1 + $0xb28] sm:$0xff] }
 0x14a   :  { %4019 = vmatpush.bf16.msra.mxu0 %v7828_v34  ;;  %v7876_v34 = vld [vmem:[%s10211_s1 + $0xba8] sm:$0xff] }
 0x14b   :  { %4047 = vmatpush.bf16.msra.mxu2 %v7844_v35  ;;  %v7868_v35 = vld [vmem:[%s10211_s1 + $0xb68] sm:$0xff] }
 0x14c   :  { %4033 = vmatpush.bf16.msra.mxu1 %v7836_v36  ;;  %v7884_v36 = vld [vmem:[%s10211_s1 + $0xbe8] sm:$0xff] }
 0x14d   :  { %4061 = vmatpush.bf16.msra.mxu3 %v7852_v37  ;;  %v7859_v37 = vld [vmem:[%s10211_s1 + $0xb20] sm:$0xff] }
 0x14e   :  { %4020 = vmatpush.bf16.msra.mxu0 %v7827_v40  ;;  %v7867_v40 = vld [vmem:[%s10211_s1 + $0xb60] sm:$0xff] }
 0x14f   :  { %4048 = vmatpush.bf16.msra.mxu2 %v7843_v41  ;;  %v7883_v41 = vld [vmem:[%s10211_s1 + $0xbe0] sm:$0xff] }
 0x150   :  { %4034 = vmatpush.bf16.msra.mxu1 %v7835_v42  ;;  %v7858_v42 = vld [vmem:[%s10211_s1 + $0xb18] sm:$0xff] }
 0x151   :  { %4062 = vmatpush.bf16.msra.mxu3 %v7851_v43  ;;  %v7874_v43 = vld [vmem:[%s10211_s1 + $0xb98] sm:$0xff] }
 0x152   :  { %4021 = vmatpush.bf16.msra.mxu0 %v7826_v44  ;;  %v7866_v44 = vld [vmem:[%s10211_s1 + $0xb58] sm:$0xff] }
 0x153   :  { %4049 = vmatpush.bf16.msra.mxu2 %v7842_v45  ;;  %v7882_v45 = vld [vmem:[%s10211_s1 + $0xbd8] sm:$0xff] }
 0x154   :  { %4035 = vmatpush.bf16.msra.mxu1 %v7834_v46  ;;  %v7857_v46 = vld [vmem:[%s10211_s1 + $0xb10] sm:$0xff] }
 0x155   :  { %4063 = vmatpush.bf16.msra.mxu3 %v7850_v47  ;;  %v7873_v47 = vld [vmem:[%s10211_s1 + $0xb90] sm:$0xff] }
 0x156   :  { %4022 = vmatpush.bf16.msra.mxu0 %v7825_v48  ;;  %v7865_v48 = vld [vmem:[%s10211_s1 + $0xb50] sm:$0xff] }
 0x157   :  { %4050 = vmatpush.bf16.msra.mxu2 %v7841_v49  ;;  %v7881_v49 = vld [vmem:[%s10211_s1 + $0xbd0] sm:$0xff] }
 0x158   :  { %4036 = vmatpush.bf16.msra.mxu1 %v7833_v50  ;;  %v7856_v50 = vld [vmem:[%s10211_s1 + $0xb08] sm:$0xff] }
 0x159   :  { %4064 = vmatpush.bf16.msra.mxu3 %v7849_v51  ;;  %v7872_v51 = vld [vmem:[%s10211_s1 + $0xb88] sm:$0xff] }
 0x15a   :  { %4023 = vmatpush.bf16.msra.mxu0 %v7824_v52  ;;  %v7864_v52 = vld [vmem:[%s10211_s1 + $0xb48] sm:$0xff] }
 0x15b   :  { %4051 = vmatpush.bf16.msra.mxu2 %v7840_v53  ;;  %v7880_v53 = vld [vmem:[%s10211_s1 + $0xbc8] sm:$0xff] }
 0x15c   :  { %4037 = vmatpush.bf16.msra.mxu1 %v7832_v54  ;;  %v7855_v54 = vld [vmem:[%s10211_s1 + $0xb00] sm:$0xff] }
 0x15d   :  { %4065 = vmatpush.bf16.msra.mxu3 %v7848_v55  ;;  %v7871_v55 = vld [vmem:[%s10211_s1 + $0xb80] sm:$0xff] }
 0x15e   :  { %4024 = vmatpush.bf16.msra.mxu0 %v7823_v56  ;;  %v7894_v56 = vld [vmem:[%s10211_s1 + $0xc38] sm:$0xff] }
 0x15f   :  { %4052 = vmatpush.bf16.msra.mxu2 %v7839_v57  ;;  %v5623_v57 = vld [vmem:[%s10212_s0 + $0xb0] sm:$0xf] }
 0x160   :  { %4038 = vmatpush.bf16.msra.mxu1 %v7831_v0  ;;  %v5625_v0 = vld [vmem:[%s10212_s0 + $0x174] sm:$0xf0] }
 0x161   :  { %4066 = vmatpush.bf16.msra.mxu3 %v7847_v1  ;;  %4025 = vmatmul.bf16.vlgmr.msra.gmra.mxu0 %v5608_v8  ;;  %v7477_v1 = vld [vmem:[%s10212_s0 + $0xbc] sm:$0xf]  ;;  %v5628_v7 = vor.u32 %v7476_v63, %v5625_v0 }
 0x162   :  { %4073 = vmatpush.bf16.msrb.mxu0 %v7862_v58  ;;  %4053 = vmatmul.bf16.vlgmr.msra.gmra.mxu2 %v5616_v10  ;;  %v7500_v58 = vld [vmem:[%s10212_s0 + $0x170] sm:$0xf0]  ;;  %v5636_v8 = vor.u32 %v7477_v1, %v5633_v2 }
 0x163   :  { %4101 = vmatpush.bf16.msrb.mxu2 %v7878_v59  ;;  %4039 = vmatmul.bf16.vlgmr.msra.gmra.mxu1 %v5612_v19  ;;  %v5631_v59 = vld [vmem:[%s10212_s0 + $0xb8] sm:$0xf]  ;;  %v5624_v3 = vor.u32 %v7500_v58, %v5623_v57  ;;  %v7893_v10 = vld [vmem:[%s10211_s1 + $0xc30] sm:$0xff] }
 0x164   :  { %4087 = vmatpush.bf16.msrb.mxu1 %v7870_v13  ;;  %4067 = vmatmul.bf16.vlgmr.msra.gmra.mxu3 %v5620_v22  ;;  %v5632_v4 = vor.u32 %v7501_v60, %v5631_v59  ;;  %v7892_v13 = vld [vmem:[%s10211_s1 + $0xc28] sm:$0xff]  ;;  %v7890_v19 = vld [vmem:[%s10211_s1 + $0xc18] sm:$0xff]  ;;  %v7889_v22 = vld [vmem:[%s10211_s1 + $0xc10] sm:$0xff] }
 0x165   :  { %4115 = vmatpush.bf16.msrb.mxu3 %v7886_v17  ;;  %v7891_v17 = vld [vmem:[%s10211_s1 + $0xc20] sm:$0xff] }
 0x166   :  { %4074 = vmatpush.bf16.msrb.mxu0 %v7861_v26  ;;  %v7946_v26 = vld [vmem:[%s10213_s2] ss:$0 sm:$0xff] }
 0x167   :  { %4102 = vmatpush.bf16.msrb.mxu2 %v7877_v28  ;;  %v3469_v28 = vadd.f32 %v7946_v26, %v8699_v12  ;;  %v7502_v12 = vld [vmem:[%s10212_s0 + $0x180] sm:$0xf0] }
 0x168   :  { %4088 = vmatpush.bf16.msrb.mxu1 %v7869_v31  ;;  %v7888_v31 = vld [vmem:[%s10211_s1 + $0xc08] sm:$0xff] }
 0x169   :  { %4116 = vmatpush.bf16.msrb.mxu3 %v7885_v32  ;;  %v3483_v32 = vadd.f32 %v8716_v20, %v3469_v28 }
 0x16a   :  { %4075 = vmatpush.bf16.msrb.mxu0 %v7860_v33  ;;  %v7887_v33 = vld [vmem:[%s10211_s1 + $0xc00] sm:$0xff] }
 0x16b   :  { %4103 = vmatpush.bf16.msrb.mxu2 %v7876_v34  ;;  %v5639_v34 = vld [vmem:[%s10212_s0 + $0xc0] sm:$0xf] }
 0x16c   :  { %4089 = vmatpush.bf16.msrb.mxu1 %v7868_v35  ;;  %v3497_v35 = vadd.f32 %v8730_v27, %v3483_v32 }
 0x16d   :  { %4117 = vmatpush.bf16.msrb.mxu3 %v7884_v36  ;;  %v5640_v36 = vor.u32 %v7502_v12, %v5639_v34 }
 0x16e   :  { %4076 = vmatpush.bf16.msrb.mxu0 %v7859_v37  ;;  %v3706_v37 = vpop.f32.mrf.mxu1  ;;  %v3511_v20 = vadd.f32 %v8738_v30, %v3497_v35 }
 0x16f   :  { %4104 = vmatpush.bf16.msrb.mxu2 %v7875_v38  ;;  %v3720_v38 = vpop.f32.mrf.mxu2 }
 0x170   :  { %4090 = vmatpush.bf16.msrb.mxu1 %v7867_v40  ;;  %v3525_v40 = vadd.f32 %v8839_v9, %v3511_v20 }
 0x171   :  { %4118 = vmatpush.bf16.msrb.mxu3 %v7883_v41  ;;  %v3734_v41 = vpop.f32.mrf.mxu3 }
 0x172   :  { %4077 = vmatpush.bf16.msrb.mxu0 %v7858_v42 }
 0x173   :  { %4105 = vmatpush.bf16.msrb.mxu2 %v7874_v43  ;;  %v3539_v43 = vadd.f32 %v8847_v15, %v3525_v40 }
 0x174   :  { %4091 = vmatpush.bf16.msrb.mxu1 %v7866_v44 }
 0x175   :  { %4119 = vmatpush.bf16.msrb.mxu3 %v7882_v45  ;;  %v3553_v45 = vadd.f32 %v8861_v21, %v3539_v43 }
 0x176   :  { %4078 = vmatpush.bf16.msrb.mxu0 %v7857_v46  ;;  %v3760_v42 = vpop.f32.mrf.mxu1  ;;  %v3748_v46 = vpop.f32.mrf.mxu0 }
 0x177   :  { %4106 = vmatpush.bf16.msrb.mxu2 %v7873_v47  ;;  %v3774_v44 = vpop.f32.mrf.mxu2  ;;  %v3567_v27 = vadd.f32 %v8869_v24, %v3553_v45 }
 0x178   :  { %4092 = vmatpush.bf16.msrb.mxu1 %v7865_v48 }
 0x179   :  { %4120 = vmatpush.bf16.msrb.mxu3 %v7881_v49  ;;  %v3788_v47 = vpop.f32.mrf.mxu3  ;;  %v3581_v48 = vadd.f32 %v8970_v5, %v3567_v27  ;;  %v7895_v27 = vld [vmem:[%s10214_s3 + $0x4] sm:$0xf] }
 0x17a   :  { %4079 = vmatpush.bf16.msrb.mxu0 %v7856_v50 }
 0x17b   :  { %4107 = vmatpush.bf16.msrb.mxu2 %v7872_v51  ;;  %v3595_v30 = vadd.f32 %v8978_v11, %v3581_v48  ;;  %v7213_v48 = vld [vmem:[%s10214_s3 + $0xc4] sm:$0x10] }
 0x17c   :  { %4093 = vmatpush.bf16.msrb.mxu1 %v7864_v52 }
 0x17d   :  { %4121 = vmatpush.bf16.msrb.mxu3 %v7880_v53  ;;  %v3609_v9 = vadd.f32 %v8992_v18, %v3595_v30 }
 0x17e   :  { %4080 = vmatpush.bf16.msrb.mxu0 %v7855_v54  ;;  %v3762_v49 = vpop.f32.mrf.mxu1  ;;  %v3802_v51 = vpop.f32.mrf.mxu0 }
 0x17f   :  { %4108 = vmatpush.bf16.msrb.mxu2 %v7871_v55  ;;  %v3776_v50 = vpop.f32.mrf.mxu2  ;;  %v3623_v15 = vadd.f32 %v9000_v23, %v3609_v9 }
 0x180   :  { %4094 = vmatpush.bf16.msrb.mxu1 %v7863_v61 }
 0x181   :  { %4122 = vmatpush.bf16.msrb.mxu3 %v7879_v62  ;;  %4081 = vmatmul.bf16.vlgmr.msrb.gmra.mxu0 %v5624_v3  ;;  %v3790_v52 = vpop.f32.mrf.mxu3  ;;  %v3637_v21 = vadd.f32 %v9101_v6, %v3623_v15 }
 0x182   :  { %4129 = vmatpush.bf16.msra.mxu0 %v7894_v56  ;;  %4109 = vmatmul.bf16.vlgmr.msrb.gmra.mxu2 %v5632_v4 }
 0x183   :  { %4095 = vmatmul.bf16.vlgmr.msrb.gmra.mxu1 %v5628_v7  ;;  %v3651_v24 = vadd.f32 %v9109_v14, %v3637_v21 }
 0x184   :  { %4123 = vmatmul.bf16.vlgmr.msrb.gmra.mxu3 %v5636_v8 }
 0x185   :  { %v3665_v5 = vadd.f32 %v9123_v25, %v3651_v24  ;;  %v3761_v25 = vadd.f32 %v3760_v42, %v9265_v39 }
 0x186   :  { %4130 = vmatpush.bf16.msra.mxu0 %v7893_v10  ;;  %v3816_v53 = vpop.f32.mrf.mxu1  ;;  %v3804_v55 = vpop.f32.mrf.mxu0 }
 0x187   :  { %v3830_v54 = vpop.f32.mrf.mxu2  ;;  %v3679_v11 = vadd.f32 %v9131_v29, %v3665_v5  ;;  %v3775_v8 = vadd.f32 %v3774_v44, %v3761_v25  ;;  %v7922_v25 = vld [vmem:[%s10214_s3 + $0xd8] sm:$0x10] }
 0x189   :  { %v3844_v56 = vpop.f32.mrf.mxu3  ;;  %v3693_v18 = vadd.f32 %v9232_v16, %v3679_v11  ;;  %v3789_v16 = vadd.f32 %v3788_v47, %v3775_v8  ;;  %v7919_v11 = vld [vmem:[%s10214_s3 + $0xc0] sm:$0x10] }
 0x18a   :  { %4131 = vmatpush.bf16.msra.mxu0 %v7892_v13 }
 0x18b   :  { %v3707_v62 = vadd.f32 %v3706_v37, %v3693_v18 }
 0x18d   :  { %v3721_v63 = vadd.f32 %v3720_v38, %v3707_v62 }
 0x18e   :  { %4132 = vmatpush.bf16.msra.mxu0 %v7891_v17  ;;  %v3818_v57 = vpop.f32.mrf.mxu1  ;;  %v3858_v59 = vpop.f32.mrf.mxu0 }
 0x18f   :  { %v3832_v58 = vpop.f32.mrf.mxu2  ;;  %v3735_v1 = vadd.f32 %v3734_v41, %v3721_v63 }
 0x191   :  { %v3846_v60 = vpop.f32.mrf.mxu3  ;;  %v3749_v2 = vadd.f32 %v3748_v46, %v3735_v1 }
 0x192   :  { %4133 = vmatpush.bf16.msra.mxu0 %v7890_v19 }
 0x193   :  { %v3763_v7 = vadd.f32 %v3762_v49, %v3749_v2  ;;  %v7219_v2 = vld [vmem:[%s10214_s3 + $0x8] sm:$0xf] }
 0x195   :  { %v3777_v10 = vadd.f32 %v3776_v50, %v3763_v7  ;;  %v7216_v50 = vor.u32 %v7895_v27, %v7213_v48 }
 0x196   :  { %4134 = vmatpush.bf16.msra.mxu0 %v7889_v22  ;;  %v3872_v61 = vpop.f32.mrf.mxu1  ;;  %v3860_v0 = vpop.f32.mrf.mxu0  ;;  %v3803_v22 = vadd.f32 %v3802_v51, %v3789_v16 }
 0x197   :  { %v3886_v23 = vpop.f32.mrf.mxu2  ;;  %v3791_v17 = vadd.f32 %v3790_v52, %v3777_v10  ;;  %v4512_v30 = vsel %vm4507_vm0, %v7216_v50, 0 }
 0x198   :  { %v3817_v32 = vadd.f32 %v3816_v53, %v3803_v22  ;;  %4676 = vmatpush.bf16.msra.mxu2 %v4512_v30 }
 0x199   :  { %v3900_v6 = vpop.f32.mrf.mxu3  ;;  %v3805_v26 = vadd.f32 %v3804_v55, %v3791_v17 }
 0x19a   :  { %4135 = vmatpush.bf16.msra.mxu0 %v7888_v31  ;;  %v3831_v34 = vadd.f32 %v3830_v54, %v3817_v32  ;;  %v7921_v32 = vld [vmem:[%s10214_s3 + $0xd0] sm:$0x10] }
 0x19c   :  { %v3845_v39 = vadd.f32 %v3844_v56, %v3831_v34 }
 0x19e   :  { %4136 = vmatpush.bf16.msra.mxu0 %v7887_v33  ;;  %v3874_v3 = vpop.f32.mrf.mxu1  ;;  %v3914_v4 = vpop.f32.mrf.mxu0  ;;  %v3819_v33 = vadd.f32 %v3818_v57, %v3805_v26  ;;  %v3859_v20 = vadd.f32 %v3858_v59, %v3845_v39  ;;  %v7211_v59 = vld [vmem:[%s10214_s3] sm:$0xf]  ;;  %v7229_v39 = vld [vmem:[%s10214_s3 + $0xd4] sm:$0x10] }
 0x19f   :  { %v3888_v14 = vpop.f32.mrf.mxu2 }
 0x1a0   :  { %v3833_v12 = vadd.f32 %v3832_v58, %v3819_v33  ;;  %v3873_v43 = vadd.f32 %v3872_v61, %v3859_v20  ;;  %v7896_v33 = vld [vmem:[%s10214_s3 + $0xc] sm:$0xf] }
 0x1a1   :  { %4137 = vmatmul.bf16.vlgmr.msra.gmra.mxu0 %v5640_v36  ;;  %v3902_v29 = vpop.f32.mrf.mxu3 }
 0x1a2   :  { %v3847_v38 = vadd.f32 %v3846_v60, %v3833_v12  ;;  %v3887_v46 = vadd.f32 %v3886_v23, %v3873_v43  ;;  %v7212_v60 = vor.u32 %v7919_v11, %v7211_v59 }
 0x1a4   :  { %v3861_v40 = vadd.f32 %v3860_v0, %v3847_v38  ;;  %v3901_v9 = vadd.f32 %v3900_v6, %v3887_v46  ;;  %v4509_v63 = vsel %vm4507_vm0, %v7212_v60, 0 }
 0x1a5   :  { %4662 = vmatpush.bf16.msra.mxu1 %v4509_v63  ;;  %v7237_v63 = vld [vmem:[%s10214_s3 + $0xdc] sm:$0x10] }
 0x1a6   :  { %v3928_v13 = vpop.f32.mrf.mxu1  ;;  %v3916_v28 = vpop.f32.mrf.mxu0  ;;  %v3875_v44 = vadd.f32 %v3874_v3, %v3861_v40  ;;  %v3915_v53 = vadd.f32 %v3914_v4, %v3901_v9  ;;  %v7920_v3 = vld [vmem:[%s10214_s3 + $0xc8] sm:$0x10]  ;;  %v7251_v40 = vld [vmem:[%s10214_s3 + $0x28] sm:$0xf] }
 0x1a7   :  { %v3942_v19 = vpop.f32.mrf.mxu2  ;;  %v7220_v4 = vor.u32 %v7920_v3, %v7219_v2  ;;  %v7926_v2 = vld [vmem:[%s10214_s3 + $0xf8] sm:$0x10] }
 0x1a8   :  { %v3889_v47 = vadd.f32 %v3888_v14, %v3875_v44  ;;  %v3929_v56 = vadd.f32 %v3928_v13, %v3915_v53  ;;  %v7235_v14 = vld [vmem:[%s10214_s3 + $0x18] sm:$0xf] }
 0x1a9   :  { %v3956_v31 = vpop.f32.mrf.mxu3  ;;  %v7236_v8 = vor.u32 %v7922_v25, %v7235_v14  ;;  %v4515_v13 = vsel %vm4507_vm0, %v7220_v4, 0 }
 0x1aa   :  { %v3903_v52 = vadd.f32 %v3902_v29, %v3889_v47  ;;  %v3943_v5 = vadd.f32 %v3942_v19, %v3929_v56  ;;  %4690 = vmatpush.bf16.msra.mxu3 %v4515_v13 }
 0x1ab   :  { %v4527_v16 = vsel %vm4507_vm0, %v7236_v8, 0 }
 0x1ac   :  { %v3917_v15 = vadd.f32 %v3916_v28, %v3903_v52  ;;  %v3957_v61 = vadd.f32 %v3956_v31, %v3943_v5  ;;  %4746 = vmatpush.bf16.msrb.mxu0 %v4527_v16  ;;  %v7227_v31 = vld [vmem:[%s10214_s3 + $0x10] sm:$0xf] }
 0x1ae   :  { %v3930_v35 = vpop.f32.mrf.mxu1 }
 0x1af   :  { %v3944_v36 = vpop.f32.mrf.mxu2  ;;  %v3931_v24 = vadd.f32 %v3930_v35, %v3917_v15  ;;  %v7228_v35 = vor.u32 %v7921_v32, %v7227_v31  ;;  %v7925_v31 = vld [vmem:[%s10214_s3 + $0xf0] sm:$0x10]  ;;  %v7900_v32 = vld [vmem:[%s10214_s3 + $0x2c] sm:$0xf] }
 0x1b1   :  { %v3958_v41 = vpop.f32.mrf.mxu3  ;;  %v3945_v57 = vadd.f32 %v3944_v36, %v3931_v24  ;;  %v7221_v36 = vld [vmem:[%s10214_s3 + $0xcc] sm:$0x10]  ;;  %v4521_v44 = vsel %vm4507_vm0, %v7228_v35, 0  ;;  %v7283_v35 = vld [vmem:[%s10214_s3 + $0x48] sm:$0xf] }
 0x1b2   :  { %v7224_v38 = vor.u32 %v7896_v33, %v7221_v36  ;;  %4718 = vmatpush.bf16.msrb.mxu2 %v4521_v44  ;;  %v7253_v33 = vld [vmem:[%s10214_s3 + $0xec] sm:$0x10]  ;;  %v7928_v36 = vld [vmem:[%s10214_s3 + $0x108] sm:$0x10]  ;;  %v7275_v44 = vld [vmem:[%s10214_s3 + $0x40] sm:$0xf] }
 0x1b3   :  { %v3959_v62 = vadd.f32 %v3958_v41, %v3945_v57  ;;  %v7924_v41 = vld [vmem:[%s10214_s3 + $0xe8] sm:$0x10] }
 0x1b4   :  { %v4518_v47 = vsel %vm4507_vm0, %v7224_v38, 0 }
 0x1b5   :  { %4704 = vmatpush.bf16.msrb.mxu1 %v4518_v47  ;;  %v7269_v47 = vld [vmem:[%s10214_s3 + $0xfc] sm:$0x10] }
 0x1be   :  { %v3970_v37 = vpop.f32.mrf.mxu0 }
 0x1bf   :  { %v3971_v0 = vadd.f32 %v3970_v37, %v3957_v61  ;;  %v7897_v37 = vld [vmem:[%s10214_s3 + $0x14] sm:$0xf] }
 0x1c0   :  { %v3984_v42 = vpop.f32.mrf.mxu1  ;;  %v7232_v20 = vor.u32 %v7897_v37, %v7229_v39  ;;  %v7256_v39 = vor.u32 %v7900_v32, %v7253_v33  ;;  %v7933_v32 = vld [vmem:[%s10214_s3 + $0x130] sm:$0x10]  ;;  %v7908_v33 = vld [vmem:[%s10214_s3 + $0x6c] sm:$0xf] }
 0x1c1   :  { %v3985_v10 = vadd.f32 %v3984_v42, %v3971_v0  ;;  %v7899_v0 = vld [vmem:[%s10214_s3 + $0x24] sm:$0xf] }
 0x1c2   :  { %v4524_v27 = vsel %vm4507_vm0, %v7232_v20, 0  ;;  %v7284_v20 = vor.u32 %v7928_v36, %v7283_v35  ;;  %v7325_v35 = vld [vmem:[%s10214_s3 + $0x134] sm:$0x10]  ;;  %v7347_v36 = vld [vmem:[%s10214_s3 + $0x88] sm:$0xf] }
 0x1c3   :  { %4732 = vmatpush.bf16.msrb.mxu3 %v4524_v27  ;;  %v7903_v27 = vld [vmem:[%s10214_s3 + $0x44] sm:$0xf] }
 0x1c5   :  { %v3998_v45 = vpop.f32.mrf.mxu2 }
 0x1c6   :  { %v3972_v49 = vpop.f32.mrf.mxu0  ;;  %v3999_v17 = vadd.f32 %v3998_v45, %v3985_v10  ;;  %v7252_v45 = vor.u32 %v7924_v41, %v7251_v40  ;;  %v4542_v41 = vsel %vm4507_vm0, %v7256_v39, 0 }
 0x1c7   :  { %v4012_v51 = vpop.f32.mrf.mxu3  ;;  %v3973_v6 = vadd.f32 %v3972_v49, %v3959_v62  ;;  %v7923_v62 = vld [vmem:[%s10214_s3 + $0xe0] sm:$0x10] }
 0x1c8   :  { %v3986_v54 = vpop.f32.mrf.mxu1  ;;  %v4013_v34 = vadd.f32 %v4012_v51, %v3999_v17  ;;  %v4539_v48 = vsel %vm4507_vm0, %v7252_v45, 0  ;;  %v7927_v45 = vld [vmem:[%s10214_s3 + $0x100] sm:$0x10] }
 0x1c9   :  { %v3987_v29 = vadd.f32 %v3986_v54, %v3973_v6  ;;  %4802 = vmatpush.bf16.msra.mxu0 %v4539_v48  ;;  %v7245_v6 = vld [vmem:[%s10214_s3 + $0xe4] sm:$0x10] }
 0x1ca   :  { %v7277_v48 = vld [vmem:[%s10214_s3 + $0x104] sm:$0x10] }
 0x1cd   :  { %v4000_v21 = vpop.f32.mrf.mxu2 }
 0x1ce   :  { %v4001_v19 = vadd.f32 %v4000_v21, %v3987_v29  ;;  %v7248_v29 = vor.u32 %v7899_v0, %v7245_v6 }
 0x1cf   :  { %v4014_v58 = vpop.f32.mrf.mxu3 }
 0x1d0   :  { %v4015_v12 = vadd.f32 %v4014_v58, %v4001_v19 }
 0x1de   :  { %v4026_v55 = vpop.f32.mrf.mxu0 }
 0x1df   :  { %v4027_v42 = vadd.f32 %v4026_v55, %v4013_v34  ;;  %v7901_v34 = vld [vmem:[%s10214_s3 + $0x34] sm:$0xf] }
 0x1e0   :  { %v4040_v18 = vpop.f32.mrf.mxu1 }
 0x1e1   :  { %v4041_v50 = vadd.f32 %v4040_v18, %v4027_v42  ;;  %v7243_v18 = vld [vmem:[%s10214_s3 + $0x20] sm:$0xf] }
 0x1e2   :  { %v7244_v25 = vor.u32 %v7923_v62, %v7243_v18 }
 0x1e4   :  { %v4533_v17 = vsel %vm4507_vm0, %v7244_v25, 0  ;;  %v7309_v25 = vld [vmem:[%s10214_s3 + $0x124] sm:$0x10] }
 0x1e5   :  { %v4054_v23 = vpop.f32.mrf.mxu2 }
 0x1e6   :  { %v4028_v1 = vpop.f32.mrf.mxu0  ;;  %v4055_v9 = vadd.f32 %v4054_v23, %v4041_v50  ;;  %v7898_v23 = vld [vmem:[%s10214_s3 + $0x1c] sm:$0xf] }
 0x1e7   :  { %v4068_v7 = vpop.f32.mrf.mxu3  ;;  %v4029_v43 = vadd.f32 %v4028_v1, %v4015_v12  ;;  %v7267_v1 = vld [vmem:[%s10214_s3 + $0x38] sm:$0xf]  ;;  %v7930_v50 = vld [vmem:[%s10214_s3 + $0x118] sm:$0x10] }
 0x1e8   :  { %v4042_v22 = vpop.f32.mrf.mxu1  ;;  %v4069_v54 = vadd.f32 %v4068_v7, %v4055_v9  ;;  %v7240_v7 = vor.u32 %v7898_v23, %v7237_v63  ;;  %v7268_v13 = vor.u32 %v7926_v2, %v7267_v1  ;;  %v7261_v12 = vld [vmem:[%s10214_s3 + $0xf4] sm:$0x10]  ;;  %v7280_v9 = vor.u32 %v7903_v27, %v7277_v48  ;;  %v7307_v1 = vld [vmem:[%s10214_s3 + $0x60] sm:$0xf]  ;;  %v7931_v2 = vld [vmem:[%s10214_s3 + $0x120] sm:$0x10] }
 0x1e9   :  { %v4043_v51 = vadd.f32 %v4042_v22, %v4029_v43  ;;  %v4536_v22 = vsel %vm4507_vm0, %v7248_v29, 0  ;;  %v7264_v38 = vor.u32 %v7901_v34, %v7261_v12  ;;  %v4563_v43 = vsel %vm4507_vm0, %v7284_v20, 0  ;;  %v7317_v34 = vld [vmem:[%s10214_s3 + $0x12c] sm:$0x10]  ;;  %v7909_v12 = vld [vmem:[%s10214_s3 + $0x74] sm:$0xf] }
 0x1ea   :  { %v4530_v19 = vsel %vm4507_vm0, %v7240_v7, 0  ;;  %v7331_v7 = vld [vmem:[%s10214_s3 + $0x78] sm:$0xf]  ;;  %v7328_v20 = vor.u32 %v7909_v12, %v7325_v35  ;;  %v7333_v27 = vld [vmem:[%s10214_s3 + $0x13c] sm:$0x10] }
 0x1eb   :  { %v4548_v42 = vsel %vm4507_vm0, %v7264_v38, 0  ;;  %v7320_v38 = vor.u32 %v7908_v33, %v7317_v34  ;;  %v7911_v48 = vld [vmem:[%s10214_s3 + $0x84] sm:$0xf] }
 0x1ed   :  { %v4056_v26 = vpop.f32.mrf.mxu2 }
 0x1ee   :  { %v4057_v52 = vadd.f32 %v4056_v26, %v4043_v51  ;;  %v4551_v26 = vsel %vm4507_vm0, %v7268_v13, 0  ;;  %v7276_v51 = vor.u32 %v7927_v45, %v7275_v44  ;;  %v7339_v45 = vld [vmem:[%s10214_s3 + $0x80] sm:$0xf] }
 0x1ef   :  { %v4070_v46 = vpop.f32.mrf.mxu3 }
 0x1f0   :  { %v4071_v21 = vadd.f32 %v4070_v46, %v4057_v52  ;;  %v7902_v46 = vld [vmem:[%s10214_s3 + $0x3c] sm:$0xf] }
 0x1fe   :  { %v4082_v28 = vpop.f32.mrf.mxu0 }
 0x1ff   :  { %v4083_v55 = vadd.f32 %v4082_v28, %v4069_v54  ;;  %v7259_v28 = vld [vmem:[%s10214_s3 + $0x30] sm:$0xf]  ;;  %v4560_v54 = vsel %vm4507_vm0, %v7280_v9, 0  ;;  %v7938_v9 = vld [vmem:[%s10214_s3 + $0x158] sm:$0x10] }
 0x200   :  { %v4096_v49 = vpop.f32.mrf.mxu1  ;;  %v7260_v37 = vor.u32 %v7925_v31, %v7259_v28  ;;  %v7323_v31 = vld [vmem:[%s10214_s3 + $0x70] sm:$0xf] }
 0x201   :  { %v4097_v58 = vadd.f32 %v4096_v49, %v4083_v55  ;;  %v7299_v49 = vld [vmem:[%s10214_s3 + $0x58] sm:$0xf]  ;;  %v7291_v55 = vld [vmem:[%s10214_s3 + $0x50] sm:$0xf]  ;;  %v7324_v39 = vor.u32 %v7933_v32, %v7323_v31 }
 0x202   :  { %v4545_v40 = vsel %vm4507_vm0, %v7260_v37, 0  ;;  %v7300_v52 = vor.u32 %v7930_v50, %v7299_v49  ;;  %v7936_v37 = vld [vmem:[%s10214_s3 + $0x148] sm:$0x10]  ;;  %v7341_v49 = vld [vmem:[%s10214_s3 + $0x144] sm:$0x10] }
 0x203   :  { %v7363_v50 = vld [vmem:[%s10214_s3 + $0x98] sm:$0xf] }
 0x205   :  { %v4110_v30 = vpop.f32.mrf.mxu2 }
 0x206   :  { %v4084_v53 = vpop.f32.mrf.mxu0  ;;  %v4111_v11 = vadd.f32 %v4110_v30, %v4097_v58  ;;  %v7272_v30 = vor.u32 %v7902_v46, %v7269_v47  ;;  %v7293_v58 = vld [vmem:[%s10214_s3 + $0x114] sm:$0x10]  ;;  %v7935_v46 = vld [vmem:[%s10214_s3 + $0x140] sm:$0x10]  ;;  %v7910_v47 = vld [vmem:[%s10214_s3 + $0x7c] sm:$0xf] }
 0x207   :  { %v4124_v15 = vpop.f32.mrf.mxu3  ;;  %v4085_v56 = vadd.f32 %v4084_v53, %v4071_v21  ;;  %v4557_v53 = vsel %vm4507_vm0, %v7276_v51, 0  ;;  %v4575_v21 = vsel %vm4507_vm0, %v7300_v52, 0  ;;  %v7340_v51 = vor.u32 %v7935_v46, %v7339_v45  ;;  %v7916_v46 = vld [vmem:[%s10214_s3 + $0xac] sm:$0xf] }
 0x208   :  { %v4098_v24 = vpop.f32.mrf.mxu1  ;;  %v4125_v3 = vadd.f32 %v4124_v15, %v4111_v11  ;;  %v4554_v15 = vsel %vm4507_vm0, %v7272_v30, 0  ;;  %v7932_v11 = vld [vmem:[%s10214_s3 + $0x128] sm:$0x10]  ;;  %v7336_v30 = vor.u32 %v7910_v47, %v7333_v27  ;;  %v7344_v52 = vor.u32 %v7911_v48, %v7341_v49  ;;  %v7381_v47 = vld [vmem:[%s10214_s3 + $0x16c] sm:$0x10] }
 0x209   :  { %v4099_v59 = vadd.f32 %v4098_v24, %v4085_v56  ;;  %v7929_v56 = vld [vmem:[%s10214_s3 + $0x110] sm:$0x10]  ;;  %v7904_v24 = vld [vmem:[%s10214_s3 + $0x4c] sm:$0xf] }
 0x20a   :  { %v7917_v27 = vld [vmem:[%s10214_s3 + $0xb4] sm:$0xf] }
 0x20d   :  { %v4112_v5 = vpop.f32.mrf.mxu2 }
 0x20e   :  { %v4113_v60 = vadd.f32 %v4112_v5, %v4099_v59  ;;  %v7285_v5 = vld [vmem:[%s10214_s3 + $0x10c] sm:$0x10]  ;;  %v7315_v59 = vld [vmem:[%s10214_s3 + $0x68] sm:$0xf] }
 0x20f   :  { %v4126_v61 = vpop.f32.mrf.mxu3  ;;  %v7316_v62 = vor.u32 %v7932_v11, %v7315_v59  ;;  %v7357_v59 = vld [vmem:[%s10214_s3 + $0x154] sm:$0x10]  ;;  %v7379_v11 = vld [vmem:[%s10214_s3 + $0xa8] sm:$0xf] }
 0x210   :  { %v4127_v14 = vadd.f32 %v4126_v61, %v4113_v60  ;;  %v7292_v60 = vor.u32 %v7929_v56, %v7291_v55  ;;  %v7288_v61 = vor.u32 %v7904_v24, %v7285_v5  ;;  %v7355_v56 = vld [vmem:[%s10214_s3 + $0x90] sm:$0xf]  ;;  %v7937_v24 = vld [vmem:[%s10214_s3 + $0x150] sm:$0x10]  ;;  %v7912_v5 = vld [vmem:[%s10214_s3 + $0x8c] sm:$0xf] }
 0x211   :  { %v4587_v6 = vsel %vm4507_vm0, %v7316_v62, 0 }
 0x212   :  { %v4569_v23 = vsel %vm4507_vm0, %v7292_v60, 0  ;;  %v4566_v63 = vsel %vm4507_vm0, %v7288_v61, 0  ;;  %v7356_v60 = vor.u32 %v7937_v24, %v7355_v56 }
 0x21e   :  { %v4138_v57 = vpop.f32.mrf.mxu0 }
 0x21f   :  { %v4139_v8 = vadd.f32 %v4138_v57, %v4125_v3  ;;  %v7905_v57 = vld [vmem:[%s10214_s3 + $0x54] sm:$0xf]  ;;  %v7906_v3 = vld [vmem:[%s10214_s3 + $0x5c] sm:$0xf] }
 0x220   :  { %v7296_v18 = vor.u32 %v7905_v57, %v7293_v58  ;;  %v7349_v57 = vld [vmem:[%s10214_s3 + $0x14c] sm:$0x10]  ;;  %v7913_v58 = vld [vmem:[%s10214_s3 + $0x94] sm:$0xf] }
 0x221   :  { %v7352_v61 = vor.u32 %v7912_v5, %v7349_v57  ;;  %v7360_v62 = vor.u32 %v7913_v58, %v7357_v59 }
 0x222   :  { %v4572_v0 = vsel %vm4507_vm0, %v7296_v18, 0  ;;  %v7940_v18 = vld [vmem:[%s10214_s3 + $0x168] sm:$0x10] }
 0x226   :  { %v4140_v4 = vpop.f32.mrf.mxu0 }
 0x227   :  { %v4141_v10 = vadd.f32 %v4140_v4, %v4127_v14  ;;  %v7301_v14 = vld [vmem:[%s10214_s3 + $0x11c] sm:$0x10]  ;;  %v7907_v4 = vld [vmem:[%s10214_s3 + $0x64] sm:$0xf] }
 0x228   :  { %v7304_v29 = vor.u32 %v7906_v3, %v7301_v14  ;;  %v7312_v13 = vor.u32 %v7907_v4, %v7309_v25  ;;  %v7939_v3 = vld [vmem:[%s10214_s3 + $0x160] sm:$0x10]  ;;  %v7914_v14 = vld [vmem:[%s10214_s3 + $0x9c] sm:$0xf]  ;;  %v7365_v4 = vld [vmem:[%s10214_s3 + $0x15c] sm:$0x10] }
 0x229   :  { %v9602_v16 = vpack.c.bf16 %v4141_v10, %v4139_v8  ;;  %v7934_v8 = vld [vmem:[%s10214_s3 + $0x138] sm:$0x10]  ;;  %v7308_v10 = vor.u32 %v7931_v2, %v7307_v1  ;;  %v7371_v2 = vld [vmem:[%s10214_s3 + $0xa0] sm:$0xf]  ;;  %v7915_v25 = vld [vmem:[%s10214_s3 + $0xa4] sm:$0xf] }
 0x22b   :  { %7405 = vmatmul.msk.bf16.vlgmr.msra.gmra.mxu1 %vm4503_vm1, %v9602_v16  ;;  %7406 = vmatmul.msk.bf16.vlgmr.msra.gmra.mxu2 %vm4503_vm1, %v9602_v16 }
 0x22c   :  { %7407 = vmatmul.msk.bf16.vlgmr.msra.gmra.mxu3 %vm4503_vm1, %v9602_v16  ;;  %7411 = vmatmul.msk.bf16.vlgmr.msrb.gmra.mxu0 %vm4503_vm1, %v9602_v16 }
 0x22d   :  { %4774 = vmatpush.bf16.msra.mxu2 %v4533_v17  ;;  %4760 = vmatpush.bf16.msra.mxu1 %v4530_v19  ;;  %v7332_v17 = vor.u32 %v7934_v8, %v7331_v7  ;;  %v4581_v19 = vsel %vm4507_vm0, %v7308_v10, 0  ;;  %v7372_v7 = vor.u32 %v7939_v3, %v7371_v2  ;;  %v7368_v8 = vor.u32 %v7914_v14, %v7365_v4  ;;  %v7373_v10 = vld [vmem:[%s10214_s3 + $0x164] sm:$0x10]  ;;  %v7403_v3 = vld [vmem:[%s10214_s3 + $0xc0] sm:$0xf] }
 0x22e   :  { %4788 = vmatpush.bf16.msra.mxu3 %v4536_v22  ;;  %4858 = vmatpush.bf16.msrb.mxu0 %v4551_v26  ;;  %v4578_v22 = vsel %vm4507_vm0, %v7304_v29, 0  ;;  %v4584_v26 = vsel %vm4507_vm0, %v7312_v13, 0  ;;  %v7395_v29 = vld [vmem:[%s10214_s3 + $0xb8] sm:$0xf]  ;;  %v7942_v13 = vld [vmem:[%s10214_s3 + $0x178] sm:$0x10] }
 0x22f   :  { %v4599_v28 = vsel %vm4507_vm0, %v7332_v17, 0  ;;  %v7376_v17 = vor.u32 %v7915_v25, %v7373_v10  ;;  %v4629_v31 = vsel %vm4507_vm0, %v7372_v7, 0  ;;  %v4626_v32 = vsel %vm4507_vm0, %v7368_v8, 0  ;;  %v7943_v14 = vld [vmem:[%s10214_s3 + $0x180] sm:$0x10] }
 0x230   :  { %v7918_v7 = vld [vmem:[%s10214_s3 + $0xbc] sm:$0xf]  ;;  %v7397_v8 = vld [vmem:[%s10214_s3 + $0x17c] sm:$0x10] }
 0x231   :  { %v4632_v12 = vsel %vm4507_vm0, %v7376_v17, 0 }
 0x23b   :  { %7408 = vmatmul.msk.bf16.vlgmr.msrb.gmra.mxu1 %vm4503_vm1, %v9602_v16  ;;  %7409 = vmatmul.msk.bf16.vlgmr.msrb.gmra.mxu2 %vm4503_vm1, %v9602_v16 }
 0x23c   :  { %7410 = vmatmul.msk.bf16.vlgmr.msrb.gmra.mxu3 %vm4503_vm1, %v9602_v16  ;;  %7415 = vmatmul.msk.bf16.vlgmr.msra.gmra.mxu0 %vm4503_vm1, %v9602_v16 }
 0x23d   :  { %4830 = vmatpush.bf16.msrb.mxu2 %v4545_v40  ;;  %4816 = vmatpush.bf16.msrb.mxu1 %v4542_v41  ;;  %v7348_v40 = vor.u32 %v7936_v37, %v7347_v36  ;;  %v4593_v41 = vsel %vm4507_vm0, %v7324_v39, 0 }
 0x23e   :  { %4844 = vmatpush.bf16.msrb.mxu3 %v4548_v42  ;;  %4914 = vmatpush.bf16.msra.mxu0 %v4563_v43  ;;  %v4590_v42 = vsel %vm4507_vm0, %v7320_v38, 0  ;;  %v4596_v43 = vsel %vm4507_vm0, %v7328_v20, 0 }
 0x23f   :  { %v4611_v44 = vsel %vm4507_vm0, %v7348_v40, 0 }
 0x24b   :  { %7412 = vmatmul.msk.bf16.vlgmr.msra.gmra.mxu1 %vm4503_vm1, %v9602_v16  ;;  %7413 = vmatmul.msk.bf16.vlgmr.msra.gmra.mxu2 %vm4503_vm1, %v9602_v16 }
 0x24c   :  { %7414 = vmatmul.msk.bf16.vlgmr.msra.gmra.mxu3 %vm4503_vm1, %v9602_v16  ;;  %7419 = vmatmul.msk.bf16.vlgmr.msrb.gmra.mxu0 %vm4503_vm1, %v9602_v16 }
 0x24d   :  { %4886 = vmatpush.bf16.msra.mxu2 %v4557_v53  ;;  %4872 = vmatpush.bf16.msra.mxu1 %v4554_v15  ;;  %v7364_v53 = vor.u32 %v7938_v9, %v7363_v50  ;;  %v4605_v15 = vsel %vm4507_vm0, %v7340_v51, 0  ;;  %v7384_v50 = vor.u32 %v7916_v46, %v7381_v47  ;;  %v7389_v51 = vld [vmem:[%s10214_s3 + $0x174] sm:$0x10] }
 0x24e   :  { %4900 = vmatpush.bf16.msra.mxu3 %v4560_v54  ;;  %4970 = vmatpush.bf16.msrb.mxu0 %v4575_v21  ;;  %v4602_v54 = vsel %vm4507_vm0, %v7336_v30, 0  ;;  %v4608_v21 = vsel %vm4507_vm0, %v7344_v52, 0 }
 0x24f   :  { %v4623_v55 = vsel %vm4507_vm0, %v7364_v53, 0  ;;  %v7392_v53 = vor.u32 %v7917_v27, %v7389_v51  ;;  %v4638_v5 = vsel %vm4507_vm0, %v7384_v50, 0 }
 0x251   :  { %v4644_v59 = vsel %vm4507_vm0, %v7392_v53, 0 }
 0x25b   :  { %7416 = vmatmul.msk.bf16.vlgmr.msrb.gmra.mxu1 %vm4503_vm1, %v9602_v16  ;;  %7417 = vmatmul.msk.bf16.vlgmr.msrb.gmra.mxu2 %vm4503_vm1, %v9602_v16 }
 0x25c   :  { %7418 = vmatmul.msk.bf16.vlgmr.msrb.gmra.mxu3 %vm4503_vm1, %v9602_v16  ;;  %7423 = vmatmul.msk.bf16.vlgmr.msra.gmra.mxu0 %vm4503_vm1, %v9602_v16 }
 0x25d   :  { %4942 = vmatpush.bf16.msrb.mxu2 %v4569_v23  ;;  %4928 = vmatpush.bf16.msrb.mxu1 %v4566_v63  ;;  %v7380_v23 = vor.u32 %v7940_v18, %v7379_v11  ;;  %v4617_v63 = vsel %vm4507_vm0, %v7356_v60, 0 }
 0x25e   :  { %4956 = vmatpush.bf16.msrb.mxu3 %v4572_v0  ;;  %5026 = vmatpush.bf16.msra.mxu0 %v4587_v6  ;;  %v4614_v0 = vsel %vm4507_vm0, %v7352_v61, 0  ;;  %v4620_v6 = vsel %vm4507_vm0, %v7360_v62, 0 }
 0x25f   :  { %v4635_v1 = vsel %vm4507_vm0, %v7380_v23, 0 }
 0x26b   :  { %7420 = vmatmul.msk.bf16.vlgmr.msra.gmra.mxu1 %vm4503_vm1, %v9602_v16  ;;  %7421 = vmatmul.msk.bf16.vlgmr.msra.gmra.mxu2 %vm4503_vm1, %v9602_v16 }
 0x26c   :  { %7422 = vmatmul.msk.bf16.vlgmr.msra.gmra.mxu3 %vm4503_vm1, %v9602_v16  ;;  %7427 = vmatmul.msk.bf16.vlgmr.msrb.gmra.mxu0 %vm4503_vm1, %v9602_v16 }
 0x26d   :  { %4998 = vmatpush.bf16.msra.mxu2 %v4581_v19  ;;  %4984 = vmatpush.bf16.msra.mxu1 %v4578_v22  ;;  %v7396_v19 = vor.u32 %v7942_v13, %v7395_v29  ;;  %v9895_v22 = vld [vmem:[%s10215_s4] sm:$0xff]  ;;  %v7404_v29 = vor.u32 %v7943_v14, %v7403_v3  ;;  %v7400_v13 = vor.u32 %v7918_v7, %v7397_v8 }
 0x26e   :  { %5012 = vmatpush.bf16.msra.mxu3 %v4584_v26  ;;  %5082 = vmatpush.bf16.msrb.mxu0 %v4599_v28  ;;  %v4208_v33 = vperm.slane %v9895_v22, 0  ;;  %v4209_v34 = vperm.slane %v9895_v22, 1  ;;  %v4211_v45 = vperm.slane %v9895_v22, 3  ;;  %v4212_v58 = vperm.slane %v9895_v22, 4 }
 0x26f   :  { %v4647_v35 = vsel %vm4507_vm0, %v7396_v19, 0  ;;  %v4213_v11 = vperm.slane %v9895_v22, 5  ;;  %v4214_v4 = vperm.slane %v9895_v22, 6  ;;  %v4215_v25 = vperm.slane %v9895_v22, 7 }
 0x27b   :  { %7424 = vmatmul.msk.bf16.vlgmr.msrb.gmra.mxu1 %vm4503_vm1, %v9602_v16  ;;  %7425 = vmatmul.msk.bf16.vlgmr.msrb.gmra.mxu2 %vm4503_vm1, %v9602_v16 }
 0x27c   :  { %7426 = vmatmul.msk.bf16.vlgmr.msrb.gmra.mxu3 %vm4503_vm1, %v9602_v16  ;;  %7431 = vmatmul.msk.bf16.vlgmr.msra.gmra.mxu0 %vm4503_vm1, %v9602_v16 }
 0x27d   :  { %5054 = vmatpush.bf16.msrb.mxu2 %v4593_v41  ;;  %5040 = vmatpush.bf16.msrb.mxu1 %v4590_v42  ;;  %v7387_v42 = vld [vmem:[%s10214_s3 + $0xb0] sm:$0xf] }
 0x27e   :  { %5068 = vmatpush.bf16.msrb.mxu3 %v4596_v43  ;;  %5138 = vmatpush.bf16.msra.mxu0 %v4611_v44  ;;  %v7941_v43 = vld [vmem:[%s10214_s3 + $0x170] sm:$0x10]  ;;  %v4210_v44 = vperm.slane %v9895_v22, 2  ;;  %v9987_v22 = vld [vmem:[%s10215_s4 + $0x8] sm:$0xff] }
 0x27f   :  { %v7388_v49 = vor.u32 %v7941_v43, %v7387_v42 }
 0x281   :  { %v4641_v24 = vsel %vm4507_vm0, %v7388_v49, 0  ;;  %v4219_v49 = vperm.slane %v9987_v22, 3 }
 0x28b   :  { %7428 = vmatmul.msk.bf16.vlgmr.msra.gmra.mxu1 %vm4503_vm1, %v9602_v16  ;;  %7429 = vmatmul.msk.bf16.vlgmr.msra.gmra.mxu2 %vm4503_vm1, %v9602_v16 }
 0x28c   :  { %7430 = vmatmul.msk.bf16.vlgmr.msra.gmra.mxu3 %vm4503_vm1, %v9602_v16  ;;  %7435 = vmatmul.msk.bf16.vlgmr.msrb.gmra.mxu0 %vm4503_vm1, %v9602_v16 }
 0x28d   :  { %5110 = vmatpush.bf16.msra.mxu2 %v4605_v15  ;;  %5096 = vmatpush.bf16.msra.mxu1 %v4602_v54 }
 0x28e   :  { %5124 = vmatpush.bf16.msra.mxu3 %v4608_v21  ;;  %5194 = vmatpush.bf16.msrb.mxu0 %v4623_v55 }
 0x29b   :  { %7432 = vmatmul.msk.bf16.vlgmr.msrb.gmra.mxu1 %vm4503_vm1, %v9602_v16  ;;  %7433 = vmatmul.msk.bf16.vlgmr.msrb.gmra.mxu2 %vm4503_vm1, %v9602_v16 }
 0x29c   :  { %7434 = vmatmul.msk.bf16.vlgmr.msrb.gmra.mxu3 %vm4503_vm1, %v9602_v16  ;;  %7439 = vmatmul.msk.bf16.vlgmr.msra.gmra.mxu0 %vm4503_vm1, %v9602_v16 }
 0x29d   :  { %5166 = vmatpush.bf16.msrb.mxu2 %v4617_v63  ;;  %5152 = vmatpush.bf16.msrb.mxu1 %v4614_v0 }
 0x29e   :  { %5180 = vmatpush.bf16.msrb.mxu3 %v4620_v6  ;;  %5250 = vmatpush.bf16.msra.mxu0 %v4635_v1 }
 0x2a8   :  { %v4664_v26 = vpop.f32.mrf.mxu1 }
 0x2a9   :  { %v9897_v28 = vpop.f32.mrf.mxu0  ;;  %v4665_v37 = vadd.f32 %v4664_v26, %v4208_v33 }
 0x2ab   :  { %7436 = vmatmul.msk.bf16.vlgmr.msra.gmra.mxu1 %vm4503_vm1, %v9602_v16  ;;  %7437 = vmatmul.msk.bf16.vlgmr.msra.gmra.mxu2 %vm4503_vm1, %v9602_v16 }
 0x2ac   :  { %7438 = vmatmul.msk.bf16.vlgmr.msra.gmra.mxu3 %vm4503_vm1, %v9602_v16  ;;  %7443 = vmatmul.msk.bf16.vlgmr.msrb.gmra.mxu0 %vm4503_vm1, %v9602_v16 }
 0x2ad   :  { %5222 = vmatpush.bf16.msra.mxu2 %v4629_v31  ;;  %5208 = vmatpush.bf16.msra.mxu1 %v4626_v32  ;;  %v4749_v32 = vadd.f32 %v9897_v28, %v4214_v4  ;;  %v4216_v28 = vperm.slane %v9987_v22, 0 }
 0x2ae   :  { %v4678_v36 = vpop.f32.mrf.mxu2  ;;  %5236 = vmatpush.bf16.msra.mxu3 %v4632_v12  ;;  %5306 = vmatpush.bf16.msrb.mxu0 %v4647_v35  ;;  %v4653_v35 = vsel %vm4507_vm0, %v7404_v29, 0 }
 0x2af   :  { %v4679_v39 = vadd.f32 %v4678_v36, %v4209_v34  ;;  %v4692_v38 = vpop.f32.mrf.mxu3  ;;  %v4650_v36 = vsel %vm4507_vm0, %v7400_v13, 0 }
 0x2b0   :  { %v4666_v20 = vpop.f32.mrf.mxu1  ;;  %v4693_v54 = vadd.f32 %v4692_v38, %v4210_v44 }
 0x2b1   :  { %v5341_v40 = vpack.c.bf16 %v4679_v39, %v4665_v37  ;;  %v9913_v41 = vpop.f32.mrf.mxu0  ;;  %v4667_v30 = vadd.f32 %v4666_v20, %v4208_v33  ;;  %v4217_v39 = vperm.slane %v9987_v22, 1 }
 0x2b3   :  { %5391 = vst [vmem:[%s10216_s5] sm:$0xff] %v5341_v40 }
 0x2b6   :  { %v4680_v48 = vpop.f32.mrf.mxu2 }
 0x2b7   :  { %v4681_v9 = vadd.f32 %v4680_v48, %v4209_v34  ;;  %v4694_v52 = vpop.f32.mrf.mxu3  ;;  %v4218_v48 = vperm.slane %v9987_v22, 2 }
 0x2b8   :  { %v4706_v15 = vpop.f32.mrf.mxu1  ;;  %v4695_v63 = vadd.f32 %v4694_v52, %v4210_v44  ;;  %v4751_v44 = vadd.f32 %v9913_v41, %v4214_v4 }
 0x2b9   :  { %v5366_v21 = vpack.c.bf16 %v4681_v9, %v4667_v30  ;;  %v4707_v55 = vadd.f32 %v4706_v15, %v4211_v45  ;;  %v9938_v56 = vpop.f32.mrf.mxu0 }
 0x2ba   :  { %v4805_v52 = vadd.f32 %v9938_v56, %v4218_v48  ;;  %v4221_v56 = vperm.slane %v9987_v22, 5 }
 0x2bb   :  { %5416 = vst [vmem:[%s10216_s5 + $0xc4] sm:$0xff] %v5366_v21  ;;  %v5342_v57 = vpack.c.bf16 %v4707_v55, %v4693_v54  ;;  %7440 = vmatmul.msk.bf16.vlgmr.msrb.gmra.mxu1 %vm4503_vm1, %v9602_v16  ;;  %7441 = vmatmul.msk.bf16.vlgmr.msrb.gmra.mxu2 %vm4503_vm1, %v9602_v16  ;;  %v4220_v55 = vperm.slane %v9987_v22, 4 }
 0x2bc   :  { %7442 = vmatmul.msk.bf16.vlgmr.msrb.gmra.mxu3 %vm4503_vm1, %v9602_v16  ;;  %7447 = vmatmul.msk.bf16.vlgmr.msra.gmra.mxu0 %vm4503_vm1, %v9602_v16 }
 0x2bd   :  { %5392 = vst [vmem:[%s10216_s5 + $0x8] sm:$0xff] %v5342_v57  ;;  %5278 = vmatpush.bf16.msrb.mxu2 %v4641_v24  ;;  %5264 = vmatpush.bf16.msrb.mxu1 %v4638_v5 }
 0x2be   :  { %v4720_v60 = vpop.f32.mrf.mxu2  ;;  %5292 = vmatpush.bf16.msrb.mxu3 %v4644_v59 }
 0x2bf   :  { %v4721_v61 = vadd.f32 %v4720_v60, %v4212_v58  ;;  %v4734_v18 = vpop.f32.mrf.mxu3 }
 0x2c0   :  { %v4735_v62 = vadd.f32 %v4734_v18, %v4213_v11  ;;  %v4708_v23 = vpop.f32.mrf.mxu1 }
 0x2c1   :  { %v4709_v0 = vadd.f32 %v4708_v23, %v4211_v45  ;;  %v9959_v6 = vpop.f32.mrf.mxu0  ;;  %v4222_v23 = vperm.slane %v9987_v22, 6 }
 0x2c2   :  { %v5343_v1 = vpack.c.bf16 %v4735_v62, %v4721_v61 }
 0x2c3   :  { %v5367_v2 = vpack.c.bf16 %v4709_v0, %v4695_v63  ;;  %v4223_v63 = vperm.slane %v9987_v22, 7 }
 0x2c4   :  { %5393 = vst [vmem:[%s10216_s5 + $0x10] sm:$0xff] %v5343_v1 }
 0x2c5   :  { %5417 = vst [vmem:[%s10216_s5 + $0xcc] sm:$0xff] %v5367_v2 }
 0x2c6   :  { %v4722_v10 = vpop.f32.mrf.mxu2 }
 0x2c7   :  { %v4723_v17 = vadd.f32 %v4722_v10, %v4212_v58  ;;  %v4736_v19 = vpop.f32.mrf.mxu3 }
 0x2c8   :  { %v4737_v26 = vadd.f32 %v4736_v19, %v4213_v11  ;;  %v4762_v31 = vpop.f32.mrf.mxu1  ;;  %v4807_v11 = vadd.f32 %v9959_v6, %v4218_v48 }
 0x2c9   :  { %v4763_v33 = vadd.f32 %v4762_v31, %v4215_v25  ;;  %v9982_v34 = vpop.f32.mrf.mxu0 }
 0x2ca   :  { %v5368_v12 = vpack.c.bf16 %v4737_v26, %v4723_v17  ;;  %v4861_v14 = vadd.f32 %v9982_v34, %v4222_v23 }
 0x2cb   :  { %v5344_v37 = vpack.c.bf16 %v4763_v33, %v4749_v32  ;;  %7444 = vmatmul.msk.bf16.vlgmr.msra.gmra.mxu1 %vm4503_vm1, %v9602_v16  ;;  %7445 = vmatmul.msk.bf16.vlgmr.msra.gmra.mxu2 %vm4503_vm1, %v9602_v16 }
 0x2cc   :  { %5418 = vst [vmem:[%s10216_s5 + $0xd4] sm:$0xff] %v5368_v12  ;;  %7446 = vmatmul.msk.bf16.vlgmr.msra.gmra.mxu3 %vm4503_vm1, %v9602_v16  ;;  %7451 = vmatmul.msk.bf16.vlgmr.msrb.gmra.mxu0 %vm4503_vm1, %v9602_v16 }
 0x2cd   :  { %5394 = vst [vmem:[%s10216_s5 + $0x18] sm:$0xff] %v5344_v37  ;;  %5334 = vmatpush.bf16.msra.mxu2 %v4653_v35  ;;  %5320 = vmatpush.bf16.msra.mxu1 %v4650_v36 }
 0x2ce   :  { %v4776_v38 = vpop.f32.mrf.mxu2 }
 0x2cf   :  { %v4777_v20 = vadd.f32 %v4776_v38, %v4216_v28  ;;  %v4790_v40 = vpop.f32.mrf.mxu3 }
 0x2d0   :  { %v4791_v42 = vadd.f32 %v4790_v40, %v4217_v39  ;;  %v4764_v43 = vpop.f32.mrf.mxu1 }
 0x2d1   :  { %v4765_v45 = vadd.f32 %v4764_v43, %v4215_v25  ;;  %v4862_v46 = vpop.f32.mrf.mxu0  ;;  %v10044_v25 = vld [vmem:[%s10215_s4 + $0x10] sm:$0xff] }
 0x2d2   :  { %v5345_v47 = vpack.c.bf16 %v4791_v42, %v4777_v20  ;;  %v4224_v10 = vperm.slane %v10044_v25, 0  ;;  %v4225_v13 = vperm.slane %v10044_v25, 1  ;;  %v4863_v33 = vadd.f32 %v4862_v46, %v4222_v23 }
 0x2d3   :  { %v5369_v27 = vpack.c.bf16 %v4765_v45, %v4751_v44  ;;  %v4226_v12 = vperm.slane %v10044_v25, 2  ;;  %v4227_v35 = vperm.slane %v10044_v25, 3  ;;  %v4228_v45 = vperm.slane %v10044_v25, 4 }
 0x2d4   :  { %5395 = vst [vmem:[%s10216_s5 + $0x20] sm:$0xff] %v5345_v47  ;;  %v4229_v46 = vperm.slane %v10044_v25, 5 }
 0x2d5   :  { %5419 = vst [vmem:[%s10216_s5 + $0xdc] sm:$0xff] %v5369_v27 }
 0x2d6   :  { %v4778_v50 = vpop.f32.mrf.mxu2 }
 0x2d7   :  { %v4779_v51 = vadd.f32 %v4778_v50, %v4216_v28  ;;  %v4792_v30 = vpop.f32.mrf.mxu3 }
 0x2d8   :  { %v4793_v41 = vadd.f32 %v4792_v30, %v4217_v39  ;;  %v4818_v9 = vpop.f32.mrf.mxu1 }
 0x2d9   :  { %v4819_v53 = vadd.f32 %v4818_v9, %v4219_v49  ;;  %v4916_v15 = vpop.f32.mrf.mxu0 }
 0x2da   :  { %v5370_v54 = vpack.c.bf16 %v4793_v41, %v4779_v51  ;;  %v4917_v40 = vadd.f32 %v4916_v15, %v4226_v12  ;;  %v4231_v15 = vperm.slane %v10044_v25, 7 }
 0x2db   :  { %v5346_v21 = vpack.c.bf16 %v4819_v53, %v4805_v52  ;;  %7448 = vmatmul.msk.bf16.vlgmr.msrb.gmra.mxu1 %vm4503_vm1, %v9602_v16  ;;  %7449 = vmatmul.msk.bf16.vlgmr.msrb.gmra.mxu2 %vm4503_vm1, %v9602_v16  ;;  %v4230_v53 = vperm.slane %v10044_v25, 6 }
 0x2dc   :  { %5420 = vst [vmem:[%s10216_s5 + $0xe4] sm:$0xff] %v5370_v54  ;;  %7450 = vmatmul.msk.bf16.vlgmr.msrb.gmra.mxu3 %vm4503_vm1, %v9602_v16 }
 0x2dd   :  { %5396 = vst [vmem:[%s10216_s5 + $0x28] sm:$0xff] %v5346_v21 }
 0x2de   :  { %v4832_v24 = vpop.f32.mrf.mxu2 }
 0x2df   :  { %v4833_v5 = vadd.f32 %v4832_v24, %v4220_v55  ;;  %v4846_v57 = vpop.f32.mrf.mxu3 }
 0x2e0   :  { %v4847_v58 = vadd.f32 %v4846_v57, %v4221_v56  ;;  %v4820_v59 = vpop.f32.mrf.mxu1 }
 0x2e1   :  { %v4821_v60 = vadd.f32 %v4820_v59, %v4219_v49  ;;  %v4918_v18 = vpop.f32.mrf.mxu0 }
 0x2e2   :  { %v5347_v61 = vpack.c.bf16 %v4847_v58, %v4833_v5  ;;  %v4919_v30 = vadd.f32 %v4918_v18, %v4226_v12  ;;  %v10085_v58 = vld [vmem:[%s10215_s4 + $0x18] sm:$0xff] }
 0x2e3   :  { %v5371_v62 = vpack.c.bf16 %v4821_v60, %v4807_v11  ;;  %v4233_v18 = vperm.slane %v10085_v58, 1  ;;  %v4234_v25 = vperm.slane %v10085_v58, 2 }
 0x2e4   :  { %5397 = vst [vmem:[%s10216_s5 + $0x30] sm:$0xff] %v5347_v61  ;;  %v4232_v61 = vperm.slane %v10085_v58, 0 }
 0x2e5   :  { %5421 = vst [vmem:[%s10216_s5 + $0xec] sm:$0xff] %v5371_v62 }
 0x2e6   :  { %v4834_v0 = vpop.f32.mrf.mxu2 }
 0x2e7   :  { %v4835_v1 = vadd.f32 %v4834_v0, %v4220_v55  ;;  %v4848_v2 = vpop.f32.mrf.mxu3 }
 0x2e8   :  { %v4849_v6 = vadd.f32 %v4848_v2, %v4221_v56  ;;  %v4874_v3 = vpop.f32.mrf.mxu1 }
 0x2e9   :  { %v4875_v4 = vadd.f32 %v4874_v3, %v4223_v63  ;;  %v4972_v29 = vpop.f32.mrf.mxu0 }
 0x2ea   :  { %v5372_v7 = vpack.c.bf16 %v4849_v6, %v4835_v1  ;;  %v4973_v5 = vadd.f32 %v4972_v29, %v4230_v53 }
 0x2eb   :  { %v5348_v8 = vpack.c.bf16 %v4875_v4, %v4861_v14  ;;  %7452 = vmatmul.msk.bf16.vlgmr.msra.gmra.mxu1 %vm4503_vm1, %v9602_v16  ;;  %7453 = vmatmul.msk.bf16.vlgmr.msra.gmra.mxu2 %vm4503_vm1, %v9602_v16 }
 0x2ec   :  { %5422 = vst [vmem:[%s10216_s5 + $0xf4] sm:$0xff] %v5372_v7  ;;  %v4235_v7 = vperm.slane %v10085_v58, 3 }
 0x2ed   :  { %5398 = vst [vmem:[%s10216_s5 + $0x38] sm:$0xff] %v5348_v8 }
 0x2ee   :  { %v4888_v17 = vpop.f32.mrf.mxu2 }
 0x2ef   :  { %v4889_v19 = vadd.f32 %v4888_v17, %v4224_v10  ;;  %v4902_v26 = vpop.f32.mrf.mxu3 }
 0x2f0   :  { %v4903_v31 = vadd.f32 %v4902_v26, %v4225_v13  ;;  %v4876_v32 = vpop.f32.mrf.mxu1 }
 0x2f1   :  { %v4877_v16 = vadd.f32 %v4876_v32, %v4223_v63  ;;  %v4974_v36 = vpop.f32.mrf.mxu0 }
 0x2f2   :  { %v5349_v34 = vpack.c.bf16 %v4903_v31, %v4889_v19  ;;  %v4975_v2 = vadd.f32 %v4974_v36, %v4230_v53 }
 0x2f3   :  { %v5373_v22 = vpack.c.bf16 %v4877_v16, %v4863_v33  ;;  %v4236_v33 = vperm.slane %v10085_v58, 4  ;;  %v4237_v16 = vperm.slane %v10085_v58, 5 }
 0x2f4   :  { %5399 = vst [vmem:[%s10216_s5 + $0x40] sm:$0xff] %v5349_v34 }
 0x2f5   :  { %5423 = vst [vmem:[%s10216_s5 + $0xfc] sm:$0xff] %v5373_v22 }
 0x2f6   :  { %v4890_v37 = vpop.f32.mrf.mxu2 }
 0x2f7   :  { %v4891_v28 = vadd.f32 %v4890_v37, %v4224_v10  ;;  %v4904_v39 = vpop.f32.mrf.mxu3 }
 0x2f8   :  { %v4905_v38 = vadd.f32 %v4904_v39, %v4225_v13  ;;  %v4930_v20 = vpop.f32.mrf.mxu1 }
 0x2f9   :  { %v4931_v42 = vadd.f32 %v4930_v20, %v4227_v35  ;;  %v5028_v49 = vpop.f32.mrf.mxu0 }
 0x2fa   :  { %v5374_v43 = vpack.c.bf16 %v4905_v38, %v4891_v28  ;;  %v5029_v19 = vadd.f32 %v5028_v49, %v4234_v25 }
 0x2fb   :  { %v5350_v44 = vpack.c.bf16 %v4931_v42, %v4917_v40  ;;  %v4238_v40 = vperm.slane %v10085_v58, 6  ;;  %v4239_v42 = vperm.slane %v10085_v58, 7 }
 0x2fc   :  { %5424 = vst [vmem:[%s10216_s5 + $0x104] sm:$0xff] %v5374_v43 }
 0x2fd   :  { %5400 = vst [vmem:[%s10216_s5 + $0x48] sm:$0xff] %v5350_v44 }
 0x2fe   :  { %v4944_v47 = vpop.f32.mrf.mxu2 }
 0x2ff   :  { %v4945_v27 = vadd.f32 %v4944_v47, %v4228_v45  ;;  %v4958_v48 = vpop.f32.mrf.mxu3 }
 0x300   :  { %v4959_v50 = vadd.f32 %v4958_v48, %v4229_v46  ;;  %v4932_v51 = vpop.f32.mrf.mxu1 }
 0x301   :  { %v4933_v41 = vadd.f32 %v4932_v51, %v4227_v35  ;;  %v5030_v59 = vpop.f32.mrf.mxu0 }
 0x302   :  { %v5351_v9 = vpack.c.bf16 %v4959_v50, %v4945_v27  ;;  %v5031_v28 = vadd.f32 %v5030_v59, %v4234_v25  ;;  %v10122_v50 = vld [vmem:[%s10215_s4 + $0x20] sm:$0xff] }
 0x303   :  { %v5375_v52 = vpack.c.bf16 %v4933_v41, %v4919_v30  ;;  %v4240_v41 = vperm.slane %v10122_v50, 0  ;;  %v4242_v58 = vperm.slane %v10122_v50, 2  ;;  %v4243_v59 = vperm.slane %v10122_v50, 3 }
 0x304   :  { %5401 = vst [vmem:[%s10216_s5 + $0x50] sm:$0xff] %v5351_v9  ;;  %v4241_v9 = vperm.slane %v10122_v50, 1 }
 0x305   :  { %5425 = vst [vmem:[%s10216_s5 + $0x10c] sm:$0xff] %v5375_v52 }
 0x306   :  { %v4946_v54 = vpop.f32.mrf.mxu2 }
 0x307   :  { %v4947_v21 = vadd.f32 %v4946_v54, %v4228_v45  ;;  %v4960_v55 = vpop.f32.mrf.mxu3 }
 0x308   :  { %v4961_v56 = vadd.f32 %v4960_v55, %v4229_v46  ;;  %v4986_v24 = vpop.f32.mrf.mxu1 }
 0x309   :  { %v4987_v57 = vadd.f32 %v4986_v24, %v4231_v15  ;;  %v5084_v4 = vpop.f32.mrf.mxu0 }
 0x30a   :  { %v5376_v11 = vpack.c.bf16 %v4961_v56, %v4947_v21  ;;  %v5085_v48 = vadd.f32 %v5084_v4, %v4238_v40 }
 0x30b   :  { %v5352_v60 = vpack.c.bf16 %v4987_v57, %v4973_v5 }
 0x30c   :  { %5426 = vst [vmem:[%s10216_s5 + $0x114] sm:$0xff] %v5376_v11 }
 0x30d   :  { %5402 = vst [vmem:[%s10216_s5 + $0x58] sm:$0xff] %v5352_v60 }
 0x30e   :  { %v5000_v62 = vpop.f32.mrf.mxu2 }
 0x30f   :  { %v5001_v23 = vadd.f32 %v5000_v62, %v4232_v61  ;;  %v5014_v63 = vpop.f32.mrf.mxu3 }
 0x310   :  { %v5015_v0 = vadd.f32 %v5014_v63, %v4233_v18  ;;  %v4988_v1 = vpop.f32.mrf.mxu1 }
 0x311   :  { %v4989_v6 = vadd.f32 %v4988_v1, %v4231_v15  ;;  %v5086_v34 = vpop.f32.mrf.mxu0 }
 0x312   :  { %v5353_v3 = vpack.c.bf16 %v5015_v0, %v5001_v23  ;;  %v5087_v55 = vadd.f32 %v5086_v34, %v4238_v40 }
 0x313   :  { %v5377_v14 = vpack.c.bf16 %v4989_v6, %v4975_v2  ;;  %v4244_v2 = vperm.slane %v10122_v50, 4 }
 0x314   :  { %5403 = vst [vmem:[%s10216_s5 + $0x60] sm:$0xff] %v5353_v3  ;;  %v4245_v3 = vperm.slane %v10122_v50, 5 }
 0x315   :  { %5427 = vst [vmem:[%s10216_s5 + $0x11c] sm:$0xff] %v5377_v14 }
 0x316   :  { %v5002_v8 = vpop.f32.mrf.mxu2 }
 0x317   :  { %v5003_v10 = vadd.f32 %v5002_v8, %v4232_v61  ;;  %v5016_v29 = vpop.f32.mrf.mxu3 }
 0x318   :  { %v5017_v13 = vadd.f32 %v5016_v29, %v4233_v18  ;;  %v5042_v17 = vpop.f32.mrf.mxu1 }
 0x319   :  { %v5043_v26 = vadd.f32 %v5042_v17, %v4235_v7  ;;  %v5140_v46 = vpop.f32.mrf.mxu0 }
 0x31a   :  { %v5378_v31 = vpack.c.bf16 %v5017_v13, %v5003_v10  ;;  %v5141_v23 = vadd.f32 %v5140_v46, %v4242_v58 }
 0x31b   :  { %v5354_v32 = vpack.c.bf16 %v5043_v26, %v5029_v19  ;;  %v4246_v19 = vperm.slane %v10122_v50, 6  ;;  %v4247_v26 = vperm.slane %v10122_v50, 7 }
 0x31c   :  { %5428 = vst [vmem:[%s10216_s5 + $0x124] sm:$0xff] %v5378_v31 }
 0x31d   :  { %5404 = vst [vmem:[%s10216_s5 + $0x68] sm:$0xff] %v5354_v32 }
 0x31e   :  { %v5056_v22 = vpop.f32.mrf.mxu2 }
 0x31f   :  { %v5057_v12 = vadd.f32 %v5056_v22, %v4236_v33  ;;  %v5070_v35 = vpop.f32.mrf.mxu3 }
 0x320   :  { %v5071_v36 = vadd.f32 %v5070_v35, %v4237_v16  ;;  %v5044_v37 = vpop.f32.mrf.mxu1 }
 0x321   :  { %v5045_v39 = vadd.f32 %v5044_v37, %v4235_v7  ;;  %v5142_v24 = vpop.f32.mrf.mxu0 }
 0x322   :  { %v5355_v38 = vpack.c.bf16 %v5071_v36, %v5057_v12  ;;  %v5143_v10 = vadd.f32 %v5142_v24, %v4242_v58  ;;  %v10159_v36 = vld [vmem:[%s10215_s4 + $0x28] sm:$0xff] }
 0x323   :  { %v5379_v20 = vpack.c.bf16 %v5045_v39, %v5031_v28  ;;  %v4248_v39 = vperm.slane %v10159_v36, 0  ;;  %v4251_v50 = vperm.slane %v10159_v36, 3  ;;  %v4253_v24 = vperm.slane %v10159_v36, 5 }
 0x324   :  { %5405 = vst [vmem:[%s10216_s5 + $0x70] sm:$0xff] %v5355_v38  ;;  %v4249_v38 = vperm.slane %v10159_v36, 1 }
 0x325   :  { %5429 = vst [vmem:[%s10216_s5 + $0x12c] sm:$0xff] %v5379_v20 }
 0x326   :  { %v5058_v43 = vpop.f32.mrf.mxu2 }
 0x327   :  { %v5059_v44 = vadd.f32 %v5058_v43, %v4236_v33  ;;  %v5072_v45 = vpop.f32.mrf.mxu3 }
 0x328   :  { %v5073_v47 = vadd.f32 %v5072_v45, %v4237_v16  ;;  %v5098_v27 = vpop.f32.mrf.mxu1 }
 0x329   :  { %v5099_v49 = vadd.f32 %v5098_v27, %v4239_v42  ;;  %v5196_v6 = vpop.f32.mrf.mxu0 }
 0x32a   :  { %v5380_v51 = vpack.c.bf16 %v5073_v47, %v5059_v44  ;;  %v5197_v12 = vadd.f32 %v5196_v6, %v4246_v19 }
 0x32b   :  { %v5356_v30 = vpack.c.bf16 %v5099_v49, %v5085_v48  ;;  %v4250_v49 = vperm.slane %v10159_v36, 2 }
 0x32c   :  { %5430 = vst [vmem:[%s10216_s5 + $0x134] sm:$0xff] %v5380_v51 }
 0x32d   :  { %5406 = vst [vmem:[%s10216_s5 + $0x78] sm:$0xff] %v5356_v30 }
 0x32e   :  { %v5112_v52 = vpop.f32.mrf.mxu2 }
 0x32f   :  { %v5113_v53 = vadd.f32 %v5112_v52, %v4240_v41  ;;  %v5126_v15 = vpop.f32.mrf.mxu3 }
 0x330   :  { %v5127_v54 = vadd.f32 %v5126_v15, %v4241_v9  ;;  %v5100_v21 = vpop.f32.mrf.mxu1 }
 0x331   :  { %v5101_v56 = vadd.f32 %v5100_v21, %v4239_v42  ;;  %v5198_v31 = vpop.f32.mrf.mxu0 }
 0x332   :  { %v5357_v5 = vpack.c.bf16 %v5127_v54, %v5113_v53  ;;  %v5199_v46 = vadd.f32 %v5198_v31, %v4246_v19 }
 0x333   :  { %v5381_v57 = vpack.c.bf16 %v5101_v56, %v5087_v55  ;;  %v4252_v56 = vperm.slane %v10159_v36, 4 }
 0x334   :  { %5407 = vst [vmem:[%s10216_s5 + $0x80] sm:$0xff] %v5357_v5 }
 0x335   :  { %5431 = vst [vmem:[%s10216_s5 + $0x13c] sm:$0xff] %v5381_v57 }
 0x336   :  { %v5114_v11 = vpop.f32.mrf.mxu2 }
 0x337   :  { %v5115_v60 = vadd.f32 %v5114_v11, %v4240_v41  ;;  %v5128_v61 = vpop.f32.mrf.mxu3 }
 0x338   :  { %v5129_v18 = vadd.f32 %v5128_v61, %v4241_v9  ;;  %v5154_v62 = vpop.f32.mrf.mxu1 }
 0x339   :  { %v5155_v63 = vadd.f32 %v5154_v62, %v4243_v59  ;;  %v5252_v43 = vpop.f32.mrf.mxu0 }
 0x33a   :  { %v5382_v0 = vpack.c.bf16 %v5129_v18, %v5115_v60  ;;  %v5253_v53 = vadd.f32 %v5252_v43, %v4250_v49 }
 0x33b   :  { %v5358_v1 = vpack.c.bf16 %v5155_v63, %v5141_v23  ;;  %v4254_v63 = vperm.slane %v10159_v36, 6 }
 0x33c   :  { %5432 = vst [vmem:[%s10216_s5 + $0x144] sm:$0xff] %v5382_v0  ;;  %v4255_v0 = vperm.slane %v10159_v36, 7 }
 0x33d   :  { %5408 = vst [vmem:[%s10216_s5 + $0x88] sm:$0xff] %v5358_v1 }
 0x33e   :  { %v5168_v14 = vpop.f32.mrf.mxu2 }
 0x33f   :  { %v5169_v4 = vadd.f32 %v5168_v14, %v4244_v2  ;;  %v5182_v25 = vpop.f32.mrf.mxu3 }
 0x340   :  { %v5183_v7 = vadd.f32 %v5182_v25, %v4245_v3  ;;  %v5156_v8 = vpop.f32.mrf.mxu1 }
 0x341   :  { %v5157_v29 = vadd.f32 %v5156_v8, %v4243_v59  ;;  %v5254_v54 = vpop.f32.mrf.mxu0 }
 0x342   :  { %v5359_v13 = vpack.c.bf16 %v5183_v7, %v5169_v4  ;;  %v5255_v60 = vadd.f32 %v5254_v54, %v4250_v49 }
 0x343   :  { %v5383_v17 = vpack.c.bf16 %v5157_v29, %v5143_v10  ;;  %v7945_v10 = vld [vmem:[%s10215_s4 + $0x30] ss:$0 sm:$0xff] }
 0x344   :  { %5409 = vst [vmem:[%s10216_s5 + $0x90] sm:$0xff] %v5359_v13 }
 0x345   :  { %5433 = vst [vmem:[%s10216_s5 + $0x14c] sm:$0xff] %v5383_v17 }
 0x346   :  { %v5170_v32 = vpop.f32.mrf.mxu2 }
 0x347   :  { %v5171_v33 = vadd.f32 %v5170_v32, %v4244_v2  ;;  %v5184_v16 = vpop.f32.mrf.mxu3 }
 0x348   :  { %v5185_v34 = vadd.f32 %v5184_v16, %v4245_v3  ;;  %v5210_v22 = vpop.f32.mrf.mxu1 }
 0x349   :  { %v5211_v35 = vadd.f32 %v5210_v22, %v4247_v26  ;;  %v5308_v23 = vpop.f32.mrf.mxu0 }
 0x34a   :  { %v5384_v37 = vpack.c.bf16 %v5185_v34, %v5171_v33  ;;  %v5309_v4 = vadd.f32 %v5308_v23, %v4254_v63 }
 0x34b   :  { %v5360_v28 = vpack.c.bf16 %v5211_v35, %v5197_v12 }
 0x34c   :  { %5434 = vst [vmem:[%s10216_s5 + $0x154] sm:$0xff] %v5384_v37 }
 0x34d   :  { %5410 = vst [vmem:[%s10216_s5 + $0x98] sm:$0xff] %v5360_v28 }
 0x34e   :  { %v5224_v20 = vpop.f32.mrf.mxu2 }
 0x34f   :  { %v5225_v40 = vadd.f32 %v5224_v20, %v4248_v39  ;;  %v5238_v42 = vpop.f32.mrf.mxu3 }
 0x350   :  { %v5239_v44 = vadd.f32 %v5238_v42, %v4249_v38  ;;  %v5212_v45 = vpop.f32.mrf.mxu1 }
 0x351   :  { %v5213_v47 = vadd.f32 %v5212_v45, %v4247_v26  ;;  %v5310_v29 = vpop.f32.mrf.mxu0 }
 0x352   :  { %v5361_v27 = vpack.c.bf16 %v5239_v44, %v5225_v40  ;;  %v5311_v26 = vadd.f32 %v5310_v29, %v4254_v63 }
 0x353   :  { %v5385_v48 = vpack.c.bf16 %v5213_v47, %v5199_v46 }
 0x354   :  { %5411 = vst [vmem:[%s10216_s5 + $0xa0] sm:$0xff] %v5361_v27 }
 0x355   :  { %5435 = vst [vmem:[%s10216_s5 + $0x15c] sm:$0xff] %v5385_v48 }
 0x356   :  { %v5226_v51 = vpop.f32.mrf.mxu2 }
 0x357   :  { %v5227_v30 = vadd.f32 %v5226_v51, %v4248_v39  ;;  %v5240_v41 = vpop.f32.mrf.mxu3 }
 0x358   :  { %v5241_v9 = vadd.f32 %v5240_v41, %v4249_v38  ;;  %v5266_v52 = vpop.f32.mrf.mxu1 }
 0x359   :  { %v5267_v15 = vadd.f32 %v5266_v52, %v4251_v50 }
 0x35a   :  { %v5386_v21 = vpack.c.bf16 %v5241_v9, %v5227_v30 }
 0x35b   :  { %v5362_v55 = vpack.c.bf16 %v5267_v15, %v5253_v53 }
 0x35c   :  { %5436 = vst [vmem:[%s10216_s5 + $0x164] sm:$0xff] %v5386_v21 }
 0x35d   :  { %5412 = vst [vmem:[%s10216_s5 + $0xa8] sm:$0xff] %v5362_v55 }
 0x35e   :  { %v5280_v5 = vpop.f32.mrf.mxu2 }
 0x35f   :  { %v5281_v57 = vadd.f32 %v5280_v5, %v4252_v56  ;;  %v5294_v58 = vpop.f32.mrf.mxu3 }
 0x360   :  { %v5295_v59 = vadd.f32 %v5294_v58, %v4253_v24  ;;  %v5268_v11 = vpop.f32.mrf.mxu1 }
 0x361   :  { %v5269_v61 = vadd.f32 %v5268_v11, %v4251_v50 }
 0x362   :  { %v5363_v18 = vpack.c.bf16 %v5295_v59, %v5281_v57 }
 0x363   :  { %v5387_v62 = vpack.c.bf16 %v5269_v61, %v5255_v60 }
 0x364   :  { %5413 = vst [vmem:[%s10216_s5 + $0xb0] sm:$0xff] %v5363_v18 }
 0x365   :  { %5437 = vst [vmem:[%s10216_s5 + $0x16c] sm:$0xff] %v5387_v62 }
 0x366   :  { %v5282_v1 = vpop.f32.mrf.mxu2 }
 0x367   :  { %v5283_v2 = vadd.f32 %v5282_v1, %v4252_v56  ;;  %v5296_v6 = vpop.f32.mrf.mxu3 }
 0x368   :  { %v5297_v3 = vadd.f32 %v5296_v6, %v4253_v24  ;;  %v5322_v14 = vpop.f32.mrf.mxu1 }
 0x369   :  { %v5323_v25 = vadd.f32 %v5322_v14, %v4255_v0 }
 0x36a   :  { %v5388_v7 = vpack.c.bf16 %v5297_v3, %v5283_v2 }
 0x36b   :  { %v5364_v8 = vpack.c.bf16 %v5323_v25, %v5309_v4 }
 0x36c   :  { %5438 = vst [vmem:[%s10216_s5 + $0x174] sm:$0xff] %v5388_v7 }
 0x36d   :  { %5414 = vst [vmem:[%s10216_s5 + $0xb8] sm:$0xff] %v5364_v8 }
 0x36e   :  { %v5336_v13 = vpop.f32.mrf.mxu2 }
 0x36f   :  { %v5337_v17 = vadd.f32 %v7945_v10, %v5336_v13 }
 0x370   :  { %v5324_v19 = vpop.f32.mrf.mxu1 }
 0x371   :  { %v5365_v31 = vpack.c.bf16 %v5337_v17, %v5337_v17  ;;  %v5325_v32 = vadd.f32 %v5324_v19, %v4255_v0 }
 0x373   :  { %5415 = vst [vmem:[%s10216_s5 + $0xc0] sm:$0xf] %v5365_v31  ;;  %v5389_v33 = vpack.c.bf16 %v5325_v32, %v5311_v26 }
 0x375   :  { %5439 = vst [vmem:[%s10216_s5 + $0x17c] sm:$0xff] %v5389_v33 }
 0x376   :  { %v5338_v16 = vpop.f32.mrf.mxu2 }
 0x377   :  { %v5339_v34 = vadd.f32 %v7945_v10, %v5338_v16 }
 0x379   :  { %v5390_v22 = vpack.c.bf16 %v5339_v34, %v5339_v34 }
 0x37b   :  { %5440 = vst [vmem:[%s10216_s5 + $0x184] sm:$0xf] %v5390_v22 }

// kernel: autoencoder_forward.8
= control target key start
LH: loop header
LB: loop body
LE: loop exit
PB: predicated region body
PF: predicated region fallthrough
CT: control target
= control target key end

     0   :  { %s1405_s12 = smov 0   ;;  %s1407_s13 = smov 0   ;;  %s1566_s0 = inlined_call_operand.vmem [shape: bf16[4,112,512], index: 0, kind: input, shape index: {}]   ;;  %s1567_s1 = inlined_call_operand.vmem [shape: bf16[4,512,128], index: 1, kind: input, shape index: {}]   ;;  %s1568_s2 = inlined_call_operand.vmem [shape: f32[1,128], index: 2, kind: input, shape index: {}]   ;;  %s1569_s3 = inlined_call_operand.vmem [shape: bf16[4,112,128], index: 3, kind: output, shape index: {}]  }
   0x1   :  { %s1409_s14 = smov 0  }
   0x2 LB: > { %s25_s15 = sadd.s32 1, %s1379_s13  ;;  %p985_p0 = scmp.ge.s32.totalorder %s1383_s14, 1  ;;  %s1383_s14 = sphi %s1409_s14, %s13_s14   ;;  %s1379_s13 = sphi %s1407_s13, %s1571_s13   ;;  %s1375_s12 = sphi %s1405_s12, %s1570_s12  }
   0x3   : > { %p27_p1 = scmp.ge.s32.totalorder %s25_s15, 4  ;;  %p169_p2 = scmp.lt.s32.totalorder %s1383_s14, 5 }
   0x5   : > { %s1573_s15 = smov (%p27_p1, %s25_s15), 0  ;;  %p170_p3 = pnand %p985_p0, %p169_p2 }
   0x6   : > { %p208_p4 = scmp.lt.s32.totalorder (!%p170_p3), %s1375_s12, 3 }
   0x7   : > { %173 = sbr.rel (%p170_p3) target bundleno = 294 (0x126), region = 32 }
   0xc   : > { %s1575_s12 = smov (!%p208_p4, %s1375_s12), 3 }
   0xd   : > { %s1232_s16 = sshll.u32 %s1575_s12, 8  ;;  %s1334_s20 = smul.u32 224, %s1575_s12 }
   0xe   : > { %s1429_s19 = scalar_lea.vmem %s1567_s1, %s1232_s16  ;;  %s1335_s26 = smul.u32 56, %s1575_s12 }
   0xf   : > { %v1268_v0 = vld [vmem:[%s1429_s19 + $0x38] sm:$0xff]  ;;  %v1267_v4 = vld [vmem:[%s1429_s19 + $0x30] sm:$0xff]  ;;  %v1266_v8 = vld [vmem:[%s1429_s19 + $0x28] sm:$0xff]  ;;  %s1461_s23 = scalar_lea.vmem %s1566_s0, %s1334_s20 }
  0x10   : > { %v1276_v1 = vld [vmem:[%s1429_s19 + $0x78] sm:$0xff]  ;;  %661 = vmatpush.bf16.msra.mxu0 %v1268_v0  ;;  %v1275_v5 = vld [vmem:[%s1429_s19 + $0x70] sm:$0xff]  ;;  %v1274_v9 = vld [vmem:[%s1429_s19 + $0x68] sm:$0xff]  ;;  %s1537_s29 = scalar_lea.vmem %s1569_s3, %s1335_s26 }
  0x11   : > { %v1284_v2 = vld [vmem:[%s1429_s19 + $0xb8] sm:$0xff]  ;;  %705 = vmatpush.bf16.msra.mxu1 %v1276_v1  ;;  %v1283_v6 = vld [vmem:[%s1429_s19 + $0xb0] sm:$0xff]  ;;  %v1282_v10 = vld [vmem:[%s1429_s19 + $0xa8] sm:$0xff] }
  0x12   : > { %v1292_v3 = vld [vmem:[%s1429_s19 + $0xf8] sm:$0xff]  ;;  %749 = vmatpush.bf16.msra.mxu2 %v1284_v2  ;;  %v1291_v7 = vld [vmem:[%s1429_s19 + $0xf0] sm:$0xff]  ;;  %v1290_v11 = vld [vmem:[%s1429_s19 + $0xe8] sm:$0xff] }
  0x13   : > { %793 = vmatpush.bf16.msra.mxu3 %v1292_v3  ;;  %v1265_v12 = vld [vmem:[%s1429_s19 + $0x20] sm:$0xff]  ;;  %v1264_v16 = vld [vmem:[%s1429_s19 + $0x18] sm:$0xff]  ;;  %v1263_v20 = vld [vmem:[%s1429_s19 + $0x10] sm:$0xff] }
  0x14   : > { %662 = vmatpush.bf16.msra.mxu0 %v1267_v4  ;;  %v1273_v13 = vld [vmem:[%s1429_s19 + $0x60] sm:$0xff]  ;;  %v1272_v17 = vld [vmem:[%s1429_s19 + $0x58] sm:$0xff]  ;;  %v1271_v21 = vld [vmem:[%s1429_s19 + $0x50] sm:$0xff] }
  0x15   : > { %706 = vmatpush.bf16.msra.mxu1 %v1275_v5  ;;  %v1281_v14 = vld [vmem:[%s1429_s19 + $0xa0] sm:$0xff]  ;;  %v1280_v18 = vld [vmem:[%s1429_s19 + $0x98] sm:$0xff]  ;;  %v1279_v22 = vld [vmem:[%s1429_s19 + $0x90] sm:$0xff] }
  0x16   : > { %750 = vmatpush.bf16.msra.mxu2 %v1283_v6  ;;  %v1289_v15 = vld [vmem:[%s1429_s19 + $0xe0] sm:$0xff]  ;;  %v1288_v19 = vld [vmem:[%s1429_s19 + $0xd8] sm:$0xff]  ;;  %v1287_v23 = vld [vmem:[%s1429_s19 + $0xd0] sm:$0xff] }
  0x17   : > { %794 = vmatpush.bf16.msra.mxu3 %v1291_v7  ;;  %v1262_v24 = vld [vmem:[%s1429_s19 + $0x8] sm:$0xff]  ;;  %v1261_v28 = vld [vmem:[%s1429_s19] sm:$0xff]  ;;  %v1235_v33 = vld [vmem:[%s1461_s23 + $0xc] sm:$0xf0] }
  0x18   : > { %663 = vmatpush.bf16.msra.mxu0 %v1266_v8  ;;  %v1270_v25 = vld [vmem:[%s1429_s19 + $0x48] sm:$0xff]  ;;  %v1269_v29 = vld [vmem:[%s1429_s19 + $0x40] sm:$0xff]  ;;  %v994_v35 = vld [vmem:[%s1461_s23 + $0x10] sm:$0xf0] }
  0x19   : > { %707 = vmatpush.bf16.msra.mxu1 %v1274_v9  ;;  %v1278_v26 = vld [vmem:[%s1429_s19 + $0x88] sm:$0xff]  ;;  %v1277_v30 = vld [vmem:[%s1429_s19 + $0x80] sm:$0xff]  ;;  %v1236_v37 = vld [vmem:[%s1461_s23 + $0x14] sm:$0xf0] }
  0x1a   : > { %751 = vmatpush.bf16.msra.mxu2 %v1282_v10  ;;  %v1286_v27 = vld [vmem:[%s1429_s19 + $0xc8] sm:$0xff]  ;;  %v1285_v31 = vld [vmem:[%s1429_s19 + $0xc0] sm:$0xff]  ;;  %v1002_v39 = vld [vmem:[%s1461_s23 + $0x18] sm:$0xf0] }
  0x1b   : > { %795 = vmatpush.bf16.msra.mxu3 %v1290_v11  ;;  %v992_v32 = vld [vmem:[%s1461_s23] sm:$0xf]  ;;  %v1233_v34 = vld [vmem:[%s1461_s23 + $0x4] sm:$0xf]  ;;  %v1000_v36 = vld [vmem:[%s1461_s23 + $0x8] sm:$0xf] }
  0x1c   : > { %664 = vmatpush.bf16.msra.mxu0 %v1265_v12  ;;  %v1234_v38 = vld [vmem:[%s1461_s23 + $0xc] sm:$0xf]  ;;  %v993_v40 = vor.u32 %v1235_v33, %v992_v32  ;;  %v997_v41 = vor.u32 %v1233_v34, %v994_v35  ;;  %v1001_v42 = vor.u32 %v1236_v37, %v1000_v36  ;;  %v1008_v44 = vld [vmem:[%s1461_s23 + $0x20] sm:$0xf]  ;;  %v1239_v45 = vld [vmem:[%s1461_s23 + $0x2c] sm:$0xf0] }
  0x1d   : > { %708 = vmatpush.bf16.msra.mxu1 %v1273_v13  ;;  %v1005_v43 = vor.u32 %v1234_v38, %v1002_v39  ;;  %v1237_v46 = vld [vmem:[%s1461_s23 + $0x24] sm:$0xf]  ;;  %v1010_v47 = vld [vmem:[%s1461_s23 + $0x30] sm:$0xf0]  ;;  %v1016_v48 = vld [vmem:[%s1461_s23 + $0x28] sm:$0xf]  ;;  %v1009_v52 = vor.u32 %v1239_v45, %v1008_v44 }
  0x1e   : > { %752 = vmatpush.bf16.msra.mxu2 %v1281_v14  ;;  %v1240_v49 = vld [vmem:[%s1461_s23 + $0x34] sm:$0xf0]  ;;  %v1238_v50 = vld [vmem:[%s1461_s23 + $0x2c] sm:$0xf]  ;;  %v1018_v51 = vld [vmem:[%s1461_s23 + $0x38] sm:$0xf0]  ;;  %v1013_v53 = vor.u32 %v1237_v46, %v1010_v47 }
  0x1f   : > { %796 = vmatpush.bf16.msra.mxu3 %v1289_v15  ;;  %v1017_v54 = vor.u32 %v1240_v49, %v1016_v48  ;;  %v1021_v55 = vor.u32 %v1238_v50, %v1018_v51  ;;  %v1024_v56 = vld [vmem:[%s1461_s23 + $0x40] sm:$0xf]  ;;  %v1243_v57 = vld [vmem:[%s1461_s23 + $0x4c] sm:$0xf0]  ;;  %v1241_v58 = vld [vmem:[%s1461_s23 + $0x44] sm:$0xf] }
  0x20   : > { %665 = vmatpush.bf16.msra.mxu0 %v1264_v16  ;;  %v1026_v59 = vld [vmem:[%s1461_s23 + $0x50] sm:$0xf0]  ;;  %v1032_v60 = vld [vmem:[%s1461_s23 + $0x48] sm:$0xf]  ;;  %v1244_v61 = vld [vmem:[%s1461_s23 + $0x54] sm:$0xf0]  ;;  %v1025_v0 = vor.u32 %v1243_v57, %v1024_v56 }
  0x21   : > { %709 = vmatpush.bf16.msra.mxu1 %v1272_v17  ;;  %v1242_v62 = vld [vmem:[%s1461_s23 + $0x4c] sm:$0xf]  ;;  %v1034_v63 = vld [vmem:[%s1461_s23 + $0x58] sm:$0xf0]  ;;  %v1029_v1 = vor.u32 %v1241_v58, %v1026_v59  ;;  %v1033_v2 = vor.u32 %v1244_v61, %v1032_v60  ;;  %v1040_v4 = vld [vmem:[%s1461_s23 + $0x60] sm:$0xf] }
  0x22   : > { %753 = vmatpush.bf16.msra.mxu2 %v1280_v18  ;;  %v1037_v3 = vor.u32 %v1242_v62, %v1034_v63  ;;  %v1247_v5 = vld [vmem:[%s1461_s23 + $0x6c] sm:$0xf0]  ;;  %v1245_v6 = vld [vmem:[%s1461_s23 + $0x64] sm:$0xf]  ;;  %v1042_v7 = vld [vmem:[%s1461_s23 + $0x70] sm:$0xf0] }
  0x23   : > { %797 = vmatpush.bf16.msra.mxu3 %v1288_v19  ;;  %v1048_v8 = vld [vmem:[%s1461_s23 + $0x68] sm:$0xf]  ;;  %v1248_v9 = vld [vmem:[%s1461_s23 + $0x74] sm:$0xf0]  ;;  %v1246_v10 = vld [vmem:[%s1461_s23 + $0x6c] sm:$0xf]  ;;  %v1041_v12 = vor.u32 %v1247_v5, %v1040_v4  ;;  %v1045_v13 = vor.u32 %v1245_v6, %v1042_v7 }
  0x24   : > { %666 = vmatpush.bf16.msra.mxu0 %v1263_v20  ;;  %v1050_v11 = vld [vmem:[%s1461_s23 + $0x78] sm:$0xf0]  ;;  %v1049_v14 = vor.u32 %v1248_v9, %v1048_v8  ;;  %v1056_v16 = vld [vmem:[%s1461_s23 + $0x80] sm:$0xf]  ;;  %v1251_v17 = vld [vmem:[%s1461_s23 + $0x8c] sm:$0xf0] }
  0x25   : > { %710 = vmatpush.bf16.msra.mxu1 %v1271_v21  ;;  %v1053_v15 = vor.u32 %v1246_v10, %v1050_v11  ;;  %v1249_v18 = vld [vmem:[%s1461_s23 + $0x84] sm:$0xf]  ;;  %v1058_v19 = vld [vmem:[%s1461_s23 + $0x90] sm:$0xf0]  ;;  %v1064_v20 = vld [vmem:[%s1461_s23 + $0x88] sm:$0xf] }
  0x26   : > { %754 = vmatpush.bf16.msra.mxu2 %v1279_v22  ;;  %v1252_v21 = vld [vmem:[%s1461_s23 + $0x94] sm:$0xf0]  ;;  %v1250_v22 = vld [vmem:[%s1461_s23 + $0x8c] sm:$0xf]  ;;  %v1080_v32 = vld [vmem:[%s1461_s23 + $0xa8] sm:$0xf] }
  0x27   : > { %798 = vmatpush.bf16.msra.mxu3 %v1287_v23  ;;  %v1066_v23 = vld [vmem:[%s1461_s23 + $0x98] sm:$0xf0]  ;;  %v1256_v33 = vld [vmem:[%s1461_s23 + $0xb4] sm:$0xf0]  ;;  %v1254_v34 = vld [vmem:[%s1461_s23 + $0xac] sm:$0xf] }
  0x28   : > { %667 = vmatpush.bf16.msra.mxu0 %v1262_v24  ;;  %v1057_v24 = vor.u32 %v1251_v17, %v1056_v16  ;;  %v1082_v35 = vld [vmem:[%s1461_s23 + $0xb8] sm:$0xf0]  ;;  %v1081_v38 = vor.u32 %v1256_v33, %v1080_v32  ;;  %v1096_v44 = vld [vmem:[%s1461_s23 + $0xc8] sm:$0xf]  ;;  %v1260_v45 = vld [vmem:[%s1461_s23 + $0xd4] sm:$0xf0] }
  0x29   : > { %711 = vmatpush.bf16.msra.mxu1 %v1270_v25  ;;  %v1061_v25 = vor.u32 %v1249_v18, %v1058_v19  ;;  %v1085_v39 = vor.u32 %v1254_v34, %v1082_v35  ;;  %v1258_v46 = vld [vmem:[%s1461_s23 + $0xcc] sm:$0xf]  ;;  %v1098_v47 = vld [vmem:[%s1461_s23 + $0xd8] sm:$0xf0]  ;;  %v1097_v50 = vor.u32 %v1260_v45, %v1096_v44 }
  0x2a   : > { %755 = vmatpush.bf16.msra.mxu2 %v1278_v26  ;;  %v1065_v26 = vor.u32 %v1252_v21, %v1064_v20  ;;  %v1101_v51 = vor.u32 %v1258_v46, %v1098_v47 }
  0x2b   : > { %799 = vmatpush.bf16.msra.mxu3 %v1286_v27  ;;  %v1069_v27 = vor.u32 %v1250_v22, %v1066_v23 }
  0x2c   : > { %668 = vmatpush.bf16.msra.mxu0 %v1261_v28  ;;  %v1072_v28 = vld [vmem:[%s1461_s23 + $0xa0] sm:$0xf] }
  0x2d   : > { %712 = vmatpush.bf16.msra.mxu1 %v1269_v29  ;;  %v1255_v29 = vld [vmem:[%s1461_s23 + $0xac] sm:$0xf0] }
  0x2e   : > { %756 = vmatpush.bf16.msra.mxu2 %v1277_v30  ;;  %v1253_v30 = vld [vmem:[%s1461_s23 + $0xa4] sm:$0xf]  ;;  %v1073_v36 = vor.u32 %v1255_v29, %v1072_v28 }
  0x2f   : > { %800 = vmatpush.bf16.msra.mxu3 %v1285_v31  ;;  %669 = vmatmul.bf16.vlgmr.msra.gmra.mxu0 %v993_v40  ;;  %v1074_v31 = vld [vmem:[%s1461_s23 + $0xb0] sm:$0xf0]  ;;  %v1088_v40 = vld [vmem:[%s1461_s23 + $0xc0] sm:$0xf] }
  0x30   : > { %713 = vmatmul.bf16.vlgmr.msra.gmra.mxu1 %v997_v41  ;;  %v1077_v37 = vor.u32 %v1253_v30, %v1074_v31  ;;  %v1259_v41 = vld [vmem:[%s1461_s23 + $0xcc] sm:$0xf0] }
  0x31   : > { %757 = vmatmul.bf16.vlgmr.msra.gmra.mxu2 %v1001_v42  ;;  %v1257_v42 = vld [vmem:[%s1461_s23 + $0xc4] sm:$0xf]  ;;  %v1089_v48 = vor.u32 %v1259_v41, %v1088_v40 }
  0x32   : > { %801 = vmatmul.bf16.vlgmr.msra.gmra.mxu3 %v1005_v43  ;;  %v1090_v43 = vld [vmem:[%s1461_s23 + $0xd0] sm:$0xf0] }
  0x33   : > { %v1093_v49 = vor.u32 %v1257_v42, %v1090_v43 }
  0x3f   : > { %674 = vmatmul.bf16.gmra.mxu0 %v1009_v52  ;;  %v1528_v52 = vld [vmem:[%s1568_s2] ss:$0 sm:$0xff] }
  0x40   : > { %718 = vmatmul.bf16.gmra.mxu1 %v1013_v53 }
  0x41   : > { %762 = vmatmul.bf16.gmra.mxu2 %v1017_v54 }
  0x42   : > { %806 = vmatmul.bf16.gmra.mxu3 %v1021_v55 }
  0x4f   : > { %679 = vmatmul.bf16.gmra.mxu0 %v1025_v0 }
  0x50   : > { %723 = vmatmul.bf16.gmra.mxu1 %v1029_v1 }
  0x51   : > { %767 = vmatmul.bf16.gmra.mxu2 %v1033_v2 }
  0x52   : > { %811 = vmatmul.bf16.gmra.mxu3 %v1037_v3 }
  0x5f   : > { %684 = vmatmul.bf16.gmra.mxu0 %v1041_v12 }
  0x60   : > { %728 = vmatmul.bf16.gmra.mxu1 %v1045_v13 }
  0x61   : > { %772 = vmatmul.bf16.gmra.mxu2 %v1049_v14 }
  0x62   : > { %816 = vmatmul.bf16.gmra.mxu3 %v1053_v15 }
  0x6f   : > { %689 = vmatmul.bf16.gmra.mxu0 %v1057_v24 }
  0x70   : > { %733 = vmatmul.bf16.gmra.mxu1 %v1061_v25 }
  0x71   : > { %777 = vmatmul.bf16.gmra.mxu2 %v1065_v26 }
  0x72   : > { %821 = vmatmul.bf16.gmra.mxu3 %v1069_v27 }
  0x7f   : > { %694 = vmatmul.bf16.gmra.mxu0 %v1073_v36 }
  0x80   : > { %738 = vmatmul.bf16.gmra.mxu1 %v1077_v37 }
  0x81   : > { %782 = vmatmul.bf16.gmra.mxu2 %v1081_v38 }
  0x82   : > { %826 = vmatmul.bf16.gmra.mxu3 %v1085_v39 }
  0x8f   : > { %699 = vmatmul.bf16.gmra.mxu0 %v1089_v48 }
  0x90   : > { %743 = vmatmul.bf16.gmra.mxu1 %v1093_v49 }
  0x91   : > { %787 = vmatmul.bf16.gmra.mxu2 %v1097_v50 }
  0x92   : > { %831 = vmatmul.bf16.gmra.mxu3 %v1101_v51 }
  0xac   : > { %v670_v53 = vpop.f32.mrf.mxu0 }
  0xad   : > { %v714_v54 = vpop.f32.mrf.mxu1  ;;  %v671_v55 = vadd.f32 %v1528_v52, %v670_v53 }
  0xaf   : > { %v715_v58 = vadd.f32 %v714_v54, %v671_v55 }
  0xb4   : > { %v758_v56 = vpop.f32.mrf.mxu2  ;;  %v672_v59 = vpop.f32.mrf.mxu0 }
  0xb5   : > { %v802_v57 = vpop.f32.mrf.mxu3  ;;  %v716_v60 = vpop.f32.mrf.mxu1  ;;  %v673_v61 = vadd.f32 %v1528_v52, %v672_v59  ;;  %v759_v62 = vadd.f32 %v758_v56, %v715_v58 }
  0xb7   : > { %v717_v63 = vadd.f32 %v716_v60, %v673_v61  ;;  %v803_v2 = vadd.f32 %v802_v57, %v759_v62 }
  0xb9   : > { %v837_v7 = vmax.f32 %v803_v2, 0.0 }
  0xbc   : > { %v760_v0 = vpop.f32.mrf.mxu2  ;;  %v675_v4 = vpop.f32.mrf.mxu0 }
  0xbd   : > { %v804_v1 = vpop.f32.mrf.mxu3  ;;  %v761_v3 = vadd.f32 %v760_v0, %v717_v63  ;;  %v719_v5 = vpop.f32.mrf.mxu1  ;;  %v676_v9 = vadd.f32 %v1528_v52, %v675_v4 }
  0xbf   : > { %v805_v6 = vadd.f32 %v804_v1, %v761_v3  ;;  %v720_v13 = vadd.f32 %v719_v5, %v676_v9 }
  0xc1   : > { %v838_v8 = vmax.f32 %v805_v6, 0.0 }
  0xc3   : > { %v1296_v10 = vpack.c.bf16 %v838_v8, %v837_v7 }
  0xc4   : > { %v763_v11 = vpop.f32.mrf.mxu2  ;;  %v677_v14 = vpop.f32.mrf.mxu0 }
  0xc5   : > { %v807_v12 = vpop.f32.mrf.mxu3  ;;  %1297 = vst [vmem:[%s1537_s29] sm:$0xff] %v1296_v10   ;;  %v721_v15 = vpop.f32.mrf.mxu1  ;;  %v678_v16 = vadd.f32 %v1528_v52, %v677_v14  ;;  %v764_v17 = vadd.f32 %v763_v11, %v720_v13 }
  0xc7   : > { %v722_v18 = vadd.f32 %v721_v15, %v678_v16  ;;  %v808_v21 = vadd.f32 %v807_v12, %v764_v17 }
  0xc9   : > { %v839_v26 = vmax.f32 %v808_v21, 0.0 }
  0xcc   : > { %v765_v19 = vpop.f32.mrf.mxu2  ;;  %v680_v23 = vpop.f32.mrf.mxu0 }
  0xcd   : > { %v809_v20 = vpop.f32.mrf.mxu3  ;;  %v766_v22 = vadd.f32 %v765_v19, %v722_v18  ;;  %v724_v24 = vpop.f32.mrf.mxu1  ;;  %v681_v28 = vadd.f32 %v1528_v52, %v680_v23 }
  0xcf   : > { %v810_v25 = vadd.f32 %v809_v20, %v766_v22  ;;  %v725_v32 = vadd.f32 %v724_v24, %v681_v28 }
  0xd1   : > { %v840_v27 = vmax.f32 %v810_v25, 0.0 }
  0xd3   : > { %v1301_v29 = vpack.c.bf16 %v840_v27, %v839_v26 }
  0xd4   : > { %v768_v30 = vpop.f32.mrf.mxu2  ;;  %v682_v33 = vpop.f32.mrf.mxu0 }
  0xd5   : > { %v812_v31 = vpop.f32.mrf.mxu3  ;;  %1328 = vst [vmem:[%s1537_s29 + $0x8] sm:$0xff] %v1301_v29   ;;  %v726_v34 = vpop.f32.mrf.mxu1  ;;  %v683_v35 = vadd.f32 %v1528_v52, %v682_v33  ;;  %v769_v36 = vadd.f32 %v768_v30, %v725_v32 }
  0xd7   : > { %v727_v37 = vadd.f32 %v726_v34, %v683_v35  ;;  %v813_v40 = vadd.f32 %v812_v31, %v769_v36 }
  0xd9   : > { %v841_v45 = vmax.f32 %v813_v40, 0.0 }
  0xdc   : > { %v770_v38 = vpop.f32.mrf.mxu2  ;;  %v685_v42 = vpop.f32.mrf.mxu0 }
  0xdd   : > { %v814_v39 = vpop.f32.mrf.mxu3  ;;  %v771_v41 = vadd.f32 %v770_v38, %v727_v37  ;;  %v729_v43 = vpop.f32.mrf.mxu1  ;;  %v686_v47 = vadd.f32 %v1528_v52, %v685_v42 }
  0xdf   : > { %v815_v44 = vadd.f32 %v814_v39, %v771_v41  ;;  %v730_v51 = vadd.f32 %v729_v43, %v686_v47 }
  0xe1   : > { %v842_v46 = vmax.f32 %v815_v44, 0.0 }
  0xe3   : > { %v1306_v48 = vpack.c.bf16 %v842_v46, %v841_v45 }
  0xe4   : > { %v773_v49 = vpop.f32.mrf.mxu2  ;;  %v687_v53 = vpop.f32.mrf.mxu0 }
  0xe5   : > { %v817_v50 = vpop.f32.mrf.mxu3  ;;  %1329 = vst [vmem:[%s1537_s29 + $0x10] sm:$0xff] %v1306_v48   ;;  %v731_v54 = vpop.f32.mrf.mxu1  ;;  %v688_v55 = vadd.f32 %v1528_v52, %v687_v53  ;;  %v774_v56 = vadd.f32 %v773_v49, %v730_v51 }
  0xe7   : > { %v732_v57 = vadd.f32 %v731_v54, %v688_v55  ;;  %v818_v60 = vadd.f32 %v817_v50, %v774_v56 }
  0xe9   : > { %v843_v1 = vmax.f32 %v818_v60, 0.0 }
  0xec   : > { %v775_v58 = vpop.f32.mrf.mxu2  ;;  %v690_v62 = vpop.f32.mrf.mxu0 }
  0xed   : > { %v819_v59 = vpop.f32.mrf.mxu3  ;;  %v776_v61 = vadd.f32 %v775_v58, %v732_v57  ;;  %v734_v63 = vpop.f32.mrf.mxu1  ;;  %v691_v3 = vadd.f32 %v1528_v52, %v690_v62 }
  0xef   : > { %v820_v0 = vadd.f32 %v819_v59, %v776_v61  ;;  %v735_v7 = vadd.f32 %v734_v63, %v691_v3 }
  0xf1   : > { %v844_v2 = vmax.f32 %v820_v0, 0.0 }
  0xf3   : > { %v1311_v4 = vpack.c.bf16 %v844_v2, %v843_v1 }
  0xf4   : > { %v778_v5 = vpop.f32.mrf.mxu2  ;;  %v692_v8 = vpop.f32.mrf.mxu0 }
  0xf5   : > { %v822_v6 = vpop.f32.mrf.mxu3  ;;  %1330 = vst [vmem:[%s1537_s29 + $0x18] sm:$0xff] %v1311_v4   ;;  %v736_v9 = vpop.f32.mrf.mxu1  ;;  %v693_v10 = vadd.f32 %v1528_v52, %v692_v8  ;;  %v779_v11 = vadd.f32 %v778_v5, %v735_v7 }
  0xf7   : > { %v737_v12 = vadd.f32 %v736_v9, %v693_v10  ;;  %v823_v15 = vadd.f32 %v822_v6, %v779_v11 }
  0xf9   : > { %v845_v20 = vmax.f32 %v823_v15, 0.0 }
  0xfc   : > { %v780_v13 = vpop.f32.mrf.mxu2  ;;  %v695_v17 = vpop.f32.mrf.mxu0 }
  0xfd   : > { %v824_v14 = vpop.f32.mrf.mxu3  ;;  %v781_v16 = vadd.f32 %v780_v13, %v737_v12  ;;  %v739_v18 = vpop.f32.mrf.mxu1  ;;  %v696_v22 = vadd.f32 %v1528_v52, %v695_v17 }
  0xff   : > { %v825_v19 = vadd.f32 %v824_v14, %v781_v16  ;;  %v740_v26 = vadd.f32 %v739_v18, %v696_v22 }
 0x101   : > { %v846_v21 = vmax.f32 %v825_v19, 0.0 }
 0x103   : > { %v1316_v23 = vpack.c.bf16 %v846_v21, %v845_v20 }
 0x104   : > { %v783_v24 = vpop.f32.mrf.mxu2  ;;  %v697_v27 = vpop.f32.mrf.mxu0 }
 0x105   : > { %v827_v25 = vpop.f32.mrf.mxu3  ;;  %1331 = vst [vmem:[%s1537_s29 + $0x20] sm:$0xff] %v1316_v23   ;;  %v741_v28 = vpop.f32.mrf.mxu1  ;;  %v698_v29 = vadd.f32 %v1528_v52, %v697_v27  ;;  %v784_v30 = vadd.f32 %v783_v24, %v740_v26 }
 0x107   : > { %v742_v31 = vadd.f32 %v741_v28, %v698_v29  ;;  %v828_v34 = vadd.f32 %v827_v25, %v784_v30 }
 0x109   : > { %v847_v39 = vmax.f32 %v828_v34, 0.0 }
 0x10c   : > { %v785_v32 = vpop.f32.mrf.mxu2  ;;  %v700_v36 = vpop.f32.mrf.mxu0 }
 0x10d   : > { %v829_v33 = vpop.f32.mrf.mxu3  ;;  %v786_v35 = vadd.f32 %v785_v32, %v742_v31  ;;  %v744_v38 = vpop.f32.mrf.mxu1  ;;  %v701_v41 = vadd.f32 %v1528_v52, %v700_v36 }
 0x10f   : > { %v830_v37 = vadd.f32 %v829_v33, %v786_v35  ;;  %v745_v45 = vadd.f32 %v744_v38, %v701_v41 }
 0x111   : > { %v848_v40 = vmax.f32 %v830_v37, 0.0 }
 0x113   : > { %v1321_v42 = vpack.c.bf16 %v848_v40, %v847_v39 }
 0x114   : > { %v788_v43 = vpop.f32.mrf.mxu2  ;;  %v702_v46 = vpop.f32.mrf.mxu0 }
 0x115   : > { %v832_v44 = vpop.f32.mrf.mxu3  ;;  %1332 = vst [vmem:[%s1537_s29 + $0x28] sm:$0xff] %v1321_v42   ;;  %v703_v47 = vadd.f32 %v1528_v52, %v702_v46  ;;  %v789_v48 = vadd.f32 %v788_v43, %v745_v45  ;;  %v746_v49 = vpop.f32.mrf.mxu1 }
 0x117   : > { %v747_v50 = vadd.f32 %v746_v49, %v703_v47  ;;  %v833_v53 = vadd.f32 %v832_v44, %v789_v48 }
 0x119   : > { %v849_v57 = vmax.f32 %v833_v53, 0.0 }
 0x11c   : > { %v790_v51 = vpop.f32.mrf.mxu2 }
 0x11d   : > { %v791_v54 = vadd.f32 %v790_v51, %v747_v50  ;;  %v834_v55 = vpop.f32.mrf.mxu3 }
 0x11f   : > { %v835_v56 = vadd.f32 %v834_v55, %v791_v54 }
 0x121   : > { %v850_v58 = vmax.f32 %v835_v56, 0.0 }
 0x123   : > { %v1326_v59 = vpack.c.bf16 %v850_v58, %v849_v57 }
 0x125   : > { %1333 = vst [vmem:[%s1537_s29 + $0x30] sm:$0xff] %v1326_v59  }
 0x126 PF: > { %s13_s14 = sadd.s32 1, %s1383_s14   ;;  %s1570_s12 = smov %s1379_s13 }
 0x127   : > { %p10_p5 = scmp.ge.s32.totalorder %s13_s14, 6   ;;  %s1571_s13 = smov %s1573_s15 }
 0x129   :  { %12 = sbr.rel (!%p10_p5) target bundleno = 2 (0x2), region = 65 }

// kernel: autoencoder_forward.9
= control target key start
LH: loop header
LB: loop body
LE: loop exit
PB: predicated region body
PF: predicated region fallthrough
CT: control target
= control target key end

     0   :  { %s1663_s12 = smov 0   ;;  %s1665_s13 = smov 0   ;;  %s1940_s0 = inlined_call_operand.vmem [shape: bf16[4,400,256], index: 0, kind: input, shape index: {}]   ;;  %s1941_s1 = inlined_call_operand.vmem [shape: bf16[4,256,128], index: 1, kind: input, shape index: {}]   ;;  %s1942_s2 = inlined_call_operand.vmem [shape: f32[1,128], index: 2, kind: input, shape index: {}]   ;;  %s1943_s3 = inlined_call_operand.vmem [shape: f32[4,400,128], index: 3, kind: output, shape index: {}]  }
   0x1   :  { %s1667_s14 = smov 0  }
   0x2 LB: > { %s25_s15 = sadd.s32 1, %s1637_s13  ;;  %p1139_p0 = scmp.ge.s32.totalorder %s1641_s14, 1  ;;  %s1641_s14 = sphi %s1667_s14, %s13_s14   ;;  %s1637_s13 = sphi %s1665_s13, %s1945_s13   ;;  %s1633_s12 = sphi %s1663_s12, %s1944_s12  }
   0x3   : > { %p27_p1 = scmp.ge.s32.totalorder %s25_s15, 4  ;;  %p169_p2 = scmp.lt.s32.totalorder %s1641_s14, 5 }
   0x5   : > { %s1947_s15 = smov (%p27_p1, %s25_s15), 0  ;;  %p170_p3 = pnand %p1139_p0, %p169_p2 }
   0x6   : > { %p208_p4 = scmp.lt.s32.totalorder (!%p170_p3), %s1633_s12, 3 }
   0x7   : > { %173 = sbr.rel (%p170_p3) target bundleno = 391 (0x187), region = 32 }
   0xc   : > { %s1949_s12 = smov (!%p208_p4, %s1633_s12), 3 }
   0xd   : > { %s1410_s16 = sshll.u32 %s1949_s12, 7  ;;  %s1493_s20 = smul.u32 400, %s1949_s12 }
   0xe   : > { %s1687_s19 = scalar_lea.vmem %s1941_s1, %s1410_s16 }
   0xf   : > { %v1468_v0 = vld [vmem:[%s1687_s19 + $0x38] sm:$0xff]  ;;  %v1467_v2 = vld [vmem:[%s1687_s19 + $0x30] sm:$0xff]  ;;  %v1466_v4 = vld [vmem:[%s1687_s19 + $0x28] sm:$0xff]  ;;  %s1707_s23 = scalar_lea.vmem %s1940_s0, %s1493_s20  ;;  %s1798_s28 = scalar_lea.vmem %s1943_s3, %s1493_s20 }
  0x10   : > { %v1476_v1 = vld [vmem:[%s1687_s19 + $0x78] sm:$0xff]  ;;  %665 = vmatpush.bf16.msra.mxu0 %v1468_v0  ;;  %1477 = vmatpush.bf16.msra.mxu2 %v1468_v0  ;;  %v1475_v3 = vld [vmem:[%s1687_s19 + $0x70] sm:$0xff]  ;;  %v1474_v5 = vld [vmem:[%s1687_s19 + $0x68] sm:$0xff] }
  0x11   : > { %799 = vmatpush.bf16.msra.mxu1 %v1476_v1  ;;  %1485 = vmatpush.bf16.msra.mxu3 %v1476_v1  ;;  %v1465_v6 = vld [vmem:[%s1687_s19 + $0x20] sm:$0xff]  ;;  %v1464_v8 = vld [vmem:[%s1687_s19 + $0x18] sm:$0xff]  ;;  %v1463_v10 = vld [vmem:[%s1687_s19 + $0x10] sm:$0xff] }
  0x12   : > { %v1473_v7 = vld [vmem:[%s1687_s19 + $0x60] sm:$0xff]  ;;  %v1472_v9 = vld [vmem:[%s1687_s19 + $0x58] sm:$0xff]  ;;  %v1471_v11 = vld [vmem:[%s1687_s19 + $0x50] sm:$0xff] }
  0x13   : > { %v1462_v12 = vld [vmem:[%s1687_s19 + $0x8] sm:$0xff]  ;;  %v1461_v14 = vld [vmem:[%s1687_s19] sm:$0xff]  ;;  %v1437_v22 = vld [vmem:[%s1707_s23 + $0xd4] sm:$0xf] }
  0x14   : > { %666 = vmatpush.bf16.msra.mxu0 %v1467_v2  ;;  %1478 = vmatpush.bf16.msra.mxu2 %v1467_v2  ;;  %v1470_v13 = vld [vmem:[%s1687_s19 + $0x48] sm:$0xff]  ;;  %v1469_v15 = vld [vmem:[%s1687_s19 + $0x40] sm:$0xff]  ;;  %v1252_v23 = vld [vmem:[%s1707_s23 + $0xd8] sm:$0xf0] }
  0x15   : > { %800 = vmatpush.bf16.msra.mxu1 %v1475_v3  ;;  %1486 = vmatpush.bf16.msra.mxu3 %v1475_v3  ;;  %v1146_v16 = vld [vmem:[%s1707_s23] sm:$0xf]  ;;  %v1412_v17 = vld [vmem:[%s1707_s23 + $0x4] sm:$0xf0]  ;;  %v1411_v20 = vld [vmem:[%s1707_s23 + $0x4] sm:$0xf]  ;;  %v1255_v27 = vor.u32 %v1437_v22, %v1252_v23 }
  0x16   : > { %v1242_v18 = vld [vmem:[%s1707_s23 + $0xc0] sm:$0xf]  ;;  %v1436_v19 = vld [vmem:[%s1707_s23 + $0xc4] sm:$0xf0]  ;;  %v1148_v21 = vld [vmem:[%s1707_s23 + $0x8] sm:$0xf0]  ;;  %v1147_v24 = vor.u32 %v1412_v17, %v1146_v16 }
  0x17   : > { %v1243_v25 = vor.u32 %v1436_v19, %v1242_v18  ;;  %v1151_v26 = vor.u32 %v1411_v20, %v1148_v21  ;;  %v1154_v28 = vld [vmem:[%s1707_s23 + $0x10] sm:$0xf]  ;;  %v1414_v29 = vld [vmem:[%s1707_s23 + $0x14] sm:$0xf0]  ;;  %v1413_v32 = vld [vmem:[%s1707_s23 + $0x14] sm:$0xf] }
  0x18   : > { %667 = vmatpush.bf16.msra.mxu0 %v1466_v4  ;;  %1479 = vmatpush.bf16.msra.mxu2 %v1466_v4  ;;  %v1250_v30 = vld [vmem:[%s1707_s23 + $0xd0] sm:$0xf]  ;;  %v1438_v31 = vld [vmem:[%s1707_s23 + $0xd4] sm:$0xf0]  ;;  %v1156_v33 = vld [vmem:[%s1707_s23 + $0x18] sm:$0xf0]  ;;  %v1155_v36 = vor.u32 %v1414_v29, %v1154_v28 }
  0x19   : > { %801 = vmatpush.bf16.msra.mxu1 %v1474_v5  ;;  %1487 = vmatpush.bf16.msra.mxu3 %v1474_v5  ;;  %v1439_v34 = vld [vmem:[%s1707_s23 + $0xe4] sm:$0xf]  ;;  %v1260_v35 = vld [vmem:[%s1707_s23 + $0xe8] sm:$0xf0]  ;;  %v1251_v37 = vor.u32 %v1438_v31, %v1250_v30  ;;  %v1159_v38 = vor.u32 %v1413_v32, %v1156_v33  ;;  %v1162_v40 = vld [vmem:[%s1707_s23 + $0x20] sm:$0xf] }
  0x1a   : > { %v1263_v39 = vor.u32 %v1439_v34, %v1260_v35  ;;  %v1416_v41 = vld [vmem:[%s1707_s23 + $0x24] sm:$0xf0]  ;;  %v1258_v42 = vld [vmem:[%s1707_s23 + $0xe0] sm:$0xf]  ;;  %v1415_v44 = vld [vmem:[%s1707_s23 + $0x24] sm:$0xf] }
  0x1b   : > { %v1440_v43 = vld [vmem:[%s1707_s23 + $0xe4] sm:$0xf0]  ;;  %v1164_v45 = vld [vmem:[%s1707_s23 + $0x28] sm:$0xf0]  ;;  %v1441_v46 = vld [vmem:[%s1707_s23 + $0xf4] sm:$0xf]  ;;  %v1163_v48 = vor.u32 %v1416_v41, %v1162_v40 }
  0x1c   : > { %668 = vmatpush.bf16.msra.mxu0 %v1465_v6  ;;  %1480 = vmatpush.bf16.msra.mxu2 %v1465_v6  ;;  %v1268_v47 = vld [vmem:[%s1707_s23 + $0xf8] sm:$0xf0]  ;;  %v1259_v49 = vor.u32 %v1440_v43, %v1258_v42  ;;  %v1167_v50 = vor.u32 %v1415_v44, %v1164_v45  ;;  %v1170_v52 = vld [vmem:[%s1707_s23 + $0x30] sm:$0xf]  ;;  %v1418_v53 = vld [vmem:[%s1707_s23 + $0x34] sm:$0xf0] }
  0x1d   : > { %802 = vmatpush.bf16.msra.mxu1 %v1473_v7  ;;  %1488 = vmatpush.bf16.msra.mxu3 %v1473_v7  ;;  %v1271_v51 = vor.u32 %v1441_v46, %v1268_v47  ;;  %v1266_v54 = vld [vmem:[%s1707_s23 + $0xf0] sm:$0xf]  ;;  %v1442_v55 = vld [vmem:[%s1707_s23 + $0xf4] sm:$0xf0]  ;;  %v1417_v56 = vld [vmem:[%s1707_s23 + $0x34] sm:$0xf]  ;;  %v1171_v60 = vor.u32 %v1418_v53, %v1170_v52 }
  0x1e   : > { %v1172_v57 = vld [vmem:[%s1707_s23 + $0x38] sm:$0xf0]  ;;  %v1443_v58 = vld [vmem:[%s1707_s23 + $0x104] sm:$0xf]  ;;  %v1276_v59 = vld [vmem:[%s1707_s23 + $0x108] sm:$0xf0]  ;;  %v1267_v61 = vor.u32 %v1442_v55, %v1266_v54 }
  0x1f   : > { %v1175_v62 = vor.u32 %v1417_v56, %v1172_v57  ;;  %v1279_v63 = vor.u32 %v1443_v58, %v1276_v59  ;;  %v1178_v0 = vld [vmem:[%s1707_s23 + $0x40] sm:$0xf]  ;;  %v1420_v1 = vld [vmem:[%s1707_s23 + $0x44] sm:$0xf0]  ;;  %v1419_v4 = vld [vmem:[%s1707_s23 + $0x44] sm:$0xf] }
  0x20   : > { %669 = vmatpush.bf16.msra.mxu0 %v1464_v8  ;;  %1481 = vmatpush.bf16.msra.mxu2 %v1464_v8  ;;  %v1274_v2 = vld [vmem:[%s1707_s23 + $0x100] sm:$0xf]  ;;  %v1444_v3 = vld [vmem:[%s1707_s23 + $0x104] sm:$0xf0]  ;;  %v1180_v5 = vld [vmem:[%s1707_s23 + $0x48] sm:$0xf0]  ;;  %v1179_v8 = vor.u32 %v1420_v1, %v1178_v0 }
  0x21   : > { %803 = vmatpush.bf16.msra.mxu1 %v1472_v9  ;;  %1489 = vmatpush.bf16.msra.mxu3 %v1472_v9  ;;  %v1445_v6 = vld [vmem:[%s1707_s23 + $0x114] sm:$0xf]  ;;  %v1284_v7 = vld [vmem:[%s1707_s23 + $0x118] sm:$0xf0]  ;;  %v1275_v9 = vor.u32 %v1444_v3, %v1274_v2  ;;  %v1447_v18 = vld [vmem:[%s1707_s23 + $0x124] sm:$0xf] }
  0x22   : > { %v1421_v16 = vld [vmem:[%s1707_s23 + $0x54] sm:$0xf]  ;;  %v1188_v17 = vld [vmem:[%s1707_s23 + $0x58] sm:$0xf0]  ;;  %v1292_v19 = vld [vmem:[%s1707_s23 + $0x128] sm:$0xf0] }
  0x23   : > { %v1191_v22 = vor.u32 %v1421_v16, %v1188_v17  ;;  %v1295_v23 = vor.u32 %v1447_v18, %v1292_v19  ;;  %v1423_v28 = vld [vmem:[%s1707_s23 + $0x64] sm:$0xf]  ;;  %v1196_v29 = vld [vmem:[%s1707_s23 + $0x68] sm:$0xf0]  ;;  %v1449_v30 = vld [vmem:[%s1707_s23 + $0x134] sm:$0xf] }
  0x24   : > { %670 = vmatpush.bf16.msra.mxu0 %v1463_v10  ;;  %1482 = vmatpush.bf16.msra.mxu2 %v1463_v10  ;;  %v1183_v10 = vor.u32 %v1419_v4, %v1180_v5  ;;  %v1300_v31 = vld [vmem:[%s1707_s23 + $0x138] sm:$0xf0]  ;;  %v1199_v34 = vor.u32 %v1423_v28, %v1196_v29  ;;  %v1425_v40 = vld [vmem:[%s1707_s23 + $0x74] sm:$0xf]  ;;  %v1451_v42 = vld [vmem:[%s1707_s23 + $0x144] sm:$0xf] }
  0x25   : > { %804 = vmatpush.bf16.msra.mxu1 %v1471_v11  ;;  %1490 = vmatpush.bf16.msra.mxu3 %v1471_v11  ;;  %v1287_v11 = vor.u32 %v1445_v6, %v1284_v7  ;;  %v1303_v35 = vor.u32 %v1449_v30, %v1300_v31  ;;  %v1204_v41 = vld [vmem:[%s1707_s23 + $0x78] sm:$0xf0]  ;;  %v1308_v43 = vld [vmem:[%s1707_s23 + $0x148] sm:$0xf0]  ;;  %v1452_v52 = vld [vmem:[%s1707_s23 + $0x144] sm:$0xf0] }
  0x26   : > { %v1207_v46 = vor.u32 %v1425_v40, %v1204_v41  ;;  %v1311_v47 = vor.u32 %v1451_v42, %v1308_v43  ;;  %v1427_v53 = vld [vmem:[%s1707_s23 + $0x84] sm:$0xf]  ;;  %v1212_v54 = vld [vmem:[%s1707_s23 + $0x88] sm:$0xf0]  ;;  %v1453_v55 = vld [vmem:[%s1707_s23 + $0x154] sm:$0xf] }
  0x27   : > { %v1316_v56 = vld [vmem:[%s1707_s23 + $0x158] sm:$0xf0]  ;;  %v1431_v40 = vld [vmem:[%s1707_s23 + $0xa4] sm:$0xf]  ;;  %v1228_v41 = vld [vmem:[%s1707_s23 + $0xa8] sm:$0xf0] }
  0x28   : > { %671 = vmatpush.bf16.msra.mxu0 %v1462_v12  ;;  %1483 = vmatpush.bf16.msra.mxu2 %v1462_v12  ;;  %v1186_v12 = vld [vmem:[%s1707_s23 + $0x50] sm:$0xf]  ;;  %v1457_v42 = vld [vmem:[%s1707_s23 + $0x174] sm:$0xf]  ;;  %v1332_v43 = vld [vmem:[%s1707_s23 + $0x178] sm:$0xf0] }
  0x29   : > { %805 = vmatpush.bf16.msra.mxu1 %v1470_v13  ;;  %1491 = vmatpush.bf16.msra.mxu3 %v1470_v13  ;;  %v1422_v13 = vld [vmem:[%s1707_s23 + $0x54] sm:$0xf0] }
  0x2a   : > { %v1187_v20 = vor.u32 %v1422_v13, %v1186_v12  ;;  %v1429_v12 = vld [vmem:[%s1707_s23 + $0x94] sm:$0xf]  ;;  %v1220_v13 = vld [vmem:[%s1707_s23 + $0x98] sm:$0xf0] }
  0x2c   : > { %672 = vmatpush.bf16.msra.mxu0 %v1461_v14  ;;  %1484 = vmatpush.bf16.msra.mxu2 %v1461_v14  ;;  %v1282_v14 = vld [vmem:[%s1707_s23 + $0x110] sm:$0xf] }
  0x2d   : > { %806 = vmatpush.bf16.msra.mxu1 %v1469_v15  ;;  %1492 = vmatpush.bf16.msra.mxu3 %v1469_v15  ;;  %v1446_v15 = vld [vmem:[%s1707_s23 + $0x114] sm:$0xf0] }
  0x2e   : > { %v1283_v21 = vor.u32 %v1446_v15, %v1282_v14  ;;  %v1455_v14 = vld [vmem:[%s1707_s23 + $0x164] sm:$0xf]  ;;  %v1324_v15 = vld [vmem:[%s1707_s23 + $0x168] sm:$0xf0] }
  0x2f   : > { %673 = vmatmul.bf16.vlgmr.msra.gmra.mxu0 %v1147_v24  ;;  %733 = vmatmul.bf16.vlgmr.msra.gmra.mxu2 %v1243_v25  ;;  %v1194_v24 = vld [vmem:[%s1707_s23 + $0x60] sm:$0xf]  ;;  %v1424_v25 = vld [vmem:[%s1707_s23 + $0x64] sm:$0xf0] }
  0x30   : > { %807 = vmatmul.bf16.vlgmr.msra.gmra.mxu1 %v1151_v26  ;;  %872 = vmatmul.bf16.vlgmr.msra.gmra.mxu3 %v1255_v27  ;;  %v1290_v26 = vld [vmem:[%s1707_s23 + $0x120] sm:$0xf]  ;;  %v1448_v27 = vld [vmem:[%s1707_s23 + $0x124] sm:$0xf0]  ;;  %v1195_v32 = vor.u32 %v1424_v25, %v1194_v24 }
  0x31   : > { %v1291_v33 = vor.u32 %v1448_v27, %v1290_v26 }
  0x3f   : > { %678 = vmatmul.bf16.gmra.mxu0 %v1155_v36  ;;  %738 = vmatmul.bf16.gmra.mxu2 %v1251_v37  ;;  %v1202_v36 = vld [vmem:[%s1707_s23 + $0x70] sm:$0xf]  ;;  %v1426_v37 = vld [vmem:[%s1707_s23 + $0x74] sm:$0xf0] }
  0x40   : > { %812 = vmatmul.bf16.gmra.mxu1 %v1159_v38  ;;  %877 = vmatmul.bf16.gmra.mxu3 %v1263_v39  ;;  %v1298_v38 = vld [vmem:[%s1707_s23 + $0x130] sm:$0xf]  ;;  %v1450_v39 = vld [vmem:[%s1707_s23 + $0x134] sm:$0xf0]  ;;  %v1203_v44 = vor.u32 %v1426_v37, %v1202_v36  ;;  %v1226_v36 = vld [vmem:[%s1707_s23 + $0xa0] sm:$0xf] }
  0x41   : > { %v1299_v45 = vor.u32 %v1450_v39, %v1298_v38  ;;  %v1432_v37 = vld [vmem:[%s1707_s23 + $0xa4] sm:$0xf0]  ;;  %v1322_v38 = vld [vmem:[%s1707_s23 + $0x160] sm:$0xf] }
  0x42   : > { %v1456_v39 = vld [vmem:[%s1707_s23 + $0x164] sm:$0xf0] }
  0x4f   : > { %683 = vmatmul.bf16.gmra.mxu0 %v1163_v48  ;;  %743 = vmatmul.bf16.gmra.mxu2 %v1259_v49  ;;  %v1780_v48 = vld [vmem:[%s1942_s2] ss:$0 sm:$0xff] }
  0x50   : > { %817 = vmatmul.bf16.gmra.mxu1 %v1167_v50  ;;  %882 = vmatmul.bf16.gmra.mxu3 %v1271_v51  ;;  %v1210_v49 = vld [vmem:[%s1707_s23 + $0x80] sm:$0xf]  ;;  %v1428_v50 = vld [vmem:[%s1707_s23 + $0x84] sm:$0xf0] }
  0x51   : > { %v1306_v51 = vld [vmem:[%s1707_s23 + $0x140] sm:$0xf]  ;;  %v1211_v57 = vor.u32 %v1428_v50, %v1210_v49 }
  0x52   : > { %v1307_v58 = vor.u32 %v1452_v52, %v1306_v51  ;;  %v1231_v51 = vor.u32 %v1431_v40, %v1228_v41  ;;  %v1335_v52 = vor.u32 %v1457_v42, %v1332_v43  ;;  %v1460_v40 = vld [vmem:[%s1707_s23 + $0x184] sm:$0xf0]  ;;  %v1435_v41 = vld [vmem:[%s1707_s23 + $0xc4] sm:$0xf]  ;;  %v1244_v42 = vld [vmem:[%s1707_s23 + $0xc8] sm:$0xf0] }
  0x5f   : > { %688 = vmatmul.bf16.gmra.mxu0 %v1171_v60  ;;  %748 = vmatmul.bf16.gmra.mxu2 %v1267_v61  ;;  %v1215_v60 = vor.u32 %v1427_v53, %v1212_v54  ;;  %v1319_v61 = vor.u32 %v1453_v55, %v1316_v56 }
  0x60   : > { %822 = vmatmul.bf16.gmra.mxu1 %v1175_v62  ;;  %887 = vmatmul.bf16.gmra.mxu3 %v1279_v63 }
  0x6f   : > { %693 = vmatmul.bf16.gmra.mxu0 %v1179_v8  ;;  %753 = vmatmul.bf16.gmra.mxu2 %v1275_v9  ;;  %v1218_v8 = vld [vmem:[%s1707_s23 + $0x90] sm:$0xf]  ;;  %v1430_v9 = vld [vmem:[%s1707_s23 + $0x94] sm:$0xf0] }
  0x70   : > { %827 = vmatmul.bf16.gmra.mxu1 %v1183_v10  ;;  %892 = vmatmul.bf16.gmra.mxu3 %v1287_v11  ;;  %v1314_v10 = vld [vmem:[%s1707_s23 + $0x150] sm:$0xf]  ;;  %v1454_v11 = vld [vmem:[%s1707_s23 + $0x154] sm:$0xf0]  ;;  %v1219_v17 = vor.u32 %v1430_v9, %v1218_v8 }
  0x71   : > { %v1315_v18 = vor.u32 %v1454_v11, %v1314_v10  ;;  %v1330_v8 = vld [vmem:[%s1707_s23 + $0x170] sm:$0xf]  ;;  %v1458_v9 = vld [vmem:[%s1707_s23 + $0x174] sm:$0xf0]  ;;  %v1433_v10 = vld [vmem:[%s1707_s23 + $0xb4] sm:$0xf] }
  0x72   : > { %v1236_v11 = vld [vmem:[%s1707_s23 + $0xb8] sm:$0xf0] }
  0x7f   : > { %698 = vmatmul.bf16.gmra.mxu0 %v1187_v20  ;;  %758 = vmatmul.bf16.gmra.mxu2 %v1283_v21  ;;  %v1223_v21 = vor.u32 %v1429_v12, %v1220_v13  ;;  %v1459_v12 = vld [vmem:[%s1707_s23 + $0x184] sm:$0xf]  ;;  %v1340_v13 = vld [vmem:[%s1707_s23 + $0x188] sm:$0xf0] }
  0x80   : > { %832 = vmatmul.bf16.gmra.mxu1 %v1191_v22  ;;  %897 = vmatmul.bf16.gmra.mxu3 %v1295_v23  ;;  %v1327_v22 = vor.u32 %v1455_v14, %v1324_v15 }
  0x8f   : > { %703 = vmatmul.bf16.gmra.mxu0 %v1195_v32  ;;  %763 = vmatmul.bf16.gmra.mxu2 %v1291_v33 }
  0x90   : > { %837 = vmatmul.bf16.gmra.mxu1 %v1199_v34  ;;  %902 = vmatmul.bf16.gmra.mxu3 %v1303_v35 }
  0x9f   : > { %708 = vmatmul.bf16.gmra.mxu0 %v1203_v44  ;;  %768 = vmatmul.bf16.gmra.mxu2 %v1299_v45 }
  0xa0   : > { %842 = vmatmul.bf16.gmra.mxu1 %v1207_v46  ;;  %907 = vmatmul.bf16.gmra.mxu3 %v1311_v47  ;;  %v1227_v46 = vor.u32 %v1432_v37, %v1226_v36  ;;  %v1323_v47 = vor.u32 %v1456_v39, %v1322_v38  ;;  %v1338_v39 = vld [vmem:[%s1707_s23 + $0x180] sm:$0xf] }
  0xac   : > { %v674_v59 = vpop.f32.mrf.mxu0 }
  0xad   : > { %v675_v62 = vadd.f32 %v1780_v48, %v674_v59  ;;  %v808_v63 = vpop.f32.mrf.mxu1 }
  0xaf   : > { %v809_v0 = vadd.f32 %v808_v63, %v675_v62  ;;  %713 = vmatmul.bf16.gmra.mxu0 %v1211_v57  ;;  %773 = vmatmul.bf16.gmra.mxu2 %v1307_v58 }
  0xb0   : > { %847 = vmatmul.bf16.gmra.mxu1 %v1215_v60  ;;  %912 = vmatmul.bf16.gmra.mxu3 %v1319_v61 }
  0xb1   : > { %1519 = vtanh.f32 %v809_v0 }
  0xb2   : > { %v1791_v1 = vpop.f32.mrf.mxu2 }
  0xb3   : > { %v873_v2 = vpop.f32.mrf.mxu3 }
  0xb4   : > { %v676_v3 = vpop.f32.mrf.mxu0 }
  0xb5   : > { %v677_v4 = vadd.f32 %v1780_v48, %v676_v3  ;;  %v810_v5 = vpop.f32.mrf.mxu1 }
  0xb7   : > { %v1520_v6 = vpop.eup %1519  ;;  %v811_v7 = vadd.f32 %v810_v5, %v677_v4 }
  0xb8   : > { %983 = vst [vmem:[%s1798_s28] sm:$0xff] %v1520_v6  ;;  %v1234_v6 = vld [vmem:[%s1707_s23 + $0xb0] sm:$0xf] }
  0xb9   : > { %1521 = vtanh.f32 %v811_v7  ;;  %v1434_v7 = vld [vmem:[%s1707_s23 + $0xb4] sm:$0xf0] }
  0xba   : > { %v1810_v16 = vpop.f32.mrf.mxu2 }
  0xbb   : > { %v875_v19 = vpop.f32.mrf.mxu3 }
  0xbc   : > { %v679_v20 = vpop.f32.mrf.mxu0 }
  0xbd   : > { %v680_v23 = vadd.f32 %v1780_v48, %v679_v20  ;;  %v813_v24 = vpop.f32.mrf.mxu1 }
  0xbf   : > { %v1522_v25 = vpop.eup %1521  ;;  %v814_v26 = vadd.f32 %v813_v24, %v680_v23  ;;  %718 = vmatmul.bf16.gmra.mxu0 %v1219_v17  ;;  %778 = vmatmul.bf16.gmra.mxu2 %v1315_v18  ;;  %v1235_v17 = vor.u32 %v1434_v7, %v1234_v6  ;;  %v1331_v18 = vor.u32 %v1458_v9, %v1330_v8 }
  0xc0   : > { %984 = vst [vmem:[%s1798_s28 + $0x8] sm:$0xff] %v1522_v25  ;;  %852 = vmatmul.bf16.gmra.mxu1 %v1223_v21  ;;  %917 = vmatmul.bf16.gmra.mxu3 %v1327_v22  ;;  %v1239_v21 = vor.u32 %v1433_v10, %v1236_v11  ;;  %v1343_v22 = vor.u32 %v1459_v12, %v1340_v13 }
  0xc1   : > { %1523 = vtanh.f32 %v814_v26 }
  0xc2   : > { %v739_v27 = vpop.f32.mrf.mxu2 }
  0xc3   : > { %v740_v28 = vadd.f32 %v1780_v48, %v739_v27  ;;  %v878_v29 = vpop.f32.mrf.mxu3 }
  0xc4   : > { %v681_v30 = vpop.f32.mrf.mxu0 }
  0xc5   : > { %v874_v31 = vadd.f32 %v873_v2, %v740_v28  ;;  %v682_v32 = vadd.f32 %v1780_v48, %v681_v30  ;;  %v815_v33 = vpop.f32.mrf.mxu1 }
  0xc7   : > { %v1524_v34 = vpop.eup %1523  ;;  %1525 = vtanh.f32 %v874_v31  ;;  %v816_v35 = vadd.f32 %v815_v33, %v682_v32 }
  0xc8   : > { %985 = vst [vmem:[%s1798_s28 + $0x10] sm:$0xff] %v1524_v34 }
  0xc9   : > { %1527 = vtanh.f32 %v816_v35 }
  0xca   : > { %v741_v44 = vpop.f32.mrf.mxu2 }
  0xcb   : > { %v742_v45 = vadd.f32 %v1780_v48, %v741_v44  ;;  %v880_v49 = vpop.f32.mrf.mxu3 }
  0xcc   : > { %v684_v50 = vpop.f32.mrf.mxu0 }
  0xcd   : > { %v1526_v53 = vpop.eup %1525  ;;  %v876_v54 = vadd.f32 %v875_v19, %v742_v45  ;;  %v685_v55 = vadd.f32 %v1780_v48, %v684_v50  ;;  %v818_v56 = vpop.f32.mrf.mxu1  ;;  %v1339_v45 = vor.u32 %v1460_v40, %v1338_v39 }
  0xce   : > { %1009 = vst [vmem:[%s1798_s28 + $0xd0] sm:$0xff] %v1526_v53 }
  0xcf   : > { %v1528_v57 = vpop.eup %1527  ;;  %1529 = vtanh.f32 %v876_v54  ;;  %v819_v58 = vadd.f32 %v818_v56, %v685_v55  ;;  %723 = vmatmul.bf16.gmra.mxu0 %v1227_v46  ;;  %783 = vmatmul.bf16.gmra.mxu2 %v1323_v47 }
  0xd0   : > { %986 = vst [vmem:[%s1798_s28 + $0x18] sm:$0xff] %v1528_v57  ;;  %857 = vmatmul.bf16.gmra.mxu1 %v1231_v51  ;;  %922 = vmatmul.bf16.gmra.mxu3 %v1335_v52 }
  0xd1   : > { %1531 = vtanh.f32 %v819_v58 }
  0xd2   : > { %v744_v59 = vpop.f32.mrf.mxu2 }
  0xd3   : > { %v745_v60 = vadd.f32 %v1780_v48, %v744_v59  ;;  %v883_v61 = vpop.f32.mrf.mxu3 }
  0xd4   : > { %v686_v62 = vpop.f32.mrf.mxu0 }
  0xd5   : > { %v1530_v63 = vpop.eup %1529  ;;  %v879_v0 = vadd.f32 %v878_v29, %v745_v60  ;;  %v687_v2 = vadd.f32 %v1780_v48, %v686_v62  ;;  %v820_v3 = vpop.f32.mrf.mxu1 }
  0xd6   : > { %1010 = vst [vmem:[%s1798_s28 + $0xd8] sm:$0xff] %v1530_v63 }
  0xd7   : > { %v1532_v4 = vpop.eup %1531  ;;  %1533 = vtanh.f32 %v879_v0  ;;  %v821_v5 = vadd.f32 %v820_v3, %v687_v2 }
  0xd8   : > { %987 = vst [vmem:[%s1798_s28 + $0x20] sm:$0xff] %v1532_v4 }
  0xd9   : > { %1535 = vtanh.f32 %v821_v5 }
  0xda   : > { %v746_v14 = vpop.f32.mrf.mxu2 }
  0xdb   : > { %v747_v15 = vadd.f32 %v1780_v48, %v746_v14  ;;  %v885_v19 = vpop.f32.mrf.mxu3 }
  0xdc   : > { %v689_v20 = vpop.f32.mrf.mxu0 }
  0xdd   : > { %v1534_v23 = vpop.eup %1533  ;;  %v881_v24 = vadd.f32 %v880_v49, %v747_v15  ;;  %v690_v25 = vadd.f32 %v1780_v48, %v689_v20  ;;  %v823_v26 = vpop.f32.mrf.mxu1  ;;  %v1247_v49 = vor.u32 %v1435_v41, %v1244_v42 }
  0xde   : > { %1011 = vst [vmem:[%s1798_s28 + $0xe0] sm:$0xff] %v1534_v23 }
  0xdf   : > { %v1536_v27 = vpop.eup %1535  ;;  %1537 = vtanh.f32 %v881_v24  ;;  %v824_v28 = vadd.f32 %v823_v26, %v690_v25  ;;  %728 = vmatmul.bf16.gmra.mxu0 %v1235_v17  ;;  %788 = vmatmul.bf16.gmra.mxu2 %v1331_v18 }
  0xe0   : > { %988 = vst [vmem:[%s1798_s28 + $0x28] sm:$0xff] %v1536_v27  ;;  %862 = vmatmul.bf16.gmra.mxu1 %v1239_v21  ;;  %927 = vmatmul.bf16.gmra.mxu3 %v1343_v22 }
  0xe1   : > { %1539 = vtanh.f32 %v824_v28 }
  0xe2   : > { %v749_v29 = vpop.f32.mrf.mxu2 }
  0xe3   : > { %v750_v30 = vadd.f32 %v1780_v48, %v749_v29  ;;  %v888_v31 = vpop.f32.mrf.mxu3 }
  0xe4   : > { %v691_v32 = vpop.f32.mrf.mxu0 }
  0xe5   : > { %v1538_v33 = vpop.eup %1537  ;;  %v884_v34 = vadd.f32 %v883_v61, %v750_v30  ;;  %v692_v35 = vadd.f32 %v1780_v48, %v691_v32  ;;  %v825_v36 = vpop.f32.mrf.mxu1 }
  0xe6   : > { %1012 = vst [vmem:[%s1798_s28 + $0xe8] sm:$0xff] %v1538_v33 }
  0xe7   : > { %v1540_v37 = vpop.eup %1539  ;;  %1541 = vtanh.f32 %v884_v34  ;;  %v826_v38 = vadd.f32 %v825_v36, %v692_v35 }
  0xe8   : > { %989 = vst [vmem:[%s1798_s28 + $0x30] sm:$0xff] %v1540_v37 }
  0xe9   : > { %1543 = vtanh.f32 %v826_v38 }
  0xea   : > { %v751_v43 = vpop.f32.mrf.mxu2 }
  0xeb   : > { %v752_v44 = vadd.f32 %v1780_v48, %v751_v43  ;;  %v890_v46 = vpop.f32.mrf.mxu3 }
  0xec   : > { %v694_v47 = vpop.f32.mrf.mxu0 }
  0xed   : > { %v1542_v50 = vpop.eup %1541  ;;  %v886_v51 = vadd.f32 %v885_v19, %v752_v44  ;;  %v695_v52 = vadd.f32 %v1780_v48, %v694_v47  ;;  %v828_v53 = vpop.f32.mrf.mxu1 }
  0xee   : > { %1013 = vst [vmem:[%s1798_s28 + $0xf0] sm:$0xff] %v1542_v50 }
  0xef   : > { %v1544_v54 = vpop.eup %1543  ;;  %1545 = vtanh.f32 %v886_v51  ;;  %v829_v55 = vadd.f32 %v828_v53, %v695_v52  ;;  %793 = vmatmul.bf16.gmra.mxu2 %v1339_v45 }
  0xf0   : > { %990 = vst [vmem:[%s1798_s28 + $0x38] sm:$0xff] %v1544_v54  ;;  %867 = vmatmul.bf16.gmra.mxu1 %v1247_v49 }
  0xf1   : > { %1547 = vtanh.f32 %v829_v55 }
  0xf2   : > { %v754_v56 = vpop.f32.mrf.mxu2 }
  0xf3   : > { %v755_v57 = vadd.f32 %v1780_v48, %v754_v56  ;;  %v893_v58 = vpop.f32.mrf.mxu3 }
  0xf4   : > { %v696_v59 = vpop.f32.mrf.mxu0 }
  0xf5   : > { %v1546_v60 = vpop.eup %1545  ;;  %v889_v61 = vadd.f32 %v888_v31, %v755_v57  ;;  %v697_v62 = vadd.f32 %v1780_v48, %v696_v59  ;;  %v830_v63 = vpop.f32.mrf.mxu1 }
  0xf6   : > { %1014 = vst [vmem:[%s1798_s28 + $0xf8] sm:$0xff] %v1546_v60 }
  0xf7   : > { %v1548_v0 = vpop.eup %1547  ;;  %1549 = vtanh.f32 %v889_v61  ;;  %v831_v2 = vadd.f32 %v830_v63, %v697_v62 }
  0xf8   : > { %991 = vst [vmem:[%s1798_s28 + $0x40] sm:$0xff] %v1548_v0 }
  0xf9   : > { %1551 = vtanh.f32 %v831_v2 }
  0xfa   : > { %v756_v3 = vpop.f32.mrf.mxu2 }
  0xfb   : > { %v757_v4 = vadd.f32 %v1780_v48, %v756_v3  ;;  %v895_v5 = vpop.f32.mrf.mxu3 }
  0xfc   : > { %v699_v6 = vpop.f32.mrf.mxu0 }
  0xfd   : > { %v1550_v7 = vpop.eup %1549  ;;  %v891_v8 = vadd.f32 %v890_v46, %v757_v4  ;;  %v700_v9 = vadd.f32 %v1780_v48, %v699_v6  ;;  %v833_v10 = vpop.f32.mrf.mxu1 }
  0xfe   : > { %1015 = vst [vmem:[%s1798_s28 + $0x100] sm:$0xff] %v1550_v7 }
  0xff   : > { %v1552_v11 = vpop.eup %1551  ;;  %1553 = vtanh.f32 %v891_v8  ;;  %v834_v12 = vadd.f32 %v833_v10, %v700_v9 }
 0x100   : > { %992 = vst [vmem:[%s1798_s28 + $0x48] sm:$0xff] %v1552_v11 }
 0x101   : > { %1555 = vtanh.f32 %v834_v12 }
 0x102   : > { %v759_v13 = vpop.f32.mrf.mxu2 }
 0x103   : > { %v760_v14 = vadd.f32 %v1780_v48, %v759_v13  ;;  %v898_v15 = vpop.f32.mrf.mxu3 }
 0x104   : > { %v701_v17 = vpop.f32.mrf.mxu0 }
 0x105   : > { %v1554_v18 = vpop.eup %1553  ;;  %v894_v19 = vadd.f32 %v893_v58, %v760_v14  ;;  %v702_v20 = vadd.f32 %v1780_v48, %v701_v17  ;;  %v835_v21 = vpop.f32.mrf.mxu1 }
 0x106   : > { %1016 = vst [vmem:[%s1798_s28 + $0x108] sm:$0xff] %v1554_v18 }
 0x107   : > { %v1556_v22 = vpop.eup %1555  ;;  %1557 = vtanh.f32 %v894_v19  ;;  %v836_v23 = vadd.f32 %v835_v21, %v702_v20 }
 0x108   : > { %993 = vst [vmem:[%s1798_s28 + $0x50] sm:$0xff] %v1556_v22 }
 0x109   : > { %1559 = vtanh.f32 %v836_v23 }
 0x10a   : > { %v761_v24 = vpop.f32.mrf.mxu2 }
 0x10b   : > { %v762_v25 = vadd.f32 %v1780_v48, %v761_v24  ;;  %v900_v26 = vpop.f32.mrf.mxu3 }
 0x10c   : > { %v704_v27 = vpop.f32.mrf.mxu0 }
 0x10d   : > { %v1558_v28 = vpop.eup %1557  ;;  %v896_v29 = vadd.f32 %v895_v5, %v762_v25  ;;  %v705_v30 = vadd.f32 %v1780_v48, %v704_v27  ;;  %v838_v31 = vpop.f32.mrf.mxu1 }
 0x10e   : > { %1017 = vst [vmem:[%s1798_s28 + $0x110] sm:$0xff] %v1558_v28 }
 0x10f   : > { %v1560_v32 = vpop.eup %1559  ;;  %1561 = vtanh.f32 %v896_v29  ;;  %v839_v33 = vadd.f32 %v838_v31, %v705_v30 }
 0x110   : > { %994 = vst [vmem:[%s1798_s28 + $0x58] sm:$0xff] %v1560_v32 }
 0x111   : > { %1563 = vtanh.f32 %v839_v33 }
 0x112   : > { %v764_v34 = vpop.f32.mrf.mxu2 }
 0x113   : > { %v765_v35 = vadd.f32 %v1780_v48, %v764_v34  ;;  %v903_v36 = vpop.f32.mrf.mxu3 }
 0x114   : > { %v706_v37 = vpop.f32.mrf.mxu0 }
 0x115   : > { %v1562_v38 = vpop.eup %1561  ;;  %v899_v39 = vadd.f32 %v898_v15, %v765_v35  ;;  %v707_v40 = vadd.f32 %v1780_v48, %v706_v37  ;;  %v840_v41 = vpop.f32.mrf.mxu1 }
 0x116   : > { %1018 = vst [vmem:[%s1798_s28 + $0x118] sm:$0xff] %v1562_v38 }
 0x117   : > { %v1564_v42 = vpop.eup %1563  ;;  %1565 = vtanh.f32 %v899_v39  ;;  %v841_v43 = vadd.f32 %v840_v41, %v707_v40 }
 0x118   : > { %995 = vst [vmem:[%s1798_s28 + $0x60] sm:$0xff] %v1564_v42 }
 0x119   : > { %1567 = vtanh.f32 %v841_v43 }
 0x11a   : > { %v766_v44 = vpop.f32.mrf.mxu2 }
 0x11b   : > { %v767_v45 = vadd.f32 %v1780_v48, %v766_v44  ;;  %v905_v46 = vpop.f32.mrf.mxu3 }
 0x11c   : > { %v709_v47 = vpop.f32.mrf.mxu0 }
 0x11d   : > { %v1566_v49 = vpop.eup %1565  ;;  %v901_v50 = vadd.f32 %v900_v26, %v767_v45  ;;  %v710_v51 = vadd.f32 %v1780_v48, %v709_v47  ;;  %v843_v52 = vpop.f32.mrf.mxu1 }
 0x11e   : > { %1019 = vst [vmem:[%s1798_s28 + $0x120] sm:$0xff] %v1566_v49 }
 0x11f   : > { %v1568_v53 = vpop.eup %1567  ;;  %1569 = vtanh.f32 %v901_v50  ;;  %v844_v54 = vadd.f32 %v843_v52, %v710_v51 }
 0x120   : > { %996 = vst [vmem:[%s1798_s28 + $0x68] sm:$0xff] %v1568_v53 }
 0x121   : > { %1571 = vtanh.f32 %v844_v54 }
 0x122   : > { %v769_v55 = vpop.f32.mrf.mxu2 }
 0x123   : > { %v770_v56 = vadd.f32 %v1780_v48, %v769_v55  ;;  %v908_v57 = vpop.f32.mrf.mxu3 }
 0x124   : > { %v711_v58 = vpop.f32.mrf.mxu0 }
 0x125   : > { %v1570_v59 = vpop.eup %1569  ;;  %v904_v60 = vadd.f32 %v903_v36, %v770_v56  ;;  %v712_v61 = vadd.f32 %v1780_v48, %v711_v58  ;;  %v845_v62 = vpop.f32.mrf.mxu1 }
 0x126   : > { %1020 = vst [vmem:[%s1798_s28 + $0x128] sm:$0xff] %v1570_v59 }
 0x127   : > { %v1572_v63 = vpop.eup %1571  ;;  %1573 = vtanh.f32 %v904_v60  ;;  %v846_v0 = vadd.f32 %v845_v62, %v712_v61 }
 0x128   : > { %997 = vst [vmem:[%s1798_s28 + $0x70] sm:$0xff] %v1572_v63 }
 0x129   : > { %1575 = vtanh.f32 %v846_v0 }
 0x12a   : > { %v771_v2 = vpop.f32.mrf.mxu2 }
 0x12b   : > { %v772_v3 = vadd.f32 %v1780_v48, %v771_v2  ;;  %v910_v5 = vpop.f32.mrf.mxu3 }
 0x12c   : > { %v714_v4 = vpop.f32.mrf.mxu0 }
 0x12d   : > { %v1574_v6 = vpop.eup %1573  ;;  %v906_v7 = vadd.f32 %v905_v46, %v772_v3  ;;  %v715_v8 = vadd.f32 %v1780_v48, %v714_v4  ;;  %v848_v9 = vpop.f32.mrf.mxu1 }
 0x12e   : > { %1021 = vst [vmem:[%s1798_s28 + $0x130] sm:$0xff] %v1574_v6 }
 0x12f   : > { %v1576_v10 = vpop.eup %1575  ;;  %1577 = vtanh.f32 %v906_v7  ;;  %v849_v11 = vadd.f32 %v848_v9, %v715_v8 }
 0x130   : > { %998 = vst [vmem:[%s1798_s28 + $0x78] sm:$0xff] %v1576_v10 }
 0x131   : > { %1579 = vtanh.f32 %v849_v11 }
 0x132   : > { %v774_v12 = vpop.f32.mrf.mxu2 }
 0x133   : > { %v775_v13 = vadd.f32 %v1780_v48, %v774_v12  ;;  %v913_v20 = vpop.f32.mrf.mxu3 }
 0x134   : > { %v716_v14 = vpop.f32.mrf.mxu0 }
 0x135   : > { %v1578_v15 = vpop.eup %1577  ;;  %v909_v17 = vadd.f32 %v908_v57, %v775_v13  ;;  %v717_v18 = vadd.f32 %v1780_v48, %v716_v14  ;;  %v850_v19 = vpop.f32.mrf.mxu1 }
 0x136   : > { %1022 = vst [vmem:[%s1798_s28 + $0x138] sm:$0xff] %v1578_v15 }
 0x137   : > { %v1580_v21 = vpop.eup %1579  ;;  %1581 = vtanh.f32 %v909_v17  ;;  %v851_v22 = vadd.f32 %v850_v19, %v717_v18 }
 0x138   : > { %999 = vst [vmem:[%s1798_s28 + $0x80] sm:$0xff] %v1580_v21 }
 0x139   : > { %1583 = vtanh.f32 %v851_v22 }
 0x13a   : > { %v776_v23 = vpop.f32.mrf.mxu2 }
 0x13b   : > { %v777_v24 = vadd.f32 %v1780_v48, %v776_v23  ;;  %v915_v32 = vpop.f32.mrf.mxu3  ;;  %v735_v23 = vadd.f32 %v1780_v48, %v1791_v1 }
 0x13c   : > { %v719_v25 = vpop.f32.mrf.mxu0 }
 0x13d   : > { %v1582_v26 = vpop.eup %1581  ;;  %v911_v27 = vadd.f32 %v910_v5, %v777_v24  ;;  %v720_v28 = vadd.f32 %v1780_v48, %v719_v25  ;;  %v853_v29 = vpop.f32.mrf.mxu1 }
 0x13e   : > { %1023 = vst [vmem:[%s1798_s28 + $0x140] sm:$0xff] %v1582_v26 }
 0x13f   : > { %v1584_v30 = vpop.eup %1583  ;;  %1585 = vtanh.f32 %v911_v27  ;;  %v854_v31 = vadd.f32 %v853_v29, %v720_v28 }
 0x140   : > { %1000 = vst [vmem:[%s1798_s28 + $0x88] sm:$0xff] %v1584_v30 }
 0x141   : > { %1587 = vtanh.f32 %v854_v31 }
 0x142   : > { %v779_v33 = vpop.f32.mrf.mxu2 }
 0x143   : > { %v780_v34 = vadd.f32 %v1780_v48, %v779_v33  ;;  %v918_v43 = vpop.f32.mrf.mxu3 }
 0x144   : > { %v721_v35 = vpop.f32.mrf.mxu0 }
 0x145   : > { %v1586_v36 = vpop.eup %1585  ;;  %v914_v37 = vadd.f32 %v913_v20, %v780_v34  ;;  %v722_v38 = vadd.f32 %v1780_v48, %v721_v35  ;;  %v855_v39 = vpop.f32.mrf.mxu1 }
 0x146   : > { %1024 = vst [vmem:[%s1798_s28 + $0x148] sm:$0xff] %v1586_v36 }
 0x147   : > { %v1588_v40 = vpop.eup %1587  ;;  %1589 = vtanh.f32 %v914_v37  ;;  %v856_v41 = vadd.f32 %v855_v39, %v722_v38 }
 0x148   : > { %1001 = vst [vmem:[%s1798_s28 + $0x90] sm:$0xff] %v1588_v40 }
 0x149   : > { %1591 = vtanh.f32 %v856_v41 }
 0x14a   : > { %v781_v42 = vpop.f32.mrf.mxu2 }
 0x14b   : > { %v782_v44 = vadd.f32 %v1780_v48, %v781_v42  ;;  %v920_v56 = vpop.f32.mrf.mxu3 }
 0x14c   : > { %v724_v45 = vpop.f32.mrf.mxu0 }
 0x14d   : > { %v1590_v46 = vpop.eup %1589  ;;  %v916_v47 = vadd.f32 %v915_v32, %v782_v44  ;;  %v725_v49 = vadd.f32 %v1780_v48, %v724_v45  ;;  %v858_v50 = vpop.f32.mrf.mxu1  ;;  %v737_v32 = vadd.f32 %v1780_v48, %v1810_v16 }
 0x14e   : > { %1025 = vst [vmem:[%s1798_s28 + $0x150] sm:$0xff] %v1590_v46 }
 0x14f   : > { %v1592_v51 = vpop.eup %1591  ;;  %1593 = vtanh.f32 %v916_v47  ;;  %v859_v52 = vadd.f32 %v858_v50, %v725_v49 }
 0x150   : > { %1002 = vst [vmem:[%s1798_s28 + $0x98] sm:$0xff] %v1592_v51 }
 0x151   : > { %1595 = vtanh.f32 %v859_v52 }
 0x152   : > { %v784_v53 = vpop.f32.mrf.mxu2 }
 0x153   : > { %v785_v54 = vadd.f32 %v1780_v48, %v784_v53  ;;  %v923_v7 = vpop.f32.mrf.mxu3 }
 0x154   : > { %v726_v55 = vpop.f32.mrf.mxu0 }
 0x155   : > { %v1594_v57 = vpop.eup %1593  ;;  %v919_v58 = vadd.f32 %v918_v43, %v785_v54  ;;  %v727_v59 = vadd.f32 %v1780_v48, %v726_v55  ;;  %v860_v60 = vpop.f32.mrf.mxu1 }
 0x156   : > { %1026 = vst [vmem:[%s1798_s28 + $0x158] sm:$0xff] %v1594_v57 }
 0x157   : > { %v1596_v61 = vpop.eup %1595  ;;  %1597 = vtanh.f32 %v919_v58  ;;  %v861_v62 = vadd.f32 %v860_v60, %v727_v59 }
 0x158   : > { %1003 = vst [vmem:[%s1798_s28 + $0xa0] sm:$0xff] %v1596_v61 }
 0x159   : > { %1599 = vtanh.f32 %v861_v62 }
 0x15a   : > { %v786_v63 = vpop.f32.mrf.mxu2 }
 0x15b   : > { %v787_v0 = vadd.f32 %v1780_v48, %v786_v63  ;;  %v925_v20 = vpop.f32.mrf.mxu3 }
 0x15c   : > { %v729_v2 = vpop.f32.mrf.mxu0 }
 0x15d   : > { %v1598_v3 = vpop.eup %1597  ;;  %v921_v4 = vadd.f32 %v920_v56, %v787_v0  ;;  %v730_v5 = vadd.f32 %v1780_v48, %v729_v2  ;;  %v863_v6 = vpop.f32.mrf.mxu1 }
 0x15e   : > { %1027 = vst [vmem:[%s1798_s28 + $0x160] sm:$0xff] %v1598_v3 }
 0x15f   : > { %v1600_v8 = vpop.eup %1599  ;;  %1601 = vtanh.f32 %v921_v4  ;;  %v864_v9 = vadd.f32 %v863_v6, %v730_v5 }
 0x160   : > { %1004 = vst [vmem:[%s1798_s28 + $0xa8] sm:$0xff] %v1600_v8 }
 0x161   : > { %1603 = vtanh.f32 %v864_v9 }
 0x162   : > { %v789_v10 = vpop.f32.mrf.mxu2 }
 0x163   : > { %v790_v11 = vadd.f32 %v1780_v48, %v789_v10  ;;  %v928_v29 = vpop.f32.mrf.mxu3 }
 0x164   : > { %v731_v12 = vpop.f32.mrf.mxu0 }
 0x165   : > { %v1602_v13 = vpop.eup %1601  ;;  %v924_v14 = vadd.f32 %v923_v7, %v790_v11  ;;  %v732_v15 = vadd.f32 %v1780_v48, %v731_v12  ;;  %v865_v17 = vpop.f32.mrf.mxu1 }
 0x166   : > { %1028 = vst [vmem:[%s1798_s28 + $0x168] sm:$0xff] %v1602_v13 }
 0x167   : > { %v1604_v18 = vpop.eup %1603  ;;  %1605 = vtanh.f32 %v924_v14  ;;  %v866_v19 = vadd.f32 %v865_v17, %v732_v15 }
 0x168   : > { %1005 = vst [vmem:[%s1798_s28 + $0xb0] sm:$0xff] %v1604_v18 }
 0x169   : > { %1607 = vtanh.f32 %v866_v19 }
 0x16a   : > { %v791_v21 = vpop.f32.mrf.mxu2 }
 0x16b   : > { %v792_v22 = vadd.f32 %v1780_v48, %v791_v21  ;;  %v930_v39 = vpop.f32.mrf.mxu3 }
 0x16d   : > { %v1606_v24 = vpop.eup %1605  ;;  %v926_v25 = vadd.f32 %v925_v20, %v792_v22  ;;  %v868_v26 = vpop.f32.mrf.mxu1 }
 0x16e   : > { %1029 = vst [vmem:[%s1798_s28 + $0x170] sm:$0xff] %v1606_v24  ;;  %v869_v27 = vadd.f32 %v868_v26, %v735_v23 }
 0x16f   : > { %v1608_v28 = vpop.eup %1607  ;;  %1609 = vtanh.f32 %v926_v25 }
 0x170   : > { %1006 = vst [vmem:[%s1798_s28 + $0xb8] sm:$0xff] %v1608_v28  ;;  %1611 = vtanh.f32 %v869_v27 }
 0x172   : > { %v794_v30 = vpop.f32.mrf.mxu2 }
 0x173   : > { %v795_v31 = vadd.f32 %v1780_v48, %v794_v30 }
 0x175   : > { %v1610_v1 = vpop.eup %1609  ;;  %v929_v33 = vadd.f32 %v928_v29, %v795_v31  ;;  %v870_v34 = vpop.f32.mrf.mxu1 }
 0x176   : > { %v1612_v35 = vpop.eup %1611  ;;  %1030 = vst [vmem:[%s1798_s28 + $0x178] sm:$0xff] %v1610_v1  ;;  %v871_v36 = vadd.f32 %v870_v34, %v737_v32 }
 0x177   : > { %1007 = vst [vmem:[%s1798_s28 + $0xc0] sm:$0xff] %v1612_v35  ;;  %1613 = vtanh.f32 %v929_v33 }
 0x178   : > { %1615 = vtanh.f32 %v871_v36 }
 0x17a   : > { %v796_v37 = vpop.f32.mrf.mxu2 }
 0x17b   : > { %v797_v38 = vadd.f32 %v1780_v48, %v796_v37 }
 0x17d   : > { %v1614_v40 = vpop.eup %1613  ;;  %v931_v41 = vadd.f32 %v930_v39, %v797_v38 }
 0x17e   : > { %v1616_v42 = vpop.eup %1615  ;;  %1031 = vst [vmem:[%s1798_s28 + $0x180] sm:$0xff] %v1614_v40 }
 0x17f   : > { %1008 = vst [vmem:[%s1798_s28 + $0xc8] sm:$0xff] %v1616_v42  ;;  %1617 = vtanh.f32 %v931_v41 }
 0x185   : > { %v1618_v16 = vpop.eup %1617 }
 0x186   : > { %1032 = vst [vmem:[%s1798_s28 + $0x188] sm:$0xff] %v1618_v16 }
 0x187 PF: > { %s13_s14 = sadd.s32 1, %s1641_s14   ;;  %s1944_s12 = smov %s1637_s13 }
 0x188   : > { %p10_p5 = scmp.ge.s32.totalorder %s13_s14, 6   ;;  %s1945_s13 = smov %s1947_s15 }
 0x18a   :  { %12 = sbr.rel (!%p10_p5) target bundleno = 2 (0x2), region = 65 }

</bundles_post_ra>
